<compile_context>
chip_gen: v6e
topology: v6e:2x2x1
jax: 0.10.0
libtpu: 0.0.40
codegen_flags: <defaults>
</compile_context>

<pallas_src>
import functools
import math

import jax
import jax.numpy as jnp
from jax.experimental import pallas as pl
from jax.experimental.pallas import tpu as pltpu


_NEG = -1e9  # additive mask value (matches the usual PyTorch masked_fill)

_ENC_KEYS = ("wqkv", "bqkv", "wo", "bo", "ln1_g", "ln1_b",
             "w1", "b1", "w2", "b2", "ln2_g", "ln2_b")
_DEC_KEYS = ("s_wqkv", "s_bqkv", "s_wo", "s_bo", "ln1_g", "ln1_b",
             "c_wq", "c_bq", "c_wkv", "c_bkv", "c_wo", "c_bo", "ln2_g", "ln2_b",
             "w1", "b1", "w2", "b2", "ln3_g", "ln3_b")


# ------------------------- in-kernel helper functions ------------------------

def _layernorm_f32(x, g, b, eps=1e-5):
    """nn.LayerNorm (biased variance, eps=1e-5), statistics in f32."""
    mean = jnp.mean(x, axis=-1, keepdims=True)
    var = jnp.mean((x - mean) ** 2, axis=-1, keepdims=True)
    return (x - mean) * jax.lax.rsqrt(var + eps) * g + b


def _dot_bias(x, w, b):
    """bf16 MXU matmul with f32 accumulation: x(f32) @ w(bf16) + b(f32,(1,N))."""
    return jnp.dot(x.astype(w.dtype), w, preferred_element_type=jnp.float32) + b


def _mha(q, k, v, bias, n_head):
    """Multi-head attention core, batched over the batch rows in the block.

    q: (Bs, Lq, D), k/v: (Bs, Lk, D) f32; `bias` additive, broadcastable to
    (Bs, Lq, Lk).  1/sqrt(dk) is already folded into the Q projection weights.
    Heads are a small static unroll; each head's dots are batched over Bs with
    leading-batch einsums (Mosaic-friendly dot_general).
    TODO(synk): at long sequence lengths switch the head unroll to
    lax.fori_loop / flash-style KV tiling to bound live score matrices.
    """
    D = q.shape[-1]
    dk = D // n_head
    outs = []
    for h in range(n_head):                          # static unroll (n_head small)
        sl = slice(h * dk, (h + 1) * dk)
        s = jnp.einsum('bqd,bkd->bqk', q[..., sl], k[..., sl],
                       preferred_element_type=jnp.float32) + bias
        s = s - jnp.max(s, axis=-1, keepdims=True)   # == F.softmax(dim=-1)
        p = jnp.exp(s)
        p = p * pl.reciprocal(jnp.sum(p, axis=-1, keepdims=True), approx=True)
        outs.append(jnp.einsum('bqk,bkd->bqd', p, v[..., sl],
                               preferred_element_type=jnp.float32))
    return jnp.concatenate(outs, axis=-1)            # (Bs, Lq, D)


# ----------------------------- fused stack kernels ---------------------------

def _encoder_stack_kernel(x_ref, kpad_ref, *refs, n_layers, n_head):
    """All encoder layers in one kernel.  Weights carry a leading layer axis."""
    (wqkv, bqkv, wo, bo, ln1g, ln1b,
     w1, b1, w2, b2, ln2g, ln2b, o_ref) = refs

    Bs, L, D = x_ref.shape
    x2 = x_ref[...].reshape(Bs * L, D)               # (tokens, D) f32
    kbias = kpad_ref[...]                            # (Bs, 1, L) key-pad bias

    for l in range(n_layers):                        # static unroll
        # fused QKV projection on the stacked token matrix (M = Bs*L)
        qkv = _dot_bias(x2, wqkv[l], bqkv[l])        # (Bs*L, 3D)
        q3 = qkv.reshape(Bs, L, 3 * D)
        attn = _mha(q3[..., :D], q3[..., D:2 * D], q3[..., 2 * D:],
                    kbias, n_head)                   # (Bs, L, D)
        h1 = _layernorm_f32(
            x2 + _dot_bias(attn.reshape(Bs * L, D), wo[l], bo[l]),
            ln1g[l], ln1b[l])
        # position-wise FFN + residual + LayerNorm
        f = jnp.maximum(_dot_bias(h1, w1[l], b1[l]), 0.0)
        f = _dot_bias(f, w2[l], b2[l])
        x2 = _layernorm_f32(h1 + f, ln2g[l], ln2b[l])

    o_ref[...] = x2.reshape(Bs, L, D)


def _decoder_stack_kernel(y_ref, enc_ref, tpad_ref, cpad_ref, *refs,
                          n_layers, n_head):
    """All decoder layers + classifier epilogue in one kernel."""
    (s_wqkv, s_bqkv, s_wo, s_bo, ln1g, ln1b,
     c_wq, c_bq, c_wkv, c_bkv, c_wo, c_bo, ln2g, ln2b,
     w1, b1, w2, b2, ln3g, ln3b,
     cls_w, cls_b, o_ref) = refs

    Bs, Lt, D = y_ref.shape
    Ls = enc_ref.shape[1]
    y2 = y_ref[...].reshape(Bs * Lt, D)
    enc2 = enc_ref[...].reshape(Bs * Ls, D)

    # causal bias generated in-kernel (saves the (B, Lt, Lt) HBM tensor)
    row = jax.lax.broadcasted_iota(jnp.int32, (Lt, Lt), 0)
    col = jax.lax.broadcasted_iota(jnp.int32, (Lt, Lt), 1)
    causal = (col > row).astype(jnp.float32) * _NEG          # (Lt, Lt)
    self_bias = tpad_ref[...] + causal[None]                 # (Bs, Lt, Lt)
    cross_bias = cpad_ref[...]                               # (Bs, 1, Ls)

    for l in range(n_layers):                                # static unroll
        # masked self-attention (fused QKV)
        qkv = _dot_bias(y2, s_wqkv[l], s_bqkv[l])            # (Bs*Lt, 3D)
        q3 = qkv.reshape(Bs, Lt, 3 * D)
        attn = _mha(q3[..., :D], q3[..., D:2 * D], q3[..., 2 * D:],
                    self_bias, n_head)
        h1 = _layernorm_f32(
            y2 + _dot_bias(attn.reshape(Bs * Lt, D), s_wo[l], s_bo[l]),
            ln1g[l], ln1b[l])

        # cross-attention (queries from decoder, fused K|V from encoder output)
        cq = _dot_bias(h1, c_wq[l], c_bq[l]).reshape(Bs, Lt, D)
        ckv = _dot_bias(enc2, c_wkv[l], c_bkv[l]).reshape(Bs, Ls, 2 * D)
        cattn = _mha(cq, ckv[..., :D], ckv[..., D:], cross_bias, n_head)
        h2 = _layernorm_f32(
            h1 + _dot_bias(cattn.reshape(Bs * Lt, D), c_wo[l], c_bo[l]),
            ln2g[l], ln2b[l])

        # position-wise FFN
        f = jnp.maximum(_dot_bias(h2, w1[l], b1[l]), 0.0)
        f = _dot_bias(f, w2[l], b2[l])
        y2 = _layernorm_f32(h2 + f, ln3g[l], ln3b[l])

    # fused classifier epilogue (lane-dense, N padded to a 128 multiple)
    logits = _dot_bias(y2, cls_w[...], cls_b[...])           # (Bs*Lt, Np)
    o_ref[...] = logits.reshape(Bs, Lt, cls_w.shape[1])


# ------------------------------ pallas_call wrappers -------------------------

def _wspec(shape):
    """Grid-invariant (resident) weight/bias BlockSpec (whole array = 1 block)."""
    return pl.BlockSpec(shape, lambda *_: (0,) * len(shape))


def encoder_stack(ep, x, enc_pad_bias, *, n_head, num_batch_splits=1):
    B, L, D = x.shape
    assert B % num_batch_splits == 0
    Bs = B // num_batch_splits
    n_layers = ep["wqkv"].shape[0]
    weights = [ep[k] for k in _ENC_KEYS]
    kern = functools.partial(_encoder_stack_kernel,
                             n_layers=n_layers, n_head=n_head)
    return pl.pallas_call(
        kern,
        out_shape=jax.ShapeDtypeStruct((B, L, D), jnp.float32),
        grid=(num_batch_splits,),
        in_specs=[pl.BlockSpec((Bs, L, D), lambda s: (s, 0, 0)),
                  pl.BlockSpec((Bs, 1, L), lambda s: (s, 0, 0))]
                 + [_wspec(w.shape) for w in weights],
        out_specs=pl.BlockSpec((Bs, L, D), lambda s: (s, 0, 0)),
        compiler_params=pltpu.CompilerParams(dimension_semantics=("parallel",)),
    )(x, enc_pad_bias, *weights)


def decoder_stack(dp, y, enc_out, tgt_pad_bias, cross_pad_bias, cls_w, cls_b, *,
                  n_head, num_batch_splits=1):
    B, Lt, D = y.shape
    Ls = enc_out.shape[1]
    Np = cls_w.shape[1]
    assert B % num_batch_splits == 0
    Bs = B // num_batch_splits
    n_layers = dp["s_wqkv"].shape[0]
    weights = [dp[k] for k in _DEC_KEYS] + [cls_w, cls_b]
    kern = functools.partial(_decoder_stack_kernel,
                             n_layers=n_layers, n_head=n_head)
    return pl.pallas_call(
        kern,
        out_shape=jax.ShapeDtypeStruct((B, Lt, Np), jnp.float32),
        grid=(num_batch_splits,),
        in_specs=[pl.BlockSpec((Bs, Lt, D), lambda s: (s, 0, 0)),
                  pl.BlockSpec((Bs, Ls, D), lambda s: (s, 0, 0)),
                  pl.BlockSpec((Bs, 1, Lt), lambda s: (s, 0, 0)),
                  pl.BlockSpec((Bs, 1, Ls), lambda s: (s, 0, 0))]
                 + [_wspec(w.shape) for w in weights],
        out_specs=pl.BlockSpec((Bs, Lt, Np), lambda s: (s, 0, 0)),
        compiler_params=pltpu.CompilerParams(dimension_semantics=("parallel",)),
    )(y, enc_out, tgt_pad_bias, cross_pad_bias, *weights)


# ------------------------------ model (glue) --------------------------------

def positional_encoding(max_len, d_model):
    pos = jnp.arange(max_len, dtype=jnp.float32)[:, None]
    i = jnp.arange(0, d_model, 2, dtype=jnp.float32)
    div = jnp.exp(-math.log(10000.0) * i / d_model)
    pe = jnp.zeros((max_len, d_model), jnp.float32)
    pe = pe.at[:, 0::2].set(jnp.sin(pos * div))
    pe = pe.at[:, 1::2].set(jnp.cos(pos * div))
    return pe


def embed(table, tokens, d_model, pe):
    # TODO(synk): embedding lookup (gather) stays in XLA; no clean Pallas win.
    x = jnp.take(table, tokens, axis=0) * math.sqrt(d_model)
    return x + pe[None, : tokens.shape[1], :]


def transformer_forward(params, src, tgt, *, d_model, n_head, num_batch_splits=1):
    """num_batch_splits: set to 2 on v7x (2 TensorCores); 1 on v5e/v6e."""
    B, Ls = src.shape
    _, Lt = tgt.shape
    pe = params["pe"]

    # additive key-pad biases (pad token == 0); head/query broadcast in-kernel,
    # decoder causal mask generated inside the kernel.
    enc_bias = ((src == 0).astype(jnp.float32) * _NEG)[:, None, :]   # (B,1,Ls)
    tgt_pad = ((tgt == 0).astype(jnp.float32) * _NEG)[:, None, :]    # (B,1,Lt)

    # encoder: ONE fused pallas_call for the whole stack
    x = embed(params["src_emb"], src, d_model, pe)
    ec_out = encoder_stack(params["enc"], x, enc_bias,
                           n_head=n_head, num_batch_splits=num_batch_splits)

    # decoder + classifier epilogue: ONE fused pallas_call
    y = embed(params["tgt_emb"], tgt, d_model, pe)
    logits = decoder_stack(params["dec"], y, ec_out, tgt_pad, enc_bias,
                           params["cls_w"], params["cls_b"],
                           n_head=n_head, num_batch_splits=num_batch_splits)

    # view(-1, tgt_v_size): drop the lane padding of the classifier
    tgt_v = params["tgt_emb"].shape[0]
    return logits.reshape(B * Lt, -1)[:, :tgt_v]                     # (B*Lt, V)


# --------------------------- parameter creation ------------------------------

def init_params(key, src_v, tgt_v, d_model, d_ff, n_layers, n_head, max_len):
    keys = iter(jax.random.split(key, 64))
    scale = 1.0 / math.sqrt(d_model // n_head)

    def dense(din, dout, n=None, q_scale_cols=0):
        # matmul weights bf16 (f32 accumulation in-kernel); biases f32.
        shape = (din, dout) if n is None else (n, din, dout)
        w = jax.random.normal(next(keys), shape, jnp.float32) * 0.02
        b = jnp.zeros(shape[:-2] + (1, dout), jnp.float32)
        if q_scale_cols:
            # fold the 1/sqrt(dk) attention scale into the Q projection
            w = w.at[..., :q_scale_cols].multiply(scale)
            b = b.at[..., :q_scale_cols].multiply(scale)
        return w.astype(jnp.bfloat16), b

    def ln(n):
        return (jnp.ones((n, 1, d_model), jnp.float32),
                jnp.zeros((n, 1, d_model), jnp.float32))

    N = n_layers
    enc = {}
    enc["wqkv"], enc["bqkv"] = dense(d_model, 3 * d_model, N, q_scale_cols=d_model)
    enc["wo"], enc["bo"] = dense(d_model, d_model, N)
    enc["ln1_g"], enc["ln1_b"] = ln(N)
    enc["w1"], enc["b1"] = dense(d_model, d_ff, N)
    enc["w2"], enc["b2"] = dense(d_ff, d_model, N)
    enc["ln2_g"], enc["ln2_b"] = ln(N)

    dec = {}
    dec["s_wqkv"], dec["s_bqkv"] = dense(d_model, 3 * d_model, N, q_scale_cols=d_model)
    dec["s_wo"], dec["s_bo"] = dense(d_model, d_model, N)
    dec["ln1_g"], dec["ln1_b"] = ln(N)
    dec["c_wq"], dec["c_bq"] = dense(d_model, d_model, N, q_scale_cols=d_model)
    dec["c_wkv"], dec["c_bkv"] = dense(d_model, 2 * d_model, N)
    dec["c_wo"], dec["c_bo"] = dense(d_model, d_model, N)
    dec["ln2_g"], dec["ln2_b"] = ln(N)
    dec["w1"], dec["b1"] = dense(d_model, d_ff, N)
    dec["w2"], dec["b2"] = dense(d_ff, d_model, N)
    dec["ln3_g"], dec["ln3_b"] = ln(N)

    # classifier pre-padded (once) to a lane-dense 128-multiple output width
    n_pad = ((tgt_v + 127) // 128) * 128
    cls_w, cls_b = dense(d_model, tgt_v)
    cls_w = jnp.pad(cls_w, ((0, 0), (0, n_pad - tgt_v)))
    cls_b = jnp.pad(cls_b, ((0, 0), (0, n_pad - tgt_v)))

    return dict(
        src_emb=jax.random.normal(next(keys), (src_v, d_model), jnp.float32) * 0.02,
        tgt_emb=jax.random.normal(next(keys), (tgt_v, d_model), jnp.float32) * 0.02,
        pe=positional_encoding(max_len, d_model),
        enc=enc, dec=dec, cls_w=cls_w, cls_b=cls_b,
    )


# ----------------------------------- main ------------------------------------

if __name__ == "__main__":
    # small, module-consistent shapes
    SRC_V, TGT_V = 11, 13
    D_MODEL, D_FF, N_LAYERS, N_HEAD = 32, 64, 2, 4
    B, SRC_LEN, TGT_LEN = 2, 8, 8

    key = jax.random.PRNGKey(0)
    kp, ks, kt = jax.random.split(key, 3)
    params = init_params(kp, SRC_V, TGT_V, D_MODEL, D_FF, N_LAYERS, N_HEAD,
                         max_len=64)

    src = jax.random.randint(ks, (B, SRC_LEN), 0, SRC_V, dtype=jnp.int32)
    tgt = jax.random.randint(kt, (B, TGT_LEN), 0, TGT_V, dtype=jnp.int32)

    fwd = jax.jit(functools.partial(transformer_forward,
                                    d_model=D_MODEL, n_head=N_HEAD,
                                    num_batch_splits=1))  # set 2 on v7x (2 TCs)
    out = jax.block_until_ready(fwd(params, src, tgt))    # (B*TGT_LEN, TGT_V)

    assert out.shape == (B * TGT_LEN, TGT_V), out.shape
    assert bool(jnp.all(jnp.isfinite(out)))
    print("KERNEL_OK")
</pallas_src>

<mosaic_0001>
module attributes {stable_mosaic.version = 11 : i64} {
  func.func @_decoder_stack_kernel(%arg0: i32, %arg1: memref<2x8x32xf32, #tpu.memory_space<vmem>>, %arg2: memref<2x8x32xf32, #tpu.memory_space<vmem>>, %arg3: memref<2x1x8xf32, #tpu.memory_space<vmem>>, %arg4: memref<2x1x8xf32, #tpu.memory_space<vmem>>, %arg5: memref<2x32x96xbf16, #tpu.memory_space<vmem>>, %arg6: memref<2x1x96xf32, #tpu.memory_space<vmem>>, %arg7: memref<2x32x32xbf16, #tpu.memory_space<vmem>>, %arg8: memref<2x1x32xf32, #tpu.memory_space<vmem>>, %arg9: memref<2x1x32xf32, #tpu.memory_space<vmem>>, %arg10: memref<2x1x32xf32, #tpu.memory_space<vmem>>, %arg11: memref<2x32x32xbf16, #tpu.memory_space<vmem>>, %arg12: memref<2x1x32xf32, #tpu.memory_space<vmem>>, %arg13: memref<2x32x64xbf16, #tpu.memory_space<vmem>>, %arg14: memref<2x1x64xf32, #tpu.memory_space<vmem>>, %arg15: memref<2x32x32xbf16, #tpu.memory_space<vmem>>, %arg16: memref<2x1x32xf32, #tpu.memory_space<vmem>>, %arg17: memref<2x1x32xf32, #tpu.memory_space<vmem>>, %arg18: memref<2x1x32xf32, #tpu.memory_space<vmem>>, %arg19: memref<2x32x64xbf16, #tpu.memory_space<vmem>>, %arg20: memref<2x1x64xf32, #tpu.memory_space<vmem>>, %arg21: memref<2x64x32xbf16, #tpu.memory_space<vmem>>, %arg22: memref<2x1x32xf32, #tpu.memory_space<vmem>>, %arg23: memref<2x1x32xf32, #tpu.memory_space<vmem>>, %arg24: memref<2x1x32xf32, #tpu.memory_space<vmem>>, %arg25: memref<32x128xbf16, #tpu.memory_space<vmem>>, %arg26: memref<1x128xf32, #tpu.memory_space<vmem>>, %arg27: memref<2x8x128xf32, #tpu.memory_space<vmem>>) attributes {dimension_semantics = [#tpu.dimension_semantics<parallel>], iteration_bounds = array<i64: 1>, scalar_prefetch = 0 : i64, scratch_operands = 0 : i64, tpu.core_type = #tpu.core_type<tc>, window_params = [{transform_indices = @transform_0, window_bounds = array<i64: 2, 8, 32>}, {transform_indices = @transform_1, window_bounds = array<i64: 2, 8, 32>}, {transform_indices = @transform_2, window_bounds = array<i64: 2, 1, 8>}, {transform_indices = @transform_3, window_bounds = array<i64: 2, 1, 8>}, {pipeline_mode = #tpu.pipeline_mode<synchronous>, transform_indices = @transform_4, window_bounds = array<i64: 2, 32, 96>}, {pipeline_mode = #tpu.pipeline_mode<synchronous>, transform_indices = @transform_5, window_bounds = array<i64: 2, 1, 96>}, {pipeline_mode = #tpu.pipeline_mode<synchronous>, transform_indices = @transform_6, window_bounds = array<i64: 2, 32, 32>}, {pipeline_mode = #tpu.pipeline_mode<synchronous>, transform_indices = @transform_7, window_bounds = array<i64: 2, 1, 32>}, {pipeline_mode = #tpu.pipeline_mode<synchronous>, transform_indices = @transform_8, window_bounds = array<i64: 2, 1, 32>}, {pipeline_mode = #tpu.pipeline_mode<synchronous>, transform_indices = @transform_9, window_bounds = array<i64: 2, 1, 32>}, {pipeline_mode = #tpu.pipeline_mode<synchronous>, transform_indices = @transform_10, window_bounds = array<i64: 2, 32, 32>}, {pipeline_mode = #tpu.pipeline_mode<synchronous>, transform_indices = @transform_11, window_bounds = array<i64: 2, 1, 32>}, {pipeline_mode = #tpu.pipeline_mode<synchronous>, transform_indices = @transform_12, window_bounds = array<i64: 2, 32, 64>}, {pipeline_mode = #tpu.pipeline_mode<synchronous>, transform_indices = @transform_13, window_bounds = array<i64: 2, 1, 64>}, {pipeline_mode = #tpu.pipeline_mode<synchronous>, transform_indices = @transform_14, window_bounds = array<i64: 2, 32, 32>}, {pipeline_mode = #tpu.pipeline_mode<synchronous>, transform_indices = @transform_15, window_bounds = array<i64: 2, 1, 32>}, {pipeline_mode = #tpu.pipeline_mode<synchronous>, transform_indices = @transform_16, window_bounds = array<i64: 2, 1, 32>}, {pipeline_mode = #tpu.pipeline_mode<synchronous>, transform_indices = @transform_17, window_bounds = array<i64: 2, 1, 32>}, {pipeline_mode = #tpu.pipeline_mode<synchronous>, transform_indices = @transform_18, window_bounds = array<i64: 2, 32, 64>}, {pipeline_mode = #tpu.pipeline_mode<synchronous>, transform_indices = @transform_19, window_bounds = array<i64: 2, 1, 64>}, {pipeline_mode = #tpu.pipeline_mode<synchronous>, transform_indices = @transform_20, window_bounds = array<i64: 2, 64, 32>}, {pipeline_mode = #tpu.pipeline_mode<synchronous>, transform_indices = @transform_21, window_bounds = array<i64: 2, 1, 32>}, {pipeline_mode = #tpu.pipeline_mode<synchronous>, transform_indices = @transform_22, window_bounds = array<i64: 2, 1, 32>}, {pipeline_mode = #tpu.pipeline_mode<synchronous>, transform_indices = @transform_23, window_bounds = array<i64: 2, 1, 32>}, {pipeline_mode = #tpu.pipeline_mode<synchronous>, transform_indices = @transform_24, window_bounds = array<i64: 32, 128>}, {pipeline_mode = #tpu.pipeline_mode<synchronous>, transform_indices = @transform_25, window_bounds = array<i64: 1, 128>}, {transform_indices = @transform_26, window_bounds = array<i64: 2, 8, 128>}]} {
    %c0 = arith.constant 0 : index
    %c0_0 = arith.constant 0 : index
    %c0_1 = arith.constant 0 : index
    %0 = vector.load %arg1[%c0, %c0_0, %c0_1] : memref<2x8x32xf32, #tpu.memory_space<vmem>>, vector<2x8x32xf32>
    %1 = vector.shape_cast %0 : vector<2x8x32xf32> to vector<16x32xf32>
    %c0_2 = arith.constant 0 : index
    %c0_3 = arith.constant 0 : index
    %c0_4 = arith.constant 0 : index
    %2 = vector.load %arg2[%c0_2, %c0_3, %c0_4] : memref<2x8x32xf32, #tpu.memory_space<vmem>>, vector<2x8x32xf32>
    %3 = vector.shape_cast %2 : vector<2x8x32xf32> to vector<16x32xf32>
    %4 = tpu.iota {dimensions = array<i32: 0>} : vector<8x8xi32>
    %5 = tpu.iota {dimensions = array<i32: 1>} : vector<8x8xi32>
    %6 = arith.cmpi sgt, %5, %4 : vector<8x8xi32>
    %7 = arith.extui %6 : vector<8x8xi1> to vector<8x8xi32>
    %8 = arith.sitofp %7 : vector<8x8xi32> to vector<8x8xf32>
    %cst = arith.constant -1.000000e+09 : f32
    %9 = vector.broadcast %cst : f32 to vector<8x8xf32>
    %10 = arith.mulf %8, %9 : vector<8x8xf32>
    %c0_5 = arith.constant 0 : index
    %c0_6 = arith.constant 0 : index
    %c0_7 = arith.constant 0 : index
    %11 = vector.load %arg3[%c0_5, %c0_6, %c0_7] : memref<2x1x8xf32, #tpu.memory_space<vmem>>, vector<2x1x8xf32>
    %12 = vector.shape_cast %10 : vector<8x8xf32> to vector<1x8x8xf32>
    %13 = vector.broadcast %11 : vector<2x1x8xf32> to vector<2x8x8xf32>
    %14 = vector.broadcast %12 : vector<1x8x8xf32> to vector<2x8x8xf32>
    %15 = arith.addf %13, %14 : vector<2x8x8xf32>
    %c0_8 = arith.constant 0 : index
    %c0_9 = arith.constant 0 : index
    %c0_10 = arith.constant 0 : index
    %16 = vector.load %arg4[%c0_8, %c0_9, %c0_10] : memref<2x1x8xf32, #tpu.memory_space<vmem>>, vector<2x1x8xf32>
    %c0_11 = arith.constant 0 : index
    %c0_12 = arith.constant 0 : index
    %c0_13 = arith.constant 0 : index
    %17 = vector.load %arg5[%c0_11, %c0_12, %c0_13] : memref<2x32x96xbf16, #tpu.memory_space<vmem>>, vector<1x32x96xbf16>
    %18 = vector.shape_cast %17 : vector<1x32x96xbf16> to vector<32x96xbf16>
    %c0_14 = arith.constant 0 : index
    %c0_15 = arith.constant 0 : index
    %c0_16 = arith.constant 0 : index
    %19 = vector.load %arg6[%c0_14, %c0_15, %c0_16] : memref<2x1x96xf32, #tpu.memory_space<vmem>>, vector<1x1x96xf32>
    %20 = vector.shape_cast %19 : vector<1x1x96xf32> to vector<1x96xf32>
    %21 = arith.truncf %1 : vector<16x32xf32> to vector<16x32xbf16>
    %cst_17 = arith.constant dense<0.000000e+00> : vector<16x96xf32>
    %22 = tpu.matmul %21, %18, %cst_17 {dimension_numbers = #tpu.dot_dimension_numbers<[1], [0], [0], [1], [0, 0, 1, 1], [], []>} : vector<16x32xbf16>, vector<32x96xbf16>, vector<16x96xf32> -> vector<16x96xf32>
    %23 = vector.broadcast %20 : vector<1x96xf32> to vector<16x96xf32>
    %24 = arith.addf %22, %23 : vector<16x96xf32>
    %25 = vector.shape_cast %24 : vector<16x96xf32> to vector<2x8x96xf32>
    %26 = vector.extract_strided_slice %25 {offsets = [0, 0, 0], sizes = [2, 8, 32], strides = [1, 1, 1]} : vector<2x8x96xf32> to vector<2x8x32xf32>
    %27 = vector.extract_strided_slice %25 {offsets = [0, 0, 32], sizes = [2, 8, 32], strides = [1, 1, 1]} : vector<2x8x96xf32> to vector<2x8x32xf32>
    %28 = vector.extract_strided_slice %25 {offsets = [0, 0, 64], sizes = [2, 8, 32], strides = [1, 1, 1]} : vector<2x8x96xf32> to vector<2x8x32xf32>
    %29 = vector.extract_strided_slice %26 {offsets = [0, 0, 0], sizes = [2, 8, 8], strides = [1, 1, 1]} : vector<2x8x32xf32> to vector<2x8x8xf32>
    %30 = vector.extract_strided_slice %27 {offsets = [0, 0, 0], sizes = [2, 8, 8], strides = [1, 1, 1]} : vector<2x8x32xf32> to vector<2x8x8xf32>
    "tpu.trace_start"() <{level = 10 : i32, message = "bqd,bkd->bqk"}> : () -> ()
    %cst_18 = arith.constant dense<0.000000e+00> : vector<2x8x8xf32>
    %31 = tpu.matmul %29, %30, %cst_18 {dimension_numbers = #tpu.dot_dimension_numbers<[2], [2], [1], [1], [0, 0, 0, 1, 1, 1], [0], [0]>} : vector<2x8x8xf32>, vector<2x8x8xf32>, vector<2x8x8xf32> -> vector<2x8x8xf32>
    "tpu.trace_stop"() : () -> ()
    %32 = arith.addf %31, %15 : vector<2x8x8xf32>
    %cst_19 = arith.constant dense<0xFF800000> : vector<2x8xf32>
    %33 = vector.multi_reduction <maximumf>, %32, %cst_19 [2] : vector<2x8x8xf32> to vector<2x8xf32>
    %34 = vector.shape_cast %33 : vector<2x8xf32> to vector<2x8x1xf32>
    %35 = vector.broadcast %34 : vector<2x8x1xf32> to vector<2x8x8xf32>
    %36 = arith.subf %32, %35 : vector<2x8x8xf32>
    %37 = math.exp %36 : vector<2x8x8xf32>
    %cst_20 = arith.constant dense<0.000000e+00> : vector<2x8xf32>
    %38 = vector.multi_reduction <add>, %37, %cst_20 [2] : vector<2x8x8xf32> to vector<2x8xf32>
    %39 = vector.shape_cast %38 : vector<2x8xf32> to vector<2x8x1xf32>
    %40 = tpu.reciprocal %39 {approx = true} : vector<2x8x1xf32> -> vector<2x8x1xf32>
    %41 = vector.broadcast %40 : vector<2x8x1xf32> to vector<2x8x8xf32>
    %42 = arith.mulf %37, %41 : vector<2x8x8xf32>
    %43 = vector.extract_strided_slice %28 {offsets = [0, 0, 0], sizes = [2, 8, 8], strides = [1, 1, 1]} : vector<2x8x32xf32> to vector<2x8x8xf32>
    "tpu.trace_start"() <{level = 10 : i32, message = "bqk,bkd->bqd"}> : () -> ()
    %cst_21 = arith.constant dense<0.000000e+00> : vector<2x8x8xf32>
    %44 = tpu.matmul %42, %43, %cst_21 {dimension_numbers = #tpu.dot_dimension_numbers<[2], [1], [1], [2], [0, 0, 0, 1, 1, 2], [0], [0]>} : vector<2x8x8xf32>, vector<2x8x8xf32>, vector<2x8x8xf32> -> vector<2x8x8xf32>
    "tpu.trace_stop"() : () -> ()
    %45 = vector.extract_strided_slice %26 {offsets = [0, 0, 8], sizes = [2, 8, 8], strides = [1, 1, 1]} : vector<2x8x32xf32> to vector<2x8x8xf32>
    %46 = vector.extract_strided_slice %27 {offsets = [0, 0, 8], sizes = [2, 8, 8], strides = [1, 1, 1]} : vector<2x8x32xf32> to vector<2x8x8xf32>
    "tpu.trace_start"() <{level = 10 : i32, message = "bqd,bkd->bqk"}> : () -> ()
    %cst_22 = arith.constant dense<0.000000e+00> : vector<2x8x8xf32>
    %47 = tpu.matmul %45, %46, %cst_22 {dimension_numbers = #tpu.dot_dimension_numbers<[2], [2], [1], [1], [0, 0, 0, 1, 1, 1], [0], [0]>} : vector<2x8x8xf32>, vector<2x8x8xf32>, vector<2x8x8xf32> -> vector<2x8x8xf32>
    "tpu.trace_stop"() : () -> ()
    %48 = arith.addf %47, %15 : vector<2x8x8xf32>
    %cst_23 = arith.constant dense<0xFF800000> : vector<2x8xf32>
    %49 = vector.multi_reduction <maximumf>, %48, %cst_23 [2] : vector<2x8x8xf32> to vector<2x8xf32>
    %50 = vector.shape_cast %49 : vector<2x8xf32> to vector<2x8x1xf32>
    %51 = vector.broadcast %50 : vector<2x8x1xf32> to vector<2x8x8xf32>
    %52 = arith.subf %48, %51 : vector<2x8x8xf32>
    %53 = math.exp %52 : vector<2x8x8xf32>
    %cst_24 = arith.constant dense<0.000000e+00> : vector<2x8xf32>
    %54 = vector.multi_reduction <add>, %53, %cst_24 [2] : vector<2x8x8xf32> to vector<2x8xf32>
    %55 = vector.shape_cast %54 : vector<2x8xf32> to vector<2x8x1xf32>
    %56 = tpu.reciprocal %55 {approx = true} : vector<2x8x1xf32> -> vector<2x8x1xf32>
    %57 = vector.broadcast %56 : vector<2x8x1xf32> to vector<2x8x8xf32>
    %58 = arith.mulf %53, %57 : vector<2x8x8xf32>
    %59 = vector.extract_strided_slice %28 {offsets = [0, 0, 8], sizes = [2, 8, 8], strides = [1, 1, 1]} : vector<2x8x32xf32> to vector<2x8x8xf32>
    "tpu.trace_start"() <{level = 10 : i32, message = "bqk,bkd->bqd"}> : () -> ()
    %cst_25 = arith.constant dense<0.000000e+00> : vector<2x8x8xf32>
    %60 = tpu.matmul %58, %59, %cst_25 {dimension_numbers = #tpu.dot_dimension_numbers<[2], [1], [1], [2], [0, 0, 0, 1, 1, 2], [0], [0]>} : vector<2x8x8xf32>, vector<2x8x8xf32>, vector<2x8x8xf32> -> vector<2x8x8xf32>
    "tpu.trace_stop"() : () -> ()
    %61 = vector.extract_strided_slice %26 {offsets = [0, 0, 16], sizes = [2, 8, 8], strides = [1, 1, 1]} : vector<2x8x32xf32> to vector<2x8x8xf32>
    %62 = vector.extract_strided_slice %27 {offsets = [0, 0, 16], sizes = [2, 8, 8], strides = [1, 1, 1]} : vector<2x8x32xf32> to vector<2x8x8xf32>
    "tpu.trace_start"() <{level = 10 : i32, message = "bqd,bkd->bqk"}> : () -> ()
    %cst_26 = arith.constant dense<0.000000e+00> : vector<2x8x8xf32>
    %63 = tpu.matmul %61, %62, %cst_26 {dimension_numbers = #tpu.dot_dimension_numbers<[2], [2], [1], [1], [0, 0, 0, 1, 1, 1], [0], [0]>} : vector<2x8x8xf32>, vector<2x8x8xf32>, vector<2x8x8xf32> -> vector<2x8x8xf32>
    "tpu.trace_stop"() : () -> ()
    %64 = arith.addf %63, %15 : vector<2x8x8xf32>
    %cst_27 = arith.constant dense<0xFF800000> : vector<2x8xf32>
    %65 = vector.multi_reduction <maximumf>, %64, %cst_27 [2] : vector<2x8x8xf32> to vector<2x8xf32>
    %66 = vector.shape_cast %65 : vector<2x8xf32> to vector<2x8x1xf32>
    %67 = vector.broadcast %66 : vector<2x8x1xf32> to vector<2x8x8xf32>
    %68 = arith.subf %64, %67 : vector<2x8x8xf32>
    %69 = math.exp %68 : vector<2x8x8xf32>
    %cst_28 = arith.constant dense<0.000000e+00> : vector<2x8xf32>
    %70 = vector.multi_reduction <add>, %69, %cst_28 [2] : vector<2x8x8xf32> to vector<2x8xf32>
    %71 = vector.shape_cast %70 : vector<2x8xf32> to vector<2x8x1xf32>
    %72 = tpu.reciprocal %71 {approx = true} : vector<2x8x1xf32> -> vector<2x8x1xf32>
    %73 = vector.broadcast %72 : vector<2x8x1xf32> to vector<2x8x8xf32>
    %74 = arith.mulf %69, %73 : vector<2x8x8xf32>
    %75 = vector.extract_strided_slice %28 {offsets = [0, 0, 16], sizes = [2, 8, 8], strides = [1, 1, 1]} : vector<2x8x32xf32> to vector<2x8x8xf32>
    "tpu.trace_start"() <{level = 10 : i32, message = "bqk,bkd->bqd"}> : () -> ()
    %cst_29 = arith.constant dense<0.000000e+00> : vector<2x8x8xf32>
    %76 = tpu.matmul %74, %75, %cst_29 {dimension_numbers = #tpu.dot_dimension_numbers<[2], [1], [1], [2], [0, 0, 0, 1, 1, 2], [0], [0]>} : vector<2x8x8xf32>, vector<2x8x8xf32>, vector<2x8x8xf32> -> vector<2x8x8xf32>
    "tpu.trace_stop"() : () -> ()
    %77 = vector.extract_strided_slice %26 {offsets = [0, 0, 24], sizes = [2, 8, 8], strides = [1, 1, 1]} : vector<2x8x32xf32> to vector<2x8x8xf32>
    %78 = vector.extract_strided_slice %27 {offsets = [0, 0, 24], sizes = [2, 8, 8], strides = [1, 1, 1]} : vector<2x8x32xf32> to vector<2x8x8xf32>
    "tpu.trace_start"() <{level = 10 : i32, message = "bqd,bkd->bqk"}> : () -> ()
    %cst_30 = arith.constant dense<0.000000e+00> : vector<2x8x8xf32>
    %79 = tpu.matmul %77, %78, %cst_30 {dimension_numbers = #tpu.dot_dimension_numbers<[2], [2], [1], [1], [0, 0, 0, 1, 1, 1], [0], [0]>} : vector<2x8x8xf32>, vector<2x8x8xf32>, vector<2x8x8xf32> -> vector<2x8x8xf32>
    "tpu.trace_stop"() : () -> ()
    %80 = arith.addf %79, %15 : vector<2x8x8xf32>
    %cst_31 = arith.constant dense<0xFF800000> : vector<2x8xf32>
    %81 = vector.multi_reduction <maximumf>, %80, %cst_31 [2] : vector<2x8x8xf32> to vector<2x8xf32>
    %82 = vector.shape_cast %81 : vector<2x8xf32> to vector<2x8x1xf32>
    %83 = vector.broadcast %82 : vector<2x8x1xf32> to vector<2x8x8xf32>
    %84 = arith.subf %80, %83 : vector<2x8x8xf32>
    %85 = math.exp %84 : vector<2x8x8xf32>
    %cst_32 = arith.constant dense<0.000000e+00> : vector<2x8xf32>
    %86 = vector.multi_reduction <add>, %85, %cst_32 [2] : vector<2x8x8xf32> to vector<2x8xf32>
    %87 = vector.shape_cast %86 : vector<2x8xf32> to vector<2x8x1xf32>
    %88 = tpu.reciprocal %87 {approx = true} : vector<2x8x1xf32> -> vector<2x8x1xf32>
    %89 = vector.broadcast %88 : vector<2x8x1xf32> to vector<2x8x8xf32>
    %90 = arith.mulf %85, %89 : vector<2x8x8xf32>
    %91 = vector.extract_strided_slice %28 {offsets = [0, 0, 24], sizes = [2, 8, 8], strides = [1, 1, 1]} : vector<2x8x32xf32> to vector<2x8x8xf32>
    "tpu.trace_start"() <{level = 10 : i32, message = "bqk,bkd->bqd"}> : () -> ()
    %cst_33 = arith.constant dense<0.000000e+00> : vector<2x8x8xf32>
    %92 = tpu.matmul %90, %91, %cst_33 {dimension_numbers = #tpu.dot_dimension_numbers<[2], [1], [1], [2], [0, 0, 0, 1, 1, 2], [0], [0]>} : vector<2x8x8xf32>, vector<2x8x8xf32>, vector<2x8x8xf32> -> vector<2x8x8xf32>
    "tpu.trace_stop"() : () -> ()
    %93 = tpu.concatenate %44, %60, %76, %92 in 2 : vector<2x8x8xf32>, vector<2x8x8xf32>, vector<2x8x8xf32>, vector<2x8x8xf32> -> vector<2x8x32xf32>
    %94 = vector.shape_cast %93 : vector<2x8x32xf32> to vector<16x32xf32>
    %c0_34 = arith.constant 0 : index
    %c0_35 = arith.constant 0 : index
    %c0_36 = arith.constant 0 : index
    %95 = vector.load %arg7[%c0_34, %c0_35, %c0_36] : memref<2x32x32xbf16, #tpu.memory_space<vmem>>, vector<1x32x32xbf16>
    %96 = vector.shape_cast %95 : vector<1x32x32xbf16> to vector<32x32xbf16>
    %c0_37 = arith.constant 0 : index
    %c0_38 = arith.constant 0 : index
    %c0_39 = arith.constant 0 : index
    %97 = vector.load %arg8[%c0_37, %c0_38, %c0_39] : memref<2x1x32xf32, #tpu.memory_space<vmem>>, vector<1x1x32xf32>
    %98 = vector.shape_cast %97 : vector<1x1x32xf32> to vector<1x32xf32>
    %99 = arith.truncf %94 : vector<16x32xf32> to vector<16x32xbf16>
    %cst_40 = arith.constant dense<0.000000e+00> : vector<16x32xf32>
    %100 = tpu.matmul %99, %96, %cst_40 {dimension_numbers = #tpu.dot_dimension_numbers<[1], [0], [0], [1], [0, 0, 1, 1], [], []>} : vector<16x32xbf16>, vector<32x32xbf16>, vector<16x32xf32> -> vector<16x32xf32>
    %101 = vector.broadcast %98 : vector<1x32xf32> to vector<16x32xf32>
    %102 = arith.addf %100, %101 : vector<16x32xf32>
    %103 = arith.addf %1, %102 : vector<16x32xf32>
    %c0_41 = arith.constant 0 : index
    %c0_42 = arith.constant 0 : index
    %c0_43 = arith.constant 0 : index
    %104 = vector.load %arg9[%c0_41, %c0_42, %c0_43] : memref<2x1x32xf32, #tpu.memory_space<vmem>>, vector<1x1x32xf32>
    %105 = vector.shape_cast %104 : vector<1x1x32xf32> to vector<1x32xf32>
    %c0_44 = arith.constant 0 : index
    %c0_45 = arith.constant 0 : index
    %c0_46 = arith.constant 0 : index
    %106 = vector.load %arg10[%c0_44, %c0_45, %c0_46] : memref<2x1x32xf32, #tpu.memory_space<vmem>>, vector<1x1x32xf32>
    %107 = vector.shape_cast %106 : vector<1x1x32xf32> to vector<1x32xf32>
    %cst_47 = arith.constant dense<0.000000e+00> : vector<16xf32>
    %108 = vector.multi_reduction <add>, %103, %cst_47 [1] : vector<16x32xf32> to vector<16xf32>
    %109 = vector.shape_cast %108 : vector<16xf32> to vector<16x1xf32>
    %cst_48 = arith.constant 3.200000e+01 : f32
    %110 = vector.broadcast %cst_48 : f32 to vector<16x1xf32>
    %111 = arith.divf %109, %110 : vector<16x1xf32>
    %112 = vector.broadcast %111 : vector<16x1xf32> to vector<16x32xf32>
    %113 = arith.subf %103, %112 : vector<16x32xf32>
    %114 = arith.mulf %113, %113 : vector<16x32xf32>
    %cst_49 = arith.constant dense<0.000000e+00> : vector<16xf32>
    %115 = vector.multi_reduction <add>, %114, %cst_49 [1] : vector<16x32xf32> to vector<16xf32>
    %116 = vector.shape_cast %115 : vector<16xf32> to vector<16x1xf32>
    %cst_50 = arith.constant 3.200000e+01 : f32
    %117 = vector.broadcast %cst_50 : f32 to vector<16x1xf32>
    %118 = arith.divf %116, %117 : vector<16x1xf32>
    %119 = vector.broadcast %111 : vector<16x1xf32> to vector<16x32xf32>
    %120 = arith.subf %103, %119 : vector<16x32xf32>
    %cst_51 = arith.constant 9.99999974E-6 : f32
    %121 = vector.broadcast %cst_51 : f32 to vector<16x1xf32>
    %122 = arith.addf %118, %121 : vector<16x1xf32>
    %123 = math.rsqrt %122 : vector<16x1xf32>
    %124 = vector.broadcast %123 : vector<16x1xf32> to vector<16x32xf32>
    %125 = arith.mulf %120, %124 : vector<16x32xf32>
    %126 = vector.broadcast %105 : vector<1x32xf32> to vector<16x32xf32>
    %127 = arith.mulf %125, %126 : vector<16x32xf32>
    %128 = vector.broadcast %107 : vector<1x32xf32> to vector<16x32xf32>
    %129 = arith.addf %127, %128 : vector<16x32xf32>
    %c0_52 = arith.constant 0 : index
    %c0_53 = arith.constant 0 : index
    %c0_54 = arith.constant 0 : index
    %130 = vector.load %arg11[%c0_52, %c0_53, %c0_54] : memref<2x32x32xbf16, #tpu.memory_space<vmem>>, vector<1x32x32xbf16>
    %131 = vector.shape_cast %130 : vector<1x32x32xbf16> to vector<32x32xbf16>
    %c0_55 = arith.constant 0 : index
    %c0_56 = arith.constant 0 : index
    %c0_57 = arith.constant 0 : index
    %132 = vector.load %arg12[%c0_55, %c0_56, %c0_57] : memref<2x1x32xf32, #tpu.memory_space<vmem>>, vector<1x1x32xf32>
    %133 = vector.shape_cast %132 : vector<1x1x32xf32> to vector<1x32xf32>
    %134 = arith.truncf %129 : vector<16x32xf32> to vector<16x32xbf16>
    %cst_58 = arith.constant dense<0.000000e+00> : vector<16x32xf32>
    %135 = tpu.matmul %134, %131, %cst_58 {dimension_numbers = #tpu.dot_dimension_numbers<[1], [0], [0], [1], [0, 0, 1, 1], [], []>} : vector<16x32xbf16>, vector<32x32xbf16>, vector<16x32xf32> -> vector<16x32xf32>
    %136 = vector.broadcast %133 : vector<1x32xf32> to vector<16x32xf32>
    %137 = arith.addf %135, %136 : vector<16x32xf32>
    %138 = vector.shape_cast %137 : vector<16x32xf32> to vector<2x8x32xf32>
    %c0_59 = arith.constant 0 : index
    %c0_60 = arith.constant 0 : index
    %c0_61 = arith.constant 0 : index
    %139 = vector.load %arg13[%c0_59, %c0_60, %c0_61] : memref<2x32x64xbf16, #tpu.memory_space<vmem>>, vector<1x32x64xbf16>
    %140 = vector.shape_cast %139 : vector<1x32x64xbf16> to vector<32x64xbf16>
    %c0_62 = arith.constant 0 : index
    %c0_63 = arith.constant 0 : index
    %c0_64 = arith.constant 0 : index
    %141 = vector.load %arg14[%c0_62, %c0_63, %c0_64] : memref<2x1x64xf32, #tpu.memory_space<vmem>>, vector<1x1x64xf32>
    %142 = vector.shape_cast %141 : vector<1x1x64xf32> to vector<1x64xf32>
    %143 = arith.truncf %3 : vector<16x32xf32> to vector<16x32xbf16>
    %cst_65 = arith.constant dense<0.000000e+00> : vector<16x64xf32>
    %144 = tpu.matmul %143, %140, %cst_65 {dimension_numbers = #tpu.dot_dimension_numbers<[1], [0], [0], [1], [0, 0, 1, 1], [], []>} : vector<16x32xbf16>, vector<32x64xbf16>, vector<16x64xf32> -> vector<16x64xf32>
    %145 = vector.broadcast %142 : vector<1x64xf32> to vector<16x64xf32>
    %146 = arith.addf %144, %145 : vector<16x64xf32>
    %147 = vector.shape_cast %146 : vector<16x64xf32> to vector<2x8x64xf32>
    %148 = vector.extract_strided_slice %147 {offsets = [0, 0, 0], sizes = [2, 8, 32], strides = [1, 1, 1]} : vector<2x8x64xf32> to vector<2x8x32xf32>
    %149 = vector.extract_strided_slice %147 {offsets = [0, 0, 32], sizes = [2, 8, 32], strides = [1, 1, 1]} : vector<2x8x64xf32> to vector<2x8x32xf32>
    %150 = vector.extract_strided_slice %138 {offsets = [0, 0, 0], sizes = [2, 8, 8], strides = [1, 1, 1]} : vector<2x8x32xf32> to vector<2x8x8xf32>
    %151 = vector.extract_strided_slice %148 {offsets = [0, 0, 0], sizes = [2, 8, 8], strides = [1, 1, 1]} : vector<2x8x32xf32> to vector<2x8x8xf32>
    "tpu.trace_start"() <{level = 10 : i32, message = "bqd,bkd->bqk"}> : () -> ()
    %cst_66 = arith.constant dense<0.000000e+00> : vector<2x8x8xf32>
    %152 = tpu.matmul %150, %151, %cst_66 {dimension_numbers = #tpu.dot_dimension_numbers<[2], [2], [1], [1], [0, 0, 0, 1, 1, 1], [0], [0]>} : vector<2x8x8xf32>, vector<2x8x8xf32>, vector<2x8x8xf32> -> vector<2x8x8xf32>
    "tpu.trace_stop"() : () -> ()
    %153 = vector.broadcast %16 : vector<2x1x8xf32> to vector<2x8x8xf32>
    %154 = arith.addf %152, %153 : vector<2x8x8xf32>
    %cst_67 = arith.constant dense<0xFF800000> : vector<2x8xf32>
    %155 = vector.multi_reduction <maximumf>, %154, %cst_67 [2] : vector<2x8x8xf32> to vector<2x8xf32>
    %156 = vector.shape_cast %155 : vector<2x8xf32> to vector<2x8x1xf32>
    %157 = vector.broadcast %156 : vector<2x8x1xf32> to vector<2x8x8xf32>
    %158 = arith.subf %154, %157 : vector<2x8x8xf32>
    %159 = math.exp %158 : vector<2x8x8xf32>
    %cst_68 = arith.constant dense<0.000000e+00> : vector<2x8xf32>
    %160 = vector.multi_reduction <add>, %159, %cst_68 [2] : vector<2x8x8xf32> to vector<2x8xf32>
    %161 = vector.shape_cast %160 : vector<2x8xf32> to vector<2x8x1xf32>
    %162 = tpu.reciprocal %161 {approx = true} : vector<2x8x1xf32> -> vector<2x8x1xf32>
    %163 = vector.broadcast %162 : vector<2x8x1xf32> to vector<2x8x8xf32>
    %164 = arith.mulf %159, %163 : vector<2x8x8xf32>
    %165 = vector.extract_strided_slice %149 {offsets = [0, 0, 0], sizes = [2, 8, 8], strides = [1, 1, 1]} : vector<2x8x32xf32> to vector<2x8x8xf32>
    "tpu.trace_start"() <{level = 10 : i32, message = "bqk,bkd->bqd"}> : () -> ()
    %cst_69 = arith.constant dense<0.000000e+00> : vector<2x8x8xf32>
    %166 = tpu.matmul %164, %165, %cst_69 {dimension_numbers = #tpu.dot_dimension_numbers<[2], [1], [1], [2], [0, 0, 0, 1, 1, 2], [0], [0]>} : vector<2x8x8xf32>, vector<2x8x8xf32>, vector<2x8x8xf32> -> vector<2x8x8xf32>
    "tpu.trace_stop"() : () -> ()
    %167 = vector.extract_strided_slice %138 {offsets = [0, 0, 8], sizes = [2, 8, 8], strides = [1, 1, 1]} : vector<2x8x32xf32> to vector<2x8x8xf32>
    %168 = vector.extract_strided_slice %148 {offsets = [0, 0, 8], sizes = [2, 8, 8], strides = [1, 1, 1]} : vector<2x8x32xf32> to vector<2x8x8xf32>
    "tpu.trace_start"() <{level = 10 : i32, message = "bqd,bkd->bqk"}> : () -> ()
    %cst_70 = arith.constant dense<0.000000e+00> : vector<2x8x8xf32>
    %169 = tpu.matmul %167, %168, %cst_70 {dimension_numbers = #tpu.dot_dimension_numbers<[2], [2], [1], [1], [0, 0, 0, 1, 1, 1], [0], [0]>} : vector<2x8x8xf32>, vector<2x8x8xf32>, vector<2x8x8xf32> -> vector<2x8x8xf32>
    "tpu.trace_stop"() : () -> ()
    %170 = vector.broadcast %16 : vector<2x1x8xf32> to vector<2x8x8xf32>
    %171 = arith.addf %169, %170 : vector<2x8x8xf32>
    %cst_71 = arith.constant dense<0xFF800000> : vector<2x8xf32>
    %172 = vector.multi_reduction <maximumf>, %171, %cst_71 [2] : vector<2x8x8xf32> to vector<2x8xf32>
    %173 = vector.shape_cast %172 : vector<2x8xf32> to vector<2x8x1xf32>
    %174 = vector.broadcast %173 : vector<2x8x1xf32> to vector<2x8x8xf32>
    %175 = arith.subf %171, %174 : vector<2x8x8xf32>
    %176 = math.exp %175 : vector<2x8x8xf32>
    %cst_72 = arith.constant dense<0.000000e+00> : vector<2x8xf32>
    %177 = vector.multi_reduction <add>, %176, %cst_72 [2] : vector<2x8x8xf32> to vector<2x8xf32>
    %178 = vector.shape_cast %177 : vector<2x8xf32> to vector<2x8x1xf32>
    %179 = tpu.reciprocal %178 {approx = true} : vector<2x8x1xf32> -> vector<2x8x1xf32>
    %180 = vector.broadcast %179 : vector<2x8x1xf32> to vector<2x8x8xf32>
    %181 = arith.mulf %176, %180 : vector<2x8x8xf32>
    %182 = vector.extract_strided_slice %149 {offsets = [0, 0, 8], sizes = [2, 8, 8], strides = [1, 1, 1]} : vector<2x8x32xf32> to vector<2x8x8xf32>
    "tpu.trace_start"() <{level = 10 : i32, message = "bqk,bkd->bqd"}> : () -> ()
    %cst_73 = arith.constant dense<0.000000e+00> : vector<2x8x8xf32>
    %183 = tpu.matmul %181, %182, %cst_73 {dimension_numbers = #tpu.dot_dimension_numbers<[2], [1], [1], [2], [0, 0, 0, 1, 1, 2], [0], [0]>} : vector<2x8x8xf32>, vector<2x8x8xf32>, vector<2x8x8xf32> -> vector<2x8x8xf32>
    "tpu.trace_stop"() : () -> ()
    %184 = vector.extract_strided_slice %138 {offsets = [0, 0, 16], sizes = [2, 8, 8], strides = [1, 1, 1]} : vector<2x8x32xf32> to vector<2x8x8xf32>
    %185 = vector.extract_strided_slice %148 {offsets = [0, 0, 16], sizes = [2, 8, 8], strides = [1, 1, 1]} : vector<2x8x32xf32> to vector<2x8x8xf32>
    "tpu.trace_start"() <{level = 10 : i32, message = "bqd,bkd->bqk"}> : () -> ()
    %cst_74 = arith.constant dense<0.000000e+00> : vector<2x8x8xf32>
    %186 = tpu.matmul %184, %185, %cst_74 {dimension_numbers = #tpu.dot_dimension_numbers<[2], [2], [1], [1], [0, 0, 0, 1, 1, 1], [0], [0]>} : vector<2x8x8xf32>, vector<2x8x8xf32>, vector<2x8x8xf32> -> vector<2x8x8xf32>
    "tpu.trace_stop"() : () -> ()
    %187 = vector.broadcast %16 : vector<2x1x8xf32> to vector<2x8x8xf32>
    %188 = arith.addf %186, %187 : vector<2x8x8xf32>
    %cst_75 = arith.constant dense<0xFF800000> : vector<2x8xf32>
    %189 = vector.multi_reduction <maximumf>, %188, %cst_75 [2] : vector<2x8x8xf32> to vector<2x8xf32>
    %190 = vector.shape_cast %189 : vector<2x8xf32> to vector<2x8x1xf32>
    %191 = vector.broadcast %190 : vector<2x8x1xf32> to vector<2x8x8xf32>
    %192 = arith.subf %188, %191 : vector<2x8x8xf32>
    %193 = math.exp %192 : vector<2x8x8xf32>
    %cst_76 = arith.constant dense<0.000000e+00> : vector<2x8xf32>
    %194 = vector.multi_reduction <add>, %193, %cst_76 [2] : vector<2x8x8xf32> to vector<2x8xf32>
    %195 = vector.shape_cast %194 : vector<2x8xf32> to vector<2x8x1xf32>
    %196 = tpu.reciprocal %195 {approx = true} : vector<2x8x1xf32> -> vector<2x8x1xf32>
    %197 = vector.broadcast %196 : vector<2x8x1xf32> to vector<2x8x8xf32>
    %198 = arith.mulf %193, %197 : vector<2x8x8xf32>
    %199 = vector.extract_strided_slice %149 {offsets = [0, 0, 16], sizes = [2, 8, 8], strides = [1, 1, 1]} : vector<2x8x32xf32> to vector<2x8x8xf32>
    "tpu.trace_start"() <{level = 10 : i32, message = "bqk,bkd->bqd"}> : () -> ()
    %cst_77 = arith.constant dense<0.000000e+00> : vector<2x8x8xf32>
    %200 = tpu.matmul %198, %199, %cst_77 {dimension_numbers = #tpu.dot_dimension_numbers<[2], [1], [1], [2], [0, 0, 0, 1, 1, 2], [0], [0]>} : vector<2x8x8xf32>, vector<2x8x8xf32>, vector<2x8x8xf32> -> vector<2x8x8xf32>
    "tpu.trace_stop"() : () -> ()
    %201 = vector.extract_strided_slice %138 {offsets = [0, 0, 24], sizes = [2, 8, 8], strides = [1, 1, 1]} : vector<2x8x32xf32> to vector<2x8x8xf32>
    %202 = vector.extract_strided_slice %148 {offsets = [0, 0, 24], sizes = [2, 8, 8], strides = [1, 1, 1]} : vector<2x8x32xf32> to vector<2x8x8xf32>
    "tpu.trace_start"() <{level = 10 : i32, message = "bqd,bkd->bqk"}> : () -> ()
    %cst_78 = arith.constant dense<0.000000e+00> : vector<2x8x8xf32>
    %203 = tpu.matmul %201, %202, %cst_78 {dimension_numbers = #tpu.dot_dimension_numbers<[2], [2], [1], [1], [0, 0, 0, 1, 1, 1], [0], [0]>} : vector<2x8x8xf32>, vector<2x8x8xf32>, vector<2x8x8xf32> -> vector<2x8x8xf32>
    "tpu.trace_stop"() : () -> ()
    %204 = vector.broadcast %16 : vector<2x1x8xf32> to vector<2x8x8xf32>
    %205 = arith.addf %203, %204 : vector<2x8x8xf32>
    %cst_79 = arith.constant dense<0xFF800000> : vector<2x8xf32>
    %206 = vector.multi_reduction <maximumf>, %205, %cst_79 [2] : vector<2x8x8xf32> to vector<2x8xf32>
    %207 = vector.shape_cast %206 : vector<2x8xf32> to vector<2x8x1xf32>
    %208 = vector.broadcast %207 : vector<2x8x1xf32> to vector<2x8x8xf32>
    %209 = arith.subf %205, %208 : vector<2x8x8xf32>
    %210 = math.exp %209 : vector<2x8x8xf32>
    %cst_80 = arith.constant dense<0.000000e+00> : vector<2x8xf32>
    %211 = vector.multi_reduction <add>, %210, %cst_80 [2] : vector<2x8x8xf32> to vector<2x8xf32>
    %212 = vector.shape_cast %211 : vector<2x8xf32> to vector<2x8x1xf32>
    %213 = tpu.reciprocal %212 {approx = true} : vector<2x8x1xf32> -> vector<2x8x1xf32>
    %214 = vector.broadcast %213 : vector<2x8x1xf32> to vector<2x8x8xf32>
    %215 = arith.mulf %210, %214 : vector<2x8x8xf32>
    %216 = vector.extract_strided_slice %149 {offsets = [0, 0, 24], sizes = [2, 8, 8], strides = [1, 1, 1]} : vector<2x8x32xf32> to vector<2x8x8xf32>
    "tpu.trace_start"() <{level = 10 : i32, message = "bqk,bkd->bqd"}> : () -> ()
    %cst_81 = arith.constant dense<0.000000e+00> : vector<2x8x8xf32>
    %217 = tpu.matmul %215, %216, %cst_81 {dimension_numbers = #tpu.dot_dimension_numbers<[2], [1], [1], [2], [0, 0, 0, 1, 1, 2], [0], [0]>} : vector<2x8x8xf32>, vector<2x8x8xf32>, vector<2x8x8xf32> -> vector<2x8x8xf32>
    "tpu.trace_stop"() : () -> ()
    %218 = tpu.concatenate %166, %183, %200, %217 in 2 : vector<2x8x8xf32>, vector<2x8x8xf32>, vector<2x8x8xf32>, vector<2x8x8xf32> -> vector<2x8x32xf32>
    %219 = vector.shape_cast %218 : vector<2x8x32xf32> to vector<16x32xf32>
    %c0_82 = arith.constant 0 : index
    %c0_83 = arith.constant 0 : index
    %c0_84 = arith.constant 0 : index
    %220 = vector.load %arg15[%c0_82, %c0_83, %c0_84] : memref<2x32x32xbf16, #tpu.memory_space<vmem>>, vector<1x32x32xbf16>
    %221 = vector.shape_cast %220 : vector<1x32x32xbf16> to vector<32x32xbf16>
    %c0_85 = arith.constant 0 : index
    %c0_86 = arith.constant 0 : index
    %c0_87 = arith.constant 0 : index
    %222 = vector.load %arg16[%c0_85, %c0_86, %c0_87] : memref<2x1x32xf32, #tpu.memory_space<vmem>>, vector<1x1x32xf32>
    %223 = vector.shape_cast %222 : vector<1x1x32xf32> to vector<1x32xf32>
    %224 = arith.truncf %219 : vector<16x32xf32> to vector<16x32xbf16>
    %cst_88 = arith.constant dense<0.000000e+00> : vector<16x32xf32>
    %225 = tpu.matmul %224, %221, %cst_88 {dimension_numbers = #tpu.dot_dimension_numbers<[1], [0], [0], [1], [0, 0, 1, 1], [], []>} : vector<16x32xbf16>, vector<32x32xbf16>, vector<16x32xf32> -> vector<16x32xf32>
    %226 = vector.broadcast %223 : vector<1x32xf32> to vector<16x32xf32>
    %227 = arith.addf %225, %226 : vector<16x32xf32>
    %228 = arith.addf %129, %227 : vector<16x32xf32>
    %c0_89 = arith.constant 0 : index
    %c0_90 = arith.constant 0 : index
    %c0_91 = arith.constant 0 : index
    %229 = vector.load %arg17[%c0_89, %c0_90, %c0_91] : memref<2x1x32xf32, #tpu.memory_space<vmem>>, vector<1x1x32xf32>
    %230 = vector.shape_cast %229 : vector<1x1x32xf32> to vector<1x32xf32>
    %c0_92 = arith.constant 0 : index
    %c0_93 = arith.constant 0 : index
    %c0_94 = arith.constant 0 : index
    %231 = vector.load %arg18[%c0_92, %c0_93, %c0_94] : memref<2x1x32xf32, #tpu.memory_space<vmem>>, vector<1x1x32xf32>
    %232 = vector.shape_cast %231 : vector<1x1x32xf32> to vector<1x32xf32>
    %cst_95 = arith.constant dense<0.000000e+00> : vector<16xf32>
    %233 = vector.multi_reduction <add>, %228, %cst_95 [1] : vector<16x32xf32> to vector<16xf32>
    %234 = vector.shape_cast %233 : vector<16xf32> to vector<16x1xf32>
    %cst_96 = arith.constant 3.200000e+01 : f32
    %235 = vector.broadcast %cst_96 : f32 to vector<16x1xf32>
    %236 = arith.divf %234, %235 : vector<16x1xf32>
    %237 = vector.broadcast %236 : vector<16x1xf32> to vector<16x32xf32>
    %238 = arith.subf %228, %237 : vector<16x32xf32>
    %239 = arith.mulf %238, %238 : vector<16x32xf32>
    %cst_97 = arith.constant dense<0.000000e+00> : vector<16xf32>
    %240 = vector.multi_reduction <add>, %239, %cst_97 [1] : vector<16x32xf32> to vector<16xf32>
    %241 = vector.shape_cast %240 : vector<16xf32> to vector<16x1xf32>
    %cst_98 = arith.constant 3.200000e+01 : f32
    %242 = vector.broadcast %cst_98 : f32 to vector<16x1xf32>
    %243 = arith.divf %241, %242 : vector<16x1xf32>
    %244 = vector.broadcast %236 : vector<16x1xf32> to vector<16x32xf32>
    %245 = arith.subf %228, %244 : vector<16x32xf32>
    %cst_99 = arith.constant 9.99999974E-6 : f32
    %246 = vector.broadcast %cst_99 : f32 to vector<16x1xf32>
    %247 = arith.addf %243, %246 : vector<16x1xf32>
    %248 = math.rsqrt %247 : vector<16x1xf32>
    %249 = vector.broadcast %248 : vector<16x1xf32> to vector<16x32xf32>
    %250 = arith.mulf %245, %249 : vector<16x32xf32>
    %251 = vector.broadcast %230 : vector<1x32xf32> to vector<16x32xf32>
    %252 = arith.mulf %250, %251 : vector<16x32xf32>
    %253 = vector.broadcast %232 : vector<1x32xf32> to vector<16x32xf32>
    %254 = arith.addf %252, %253 : vector<16x32xf32>
    %c0_100 = arith.constant 0 : index
    %c0_101 = arith.constant 0 : index
    %c0_102 = arith.constant 0 : index
    %255 = vector.load %arg19[%c0_100, %c0_101, %c0_102] : memref<2x32x64xbf16, #tpu.memory_space<vmem>>, vector<1x32x64xbf16>
    %256 = vector.shape_cast %255 : vector<1x32x64xbf16> to vector<32x64xbf16>
    %c0_103 = arith.constant 0 : index
    %c0_104 = arith.constant 0 : index
    %c0_105 = arith.constant 0 : index
    %257 = vector.load %arg20[%c0_103, %c0_104, %c0_105] : memref<2x1x64xf32, #tpu.memory_space<vmem>>, vector<1x1x64xf32>
    %258 = vector.shape_cast %257 : vector<1x1x64xf32> to vector<1x64xf32>
    %259 = arith.truncf %254 : vector<16x32xf32> to vector<16x32xbf16>
    %cst_106 = arith.constant dense<0.000000e+00> : vector<16x64xf32>
    %260 = tpu.matmul %259, %256, %cst_106 {dimension_numbers = #tpu.dot_dimension_numbers<[1], [0], [0], [1], [0, 0, 1, 1], [], []>} : vector<16x32xbf16>, vector<32x64xbf16>, vector<16x64xf32> -> vector<16x64xf32>
    %261 = vector.broadcast %258 : vector<1x64xf32> to vector<16x64xf32>
    %262 = arith.addf %260, %261 : vector<16x64xf32>
    %cst_107 = arith.constant 0.000000e+00 : f32
    %263 = vector.broadcast %cst_107 : f32 to vector<16x64xf32>
    %264 = arith.maximumf %262, %263 : vector<16x64xf32>
    %c0_108 = arith.constant 0 : index
    %c0_109 = arith.constant 0 : index
    %c0_110 = arith.constant 0 : index
    %265 = vector.load %arg21[%c0_108, %c0_109, %c0_110] : memref<2x64x32xbf16, #tpu.memory_space<vmem>>, vector<1x64x32xbf16>
    %266 = vector.shape_cast %265 : vector<1x64x32xbf16> to vector<64x32xbf16>
    %c0_111 = arith.constant 0 : index
    %c0_112 = arith.constant 0 : index
    %c0_113 = arith.constant 0 : index
    %267 = vector.load %arg22[%c0_111, %c0_112, %c0_113] : memref<2x1x32xf32, #tpu.memory_space<vmem>>, vector<1x1x32xf32>
    %268 = vector.shape_cast %267 : vector<1x1x32xf32> to vector<1x32xf32>
    %269 = arith.truncf %264 : vector<16x64xf32> to vector<16x64xbf16>
    %cst_114 = arith.constant dense<0.000000e+00> : vector<16x32xf32>
    %270 = tpu.matmul %269, %266, %cst_114 {dimension_numbers = #tpu.dot_dimension_numbers<[1], [0], [0], [1], [0, 0, 1, 1], [], []>} : vector<16x64xbf16>, vector<64x32xbf16>, vector<16x32xf32> -> vector<16x32xf32>
    %271 = vector.broadcast %268 : vector<1x32xf32> to vector<16x32xf32>
    %272 = arith.addf %270, %271 : vector<16x32xf32>
    %273 = arith.addf %254, %272 : vector<16x32xf32>
    %c0_115 = arith.constant 0 : index
    %c0_116 = arith.constant 0 : index
    %c0_117 = arith.constant 0 : index
    %274 = vector.load %arg23[%c0_115, %c0_116, %c0_117] : memref<2x1x32xf32, #tpu.memory_space<vmem>>, vector<1x1x32xf32>
    %275 = vector.shape_cast %274 : vector<1x1x32xf32> to vector<1x32xf32>
    %c0_118 = arith.constant 0 : index
    %c0_119 = arith.constant 0 : index
    %c0_120 = arith.constant 0 : index
    %276 = vector.load %arg24[%c0_118, %c0_119, %c0_120] : memref<2x1x32xf32, #tpu.memory_space<vmem>>, vector<1x1x32xf32>
    %277 = vector.shape_cast %276 : vector<1x1x32xf32> to vector<1x32xf32>
    %cst_121 = arith.constant dense<0.000000e+00> : vector<16xf32>
    %278 = vector.multi_reduction <add>, %273, %cst_121 [1] : vector<16x32xf32> to vector<16xf32>
    %279 = vector.shape_cast %278 : vector<16xf32> to vector<16x1xf32>
    %cst_122 = arith.constant 3.200000e+01 : f32
    %280 = vector.broadcast %cst_122 : f32 to vector<16x1xf32>
    %281 = arith.divf %279, %280 : vector<16x1xf32>
    %282 = vector.broadcast %281 : vector<16x1xf32> to vector<16x32xf32>
    %283 = arith.subf %273, %282 : vector<16x32xf32>
    %284 = arith.mulf %283, %283 : vector<16x32xf32>
    %cst_123 = arith.constant dense<0.000000e+00> : vector<16xf32>
    %285 = vector.multi_reduction <add>, %284, %cst_123 [1] : vector<16x32xf32> to vector<16xf32>
    %286 = vector.shape_cast %285 : vector<16xf32> to vector<16x1xf32>
    %cst_124 = arith.constant 3.200000e+01 : f32
    %287 = vector.broadcast %cst_124 : f32 to vector<16x1xf32>
    %288 = arith.divf %286, %287 : vector<16x1xf32>
    %289 = vector.broadcast %281 : vector<16x1xf32> to vector<16x32xf32>
    %290 = arith.subf %273, %289 : vector<16x32xf32>
    %cst_125 = arith.constant 9.99999974E-6 : f32
    %291 = vector.broadcast %cst_125 : f32 to vector<16x1xf32>
    %292 = arith.addf %288, %291 : vector<16x1xf32>
    %293 = math.rsqrt %292 : vector<16x1xf32>
    %294 = vector.broadcast %293 : vector<16x1xf32> to vector<16x32xf32>
    %295 = arith.mulf %290, %294 : vector<16x32xf32>
    %296 = vector.broadcast %275 : vector<1x32xf32> to vector<16x32xf32>
    %297 = arith.mulf %295, %296 : vector<16x32xf32>
    %298 = vector.broadcast %277 : vector<1x32xf32> to vector<16x32xf32>
    %299 = arith.addf %297, %298 : vector<16x32xf32>
    %c1 = arith.constant 1 : index
    %c0_126 = arith.constant 0 : index
    %c0_127 = arith.constant 0 : index
    %300 = vector.load %arg5[%c1, %c0_126, %c0_127] : memref<2x32x96xbf16, #tpu.memory_space<vmem>>, vector<1x32x96xbf16>
    %301 = vector.shape_cast %300 : vector<1x32x96xbf16> to vector<32x96xbf16>
    %c1_128 = arith.constant 1 : index
    %c0_129 = arith.constant 0 : index
    %c0_130 = arith.constant 0 : index
    %302 = vector.load %arg6[%c1_128, %c0_129, %c0_130] : memref<2x1x96xf32, #tpu.memory_space<vmem>>, vector<1x1x96xf32>
    %303 = vector.shape_cast %302 : vector<1x1x96xf32> to vector<1x96xf32>
    %304 = arith.truncf %299 : vector<16x32xf32> to vector<16x32xbf16>
    %cst_131 = arith.constant dense<0.000000e+00> : vector<16x96xf32>
    %305 = tpu.matmul %304, %301, %cst_131 {dimension_numbers = #tpu.dot_dimension_numbers<[1], [0], [0], [1], [0, 0, 1, 1], [], []>} : vector<16x32xbf16>, vector<32x96xbf16>, vector<16x96xf32> -> vector<16x96xf32>
    %306 = vector.broadcast %303 : vector<1x96xf32> to vector<16x96xf32>
    %307 = arith.addf %305, %306 : vector<16x96xf32>
    %308 = vector.shape_cast %307 : vector<16x96xf32> to vector<2x8x96xf32>
    %309 = vector.extract_strided_slice %308 {offsets = [0, 0, 0], sizes = [2, 8, 32], strides = [1, 1, 1]} : vector<2x8x96xf32> to vector<2x8x32xf32>
    %310 = vector.extract_strided_slice %308 {offsets = [0, 0, 32], sizes = [2, 8, 32], strides = [1, 1, 1]} : vector<2x8x96xf32> to vector<2x8x32xf32>
    %311 = vector.extract_strided_slice %308 {offsets = [0, 0, 64], sizes = [2, 8, 32], strides = [1, 1, 1]} : vector<2x8x96xf32> to vector<2x8x32xf32>
    %312 = vector.extract_strided_slice %309 {offsets = [0, 0, 0], sizes = [2, 8, 8], strides = [1, 1, 1]} : vector<2x8x32xf32> to vector<2x8x8xf32>
    %313 = vector.extract_strided_slice %310 {offsets = [0, 0, 0], sizes = [2, 8, 8], strides = [1, 1, 1]} : vector<2x8x32xf32> to vector<2x8x8xf32>
    "tpu.trace_start"() <{level = 10 : i32, message = "bqd,bkd->bqk"}> : () -> ()
    %cst_132 = arith.constant dense<0.000000e+00> : vector<2x8x8xf32>
    %314 = tpu.matmul %312, %313, %cst_132 {dimension_numbers = #tpu.dot_dimension_numbers<[2], [2], [1], [1], [0, 0, 0, 1, 1, 1], [0], [0]>} : vector<2x8x8xf32>, vector<2x8x8xf32>, vector<2x8x8xf32> -> vector<2x8x8xf32>
    "tpu.trace_stop"() : () -> ()
    %315 = arith.addf %314, %15 : vector<2x8x8xf32>
    %cst_133 = arith.constant dense<0xFF800000> : vector<2x8xf32>
    %316 = vector.multi_reduction <maximumf>, %315, %cst_133 [2] : vector<2x8x8xf32> to vector<2x8xf32>
    %317 = vector.shape_cast %316 : vector<2x8xf32> to vector<2x8x1xf32>
    %318 = vector.broadcast %317 : vector<2x8x1xf32> to vector<2x8x8xf32>
    %319 = arith.subf %315, %318 : vector<2x8x8xf32>
    %320 = math.exp %319 : vector<2x8x8xf32>
    %cst_134 = arith.constant dense<0.000000e+00> : vector<2x8xf32>
    %321 = vector.multi_reduction <add>, %320, %cst_134 [2] : vector<2x8x8xf32> to vector<2x8xf32>
    %322 = vector.shape_cast %321 : vector<2x8xf32> to vector<2x8x1xf32>
    %323 = tpu.reciprocal %322 {approx = true} : vector<2x8x1xf32> -> vector<2x8x1xf32>
    %324 = vector.broadcast %323 : vector<2x8x1xf32> to vector<2x8x8xf32>
    %325 = arith.mulf %320, %324 : vector<2x8x8xf32>
    %326 = vector.extract_strided_slice %311 {offsets = [0, 0, 0], sizes = [2, 8, 8], strides = [1, 1, 1]} : vector<2x8x32xf32> to vector<2x8x8xf32>
    "tpu.trace_start"() <{level = 10 : i32, message = "bqk,bkd->bqd"}> : () -> ()
    %cst_135 = arith.constant dense<0.000000e+00> : vector<2x8x8xf32>
    %327 = tpu.matmul %325, %326, %cst_135 {dimension_numbers = #tpu.dot_dimension_numbers<[2], [1], [1], [2], [0, 0, 0, 1, 1, 2], [0], [0]>} : vector<2x8x8xf32>, vector<2x8x8xf32>, vector<2x8x8xf32> -> vector<2x8x8xf32>
    "tpu.trace_stop"() : () -> ()
    %328 = vector.extract_strided_slice %309 {offsets = [0, 0, 8], sizes = [2, 8, 8], strides = [1, 1, 1]} : vector<2x8x32xf32> to vector<2x8x8xf32>
    %329 = vector.extract_strided_slice %310 {offsets = [0, 0, 8], sizes = [2, 8, 8], strides = [1, 1, 1]} : vector<2x8x32xf32> to vector<2x8x8xf32>
    "tpu.trace_start"() <{level = 10 : i32, message = "bqd,bkd->bqk"}> : () -> ()
    %cst_136 = arith.constant dense<0.000000e+00> : vector<2x8x8xf32>
    %330 = tpu.matmul %328, %329, %cst_136 {dimension_numbers = #tpu.dot_dimension_numbers<[2], [2], [1], [1], [0, 0, 0, 1, 1, 1], [0], [0]>} : vector<2x8x8xf32>, vector<2x8x8xf32>, vector<2x8x8xf32> -> vector<2x8x8xf32>
    "tpu.trace_stop"() : () -> ()
    %331 = arith.addf %330, %15 : vector<2x8x8xf32>
    %cst_137 = arith.constant dense<0xFF800000> : vector<2x8xf32>
    %332 = vector.multi_reduction <maximumf>, %331, %cst_137 [2] : vector<2x8x8xf32> to vector<2x8xf32>
    %333 = vector.shape_cast %332 : vector<2x8xf32> to vector<2x8x1xf32>
    %334 = vector.broadcast %333 : vector<2x8x1xf32> to vector<2x8x8xf32>
    %335 = arith.subf %331, %334 : vector<2x8x8xf32>
    %336 = math.exp %335 : vector<2x8x8xf32>
    %cst_138 = arith.constant dense<0.000000e+00> : vector<2x8xf32>
    %337 = vector.multi_reduction <add>, %336, %cst_138 [2] : vector<2x8x8xf32> to vector<2x8xf32>
    %338 = vector.shape_cast %337 : vector<2x8xf32> to vector<2x8x1xf32>
    %339 = tpu.reciprocal %338 {approx = true} : vector<2x8x1xf32> -> vector<2x8x1xf32>
    %340 = vector.broadcast %339 : vector<2x8x1xf32> to vector<2x8x8xf32>
    %341 = arith.mulf %336, %340 : vector<2x8x8xf32>
    %342 = vector.extract_strided_slice %311 {offsets = [0, 0, 8], sizes = [2, 8, 8], strides = [1, 1, 1]} : vector<2x8x32xf32> to vector<2x8x8xf32>
    "tpu.trace_start"() <{level = 10 : i32, message = "bqk,bkd->bqd"}> : () -> ()
    %cst_139 = arith.constant dense<0.000000e+00> : vector<2x8x8xf32>
    %343 = tpu.matmul %341, %342, %cst_139 {dimension_numbers = #tpu.dot_dimension_numbers<[2], [1], [1], [2], [0, 0, 0, 1, 1, 2], [0], [0]>} : vector<2x8x8xf32>, vector<2x8x8xf32>, vector<2x8x8xf32> -> vector<2x8x8xf32>
    "tpu.trace_stop"() : () -> ()
    %344 = vector.extract_strided_slice %309 {offsets = [0, 0, 16], sizes = [2, 8, 8], strides = [1, 1, 1]} : vector<2x8x32xf32> to vector<2x8x8xf32>
    %345 = vector.extract_strided_slice %310 {offsets = [0, 0, 16], sizes = [2, 8, 8], strides = [1, 1, 1]} : vector<2x8x32xf32> to vector<2x8x8xf32>
    "tpu.trace_start"() <{level = 10 : i32, message = "bqd,bkd->bqk"}> : () -> ()
    %cst_140 = arith.constant dense<0.000000e+00> : vector<2x8x8xf32>
    %346 = tpu.matmul %344, %345, %cst_140 {dimension_numbers = #tpu.dot_dimension_numbers<[2], [2], [1], [1], [0, 0, 0, 1, 1, 1], [0], [0]>} : vector<2x8x8xf32>, vector<2x8x8xf32>, vector<2x8x8xf32> -> vector<2x8x8xf32>
    "tpu.trace_stop"() : () -> ()
    %347 = arith.addf %346, %15 : vector<2x8x8xf32>
    %cst_141 = arith.constant dense<0xFF800000> : vector<2x8xf32>
    %348 = vector.multi_reduction <maximumf>, %347, %cst_141 [2] : vector<2x8x8xf32> to vector<2x8xf32>
    %349 = vector.shape_cast %348 : vector<2x8xf32> to vector<2x8x1xf32>
    %350 = vector.broadcast %349 : vector<2x8x1xf32> to vector<2x8x8xf32>
    %351 = arith.subf %347, %350 : vector<2x8x8xf32>
    %352 = math.exp %351 : vector<2x8x8xf32>
    %cst_142 = arith.constant dense<0.000000e+00> : vector<2x8xf32>
    %353 = vector.multi_reduction <add>, %352, %cst_142 [2] : vector<2x8x8xf32> to vector<2x8xf32>
    %354 = vector.shape_cast %353 : vector<2x8xf32> to vector<2x8x1xf32>
    %355 = tpu.reciprocal %354 {approx = true} : vector<2x8x1xf32> -> vector<2x8x1xf32>
    %356 = vector.broadcast %355 : vector<2x8x1xf32> to vector<2x8x8xf32>
    %357 = arith.mulf %352, %356 : vector<2x8x8xf32>
    %358 = vector.extract_strided_slice %311 {offsets = [0, 0, 16], sizes = [2, 8, 8], strides = [1, 1, 1]} : vector<2x8x32xf32> to vector<2x8x8xf32>
    "tpu.trace_start"() <{level = 10 : i32, message = "bqk,bkd->bqd"}> : () -> ()
    %cst_143 = arith.constant dense<0.000000e+00> : vector<2x8x8xf32>
    %359 = tpu.matmul %357, %358, %cst_143 {dimension_numbers = #tpu.dot_dimension_numbers<[2], [1], [1], [2], [0, 0, 0, 1, 1, 2], [0], [0]>} : vector<2x8x8xf32>, vector<2x8x8xf32>, vector<2x8x8xf32> -> vector<2x8x8xf32>
    "tpu.trace_stop"() : () -> ()
    %360 = vector.extract_strided_slice %309 {offsets = [0, 0, 24], sizes = [2, 8, 8], strides = [1, 1, 1]} : vector<2x8x32xf32> to vector<2x8x8xf32>
    %361 = vector.extract_strided_slice %310 {offsets = [0, 0, 24], sizes = [2, 8, 8], strides = [1, 1, 1]} : vector<2x8x32xf32> to vector<2x8x8xf32>
    "tpu.trace_start"() <{level = 10 : i32, message = "bqd,bkd->bqk"}> : () -> ()
    %cst_144 = arith.constant dense<0.000000e+00> : vector<2x8x8xf32>
    %362 = tpu.matmul %360, %361, %cst_144 {dimension_numbers = #tpu.dot_dimension_numbers<[2], [2], [1], [1], [0, 0, 0, 1, 1, 1], [0], [0]>} : vector<2x8x8xf32>, vector<2x8x8xf32>, vector<2x8x8xf32> -> vector<2x8x8xf32>
    "tpu.trace_stop"() : () -> ()
    %363 = arith.addf %362, %15 : vector<2x8x8xf32>
    %cst_145 = arith.constant dense<0xFF800000> : vector<2x8xf32>
    %364 = vector.multi_reduction <maximumf>, %363, %cst_145 [2] : vector<2x8x8xf32> to vector<2x8xf32>
    %365 = vector.shape_cast %364 : vector<2x8xf32> to vector<2x8x1xf32>
    %366 = vector.broadcast %365 : vector<2x8x1xf32> to vector<2x8x8xf32>
    %367 = arith.subf %363, %366 : vector<2x8x8xf32>
    %368 = math.exp %367 : vector<2x8x8xf32>
    %cst_146 = arith.constant dense<0.000000e+00> : vector<2x8xf32>
    %369 = vector.multi_reduction <add>, %368, %cst_146 [2] : vector<2x8x8xf32> to vector<2x8xf32>
    %370 = vector.shape_cast %369 : vector<2x8xf32> to vector<2x8x1xf32>
    %371 = tpu.reciprocal %370 {approx = true} : vector<2x8x1xf32> -> vector<2x8x1xf32>
    %372 = vector.broadcast %371 : vector<2x8x1xf32> to vector<2x8x8xf32>
    %373 = arith.mulf %368, %372 : vector<2x8x8xf32>
    %374 = vector.extract_strided_slice %311 {offsets = [0, 0, 24], sizes = [2, 8, 8], strides = [1, 1, 1]} : vector<2x8x32xf32> to vector<2x8x8xf32>
    "tpu.trace_start"() <{level = 10 : i32, message = "bqk,bkd->bqd"}> : () -> ()
    %cst_147 = arith.constant dense<0.000000e+00> : vector<2x8x8xf32>
    %375 = tpu.matmul %373, %374, %cst_147 {dimension_numbers = #tpu.dot_dimension_numbers<[2], [1], [1], [2], [0, 0, 0, 1, 1, 2], [0], [0]>} : vector<2x8x8xf32>, vector<2x8x8xf32>, vector<2x8x8xf32> -> vector<2x8x8xf32>
    "tpu.trace_stop"() : () -> ()
    %376 = tpu.concatenate %327, %343, %359, %375 in 2 : vector<2x8x8xf32>, vector<2x8x8xf32>, vector<2x8x8xf32>, vector<2x8x8xf32> -> vector<2x8x32xf32>
    %377 = vector.shape_cast %376 : vector<2x8x32xf32> to vector<16x32xf32>
    %c1_148 = arith.constant 1 : index
    %c0_149 = arith.constant 0 : index
    %c0_150 = arith.constant 0 : index
    %378 = vector.load %arg7[%c1_148, %c0_149, %c0_150] : memref<2x32x32xbf16, #tpu.memory_space<vmem>>, vector<1x32x32xbf16>
    %379 = vector.shape_cast %378 : vector<1x32x32xbf16> to vector<32x32xbf16>
    %c1_151 = arith.constant 1 : index
    %c0_152 = arith.constant 0 : index
    %c0_153 = arith.constant 0 : index
    %380 = vector.load %arg8[%c1_151, %c0_152, %c0_153] : memref<2x1x32xf32, #tpu.memory_space<vmem>>, vector<1x1x32xf32>
    %381 = vector.shape_cast %380 : vector<1x1x32xf32> to vector<1x32xf32>
    %382 = arith.truncf %377 : vector<16x32xf32> to vector<16x32xbf16>
    %cst_154 = arith.constant dense<0.000000e+00> : vector<16x32xf32>
    %383 = tpu.matmul %382, %379, %cst_154 {dimension_numbers = #tpu.dot_dimension_numbers<[1], [0], [0], [1], [0, 0, 1, 1], [], []>} : vector<16x32xbf16>, vector<32x32xbf16>, vector<16x32xf32> -> vector<16x32xf32>
    %384 = vector.broadcast %381 : vector<1x32xf32> to vector<16x32xf32>
    %385 = arith.addf %383, %384 : vector<16x32xf32>
    %386 = arith.addf %299, %385 : vector<16x32xf32>
    %c1_155 = arith.constant 1 : index
    %c0_156 = arith.constant 0 : index
    %c0_157 = arith.constant 0 : index
    %387 = vector.load %arg9[%c1_155, %c0_156, %c0_157] : memref<2x1x32xf32, #tpu.memory_space<vmem>>, vector<1x1x32xf32>
    %388 = vector.shape_cast %387 : vector<1x1x32xf32> to vector<1x32xf32>
    %c1_158 = arith.constant 1 : index
    %c0_159 = arith.constant 0 : index
    %c0_160 = arith.constant 0 : index
    %389 = vector.load %arg10[%c1_158, %c0_159, %c0_160] : memref<2x1x32xf32, #tpu.memory_space<vmem>>, vector<1x1x32xf32>
    %390 = vector.shape_cast %389 : vector<1x1x32xf32> to vector<1x32xf32>
    %cst_161 = arith.constant dense<0.000000e+00> : vector<16xf32>
    %391 = vector.multi_reduction <add>, %386, %cst_161 [1] : vector<16x32xf32> to vector<16xf32>
    %392 = vector.shape_cast %391 : vector<16xf32> to vector<16x1xf32>
    %cst_162 = arith.constant 3.200000e+01 : f32
    %393 = vector.broadcast %cst_162 : f32 to vector<16x1xf32>
    %394 = arith.divf %392, %393 : vector<16x1xf32>
    %395 = vector.broadcast %394 : vector<16x1xf32> to vector<16x32xf32>
    %396 = arith.subf %386, %395 : vector<16x32xf32>
    %397 = arith.mulf %396, %396 : vector<16x32xf32>
    %cst_163 = arith.constant dense<0.000000e+00> : vector<16xf32>
    %398 = vector.multi_reduction <add>, %397, %cst_163 [1] : vector<16x32xf32> to vector<16xf32>
    %399 = vector.shape_cast %398 : vector<16xf32> to vector<16x1xf32>
    %cst_164 = arith.constant 3.200000e+01 : f32
    %400 = vector.broadcast %cst_164 : f32 to vector<16x1xf32>
    %401 = arith.divf %399, %400 : vector<16x1xf32>
    %402 = vector.broadcast %394 : vector<16x1xf32> to vector<16x32xf32>
    %403 = arith.subf %386, %402 : vector<16x32xf32>
    %cst_165 = arith.constant 9.99999974E-6 : f32
    %404 = vector.broadcast %cst_165 : f32 to vector<16x1xf32>
    %405 = arith.addf %401, %404 : vector<16x1xf32>
    %406 = math.rsqrt %405 : vector<16x1xf32>
    %407 = vector.broadcast %406 : vector<16x1xf32> to vector<16x32xf32>
    %408 = arith.mulf %403, %407 : vector<16x32xf32>
    %409 = vector.broadcast %388 : vector<1x32xf32> to vector<16x32xf32>
    %410 = arith.mulf %408, %409 : vector<16x32xf32>
    %411 = vector.broadcast %390 : vector<1x32xf32> to vector<16x32xf32>
    %412 = arith.addf %410, %411 : vector<16x32xf32>
    %c1_166 = arith.constant 1 : index
    %c0_167 = arith.constant 0 : index
    %c0_168 = arith.constant 0 : index
    %413 = vector.load %arg11[%c1_166, %c0_167, %c0_168] : memref<2x32x32xbf16, #tpu.memory_space<vmem>>, vector<1x32x32xbf16>
    %414 = vector.shape_cast %413 : vector<1x32x32xbf16> to vector<32x32xbf16>
    %c1_169 = arith.constant 1 : index
    %c0_170 = arith.constant 0 : index
    %c0_171 = arith.constant 0 : index
    %415 = vector.load %arg12[%c1_169, %c0_170, %c0_171] : memref<2x1x32xf32, #tpu.memory_space<vmem>>, vector<1x1x32xf32>
    %416 = vector.shape_cast %415 : vector<1x1x32xf32> to vector<1x32xf32>
    %417 = arith.truncf %412 : vector<16x32xf32> to vector<16x32xbf16>
    %cst_172 = arith.constant dense<0.000000e+00> : vector<16x32xf32>
    %418 = tpu.matmul %417, %414, %cst_172 {dimension_numbers = #tpu.dot_dimension_numbers<[1], [0], [0], [1], [0, 0, 1, 1], [], []>} : vector<16x32xbf16>, vector<32x32xbf16>, vector<16x32xf32> -> vector<16x32xf32>
    %419 = vector.broadcast %416 : vector<1x32xf32> to vector<16x32xf32>
    %420 = arith.addf %418, %419 : vector<16x32xf32>
    %421 = vector.shape_cast %420 : vector<16x32xf32> to vector<2x8x32xf32>
    %c1_173 = arith.constant 1 : index
    %c0_174 = arith.constant 0 : index
    %c0_175 = arith.constant 0 : index
    %422 = vector.load %arg13[%c1_173, %c0_174, %c0_175] : memref<2x32x64xbf16, #tpu.memory_space<vmem>>, vector<1x32x64xbf16>
    %423 = vector.shape_cast %422 : vector<1x32x64xbf16> to vector<32x64xbf16>
    %c1_176 = arith.constant 1 : index
    %c0_177 = arith.constant 0 : index
    %c0_178 = arith.constant 0 : index
    %424 = vector.load %arg14[%c1_176, %c0_177, %c0_178] : memref<2x1x64xf32, #tpu.memory_space<vmem>>, vector<1x1x64xf32>
    %425 = vector.shape_cast %424 : vector<1x1x64xf32> to vector<1x64xf32>
    %426 = arith.truncf %3 : vector<16x32xf32> to vector<16x32xbf16>
    %cst_179 = arith.constant dense<0.000000e+00> : vector<16x64xf32>
    %427 = tpu.matmul %426, %423, %cst_179 {dimension_numbers = #tpu.dot_dimension_numbers<[1], [0], [0], [1], [0, 0, 1, 1], [], []>} : vector<16x32xbf16>, vector<32x64xbf16>, vector<16x64xf32> -> vector<16x64xf32>
    %428 = vector.broadcast %425 : vector<1x64xf32> to vector<16x64xf32>
    %429 = arith.addf %427, %428 : vector<16x64xf32>
    %430 = vector.shape_cast %429 : vector<16x64xf32> to vector<2x8x64xf32>
    %431 = vector.extract_strided_slice %430 {offsets = [0, 0, 0], sizes = [2, 8, 32], strides = [1, 1, 1]} : vector<2x8x64xf32> to vector<2x8x32xf32>
    %432 = vector.extract_strided_slice %430 {offsets = [0, 0, 32], sizes = [2, 8, 32], strides = [1, 1, 1]} : vector<2x8x64xf32> to vector<2x8x32xf32>
    %433 = vector.extract_strided_slice %421 {offsets = [0, 0, 0], sizes = [2, 8, 8], strides = [1, 1, 1]} : vector<2x8x32xf32> to vector<2x8x8xf32>
    %434 = vector.extract_strided_slice %431 {offsets = [0, 0, 0], sizes = [2, 8, 8], strides = [1, 1, 1]} : vector<2x8x32xf32> to vector<2x8x8xf32>
    "tpu.trace_start"() <{level = 10 : i32, message = "bqd,bkd->bqk"}> : () -> ()
    %cst_180 = arith.constant dense<0.000000e+00> : vector<2x8x8xf32>
    %435 = tpu.matmul %433, %434, %cst_180 {dimension_numbers = #tpu.dot_dimension_numbers<[2], [2], [1], [1], [0, 0, 0, 1, 1, 1], [0], [0]>} : vector<2x8x8xf32>, vector<2x8x8xf32>, vector<2x8x8xf32> -> vector<2x8x8xf32>
    "tpu.trace_stop"() : () -> ()
    %436 = vector.broadcast %16 : vector<2x1x8xf32> to vector<2x8x8xf32>
    %437 = arith.addf %435, %436 : vector<2x8x8xf32>
    %cst_181 = arith.constant dense<0xFF800000> : vector<2x8xf32>
    %438 = vector.multi_reduction <maximumf>, %437, %cst_181 [2] : vector<2x8x8xf32> to vector<2x8xf32>
    %439 = vector.shape_cast %438 : vector<2x8xf32> to vector<2x8x1xf32>
    %440 = vector.broadcast %439 : vector<2x8x1xf32> to vector<2x8x8xf32>
    %441 = arith.subf %437, %440 : vector<2x8x8xf32>
    %442 = math.exp %441 : vector<2x8x8xf32>
    %cst_182 = arith.constant dense<0.000000e+00> : vector<2x8xf32>
    %443 = vector.multi_reduction <add>, %442, %cst_182 [2] : vector<2x8x8xf32> to vector<2x8xf32>
    %444 = vector.shape_cast %443 : vector<2x8xf32> to vector<2x8x1xf32>
    %445 = tpu.reciprocal %444 {approx = true} : vector<2x8x1xf32> -> vector<2x8x1xf32>
    %446 = vector.broadcast %445 : vector<2x8x1xf32> to vector<2x8x8xf32>
    %447 = arith.mulf %442, %446 : vector<2x8x8xf32>
    %448 = vector.extract_strided_slice %432 {offsets = [0, 0, 0], sizes = [2, 8, 8], strides = [1, 1, 1]} : vector<2x8x32xf32> to vector<2x8x8xf32>
    "tpu.trace_start"() <{level = 10 : i32, message = "bqk,bkd->bqd"}> : () -> ()
    %cst_183 = arith.constant dense<0.000000e+00> : vector<2x8x8xf32>
    %449 = tpu.matmul %447, %448, %cst_183 {dimension_numbers = #tpu.dot_dimension_numbers<[2], [1], [1], [2], [0, 0, 0, 1, 1, 2], [0], [0]>} : vector<2x8x8xf32>, vector<2x8x8xf32>, vector<2x8x8xf32> -> vector<2x8x8xf32>
    "tpu.trace_stop"() : () -> ()
    %450 = vector.extract_strided_slice %421 {offsets = [0, 0, 8], sizes = [2, 8, 8], strides = [1, 1, 1]} : vector<2x8x32xf32> to vector<2x8x8xf32>
    %451 = vector.extract_strided_slice %431 {offsets = [0, 0, 8], sizes = [2, 8, 8], strides = [1, 1, 1]} : vector<2x8x32xf32> to vector<2x8x8xf32>
    "tpu.trace_start"() <{level = 10 : i32, message = "bqd,bkd->bqk"}> : () -> ()
    %cst_184 = arith.constant dense<0.000000e+00> : vector<2x8x8xf32>
    %452 = tpu.matmul %450, %451, %cst_184 {dimension_numbers = #tpu.dot_dimension_numbers<[2], [2], [1], [1], [0, 0, 0, 1, 1, 1], [0], [0]>} : vector<2x8x8xf32>, vector<2x8x8xf32>, vector<2x8x8xf32> -> vector<2x8x8xf32>
    "tpu.trace_stop"() : () -> ()
    %453 = vector.broadcast %16 : vector<2x1x8xf32> to vector<2x8x8xf32>
    %454 = arith.addf %452, %453 : vector<2x8x8xf32>
    %cst_185 = arith.constant dense<0xFF800000> : vector<2x8xf32>
    %455 = vector.multi_reduction <maximumf>, %454, %cst_185 [2] : vector<2x8x8xf32> to vector<2x8xf32>
    %456 = vector.shape_cast %455 : vector<2x8xf32> to vector<2x8x1xf32>
    %457 = vector.broadcast %456 : vector<2x8x1xf32> to vector<2x8x8xf32>
    %458 = arith.subf %454, %457 : vector<2x8x8xf32>
    %459 = math.exp %458 : vector<2x8x8xf32>
    %cst_186 = arith.constant dense<0.000000e+00> : vector<2x8xf32>
    %460 = vector.multi_reduction <add>, %459, %cst_186 [2] : vector<2x8x8xf32> to vector<2x8xf32>
    %461 = vector.shape_cast %460 : vector<2x8xf32> to vector<2x8x1xf32>
    %462 = tpu.reciprocal %461 {approx = true} : vector<2x8x1xf32> -> vector<2x8x1xf32>
    %463 = vector.broadcast %462 : vector<2x8x1xf32> to vector<2x8x8xf32>
    %464 = arith.mulf %459, %463 : vector<2x8x8xf32>
    %465 = vector.extract_strided_slice %432 {offsets = [0, 0, 8], sizes = [2, 8, 8], strides = [1, 1, 1]} : vector<2x8x32xf32> to vector<2x8x8xf32>
    "tpu.trace_start"() <{level = 10 : i32, message = "bqk,bkd->bqd"}> : () -> ()
    %cst_187 = arith.constant dense<0.000000e+00> : vector<2x8x8xf32>
    %466 = tpu.matmul %464, %465, %cst_187 {dimension_numbers = #tpu.dot_dimension_numbers<[2], [1], [1], [2], [0, 0, 0, 1, 1, 2], [0], [0]>} : vector<2x8x8xf32>, vector<2x8x8xf32>, vector<2x8x8xf32> -> vector<2x8x8xf32>
    "tpu.trace_stop"() : () -> ()
    %467 = vector.extract_strided_slice %421 {offsets = [0, 0, 16], sizes = [2, 8, 8], strides = [1, 1, 1]} : vector<2x8x32xf32> to vector<2x8x8xf32>
    %468 = vector.extract_strided_slice %431 {offsets = [0, 0, 16], sizes = [2, 8, 8], strides = [1, 1, 1]} : vector<2x8x32xf32> to vector<2x8x8xf32>
    "tpu.trace_start"() <{level = 10 : i32, message = "bqd,bkd->bqk"}> : () -> ()
    %cst_188 = arith.constant dense<0.000000e+00> : vector<2x8x8xf32>
    %469 = tpu.matmul %467, %468, %cst_188 {dimension_numbers = #tpu.dot_dimension_numbers<[2], [2], [1], [1], [0, 0, 0, 1, 1, 1], [0], [0]>} : vector<2x8x8xf32>, vector<2x8x8xf32>, vector<2x8x8xf32> -> vector<2x8x8xf32>
    "tpu.trace_stop"() : () -> ()
    %470 = vector.broadcast %16 : vector<2x1x8xf32> to vector<2x8x8xf32>
    %471 = arith.addf %469, %470 : vector<2x8x8xf32>
    %cst_189 = arith.constant dense<0xFF800000> : vector<2x8xf32>
    %472 = vector.multi_reduction <maximumf>, %471, %cst_189 [2] : vector<2x8x8xf32> to vector<2x8xf32>
    %473 = vector.shape_cast %472 : vector<2x8xf32> to vector<2x8x1xf32>
    %474 = vector.broadcast %473 : vector<2x8x1xf32> to vector<2x8x8xf32>
    %475 = arith.subf %471, %474 : vector<2x8x8xf32>
    %476 = math.exp %475 : vector<2x8x8xf32>
    %cst_190 = arith.constant dense<0.000000e+00> : vector<2x8xf32>
    %477 = vector.multi_reduction <add>, %476, %cst_190 [2] : vector<2x8x8xf32> to vector<2x8xf32>
    %478 = vector.shape_cast %477 : vector<2x8xf32> to vector<2x8x1xf32>
    %479 = tpu.reciprocal %478 {approx = true} : vector<2x8x1xf32> -> vector<2x8x1xf32>
    %480 = vector.broadcast %479 : vector<2x8x1xf32> to vector<2x8x8xf32>
    %481 = arith.mulf %476, %480 : vector<2x8x8xf32>
    %482 = vector.extract_strided_slice %432 {offsets = [0, 0, 16], sizes = [2, 8, 8], strides = [1, 1, 1]} : vector<2x8x32xf32> to vector<2x8x8xf32>
    "tpu.trace_start"() <{level = 10 : i32, message = "bqk,bkd->bqd"}> : () -> ()
    %cst_191 = arith.constant dense<0.000000e+00> : vector<2x8x8xf32>
    %483 = tpu.matmul %481, %482, %cst_191 {dimension_numbers = #tpu.dot_dimension_numbers<[2], [1], [1], [2], [0, 0, 0, 1, 1, 2], [0], [0]>} : vector<2x8x8xf32>, vector<2x8x8xf32>, vector<2x8x8xf32> -> vector<2x8x8xf32>
    "tpu.trace_stop"() : () -> ()
    %484 = vector.extract_strided_slice %421 {offsets = [0, 0, 24], sizes = [2, 8, 8], strides = [1, 1, 1]} : vector<2x8x32xf32> to vector<2x8x8xf32>
    %485 = vector.extract_strided_slice %431 {offsets = [0, 0, 24], sizes = [2, 8, 8], strides = [1, 1, 1]} : vector<2x8x32xf32> to vector<2x8x8xf32>
    "tpu.trace_start"() <{level = 10 : i32, message = "bqd,bkd->bqk"}> : () -> ()
    %cst_192 = arith.constant dense<0.000000e+00> : vector<2x8x8xf32>
    %486 = tpu.matmul %484, %485, %cst_192 {dimension_numbers = #tpu.dot_dimension_numbers<[2], [2], [1], [1], [0, 0, 0, 1, 1, 1], [0], [0]>} : vector<2x8x8xf32>, vector<2x8x8xf32>, vector<2x8x8xf32> -> vector<2x8x8xf32>
    "tpu.trace_stop"() : () -> ()
    %487 = vector.broadcast %16 : vector<2x1x8xf32> to vector<2x8x8xf32>
    %488 = arith.addf %486, %487 : vector<2x8x8xf32>
    %cst_193 = arith.constant dense<0xFF800000> : vector<2x8xf32>
    %489 = vector.multi_reduction <maximumf>, %488, %cst_193 [2] : vector<2x8x8xf32> to vector<2x8xf32>
    %490 = vector.shape_cast %489 : vector<2x8xf32> to vector<2x8x1xf32>
    %491 = vector.broadcast %490 : vector<2x8x1xf32> to vector<2x8x8xf32>
    %492 = arith.subf %488, %491 : vector<2x8x8xf32>
    %493 = math.exp %492 : vector<2x8x8xf32>
    %cst_194 = arith.constant dense<0.000000e+00> : vector<2x8xf32>
    %494 = vector.multi_reduction <add>, %493, %cst_194 [2] : vector<2x8x8xf32> to vector<2x8xf32>
    %495 = vector.shape_cast %494 : vector<2x8xf32> to vector<2x8x1xf32>
    %496 = tpu.reciprocal %495 {approx = true} : vector<2x8x1xf32> -> vector<2x8x1xf32>
    %497 = vector.broadcast %496 : vector<2x8x1xf32> to vector<2x8x8xf32>
    %498 = arith.mulf %493, %497 : vector<2x8x8xf32>
    %499 = vector.extract_strided_slice %432 {offsets = [0, 0, 24], sizes = [2, 8, 8], strides = [1, 1, 1]} : vector<2x8x32xf32> to vector<2x8x8xf32>
    "tpu.trace_start"() <{level = 10 : i32, message = "bqk,bkd->bqd"}> : () -> ()
    %cst_195 = arith.constant dense<0.000000e+00> : vector<2x8x8xf32>
    %500 = tpu.matmul %498, %499, %cst_195 {dimension_numbers = #tpu.dot_dimension_numbers<[2], [1], [1], [2], [0, 0, 0, 1, 1, 2], [0], [0]>} : vector<2x8x8xf32>, vector<2x8x8xf32>, vector<2x8x8xf32> -> vector<2x8x8xf32>
    "tpu.trace_stop"() : () -> ()
    %501 = tpu.concatenate %449, %466, %483, %500 in 2 : vector<2x8x8xf32>, vector<2x8x8xf32>, vector<2x8x8xf32>, vector<2x8x8xf32> -> vector<2x8x32xf32>
    %502 = vector.shape_cast %501 : vector<2x8x32xf32> to vector<16x32xf32>
    %c1_196 = arith.constant 1 : index
    %c0_197 = arith.constant 0 : index
    %c0_198 = arith.constant 0 : index
    %503 = vector.load %arg15[%c1_196, %c0_197, %c0_198] : memref<2x32x32xbf16, #tpu.memory_space<vmem>>, vector<1x32x32xbf16>
    %504 = vector.shape_cast %503 : vector<1x32x32xbf16> to vector<32x32xbf16>
    %c1_199 = arith.constant 1 : index
    %c0_200 = arith.constant 0 : index
    %c0_201 = arith.constant 0 : index
    %505 = vector.load %arg16[%c1_199, %c0_200, %c0_201] : memref<2x1x32xf32, #tpu.memory_space<vmem>>, vector<1x1x32xf32>
    %506 = vector.shape_cast %505 : vector<1x1x32xf32> to vector<1x32xf32>
    %507 = arith.truncf %502 : vector<16x32xf32> to vector<16x32xbf16>
    %cst_202 = arith.constant dense<0.000000e+00> : vector<16x32xf32>
    %508 = tpu.matmul %507, %504, %cst_202 {dimension_numbers = #tpu.dot_dimension_numbers<[1], [0], [0], [1], [0, 0, 1, 1], [], []>} : vector<16x32xbf16>, vector<32x32xbf16>, vector<16x32xf32> -> vector<16x32xf32>
    %509 = vector.broadcast %506 : vector<1x32xf32> to vector<16x32xf32>
    %510 = arith.addf %508, %509 : vector<16x32xf32>
    %511 = arith.addf %412, %510 : vector<16x32xf32>
    %c1_203 = arith.constant 1 : index
    %c0_204 = arith.constant 0 : index
    %c0_205 = arith.constant 0 : index
    %512 = vector.load %arg17[%c1_203, %c0_204, %c0_205] : memref<2x1x32xf32, #tpu.memory_space<vmem>>, vector<1x1x32xf32>
    %513 = vector.shape_cast %512 : vector<1x1x32xf32> to vector<1x32xf32>
    %c1_206 = arith.constant 1 : index
    %c0_207 = arith.constant 0 : index
    %c0_208 = arith.constant 0 : index
    %514 = vector.load %arg18[%c1_206, %c0_207, %c0_208] : memref<2x1x32xf32, #tpu.memory_space<vmem>>, vector<1x1x32xf32>
    %515 = vector.shape_cast %514 : vector<1x1x32xf32> to vector<1x32xf32>
    %cst_209 = arith.constant dense<0.000000e+00> : vector<16xf32>
    %516 = vector.multi_reduction <add>, %511, %cst_209 [1] : vector<16x32xf32> to vector<16xf32>
    %517 = vector.shape_cast %516 : vector<16xf32> to vector<16x1xf32>
    %cst_210 = arith.constant 3.200000e+01 : f32
    %518 = vector.broadcast %cst_210 : f32 to vector<16x1xf32>
    %519 = arith.divf %517, %518 : vector<16x1xf32>
    %520 = vector.broadcast %519 : vector<16x1xf32> to vector<16x32xf32>
    %521 = arith.subf %511, %520 : vector<16x32xf32>
    %522 = arith.mulf %521, %521 : vector<16x32xf32>
    %cst_211 = arith.constant dense<0.000000e+00> : vector<16xf32>
    %523 = vector.multi_reduction <add>, %522, %cst_211 [1] : vector<16x32xf32> to vector<16xf32>
    %524 = vector.shape_cast %523 : vector<16xf32> to vector<16x1xf32>
    %cst_212 = arith.constant 3.200000e+01 : f32
    %525 = vector.broadcast %cst_212 : f32 to vector<16x1xf32>
    %526 = arith.divf %524, %525 : vector<16x1xf32>
    %527 = vector.broadcast %519 : vector<16x1xf32> to vector<16x32xf32>
    %528 = arith.subf %511, %527 : vector<16x32xf32>
    %cst_213 = arith.constant 9.99999974E-6 : f32
    %529 = vector.broadcast %cst_213 : f32 to vector<16x1xf32>
    %530 = arith.addf %526, %529 : vector<16x1xf32>
    %531 = math.rsqrt %530 : vector<16x1xf32>
    %532 = vector.broadcast %531 : vector<16x1xf32> to vector<16x32xf32>
    %533 = arith.mulf %528, %532 : vector<16x32xf32>
    %534 = vector.broadcast %513 : vector<1x32xf32> to vector<16x32xf32>
    %535 = arith.mulf %533, %534 : vector<16x32xf32>
    %536 = vector.broadcast %515 : vector<1x32xf32> to vector<16x32xf32>
    %537 = arith.addf %535, %536 : vector<16x32xf32>
    %c1_214 = arith.constant 1 : index
    %c0_215 = arith.constant 0 : index
    %c0_216 = arith.constant 0 : index
    %538 = vector.load %arg19[%c1_214, %c0_215, %c0_216] : memref<2x32x64xbf16, #tpu.memory_space<vmem>>, vector<1x32x64xbf16>
    %539 = vector.shape_cast %538 : vector<1x32x64xbf16> to vector<32x64xbf16>
    %c1_217 = arith.constant 1 : index
    %c0_218 = arith.constant 0 : index
    %c0_219 = arith.constant 0 : index
    %540 = vector.load %arg20[%c1_217, %c0_218, %c0_219] : memref<2x1x64xf32, #tpu.memory_space<vmem>>, vector<1x1x64xf32>
    %541 = vector.shape_cast %540 : vector<1x1x64xf32> to vector<1x64xf32>
    %542 = arith.truncf %537 : vector<16x32xf32> to vector<16x32xbf16>
    %cst_220 = arith.constant dense<0.000000e+00> : vector<16x64xf32>
    %543 = tpu.matmul %542, %539, %cst_220 {dimension_numbers = #tpu.dot_dimension_numbers<[1], [0], [0], [1], [0, 0, 1, 1], [], []>} : vector<16x32xbf16>, vector<32x64xbf16>, vector<16x64xf32> -> vector<16x64xf32>
    %544 = vector.broadcast %541 : vector<1x64xf32> to vector<16x64xf32>
    %545 = arith.addf %543, %544 : vector<16x64xf32>
    %cst_221 = arith.constant 0.000000e+00 : f32
    %546 = vector.broadcast %cst_221 : f32 to vector<16x64xf32>
    %547 = arith.maximumf %545, %546 : vector<16x64xf32>
    %c1_222 = arith.constant 1 : index
    %c0_223 = arith.constant 0 : index
    %c0_224 = arith.constant 0 : index
    %548 = vector.load %arg21[%c1_222, %c0_223, %c0_224] : memref<2x64x32xbf16, #tpu.memory_space<vmem>>, vector<1x64x32xbf16>
    %549 = vector.shape_cast %548 : vector<1x64x32xbf16> to vector<64x32xbf16>
    %c1_225 = arith.constant 1 : index
    %c0_226 = arith.constant 0 : index
    %c0_227 = arith.constant 0 : index
    %550 = vector.load %arg22[%c1_225, %c0_226, %c0_227] : memref<2x1x32xf32, #tpu.memory_space<vmem>>, vector<1x1x32xf32>
    %551 = vector.shape_cast %550 : vector<1x1x32xf32> to vector<1x32xf32>
    %552 = arith.truncf %547 : vector<16x64xf32> to vector<16x64xbf16>
    %cst_228 = arith.constant dense<0.000000e+00> : vector<16x32xf32>
    %553 = tpu.matmul %552, %549, %cst_228 {dimension_numbers = #tpu.dot_dimension_numbers<[1], [0], [0], [1], [0, 0, 1, 1], [], []>} : vector<16x64xbf16>, vector<64x32xbf16>, vector<16x32xf32> -> vector<16x32xf32>
    %554 = vector.broadcast %551 : vector<1x32xf32> to vector<16x32xf32>
    %555 = arith.addf %553, %554 : vector<16x32xf32>
    %556 = arith.addf %537, %555 : vector<16x32xf32>
    %c1_229 = arith.constant 1 : index
    %c0_230 = arith.constant 0 : index
    %c0_231 = arith.constant 0 : index
    %557 = vector.load %arg23[%c1_229, %c0_230, %c0_231] : memref<2x1x32xf32, #tpu.memory_space<vmem>>, vector<1x1x32xf32>
    %558 = vector.shape_cast %557 : vector<1x1x32xf32> to vector<1x32xf32>
    %c1_232 = arith.constant 1 : index
    %c0_233 = arith.constant 0 : index
    %c0_234 = arith.constant 0 : index
    %559 = vector.load %arg24[%c1_232, %c0_233, %c0_234] : memref<2x1x32xf32, #tpu.memory_space<vmem>>, vector<1x1x32xf32>
    %560 = vector.shape_cast %559 : vector<1x1x32xf32> to vector<1x32xf32>
    %cst_235 = arith.constant dense<0.000000e+00> : vector<16xf32>
    %561 = vector.multi_reduction <add>, %556, %cst_235 [1] : vector<16x32xf32> to vector<16xf32>
    %562 = vector.shape_cast %561 : vector<16xf32> to vector<16x1xf32>
    %cst_236 = arith.constant 3.200000e+01 : f32
    %563 = vector.broadcast %cst_236 : f32 to vector<16x1xf32>
    %564 = arith.divf %562, %563 : vector<16x1xf32>
    %565 = vector.broadcast %564 : vector<16x1xf32> to vector<16x32xf32>
    %566 = arith.subf %556, %565 : vector<16x32xf32>
    %567 = arith.mulf %566, %566 : vector<16x32xf32>
    %cst_237 = arith.constant dense<0.000000e+00> : vector<16xf32>
    %568 = vector.multi_reduction <add>, %567, %cst_237 [1] : vector<16x32xf32> to vector<16xf32>
    %569 = vector.shape_cast %568 : vector<16xf32> to vector<16x1xf32>
    %cst_238 = arith.constant 3.200000e+01 : f32
    %570 = vector.broadcast %cst_238 : f32 to vector<16x1xf32>
    %571 = arith.divf %569, %570 : vector<16x1xf32>
    %572 = vector.broadcast %564 : vector<16x1xf32> to vector<16x32xf32>
    %573 = arith.subf %556, %572 : vector<16x32xf32>
    %cst_239 = arith.constant 9.99999974E-6 : f32
    %574 = vector.broadcast %cst_239 : f32 to vector<16x1xf32>
    %575 = arith.addf %571, %574 : vector<16x1xf32>
    %576 = math.rsqrt %575 : vector<16x1xf32>
    %577 = vector.broadcast %576 : vector<16x1xf32> to vector<16x32xf32>
    %578 = arith.mulf %573, %577 : vector<16x32xf32>
    %579 = vector.broadcast %558 : vector<1x32xf32> to vector<16x32xf32>
    %580 = arith.mulf %578, %579 : vector<16x32xf32>
    %581 = vector.broadcast %560 : vector<1x32xf32> to vector<16x32xf32>
    %582 = arith.addf %580, %581 : vector<16x32xf32>
    %c0_240 = arith.constant 0 : index
    %c0_241 = arith.constant 0 : index
    %583 = vector.load %arg25[%c0_240, %c0_241] : memref<32x128xbf16, #tpu.memory_space<vmem>>, vector<32x128xbf16>
    %c0_242 = arith.constant 0 : index
    %c0_243 = arith.constant 0 : index
    %584 = vector.load %arg26[%c0_242, %c0_243] : memref<1x128xf32, #tpu.memory_space<vmem>>, vector<1x128xf32>
    %585 = arith.truncf %582 : vector<16x32xf32> to vector<16x32xbf16>
    %cst_244 = arith.constant dense<0.000000e+00> : vector<16x128xf32>
    %586 = tpu.matmul %585, %583, %cst_244 {dimension_numbers = #tpu.dot_dimension_numbers<[1], [0], [0], [1], [0, 0, 1, 1], [], []>} : vector<16x32xbf16>, vector<32x128xbf16>, vector<16x128xf32> -> vector<16x128xf32>
    %587 = vector.broadcast %584 : vector<1x128xf32> to vector<16x128xf32>
    %588 = arith.addf %586, %587 : vector<16x128xf32>
    %589 = vector.shape_cast %588 : vector<16x128xf32> to vector<2x8x128xf32>
    %c0_245 = arith.constant 0 : index
    %c0_246 = arith.constant 0 : index
    %c0_247 = arith.constant 0 : index
    %590 = vector.load %arg27[%c0_245, %c0_246, %c0_247] : memref<2x8x128xf32, #tpu.memory_space<vmem>>, vector<2x8x128xf32>
    tpu.vector_store %arg27[%c0_245, %c0_246, %c0_247], %589 {strides = array<i32>} : memref<2x8x128xf32, #tpu.memory_space<vmem>>, vector<2x8x128xf32>,
    return
  }
  func.func @transform_0(%arg0: i32) -> (i32, i32, i32) {
    %c0_i32 = arith.constant 0 : i32
    %c0_i32_0 = arith.constant 0 : i32
    %c0_i32_1 = arith.constant 0 : i32
    return %arg0, %c0_i32, %c0_i32_0 : i32, i32, i32
  }
  func.func @transform_1(%arg0: i32) -> (i32, i32, i32) {
    %c0_i32 = arith.constant 0 : i32
    %c0_i32_0 = arith.constant 0 : i32
    %c0_i32_1 = arith.constant 0 : i32
    return %arg0, %c0_i32, %c0_i32_0 : i32, i32, i32
  }
  func.func @transform_2(%arg0: i32) -> (i32, i32, i32) {
    %c0_i32 = arith.constant 0 : i32
    %c0_i32_0 = arith.constant 0 : i32
    %c0_i32_1 = arith.constant 0 : i32
    return %arg0, %c0_i32, %c0_i32_0 : i32, i32, i32
  }
  func.func @transform_3(%arg0: i32) -> (i32, i32, i32) {
    %c0_i32 = arith.constant 0 : i32
    %c0_i32_0 = arith.constant 0 : i32
    %c0_i32_1 = arith.constant 0 : i32
    return %arg0, %c0_i32, %c0_i32_0 : i32, i32, i32
  }
  func.func @transform_4(%arg0: i32) -> (i32, i32, i32) {
    %c0_i32 = arith.constant 0 : i32
    %c0_i32_0 = arith.constant 0 : i32
    %c0_i32_1 = arith.constant 0 : i32
    %c0_i32_2 = arith.constant 0 : i32
    return %c0_i32, %c0_i32_0, %c0_i32_1 : i32, i32, i32
  }
  func.func @transform_5(%arg0: i32) -> (i32, i32, i32) {
    %c0_i32 = arith.constant 0 : i32
    %c0_i32_0 = arith.constant 0 : i32
    %c0_i32_1 = arith.constant 0 : i32
    %c0_i32_2 = arith.constant 0 : i32
    return %c0_i32, %c0_i32_0, %c0_i32_1 : i32, i32, i32
  }
  func.func @transform_6(%arg0: i32) -> (i32, i32, i32) {
    %c0_i32 = arith.constant 0 : i32
    %c0_i32_0 = arith.constant 0 : i32
    %c0_i32_1 = arith.constant 0 : i32
    %c0_i32_2 = arith.constant 0 : i32
    return %c0_i32, %c0_i32_0, %c0_i32_1 : i32, i32, i32
  }
  func.func @transform_7(%arg0: i32) -> (i32, i32, i32) {
    %c0_i32 = arith.constant 0 : i32
    %c0_i32_0 = arith.constant 0 : i32
    %c0_i32_1 = arith.constant 0 : i32
    %c0_i32_2 = arith.constant 0 : i32
    return %c0_i32, %c0_i32_0, %c0_i32_1 : i32, i32, i32
  }
  func.func @transform_8(%arg0: i32) -> (i32, i32, i32) {
    %c0_i32 = arith.constant 0 : i32
    %c0_i32_0 = arith.constant 0 : i32
    %c0_i32_1 = arith.constant 0 : i32
    %c0_i32_2 = arith.constant 0 : i32
    return %c0_i32, %c0_i32_0, %c0_i32_1 : i32, i32, i32
  }
  func.func @transform_9(%arg0: i32) -> (i32, i32, i32) {
    %c0_i32 = arith.constant 0 : i32
    %c0_i32_0 = arith.constant 0 : i32
    %c0_i32_1 = arith.constant 0 : i32
    %c0_i32_2 = arith.constant 0 : i32
    return %c0_i32, %c0_i32_0, %c0_i32_1 : i32, i32, i32
  }
  func.func @transform_10(%arg0: i32) -> (i32, i32, i32) {
    %c0_i32 = arith.constant 0 : i32
    %c0_i32_0 = arith.constant 0 : i32
    %c0_i32_1 = arith.constant 0 : i32
    %c0_i32_2 = arith.constant 0 : i32
    return %c0_i32, %c0_i32_0, %c0_i32_1 : i32, i32, i32
  }
  func.func @transform_11(%arg0: i32) -> (i32, i32, i32) {
    %c0_i32 = arith.constant 0 : i32
    %c0_i32_0 = arith.constant 0 : i32
    %c0_i32_1 = arith.constant 0 : i32
    %c0_i32_2 = arith.constant 0 : i32
    return %c0_i32, %c0_i32_0, %c0_i32_1 : i32, i32, i32
  }
  func.func @transform_12(%arg0: i32) -> (i32, i32, i32) {
    %c0_i32 = arith.constant 0 : i32
    %c0_i32_0 = arith.constant 0 : i32
    %c0_i32_1 = arith.constant 0 : i32
    %c0_i32_2 = arith.constant 0 : i32
    return %c0_i32, %c0_i32_0, %c0_i32_1 : i32, i32, i32
  }
  func.func @transform_13(%arg0: i32) -> (i32, i32, i32) {
    %c0_i32 = arith.constant 0 : i32
    %c0_i32_0 = arith.constant 0 : i32
    %c0_i32_1 = arith.constant 0 : i32
    %c0_i32_2 = arith.constant 0 : i32
    return %c0_i32, %c0_i32_0, %c0_i32_1 : i32, i32, i32
  }
  func.func @transform_14(%arg0: i32) -> (i32, i32, i32) {
    %c0_i32 = arith.constant 0 : i32
    %c0_i32_0 = arith.constant 0 : i32
    %c0_i32_1 = arith.constant 0 : i32
    %c0_i32_2 = arith.constant 0 : i32
    return %c0_i32, %c0_i32_0, %c0_i32_1 : i32, i32, i32
  }
  func.func @transform_15(%arg0: i32) -> (i32, i32, i32) {
    %c0_i32 = arith.constant 0 : i32
    %c0_i32_0 = arith.constant 0 : i32
    %c0_i32_1 = arith.constant 0 : i32
    %c0_i32_2 = arith.constant 0 : i32
    return %c0_i32, %c0_i32_0, %c0_i32_1 : i32, i32, i32
  }
  func.func @transform_16(%arg0: i32) -> (i32, i32, i32) {
    %c0_i32 = arith.constant 0 : i32
    %c0_i32_0 = arith.constant 0 : i32
    %c0_i32_1 = arith.constant 0 : i32
    %c0_i32_2 = arith.constant 0 : i32
    return %c0_i32, %c0_i32_0, %c0_i32_1 : i32, i32, i32
  }
  func.func @transform_17(%arg0: i32) -> (i32, i32, i32) {
    %c0_i32 = arith.constant 0 : i32
    %c0_i32_0 = arith.constant 0 : i32
    %c0_i32_1 = arith.constant 0 : i32
    %c0_i32_2 = arith.constant 0 : i32
    return %c0_i32, %c0_i32_0, %c0_i32_1 : i32, i32, i32
  }
  func.func @transform_18(%arg0: i32) -> (i32, i32, i32) {
    %c0_i32 = arith.constant 0 : i32
    %c0_i32_0 = arith.constant 0 : i32
    %c0_i32_1 = arith.constant 0 : i32
    %c0_i32_2 = arith.constant 0 : i32
    return %c0_i32, %c0_i32_0, %c0_i32_1 : i32, i32, i32
  }
  func.func @transform_19(%arg0: i32) -> (i32, i32, i32) {
    %c0_i32 = arith.constant 0 : i32
    %c0_i32_0 = arith.constant 0 : i32
    %c0_i32_1 = arith.constant 0 : i32
    %c0_i32_2 = arith.constant 0 : i32
    return %c0_i32, %c0_i32_0, %c0_i32_1 : i32, i32, i32
  }
  func.func @transform_20(%arg0: i32) -> (i32, i32, i32) {
    %c0_i32 = arith.constant 0 : i32
    %c0_i32_0 = arith.constant 0 : i32
    %c0_i32_1 = arith.constant 0 : i32
    %c0_i32_2 = arith.constant 0 : i32
    return %c0_i32, %c0_i32_0, %c0_i32_1 : i32, i32, i32
  }
  func.func @transform_21(%arg0: i32) -> (i32, i32, i32) {
    %c0_i32 = arith.constant 0 : i32
    %c0_i32_0 = arith.constant 0 : i32
    %c0_i32_1 = arith.constant 0 : i32
    %c0_i32_2 = arith.constant 0 : i32
    return %c0_i32, %c0_i32_0, %c0_i32_1 : i32, i32, i32
  }
  func.func @transform_22(%arg0: i32) -> (i32, i32, i32) {
    %c0_i32 = arith.constant 0 : i32
    %c0_i32_0 = arith.constant 0 : i32
    %c0_i32_1 = arith.constant 0 : i32
    %c0_i32_2 = arith.constant 0 : i32
    return %c0_i32, %c0_i32_0, %c0_i32_1 : i32, i32, i32
  }
  func.func @transform_23(%arg0: i32) -> (i32, i32, i32) {
    %c0_i32 = arith.constant 0 : i32
    %c0_i32_0 = arith.constant 0 : i32
    %c0_i32_1 = arith.constant 0 : i32
    %c0_i32_2 = arith.constant 0 : i32
    return %c0_i32, %c0_i32_0, %c0_i32_1 : i32, i32, i32
  }
  func.func @transform_24(%arg0: i32) -> (i32, i32) {
    %c0_i32 = arith.constant 0 : i32
    %c0_i32_0 = arith.constant 0 : i32
    %c0_i32_1 = arith.constant 0 : i32
    return %c0_i32, %c0_i32_0 : i32, i32
  }
  func.func @transform_25(%arg0: i32) -> (i32, i32) {
    %c0_i32 = arith.constant 0 : i32
    %c0_i32_0 = arith.constant 0 : i32
    %c0_i32_1 = arith.constant 0 : i32
    return %c0_i32, %c0_i32_0 : i32, i32
  }
  func.func @transform_26(%arg0: i32) -> (i32, i32, i32) {
    %c0_i32 = arith.constant 0 : i32
    %c0_i32_0 = arith.constant 0 : i32
    %c0_i32_1 = arith.constant 0 : i32
    return %arg0, %c0_i32, %c0_i32_0 : i32, i32, i32
  }
}

module attributes {stable_mosaic.version = 11 : i64} {
  func.func @_encoder_stack_kernel(%arg0: i32, %arg1: memref<2x8x32xf32, #tpu.memory_space<vmem>>, %arg2: memref<2x1x8xf32, #tpu.memory_space<vmem>>, %arg3: memref<2x32x96xbf16, #tpu.memory_space<vmem>>, %arg4: memref<2x1x96xf32, #tpu.memory_space<vmem>>, %arg5: memref<2x32x32xbf16, #tpu.memory_space<vmem>>, %arg6: memref<2x1x32xf32, #tpu.memory_space<vmem>>, %arg7: memref<2x1x32xf32, #tpu.memory_space<vmem>>, %arg8: memref<2x1x32xf32, #tpu.memory_space<vmem>>, %arg9: memref<2x32x64xbf16, #tpu.memory_space<vmem>>, %arg10: memref<2x1x64xf32, #tpu.memory_space<vmem>>, %arg11: memref<2x64x32xbf16, #tpu.memory_space<vmem>>, %arg12: memref<2x1x32xf32, #tpu.memory_space<vmem>>, %arg13: memref<2x1x32xf32, #tpu.memory_space<vmem>>, %arg14: memref<2x1x32xf32, #tpu.memory_space<vmem>>, %arg15: memref<2x8x32xf32, #tpu.memory_space<vmem>>) attributes {dimension_semantics = [#tpu.dimension_semantics<parallel>], iteration_bounds = array<i64: 1>, scalar_prefetch = 0 : i64, scratch_operands = 0 : i64, tpu.core_type = #tpu.core_type<tc>, window_params = [{transform_indices = @transform_0, window_bounds = array<i64: 2, 8, 32>}, {transform_indices = @transform_1, window_bounds = array<i64: 2, 1, 8>}, {pipeline_mode = #tpu.pipeline_mode<synchronous>, transform_indices = @transform_2, window_bounds = array<i64: 2, 32, 96>}, {pipeline_mode = #tpu.pipeline_mode<synchronous>, transform_indices = @transform_3, window_bounds = array<i64: 2, 1, 96>}, {pipeline_mode = #tpu.pipeline_mode<synchronous>, transform_indices = @transform_4, window_bounds = array<i64: 2, 32, 32>}, {pipeline_mode = #tpu.pipeline_mode<synchronous>, transform_indices = @transform_5, window_bounds = array<i64: 2, 1, 32>}, {pipeline_mode = #tpu.pipeline_mode<synchronous>, transform_indices = @transform_6, window_bounds = array<i64: 2, 1, 32>}, {pipeline_mode = #tpu.pipeline_mode<synchronous>, transform_indices = @transform_7, window_bounds = array<i64: 2, 1, 32>}, {pipeline_mode = #tpu.pipeline_mode<synchronous>, transform_indices = @transform_8, window_bounds = array<i64: 2, 32, 64>}, {pipeline_mode = #tpu.pipeline_mode<synchronous>, transform_indices = @transform_9, window_bounds = array<i64: 2, 1, 64>}, {pipeline_mode = #tpu.pipeline_mode<synchronous>, transform_indices = @transform_10, window_bounds = array<i64: 2, 64, 32>}, {pipeline_mode = #tpu.pipeline_mode<synchronous>, transform_indices = @transform_11, window_bounds = array<i64: 2, 1, 32>}, {pipeline_mode = #tpu.pipeline_mode<synchronous>, transform_indices = @transform_12, window_bounds = array<i64: 2, 1, 32>}, {pipeline_mode = #tpu.pipeline_mode<synchronous>, transform_indices = @transform_13, window_bounds = array<i64: 2, 1, 32>}, {transform_indices = @transform_14, window_bounds = array<i64: 2, 8, 32>}]} {
    %c0 = arith.constant 0 : index
    %c0_0 = arith.constant 0 : index
    %c0_1 = arith.constant 0 : index
    %0 = vector.load %arg1[%c0, %c0_0, %c0_1] : memref<2x8x32xf32, #tpu.memory_space<vmem>>, vector<2x8x32xf32>
    %1 = vector.shape_cast %0 : vector<2x8x32xf32> to vector<16x32xf32>
    %c0_2 = arith.constant 0 : index
    %c0_3 = arith.constant 0 : index
    %c0_4 = arith.constant 0 : index
    %2 = vector.load %arg2[%c0_2, %c0_3, %c0_4] : memref<2x1x8xf32, #tpu.memory_space<vmem>>, vector<2x1x8xf32>
    %c0_5 = arith.constant 0 : index
    %c0_6 = arith.constant 0 : index
    %c0_7 = arith.constant 0 : index
    %3 = vector.load %arg3[%c0_5, %c0_6, %c0_7] : memref<2x32x96xbf16, #tpu.memory_space<vmem>>, vector<1x32x96xbf16>
    %4 = vector.shape_cast %3 : vector<1x32x96xbf16> to vector<32x96xbf16>
    %c0_8 = arith.constant 0 : index
    %c0_9 = arith.constant 0 : index
    %c0_10 = arith.constant 0 : index
    %5 = vector.load %arg4[%c0_8, %c0_9, %c0_10] : memref<2x1x96xf32, #tpu.memory_space<vmem>>, vector<1x1x96xf32>
    %6 = vector.shape_cast %5 : vector<1x1x96xf32> to vector<1x96xf32>
    %7 = arith.truncf %1 : vector<16x32xf32> to vector<16x32xbf16>
    %cst = arith.constant dense<0.000000e+00> : vector<16x96xf32>
    %8 = tpu.matmul %7, %4, %cst {dimension_numbers = #tpu.dot_dimension_numbers<[1], [0], [0], [1], [0, 0, 1, 1], [], []>} : vector<16x32xbf16>, vector<32x96xbf16>, vector<16x96xf32> -> vector<16x96xf32>
    %9 = vector.broadcast %6 : vector<1x96xf32> to vector<16x96xf32>
    %10 = arith.addf %8, %9 : vector<16x96xf32>
    %11 = vector.shape_cast %10 : vector<16x96xf32> to vector<2x8x96xf32>
    %12 = vector.extract_strided_slice %11 {offsets = [0, 0, 0], sizes = [2, 8, 32], strides = [1, 1, 1]} : vector<2x8x96xf32> to vector<2x8x32xf32>
    %13 = vector.extract_strided_slice %11 {offsets = [0, 0, 32], sizes = [2, 8, 32], strides = [1, 1, 1]} : vector<2x8x96xf32> to vector<2x8x32xf32>
    %14 = vector.extract_strided_slice %11 {offsets = [0, 0, 64], sizes = [2, 8, 32], strides = [1, 1, 1]} : vector<2x8x96xf32> to vector<2x8x32xf32>
    %15 = vector.extract_strided_slice %12 {offsets = [0, 0, 0], sizes = [2, 8, 8], strides = [1, 1, 1]} : vector<2x8x32xf32> to vector<2x8x8xf32>
    %16 = vector.extract_strided_slice %13 {offsets = [0, 0, 0], sizes = [2, 8, 8], strides = [1, 1, 1]} : vector<2x8x32xf32> to vector<2x8x8xf32>
    "tpu.trace_start"() <{level = 10 : i32, message = "bqd,bkd->bqk"}> : () -> ()
    %cst_11 = arith.constant dense<0.000000e+00> : vector<2x8x8xf32>
    %17 = tpu.matmul %15, %16, %cst_11 {dimension_numbers = #tpu.dot_dimension_numbers<[2], [2], [1], [1], [0, 0, 0, 1, 1, 1], [0], [0]>} : vector<2x8x8xf32>, vector<2x8x8xf32>, vector<2x8x8xf32> -> vector<2x8x8xf32>
    "tpu.trace_stop"() : () -> ()
    %18 = vector.broadcast %2 : vector<2x1x8xf32> to vector<2x8x8xf32>
    %19 = arith.addf %17, %18 : vector<2x8x8xf32>
    %cst_12 = arith.constant dense<0xFF800000> : vector<2x8xf32>
    %20 = vector.multi_reduction <maximumf>, %19, %cst_12 [2] : vector<2x8x8xf32> to vector<2x8xf32>
    %21 = vector.shape_cast %20 : vector<2x8xf32> to vector<2x8x1xf32>
    %22 = vector.broadcast %21 : vector<2x8x1xf32> to vector<2x8x8xf32>
    %23 = arith.subf %19, %22 : vector<2x8x8xf32>
    %24 = math.exp %23 : vector<2x8x8xf32>
    %cst_13 = arith.constant dense<0.000000e+00> : vector<2x8xf32>
    %25 = vector.multi_reduction <add>, %24, %cst_13 [2] : vector<2x8x8xf32> to vector<2x8xf32>
    %26 = vector.shape_cast %25 : vector<2x8xf32> to vector<2x8x1xf32>
    %27 = tpu.reciprocal %26 {approx = true} : vector<2x8x1xf32> -> vector<2x8x1xf32>
    %28 = vector.broadcast %27 : vector<2x8x1xf32> to vector<2x8x8xf32>
    %29 = arith.mulf %24, %28 : vector<2x8x8xf32>
    %30 = vector.extract_strided_slice %14 {offsets = [0, 0, 0], sizes = [2, 8, 8], strides = [1, 1, 1]} : vector<2x8x32xf32> to vector<2x8x8xf32>
    "tpu.trace_start"() <{level = 10 : i32, message = "bqk,bkd->bqd"}> : () -> ()
    %cst_14 = arith.constant dense<0.000000e+00> : vector<2x8x8xf32>
    %31 = tpu.matmul %29, %30, %cst_14 {dimension_numbers = #tpu.dot_dimension_numbers<[2], [1], [1], [2], [0, 0, 0, 1, 1, 2], [0], [0]>} : vector<2x8x8xf32>, vector<2x8x8xf32>, vector<2x8x8xf32> -> vector<2x8x8xf32>
    "tpu.trace_stop"() : () -> ()
    %32 = vector.extract_strided_slice %12 {offsets = [0, 0, 8], sizes = [2, 8, 8], strides = [1, 1, 1]} : vector<2x8x32xf32> to vector<2x8x8xf32>
    %33 = vector.extract_strided_slice %13 {offsets = [0, 0, 8], sizes = [2, 8, 8], strides = [1, 1, 1]} : vector<2x8x32xf32> to vector<2x8x8xf32>
    "tpu.trace_start"() <{level = 10 : i32, message = "bqd,bkd->bqk"}> : () -> ()
    %cst_15 = arith.constant dense<0.000000e+00> : vector<2x8x8xf32>
    %34 = tpu.matmul %32, %33, %cst_15 {dimension_numbers = #tpu.dot_dimension_numbers<[2], [2], [1], [1], [0, 0, 0, 1, 1, 1], [0], [0]>} : vector<2x8x8xf32>, vector<2x8x8xf32>, vector<2x8x8xf32> -> vector<2x8x8xf32>
    "tpu.trace_stop"() : () -> ()
    %35 = vector.broadcast %2 : vector<2x1x8xf32> to vector<2x8x8xf32>
    %36 = arith.addf %34, %35 : vector<2x8x8xf32>
    %cst_16 = arith.constant dense<0xFF800000> : vector<2x8xf32>
    %37 = vector.multi_reduction <maximumf>, %36, %cst_16 [2] : vector<2x8x8xf32> to vector<2x8xf32>
    %38 = vector.shape_cast %37 : vector<2x8xf32> to vector<2x8x1xf32>
    %39 = vector.broadcast %38 : vector<2x8x1xf32> to vector<2x8x8xf32>
    %40 = arith.subf %36, %39 : vector<2x8x8xf32>
    %41 = math.exp %40 : vector<2x8x8xf32>
    %cst_17 = arith.constant dense<0.000000e+00> : vector<2x8xf32>
    %42 = vector.multi_reduction <add>, %41, %cst_17 [2] : vector<2x8x8xf32> to vector<2x8xf32>
    %43 = vector.shape_cast %42 : vector<2x8xf32> to vector<2x8x1xf32>
    %44 = tpu.reciprocal %43 {approx = true} : vector<2x8x1xf32> -> vector<2x8x1xf32>
    %45 = vector.broadcast %44 : vector<2x8x1xf32> to vector<2x8x8xf32>
    %46 = arith.mulf %41, %45 : vector<2x8x8xf32>
    %47 = vector.extract_strided_slice %14 {offsets = [0, 0, 8], sizes = [2, 8, 8], strides = [1, 1, 1]} : vector<2x8x32xf32> to vector<2x8x8xf32>
    "tpu.trace_start"() <{level = 10 : i32, message = "bqk,bkd->bqd"}> : () -> ()
    %cst_18 = arith.constant dense<0.000000e+00> : vector<2x8x8xf32>
    %48 = tpu.matmul %46, %47, %cst_18 {dimension_numbers = #tpu.dot_dimension_numbers<[2], [1], [1], [2], [0, 0, 0, 1, 1, 2], [0], [0]>} : vector<2x8x8xf32>, vector<2x8x8xf32>, vector<2x8x8xf32> -> vector<2x8x8xf32>
    "tpu.trace_stop"() : () -> ()
    %49 = vector.extract_strided_slice %12 {offsets = [0, 0, 16], sizes = [2, 8, 8], strides = [1, 1, 1]} : vector<2x8x32xf32> to vector<2x8x8xf32>
    %50 = vector.extract_strided_slice %13 {offsets = [0, 0, 16], sizes = [2, 8, 8], strides = [1, 1, 1]} : vector<2x8x32xf32> to vector<2x8x8xf32>
    "tpu.trace_start"() <{level = 10 : i32, message = "bqd,bkd->bqk"}> : () -> ()
    %cst_19 = arith.constant dense<0.000000e+00> : vector<2x8x8xf32>
    %51 = tpu.matmul %49, %50, %cst_19 {dimension_numbers = #tpu.dot_dimension_numbers<[2], [2], [1], [1], [0, 0, 0, 1, 1, 1], [0], [0]>} : vector<2x8x8xf32>, vector<2x8x8xf32>, vector<2x8x8xf32> -> vector<2x8x8xf32>
    "tpu.trace_stop"() : () -> ()
    %52 = vector.broadcast %2 : vector<2x1x8xf32> to vector<2x8x8xf32>
    %53 = arith.addf %51, %52 : vector<2x8x8xf32>
    %cst_20 = arith.constant dense<0xFF800000> : vector<2x8xf32>
    %54 = vector.multi_reduction <maximumf>, %53, %cst_20 [2] : vector<2x8x8xf32> to vector<2x8xf32>
    %55 = vector.shape_cast %54 : vector<2x8xf32> to vector<2x8x1xf32>
    %56 = vector.broadcast %55 : vector<2x8x1xf32> to vector<2x8x8xf32>
    %57 = arith.subf %53, %56 : vector<2x8x8xf32>
    %58 = math.exp %57 : vector<2x8x8xf32>
    %cst_21 = arith.constant dense<0.000000e+00> : vector<2x8xf32>
    %59 = vector.multi_reduction <add>, %58, %cst_21 [2] : vector<2x8x8xf32> to vector<2x8xf32>
    %60 = vector.shape_cast %59 : vector<2x8xf32> to vector<2x8x1xf32>
    %61 = tpu.reciprocal %60 {approx = true} : vector<2x8x1xf32> -> vector<2x8x1xf32>
    %62 = vector.broadcast %61 : vector<2x8x1xf32> to vector<2x8x8xf32>
    %63 = arith.mulf %58, %62 : vector<2x8x8xf32>
    %64 = vector.extract_strided_slice %14 {offsets = [0, 0, 16], sizes = [2, 8, 8], strides = [1, 1, 1]} : vector<2x8x32xf32> to vector<2x8x8xf32>
    "tpu.trace_start"() <{level = 10 : i32, message = "bqk,bkd->bqd"}> : () -> ()
    %cst_22 = arith.constant dense<0.000000e+00> : vector<2x8x8xf32>
    %65 = tpu.matmul %63, %64, %cst_22 {dimension_numbers = #tpu.dot_dimension_numbers<[2], [1], [1], [2], [0, 0, 0, 1, 1, 2], [0], [0]>} : vector<2x8x8xf32>, vector<2x8x8xf32>, vector<2x8x8xf32> -> vector<2x8x8xf32>
    "tpu.trace_stop"() : () -> ()
    %66 = vector.extract_strided_slice %12 {offsets = [0, 0, 24], sizes = [2, 8, 8], strides = [1, 1, 1]} : vector<2x8x32xf32> to vector<2x8x8xf32>
    %67 = vector.extract_strided_slice %13 {offsets = [0, 0, 24], sizes = [2, 8, 8], strides = [1, 1, 1]} : vector<2x8x32xf32> to vector<2x8x8xf32>
    "tpu.trace_start"() <{level = 10 : i32, message = "bqd,bkd->bqk"}> : () -> ()
    %cst_23 = arith.constant dense<0.000000e+00> : vector<2x8x8xf32>
    %68 = tpu.matmul %66, %67, %cst_23 {dimension_numbers = #tpu.dot_dimension_numbers<[2], [2], [1], [1], [0, 0, 0, 1, 1, 1], [0], [0]>} : vector<2x8x8xf32>, vector<2x8x8xf32>, vector<2x8x8xf32> -> vector<2x8x8xf32>
    "tpu.trace_stop"() : () -> ()
    %69 = vector.broadcast %2 : vector<2x1x8xf32> to vector<2x8x8xf32>
    %70 = arith.addf %68, %69 : vector<2x8x8xf32>
    %cst_24 = arith.constant dense<0xFF800000> : vector<2x8xf32>
    %71 = vector.multi_reduction <maximumf>, %70, %cst_24 [2] : vector<2x8x8xf32> to vector<2x8xf32>
    %72 = vector.shape_cast %71 : vector<2x8xf32> to vector<2x8x1xf32>
    %73 = vector.broadcast %72 : vector<2x8x1xf32> to vector<2x8x8xf32>
    %74 = arith.subf %70, %73 : vector<2x8x8xf32>
    %75 = math.exp %74 : vector<2x8x8xf32>
    %cst_25 = arith.constant dense<0.000000e+00> : vector<2x8xf32>
    %76 = vector.multi_reduction <add>, %75, %cst_25 [2] : vector<2x8x8xf32> to vector<2x8xf32>
    %77 = vector.shape_cast %76 : vector<2x8xf32> to vector<2x8x1xf32>
    %78 = tpu.reciprocal %77 {approx = true} : vector<2x8x1xf32> -> vector<2x8x1xf32>
    %79 = vector.broadcast %78 : vector<2x8x1xf32> to vector<2x8x8xf32>
    %80 = arith.mulf %75, %79 : vector<2x8x8xf32>
    %81 = vector.extract_strided_slice %14 {offsets = [0, 0, 24], sizes = [2, 8, 8], strides = [1, 1, 1]} : vector<2x8x32xf32> to vector<2x8x8xf32>
    "tpu.trace_start"() <{level = 10 : i32, message = "bqk,bkd->bqd"}> : () -> ()
    %cst_26 = arith.constant dense<0.000000e+00> : vector<2x8x8xf32>
    %82 = tpu.matmul %80, %81, %cst_26 {dimension_numbers = #tpu.dot_dimension_numbers<[2], [1], [1], [2], [0, 0, 0, 1, 1, 2], [0], [0]>} : vector<2x8x8xf32>, vector<2x8x8xf32>, vector<2x8x8xf32> -> vector<2x8x8xf32>
    "tpu.trace_stop"() : () -> ()
    %83 = tpu.concatenate %31, %48, %65, %82 in 2 : vector<2x8x8xf32>, vector<2x8x8xf32>, vector<2x8x8xf32>, vector<2x8x8xf32> -> vector<2x8x32xf32>
    %84 = vector.shape_cast %83 : vector<2x8x32xf32> to vector<16x32xf32>
    %c0_27 = arith.constant 0 : index
    %c0_28 = arith.constant 0 : index
    %c0_29 = arith.constant 0 : index
    %85 = vector.load %arg5[%c0_27, %c0_28, %c0_29] : memref<2x32x32xbf16, #tpu.memory_space<vmem>>, vector<1x32x32xbf16>
    %86 = vector.shape_cast %85 : vector<1x32x32xbf16> to vector<32x32xbf16>
    %c0_30 = arith.constant 0 : index
    %c0_31 = arith.constant 0 : index
    %c0_32 = arith.constant 0 : index
    %87 = vector.load %arg6[%c0_30, %c0_31, %c0_32] : memref<2x1x32xf32, #tpu.memory_space<vmem>>, vector<1x1x32xf32>
    %88 = vector.shape_cast %87 : vector<1x1x32xf32> to vector<1x32xf32>
    %89 = arith.truncf %84 : vector<16x32xf32> to vector<16x32xbf16>
    %cst_33 = arith.constant dense<0.000000e+00> : vector<16x32xf32>
    %90 = tpu.matmul %89, %86, %cst_33 {dimension_numbers = #tpu.dot_dimension_numbers<[1], [0], [0], [1], [0, 0, 1, 1], [], []>} : vector<16x32xbf16>, vector<32x32xbf16>, vector<16x32xf32> -> vector<16x32xf32>
    %91 = vector.broadcast %88 : vector<1x32xf32> to vector<16x32xf32>
    %92 = arith.addf %90, %91 : vector<16x32xf32>
    %93 = arith.addf %1, %92 : vector<16x32xf32>
    %c0_34 = arith.constant 0 : index
    %c0_35 = arith.constant 0 : index
    %c0_36 = arith.constant 0 : index
    %94 = vector.load %arg7[%c0_34, %c0_35, %c0_36] : memref<2x1x32xf32, #tpu.memory_space<vmem>>, vector<1x1x32xf32>
    %95 = vector.shape_cast %94 : vector<1x1x32xf32> to vector<1x32xf32>
    %c0_37 = arith.constant 0 : index
    %c0_38 = arith.constant 0 : index
    %c0_39 = arith.constant 0 : index
    %96 = vector.load %arg8[%c0_37, %c0_38, %c0_39] : memref<2x1x32xf32, #tpu.memory_space<vmem>>, vector<1x1x32xf32>
    %97 = vector.shape_cast %96 : vector<1x1x32xf32> to vector<1x32xf32>
    %cst_40 = arith.constant dense<0.000000e+00> : vector<16xf32>
    %98 = vector.multi_reduction <add>, %93, %cst_40 [1] : vector<16x32xf32> to vector<16xf32>
    %99 = vector.shape_cast %98 : vector<16xf32> to vector<16x1xf32>
    %cst_41 = arith.constant 3.200000e+01 : f32
    %100 = vector.broadcast %cst_41 : f32 to vector<16x1xf32>
    %101 = arith.divf %99, %100 : vector<16x1xf32>
    %102 = vector.broadcast %101 : vector<16x1xf32> to vector<16x32xf32>
    %103 = arith.subf %93, %102 : vector<16x32xf32>
    %104 = arith.mulf %103, %103 : vector<16x32xf32>
    %cst_42 = arith.constant dense<0.000000e+00> : vector<16xf32>
    %105 = vector.multi_reduction <add>, %104, %cst_42 [1] : vector<16x32xf32> to vector<16xf32>
    %106 = vector.shape_cast %105 : vector<16xf32> to vector<16x1xf32>
    %cst_43 = arith.constant 3.200000e+01 : f32
    %107 = vector.broadcast %cst_43 : f32 to vector<16x1xf32>
    %108 = arith.divf %106, %107 : vector<16x1xf32>
    %109 = vector.broadcast %101 : vector<16x1xf32> to vector<16x32xf32>
    %110 = arith.subf %93, %109 : vector<16x32xf32>
    %cst_44 = arith.constant 9.99999974E-6 : f32
    %111 = vector.broadcast %cst_44 : f32 to vector<16x1xf32>
    %112 = arith.addf %108, %111 : vector<16x1xf32>
    %113 = math.rsqrt %112 : vector<16x1xf32>
    %114 = vector.broadcast %113 : vector<16x1xf32> to vector<16x32xf32>
    %115 = arith.mulf %110, %114 : vector<16x32xf32>
    %116 = vector.broadcast %95 : vector<1x32xf32> to vector<16x32xf32>
    %117 = arith.mulf %115, %116 : vector<16x32xf32>
    %118 = vector.broadcast %97 : vector<1x32xf32> to vector<16x32xf32>
    %119 = arith.addf %117, %118 : vector<16x32xf32>
    %c0_45 = arith.constant 0 : index
    %c0_46 = arith.constant 0 : index
    %c0_47 = arith.constant 0 : index
    %120 = vector.load %arg9[%c0_45, %c0_46, %c0_47] : memref<2x32x64xbf16, #tpu.memory_space<vmem>>, vector<1x32x64xbf16>
    %121 = vector.shape_cast %120 : vector<1x32x64xbf16> to vector<32x64xbf16>
    %c0_48 = arith.constant 0 : index
    %c0_49 = arith.constant 0 : index
    %c0_50 = arith.constant 0 : index
    %122 = vector.load %arg10[%c0_48, %c0_49, %c0_50] : memref<2x1x64xf32, #tpu.memory_space<vmem>>, vector<1x1x64xf32>
    %123 = vector.shape_cast %122 : vector<1x1x64xf32> to vector<1x64xf32>
    %124 = arith.truncf %119 : vector<16x32xf32> to vector<16x32xbf16>
    %cst_51 = arith.constant dense<0.000000e+00> : vector<16x64xf32>
    %125 = tpu.matmul %124, %121, %cst_51 {dimension_numbers = #tpu.dot_dimension_numbers<[1], [0], [0], [1], [0, 0, 1, 1], [], []>} : vector<16x32xbf16>, vector<32x64xbf16>, vector<16x64xf32> -> vector<16x64xf32>
    %126 = vector.broadcast %123 : vector<1x64xf32> to vector<16x64xf32>
    %127 = arith.addf %125, %126 : vector<16x64xf32>
    %cst_52 = arith.constant 0.000000e+00 : f32
    %128 = vector.broadcast %cst_52 : f32 to vector<16x64xf32>
    %129 = arith.maximumf %127, %128 : vector<16x64xf32>
    %c0_53 = arith.constant 0 : index
    %c0_54 = arith.constant 0 : index
    %c0_55 = arith.constant 0 : index
    %130 = vector.load %arg11[%c0_53, %c0_54, %c0_55] : memref<2x64x32xbf16, #tpu.memory_space<vmem>>, vector<1x64x32xbf16>
    %131 = vector.shape_cast %130 : vector<1x64x32xbf16> to vector<64x32xbf16>
    %c0_56 = arith.constant 0 : index
    %c0_57 = arith.constant 0 : index
    %c0_58 = arith.constant 0 : index
    %132 = vector.load %arg12[%c0_56, %c0_57, %c0_58] : memref<2x1x32xf32, #tpu.memory_space<vmem>>, vector<1x1x32xf32>
    %133 = vector.shape_cast %132 : vector<1x1x32xf32> to vector<1x32xf32>
    %134 = arith.truncf %129 : vector<16x64xf32> to vector<16x64xbf16>
    %cst_59 = arith.constant dense<0.000000e+00> : vector<16x32xf32>
    %135 = tpu.matmul %134, %131, %cst_59 {dimension_numbers = #tpu.dot_dimension_numbers<[1], [0], [0], [1], [0, 0, 1, 1], [], []>} : vector<16x64xbf16>, vector<64x32xbf16>, vector<16x32xf32> -> vector<16x32xf32>
    %136 = vector.broadcast %133 : vector<1x32xf32> to vector<16x32xf32>
    %137 = arith.addf %135, %136 : vector<16x32xf32>
    %138 = arith.addf %119, %137 : vector<16x32xf32>
    %c0_60 = arith.constant 0 : index
    %c0_61 = arith.constant 0 : index
    %c0_62 = arith.constant 0 : index
    %139 = vector.load %arg13[%c0_60, %c0_61, %c0_62] : memref<2x1x32xf32, #tpu.memory_space<vmem>>, vector<1x1x32xf32>
    %140 = vector.shape_cast %139 : vector<1x1x32xf32> to vector<1x32xf32>
    %c0_63 = arith.constant 0 : index
    %c0_64 = arith.constant 0 : index
    %c0_65 = arith.constant 0 : index
    %141 = vector.load %arg14[%c0_63, %c0_64, %c0_65] : memref<2x1x32xf32, #tpu.memory_space<vmem>>, vector<1x1x32xf32>
    %142 = vector.shape_cast %141 : vector<1x1x32xf32> to vector<1x32xf32>
    %cst_66 = arith.constant dense<0.000000e+00> : vector<16xf32>
    %143 = vector.multi_reduction <add>, %138, %cst_66 [1] : vector<16x32xf32> to vector<16xf32>
    %144 = vector.shape_cast %143 : vector<16xf32> to vector<16x1xf32>
    %cst_67 = arith.constant 3.200000e+01 : f32
    %145 = vector.broadcast %cst_67 : f32 to vector<16x1xf32>
    %146 = arith.divf %144, %145 : vector<16x1xf32>
    %147 = vector.broadcast %146 : vector<16x1xf32> to vector<16x32xf32>
    %148 = arith.subf %138, %147 : vector<16x32xf32>
    %149 = arith.mulf %148, %148 : vector<16x32xf32>
    %cst_68 = arith.constant dense<0.000000e+00> : vector<16xf32>
    %150 = vector.multi_reduction <add>, %149, %cst_68 [1] : vector<16x32xf32> to vector<16xf32>
    %151 = vector.shape_cast %150 : vector<16xf32> to vector<16x1xf32>
    %cst_69 = arith.constant 3.200000e+01 : f32
    %152 = vector.broadcast %cst_69 : f32 to vector<16x1xf32>
    %153 = arith.divf %151, %152 : vector<16x1xf32>
    %154 = vector.broadcast %146 : vector<16x1xf32> to vector<16x32xf32>
    %155 = arith.subf %138, %154 : vector<16x32xf32>
    %cst_70 = arith.constant 9.99999974E-6 : f32
    %156 = vector.broadcast %cst_70 : f32 to vector<16x1xf32>
    %157 = arith.addf %153, %156 : vector<16x1xf32>
    %158 = math.rsqrt %157 : vector<16x1xf32>
    %159 = vector.broadcast %158 : vector<16x1xf32> to vector<16x32xf32>
    %160 = arith.mulf %155, %159 : vector<16x32xf32>
    %161 = vector.broadcast %140 : vector<1x32xf32> to vector<16x32xf32>
    %162 = arith.mulf %160, %161 : vector<16x32xf32>
    %163 = vector.broadcast %142 : vector<1x32xf32> to vector<16x32xf32>
    %164 = arith.addf %162, %163 : vector<16x32xf32>
    %c1 = arith.constant 1 : index
    %c0_71 = arith.constant 0 : index
    %c0_72 = arith.constant 0 : index
    %165 = vector.load %arg3[%c1, %c0_71, %c0_72] : memref<2x32x96xbf16, #tpu.memory_space<vmem>>, vector<1x32x96xbf16>
    %166 = vector.shape_cast %165 : vector<1x32x96xbf16> to vector<32x96xbf16>
    %c1_73 = arith.constant 1 : index
    %c0_74 = arith.constant 0 : index
    %c0_75 = arith.constant 0 : index
    %167 = vector.load %arg4[%c1_73, %c0_74, %c0_75] : memref<2x1x96xf32, #tpu.memory_space<vmem>>, vector<1x1x96xf32>
    %168 = vector.shape_cast %167 : vector<1x1x96xf32> to vector<1x96xf32>
    %169 = arith.truncf %164 : vector<16x32xf32> to vector<16x32xbf16>
    %cst_76 = arith.constant dense<0.000000e+00> : vector<16x96xf32>
    %170 = tpu.matmul %169, %166, %cst_76 {dimension_numbers = #tpu.dot_dimension_numbers<[1], [0], [0], [1], [0, 0, 1, 1], [], []>} : vector<16x32xbf16>, vector<32x96xbf16>, vector<16x96xf32> -> vector<16x96xf32>
    %171 = vector.broadcast %168 : vector<1x96xf32> to vector<16x96xf32>
    %172 = arith.addf %170, %171 : vector<16x96xf32>
    %173 = vector.shape_cast %172 : vector<16x96xf32> to vector<2x8x96xf32>
    %174 = vector.extract_strided_slice %173 {offsets = [0, 0, 0], sizes = [2, 8, 32], strides = [1, 1, 1]} : vector<2x8x96xf32> to vector<2x8x32xf32>
    %175 = vector.extract_strided_slice %173 {offsets = [0, 0, 32], sizes = [2, 8, 32], strides = [1, 1, 1]} : vector<2x8x96xf32> to vector<2x8x32xf32>
    %176 = vector.extract_strided_slice %173 {offsets = [0, 0, 64], sizes = [2, 8, 32], strides = [1, 1, 1]} : vector<2x8x96xf32> to vector<2x8x32xf32>
    %177 = vector.extract_strided_slice %174 {offsets = [0, 0, 0], sizes = [2, 8, 8], strides = [1, 1, 1]} : vector<2x8x32xf32> to vector<2x8x8xf32>
    %178 = vector.extract_strided_slice %175 {offsets = [0, 0, 0], sizes = [2, 8, 8], strides = [1, 1, 1]} : vector<2x8x32xf32> to vector<2x8x8xf32>
    "tpu.trace_start"() <{level = 10 : i32, message = "bqd,bkd->bqk"}> : () -> ()
    %cst_77 = arith.constant dense<0.000000e+00> : vector<2x8x8xf32>
    %179 = tpu.matmul %177, %178, %cst_77 {dimension_numbers = #tpu.dot_dimension_numbers<[2], [2], [1], [1], [0, 0, 0, 1, 1, 1], [0], [0]>} : vector<2x8x8xf32>, vector<2x8x8xf32>, vector<2x8x8xf32> -> vector<2x8x8xf32>
    "tpu.trace_stop"() : () -> ()
    %180 = vector.broadcast %2 : vector<2x1x8xf32> to vector<2x8x8xf32>
    %181 = arith.addf %179, %180 : vector<2x8x8xf32>
    %cst_78 = arith.constant dense<0xFF800000> : vector<2x8xf32>
    %182 = vector.multi_reduction <maximumf>, %181, %cst_78 [2] : vector<2x8x8xf32> to vector<2x8xf32>
    %183 = vector.shape_cast %182 : vector<2x8xf32> to vector<2x8x1xf32>
    %184 = vector.broadcast %183 : vector<2x8x1xf32> to vector<2x8x8xf32>
    %185 = arith.subf %181, %184 : vector<2x8x8xf32>
    %186 = math.exp %185 : vector<2x8x8xf32>
    %cst_79 = arith.constant dense<0.000000e+00> : vector<2x8xf32>
    %187 = vector.multi_reduction <add>, %186, %cst_79 [2] : vector<2x8x8xf32> to vector<2x8xf32>
    %188 = vector.shape_cast %187 : vector<2x8xf32> to vector<2x8x1xf32>
    %189 = tpu.reciprocal %188 {approx = true} : vector<2x8x1xf32> -> vector<2x8x1xf32>
    %190 = vector.broadcast %189 : vector<2x8x1xf32> to vector<2x8x8xf32>
    %191 = arith.mulf %186, %190 : vector<2x8x8xf32>
    %192 = vector.extract_strided_slice %176 {offsets = [0, 0, 0], sizes = [2, 8, 8], strides = [1, 1, 1]} : vector<2x8x32xf32> to vector<2x8x8xf32>
    "tpu.trace_start"() <{level = 10 : i32, message = "bqk,bkd->bqd"}> : () -> ()
    %cst_80 = arith.constant dense<0.000000e+00> : vector<2x8x8xf32>
    %193 = tpu.matmul %191, %192, %cst_80 {dimension_numbers = #tpu.dot_dimension_numbers<[2], [1], [1], [2], [0, 0, 0, 1, 1, 2], [0], [0]>} : vector<2x8x8xf32>, vector<2x8x8xf32>, vector<2x8x8xf32> -> vector<2x8x8xf32>
    "tpu.trace_stop"() : () -> ()
    %194 = vector.extract_strided_slice %174 {offsets = [0, 0, 8], sizes = [2, 8, 8], strides = [1, 1, 1]} : vector<2x8x32xf32> to vector<2x8x8xf32>
    %195 = vector.extract_strided_slice %175 {offsets = [0, 0, 8], sizes = [2, 8, 8], strides = [1, 1, 1]} : vector<2x8x32xf32> to vector<2x8x8xf32>
    "tpu.trace_start"() <{level = 10 : i32, message = "bqd,bkd->bqk"}> : () -> ()
    %cst_81 = arith.constant dense<0.000000e+00> : vector<2x8x8xf32>
    %196 = tpu.matmul %194, %195, %cst_81 {dimension_numbers = #tpu.dot_dimension_numbers<[2], [2], [1], [1], [0, 0, 0, 1, 1, 1], [0], [0]>} : vector<2x8x8xf32>, vector<2x8x8xf32>, vector<2x8x8xf32> -> vector<2x8x8xf32>
    "tpu.trace_stop"() : () -> ()
    %197 = vector.broadcast %2 : vector<2x1x8xf32> to vector<2x8x8xf32>
    %198 = arith.addf %196, %197 : vector<2x8x8xf32>
    %cst_82 = arith.constant dense<0xFF800000> : vector<2x8xf32>
    %199 = vector.multi_reduction <maximumf>, %198, %cst_82 [2] : vector<2x8x8xf32> to vector<2x8xf32>
    %200 = vector.shape_cast %199 : vector<2x8xf32> to vector<2x8x1xf32>
    %201 = vector.broadcast %200 : vector<2x8x1xf32> to vector<2x8x8xf32>
    %202 = arith.subf %198, %201 : vector<2x8x8xf32>
    %203 = math.exp %202 : vector<2x8x8xf32>
    %cst_83 = arith.constant dense<0.000000e+00> : vector<2x8xf32>
    %204 = vector.multi_reduction <add>, %203, %cst_83 [2] : vector<2x8x8xf32> to vector<2x8xf32>
    %205 = vector.shape_cast %204 : vector<2x8xf32> to vector<2x8x1xf32>
    %206 = tpu.reciprocal %205 {approx = true} : vector<2x8x1xf32> -> vector<2x8x1xf32>
    %207 = vector.broadcast %206 : vector<2x8x1xf32> to vector<2x8x8xf32>
    %208 = arith.mulf %203, %207 : vector<2x8x8xf32>
    %209 = vector.extract_strided_slice %176 {offsets = [0, 0, 8], sizes = [2, 8, 8], strides = [1, 1, 1]} : vector<2x8x32xf32> to vector<2x8x8xf32>
    "tpu.trace_start"() <{level = 10 : i32, message = "bqk,bkd->bqd"}> : () -> ()
    %cst_84 = arith.constant dense<0.000000e+00> : vector<2x8x8xf32>
    %210 = tpu.matmul %208, %209, %cst_84 {dimension_numbers = #tpu.dot_dimension_numbers<[2], [1], [1], [2], [0, 0, 0, 1, 1, 2], [0], [0]>} : vector<2x8x8xf32>, vector<2x8x8xf32>, vector<2x8x8xf32> -> vector<2x8x8xf32>
    "tpu.trace_stop"() : () -> ()
    %211 = vector.extract_strided_slice %174 {offsets = [0, 0, 16], sizes = [2, 8, 8], strides = [1, 1, 1]} : vector<2x8x32xf32> to vector<2x8x8xf32>
    %212 = vector.extract_strided_slice %175 {offsets = [0, 0, 16], sizes = [2, 8, 8], strides = [1, 1, 1]} : vector<2x8x32xf32> to vector<2x8x8xf32>
    "tpu.trace_start"() <{level = 10 : i32, message = "bqd,bkd->bqk"}> : () -> ()
    %cst_85 = arith.constant dense<0.000000e+00> : vector<2x8x8xf32>
    %213 = tpu.matmul %211, %212, %cst_85 {dimension_numbers = #tpu.dot_dimension_numbers<[2], [2], [1], [1], [0, 0, 0, 1, 1, 1], [0], [0]>} : vector<2x8x8xf32>, vector<2x8x8xf32>, vector<2x8x8xf32> -> vector<2x8x8xf32>
    "tpu.trace_stop"() : () -> ()
    %214 = vector.broadcast %2 : vector<2x1x8xf32> to vector<2x8x8xf32>
    %215 = arith.addf %213, %214 : vector<2x8x8xf32>
    %cst_86 = arith.constant dense<0xFF800000> : vector<2x8xf32>
    %216 = vector.multi_reduction <maximumf>, %215, %cst_86 [2] : vector<2x8x8xf32> to vector<2x8xf32>
    %217 = vector.shape_cast %216 : vector<2x8xf32> to vector<2x8x1xf32>
    %218 = vector.broadcast %217 : vector<2x8x1xf32> to vector<2x8x8xf32>
    %219 = arith.subf %215, %218 : vector<2x8x8xf32>
    %220 = math.exp %219 : vector<2x8x8xf32>
    %cst_87 = arith.constant dense<0.000000e+00> : vector<2x8xf32>
    %221 = vector.multi_reduction <add>, %220, %cst_87 [2] : vector<2x8x8xf32> to vector<2x8xf32>
    %222 = vector.shape_cast %221 : vector<2x8xf32> to vector<2x8x1xf32>
    %223 = tpu.reciprocal %222 {approx = true} : vector<2x8x1xf32> -> vector<2x8x1xf32>
    %224 = vector.broadcast %223 : vector<2x8x1xf32> to vector<2x8x8xf32>
    %225 = arith.mulf %220, %224 : vector<2x8x8xf32>
    %226 = vector.extract_strided_slice %176 {offsets = [0, 0, 16], sizes = [2, 8, 8], strides = [1, 1, 1]} : vector<2x8x32xf32> to vector<2x8x8xf32>
    "tpu.trace_start"() <{level = 10 : i32, message = "bqk,bkd->bqd"}> : () -> ()
    %cst_88 = arith.constant dense<0.000000e+00> : vector<2x8x8xf32>
    %227 = tpu.matmul %225, %226, %cst_88 {dimension_numbers = #tpu.dot_dimension_numbers<[2], [1], [1], [2], [0, 0, 0, 1, 1, 2], [0], [0]>} : vector<2x8x8xf32>, vector<2x8x8xf32>, vector<2x8x8xf32> -> vector<2x8x8xf32>
    "tpu.trace_stop"() : () -> ()
    %228 = vector.extract_strided_slice %174 {offsets = [0, 0, 24], sizes = [2, 8, 8], strides = [1, 1, 1]} : vector<2x8x32xf32> to vector<2x8x8xf32>
    %229 = vector.extract_strided_slice %175 {offsets = [0, 0, 24], sizes = [2, 8, 8], strides = [1, 1, 1]} : vector<2x8x32xf32> to vector<2x8x8xf32>
    "tpu.trace_start"() <{level = 10 : i32, message = "bqd,bkd->bqk"}> : () -> ()
    %cst_89 = arith.constant dense<0.000000e+00> : vector<2x8x8xf32>
    %230 = tpu.matmul %228, %229, %cst_89 {dimension_numbers = #tpu.dot_dimension_numbers<[2], [2], [1], [1], [0, 0, 0, 1, 1, 1], [0], [0]>} : vector<2x8x8xf32>, vector<2x8x8xf32>, vector<2x8x8xf32> -> vector<2x8x8xf32>
    "tpu.trace_stop"() : () -> ()
    %231 = vector.broadcast %2 : vector<2x1x8xf32> to vector<2x8x8xf32>
    %232 = arith.addf %230, %231 : vector<2x8x8xf32>
    %cst_90 = arith.constant dense<0xFF800000> : vector<2x8xf32>
    %233 = vector.multi_reduction <maximumf>, %232, %cst_90 [2] : vector<2x8x8xf32> to vector<2x8xf32>
    %234 = vector.shape_cast %233 : vector<2x8xf32> to vector<2x8x1xf32>
    %235 = vector.broadcast %234 : vector<2x8x1xf32> to vector<2x8x8xf32>
    %236 = arith.subf %232, %235 : vector<2x8x8xf32>
    %237 = math.exp %236 : vector<2x8x8xf32>
    %cst_91 = arith.constant dense<0.000000e+00> : vector<2x8xf32>
    %238 = vector.multi_reduction <add>, %237, %cst_91 [2] : vector<2x8x8xf32> to vector<2x8xf32>
    %239 = vector.shape_cast %238 : vector<2x8xf32> to vector<2x8x1xf32>
    %240 = tpu.reciprocal %239 {approx = true} : vector<2x8x1xf32> -> vector<2x8x1xf32>
    %241 = vector.broadcast %240 : vector<2x8x1xf32> to vector<2x8x8xf32>
    %242 = arith.mulf %237, %241 : vector<2x8x8xf32>
    %243 = vector.extract_strided_slice %176 {offsets = [0, 0, 24], sizes = [2, 8, 8], strides = [1, 1, 1]} : vector<2x8x32xf32> to vector<2x8x8xf32>
    "tpu.trace_start"() <{level = 10 : i32, message = "bqk,bkd->bqd"}> : () -> ()
    %cst_92 = arith.constant dense<0.000000e+00> : vector<2x8x8xf32>
    %244 = tpu.matmul %242, %243, %cst_92 {dimension_numbers = #tpu.dot_dimension_numbers<[2], [1], [1], [2], [0, 0, 0, 1, 1, 2], [0], [0]>} : vector<2x8x8xf32>, vector<2x8x8xf32>, vector<2x8x8xf32> -> vector<2x8x8xf32>
    "tpu.trace_stop"() : () -> ()
    %245 = tpu.concatenate %193, %210, %227, %244 in 2 : vector<2x8x8xf32>, vector<2x8x8xf32>, vector<2x8x8xf32>, vector<2x8x8xf32> -> vector<2x8x32xf32>
    %246 = vector.shape_cast %245 : vector<2x8x32xf32> to vector<16x32xf32>
    %c1_93 = arith.constant 1 : index
    %c0_94 = arith.constant 0 : index
    %c0_95 = arith.constant 0 : index
    %247 = vector.load %arg5[%c1_93, %c0_94, %c0_95] : memref<2x32x32xbf16, #tpu.memory_space<vmem>>, vector<1x32x32xbf16>
    %248 = vector.shape_cast %247 : vector<1x32x32xbf16> to vector<32x32xbf16>
    %c1_96 = arith.constant 1 : index
    %c0_97 = arith.constant 0 : index
    %c0_98 = arith.constant 0 : index
    %249 = vector.load %arg6[%c1_96, %c0_97, %c0_98] : memref<2x1x32xf32, #tpu.memory_space<vmem>>, vector<1x1x32xf32>
    %250 = vector.shape_cast %249 : vector<1x1x32xf32> to vector<1x32xf32>
    %251 = arith.truncf %246 : vector<16x32xf32> to vector<16x32xbf16>
    %cst_99 = arith.constant dense<0.000000e+00> : vector<16x32xf32>
    %252 = tpu.matmul %251, %248, %cst_99 {dimension_numbers = #tpu.dot_dimension_numbers<[1], [0], [0], [1], [0, 0, 1, 1], [], []>} : vector<16x32xbf16>, vector<32x32xbf16>, vector<16x32xf32> -> vector<16x32xf32>
    %253 = vector.broadcast %250 : vector<1x32xf32> to vector<16x32xf32>
    %254 = arith.addf %252, %253 : vector<16x32xf32>
    %255 = arith.addf %164, %254 : vector<16x32xf32>
    %c1_100 = arith.constant 1 : index
    %c0_101 = arith.constant 0 : index
    %c0_102 = arith.constant 0 : index
    %256 = vector.load %arg7[%c1_100, %c0_101, %c0_102] : memref<2x1x32xf32, #tpu.memory_space<vmem>>, vector<1x1x32xf32>
    %257 = vector.shape_cast %256 : vector<1x1x32xf32> to vector<1x32xf32>
    %c1_103 = arith.constant 1 : index
    %c0_104 = arith.constant 0 : index
    %c0_105 = arith.constant 0 : index
    %258 = vector.load %arg8[%c1_103, %c0_104, %c0_105] : memref<2x1x32xf32, #tpu.memory_space<vmem>>, vector<1x1x32xf32>
    %259 = vector.shape_cast %258 : vector<1x1x32xf32> to vector<1x32xf32>
    %cst_106 = arith.constant dense<0.000000e+00> : vector<16xf32>
    %260 = vector.multi_reduction <add>, %255, %cst_106 [1] : vector<16x32xf32> to vector<16xf32>
    %261 = vector.shape_cast %260 : vector<16xf32> to vector<16x1xf32>
    %cst_107 = arith.constant 3.200000e+01 : f32
    %262 = vector.broadcast %cst_107 : f32 to vector<16x1xf32>
    %263 = arith.divf %261, %262 : vector<16x1xf32>
    %264 = vector.broadcast %263 : vector<16x1xf32> to vector<16x32xf32>
    %265 = arith.subf %255, %264 : vector<16x32xf32>
    %266 = arith.mulf %265, %265 : vector<16x32xf32>
    %cst_108 = arith.constant dense<0.000000e+00> : vector<16xf32>
    %267 = vector.multi_reduction <add>, %266, %cst_108 [1] : vector<16x32xf32> to vector<16xf32>
    %268 = vector.shape_cast %267 : vector<16xf32> to vector<16x1xf32>
    %cst_109 = arith.constant 3.200000e+01 : f32
    %269 = vector.broadcast %cst_109 : f32 to vector<16x1xf32>
    %270 = arith.divf %268, %269 : vector<16x1xf32>
    %271 = vector.broadcast %263 : vector<16x1xf32> to vector<16x32xf32>
    %272 = arith.subf %255, %271 : vector<16x32xf32>
    %cst_110 = arith.constant 9.99999974E-6 : f32
    %273 = vector.broadcast %cst_110 : f32 to vector<16x1xf32>
    %274 = arith.addf %270, %273 : vector<16x1xf32>
    %275 = math.rsqrt %274 : vector<16x1xf32>
    %276 = vector.broadcast %275 : vector<16x1xf32> to vector<16x32xf32>
    %277 = arith.mulf %272, %276 : vector<16x32xf32>
    %278 = vector.broadcast %257 : vector<1x32xf32> to vector<16x32xf32>
    %279 = arith.mulf %277, %278 : vector<16x32xf32>
    %280 = vector.broadcast %259 : vector<1x32xf32> to vector<16x32xf32>
    %281 = arith.addf %279, %280 : vector<16x32xf32>
    %c1_111 = arith.constant 1 : index
    %c0_112 = arith.constant 0 : index
    %c0_113 = arith.constant 0 : index
    %282 = vector.load %arg9[%c1_111, %c0_112, %c0_113] : memref<2x32x64xbf16, #tpu.memory_space<vmem>>, vector<1x32x64xbf16>
    %283 = vector.shape_cast %282 : vector<1x32x64xbf16> to vector<32x64xbf16>
    %c1_114 = arith.constant 1 : index
    %c0_115 = arith.constant 0 : index
    %c0_116 = arith.constant 0 : index
    %284 = vector.load %arg10[%c1_114, %c0_115, %c0_116] : memref<2x1x64xf32, #tpu.memory_space<vmem>>, vector<1x1x64xf32>
    %285 = vector.shape_cast %284 : vector<1x1x64xf32> to vector<1x64xf32>
    %286 = arith.truncf %281 : vector<16x32xf32> to vector<16x32xbf16>
    %cst_117 = arith.constant dense<0.000000e+00> : vector<16x64xf32>
    %287 = tpu.matmul %286, %283, %cst_117 {dimension_numbers = #tpu.dot_dimension_numbers<[1], [0], [0], [1], [0, 0, 1, 1], [], []>} : vector<16x32xbf16>, vector<32x64xbf16>, vector<16x64xf32> -> vector<16x64xf32>
    %288 = vector.broadcast %285 : vector<1x64xf32> to vector<16x64xf32>
    %289 = arith.addf %287, %288 : vector<16x64xf32>
    %cst_118 = arith.constant 0.000000e+00 : f32
    %290 = vector.broadcast %cst_118 : f32 to vector<16x64xf32>
    %291 = arith.maximumf %289, %290 : vector<16x64xf32>
    %c1_119 = arith.constant 1 : index
    %c0_120 = arith.constant 0 : index
    %c0_121 = arith.constant 0 : index
    %292 = vector.load %arg11[%c1_119, %c0_120, %c0_121] : memref<2x64x32xbf16, #tpu.memory_space<vmem>>, vector<1x64x32xbf16>
    %293 = vector.shape_cast %292 : vector<1x64x32xbf16> to vector<64x32xbf16>
    %c1_122 = arith.constant 1 : index
    %c0_123 = arith.constant 0 : index
    %c0_124 = arith.constant 0 : index
    %294 = vector.load %arg12[%c1_122, %c0_123, %c0_124] : memref<2x1x32xf32, #tpu.memory_space<vmem>>, vector<1x1x32xf32>
    %295 = vector.shape_cast %294 : vector<1x1x32xf32> to vector<1x32xf32>
    %296 = arith.truncf %291 : vector<16x64xf32> to vector<16x64xbf16>
    %cst_125 = arith.constant dense<0.000000e+00> : vector<16x32xf32>
    %297 = tpu.matmul %296, %293, %cst_125 {dimension_numbers = #tpu.dot_dimension_numbers<[1], [0], [0], [1], [0, 0, 1, 1], [], []>} : vector<16x64xbf16>, vector<64x32xbf16>, vector<16x32xf32> -> vector<16x32xf32>
    %298 = vector.broadcast %295 : vector<1x32xf32> to vector<16x32xf32>
    %299 = arith.addf %297, %298 : vector<16x32xf32>
    %300 = arith.addf %281, %299 : vector<16x32xf32>
    %c1_126 = arith.constant 1 : index
    %c0_127 = arith.constant 0 : index
    %c0_128 = arith.constant 0 : index
    %301 = vector.load %arg13[%c1_126, %c0_127, %c0_128] : memref<2x1x32xf32, #tpu.memory_space<vmem>>, vector<1x1x32xf32>
    %302 = vector.shape_cast %301 : vector<1x1x32xf32> to vector<1x32xf32>
    %c1_129 = arith.constant 1 : index
    %c0_130 = arith.constant 0 : index
    %c0_131 = arith.constant 0 : index
    %303 = vector.load %arg14[%c1_129, %c0_130, %c0_131] : memref<2x1x32xf32, #tpu.memory_space<vmem>>, vector<1x1x32xf32>
    %304 = vector.shape_cast %303 : vector<1x1x32xf32> to vector<1x32xf32>
    %cst_132 = arith.constant dense<0.000000e+00> : vector<16xf32>
    %305 = vector.multi_reduction <add>, %300, %cst_132 [1] : vector<16x32xf32> to vector<16xf32>
    %306 = vector.shape_cast %305 : vector<16xf32> to vector<16x1xf32>
    %cst_133 = arith.constant 3.200000e+01 : f32
    %307 = vector.broadcast %cst_133 : f32 to vector<16x1xf32>
    %308 = arith.divf %306, %307 : vector<16x1xf32>
    %309 = vector.broadcast %308 : vector<16x1xf32> to vector<16x32xf32>
    %310 = arith.subf %300, %309 : vector<16x32xf32>
    %311 = arith.mulf %310, %310 : vector<16x32xf32>
    %cst_134 = arith.constant dense<0.000000e+00> : vector<16xf32>
    %312 = vector.multi_reduction <add>, %311, %cst_134 [1] : vector<16x32xf32> to vector<16xf32>
    %313 = vector.shape_cast %312 : vector<16xf32> to vector<16x1xf32>
    %cst_135 = arith.constant 3.200000e+01 : f32
    %314 = vector.broadcast %cst_135 : f32 to vector<16x1xf32>
    %315 = arith.divf %313, %314 : vector<16x1xf32>
    %316 = vector.broadcast %308 : vector<16x1xf32> to vector<16x32xf32>
    %317 = arith.subf %300, %316 : vector<16x32xf32>
    %cst_136 = arith.constant 9.99999974E-6 : f32
    %318 = vector.broadcast %cst_136 : f32 to vector<16x1xf32>
    %319 = arith.addf %315, %318 : vector<16x1xf32>
    %320 = math.rsqrt %319 : vector<16x1xf32>
    %321 = vector.broadcast %320 : vector<16x1xf32> to vector<16x32xf32>
    %322 = arith.mulf %317, %321 : vector<16x32xf32>
    %323 = vector.broadcast %302 : vector<1x32xf32> to vector<16x32xf32>
    %324 = arith.mulf %322, %323 : vector<16x32xf32>
    %325 = vector.broadcast %304 : vector<1x32xf32> to vector<16x32xf32>
    %326 = arith.addf %324, %325 : vector<16x32xf32>
    %327 = vector.shape_cast %326 : vector<16x32xf32> to vector<2x8x32xf32>
    %c0_137 = arith.constant 0 : index
    %c0_138 = arith.constant 0 : index
    %c0_139 = arith.constant 0 : index
    %328 = vector.load %arg15[%c0_137, %c0_138, %c0_139] : memref<2x8x32xf32, #tpu.memory_space<vmem>>, vector<2x8x32xf32>
    tpu.vector_store %arg15[%c0_137, %c0_138, %c0_139], %327 {strides = array<i32>} : memref<2x8x32xf32, #tpu.memory_space<vmem>>, vector<2x8x32xf32>,
    return
  }
  func.func @transform_0(%arg0: i32) -> (i32, i32, i32) {
    %c0_i32 = arith.constant 0 : i32
    %c0_i32_0 = arith.constant 0 : i32
    %c0_i32_1 = arith.constant 0 : i32
    return %arg0, %c0_i32, %c0_i32_0 : i32, i32, i32
  }
  func.func @transform_1(%arg0: i32) -> (i32, i32, i32) {
    %c0_i32 = arith.constant 0 : i32
    %c0_i32_0 = arith.constant 0 : i32
    %c0_i32_1 = arith.constant 0 : i32
    return %arg0, %c0_i32, %c0_i32_0 : i32, i32, i32
  }
  func.func @transform_2(%arg0: i32) -> (i32, i32, i32) {
    %c0_i32 = arith.constant 0 : i32
    %c0_i32_0 = arith.constant 0 : i32
    %c0_i32_1 = arith.constant 0 : i32
    %c0_i32_2 = arith.constant 0 : i32
    return %c0_i32, %c0_i32_0, %c0_i32_1 : i32, i32, i32
  }
  func.func @transform_3(%arg0: i32) -> (i32, i32, i32) {
    %c0_i32 = arith.constant 0 : i32
    %c0_i32_0 = arith.constant 0 : i32
    %c0_i32_1 = arith.constant 0 : i32
    %c0_i32_2 = arith.constant 0 : i32
    return %c0_i32, %c0_i32_0, %c0_i32_1 : i32, i32, i32
  }
  func.func @transform_4(%arg0: i32) -> (i32, i32, i32) {
    %c0_i32 = arith.constant 0 : i32
    %c0_i32_0 = arith.constant 0 : i32
    %c0_i32_1 = arith.constant 0 : i32
    %c0_i32_2 = arith.constant 0 : i32
    return %c0_i32, %c0_i32_0, %c0_i32_1 : i32, i32, i32
  }
  func.func @transform_5(%arg0: i32) -> (i32, i32, i32) {
    %c0_i32 = arith.constant 0 : i32
    %c0_i32_0 = arith.constant 0 : i32
    %c0_i32_1 = arith.constant 0 : i32
    %c0_i32_2 = arith.constant 0 : i32
    return %c0_i32, %c0_i32_0, %c0_i32_1 : i32, i32, i32
  }
  func.func @transform_6(%arg0: i32) -> (i32, i32, i32) {
    %c0_i32 = arith.constant 0 : i32
    %c0_i32_0 = arith.constant 0 : i32
    %c0_i32_1 = arith.constant 0 : i32
    %c0_i32_2 = arith.constant 0 : i32
    return %c0_i32, %c0_i32_0, %c0_i32_1 : i32, i32, i32
  }
  func.func @transform_7(%arg0: i32) -> (i32, i32, i32) {
    %c0_i32 = arith.constant 0 : i32
    %c0_i32_0 = arith.constant 0 : i32
    %c0_i32_1 = arith.constant 0 : i32
    %c0_i32_2 = arith.constant 0 : i32
    return %c0_i32, %c0_i32_0, %c0_i32_1 : i32, i32, i32
  }
  func.func @transform_8(%arg0: i32) -> (i32, i32, i32) {
    %c0_i32 = arith.constant 0 : i32
    %c0_i32_0 = arith.constant 0 : i32
    %c0_i32_1 = arith.constant 0 : i32
    %c0_i32_2 = arith.constant 0 : i32
    return %c0_i32, %c0_i32_0, %c0_i32_1 : i32, i32, i32
  }
  func.func @transform_9(%arg0: i32) -> (i32, i32, i32) {
    %c0_i32 = arith.constant 0 : i32
    %c0_i32_0 = arith.constant 0 : i32
    %c0_i32_1 = arith.constant 0 : i32
    %c0_i32_2 = arith.constant 0 : i32
    return %c0_i32, %c0_i32_0, %c0_i32_1 : i32, i32, i32
  }
  func.func @transform_10(%arg0: i32) -> (i32, i32, i32) {
    %c0_i32 = arith.constant 0 : i32
    %c0_i32_0 = arith.constant 0 : i32
    %c0_i32_1 = arith.constant 0 : i32
    %c0_i32_2 = arith.constant 0 : i32
    return %c0_i32, %c0_i32_0, %c0_i32_1 : i32, i32, i32
  }
  func.func @transform_11(%arg0: i32) -> (i32, i32, i32) {
    %c0_i32 = arith.constant 0 : i32
    %c0_i32_0 = arith.constant 0 : i32
    %c0_i32_1 = arith.constant 0 : i32
    %c0_i32_2 = arith.constant 0 : i32
    return %c0_i32, %c0_i32_0, %c0_i32_1 : i32, i32, i32
  }
  func.func @transform_12(%arg0: i32) -> (i32, i32, i32) {
    %c0_i32 = arith.constant 0 : i32
    %c0_i32_0 = arith.constant 0 : i32
    %c0_i32_1 = arith.constant 0 : i32
    %c0_i32_2 = arith.constant 0 : i32
    return %c0_i32, %c0_i32_0, %c0_i32_1 : i32, i32, i32
  }
  func.func @transform_13(%arg0: i32) -> (i32, i32, i32) {
    %c0_i32 = arith.constant 0 : i32
    %c0_i32_0 = arith.constant 0 : i32
    %c0_i32_1 = arith.constant 0 : i32
    %c0_i32_2 = arith.constant 0 : i32
    return %c0_i32, %c0_i32_0, %c0_i32_1 : i32, i32, i32
  }
  func.func @transform_14(%arg0: i32) -> (i32, i32, i32) {
    %c0_i32 = arith.constant 0 : i32
    %c0_i32_0 = arith.constant 0 : i32
    %c0_i32_1 = arith.constant 0 : i32
    return %arg0, %c0_i32, %c0_i32_0 : i32, i32, i32
  }
}

</mosaic_0001>

<bundles_post_ra>
// kernel: transformer_forward.2
= control target key start
LH: loop header
LB: loop body
LE: loop exit
PB: predicated region body
PF: predicated region fallthrough
CT: control target
= control target key end

     0   :  { %v4142_v0 = vmov 0.0   ;;  %vm4143_vm0 = vmmov 0   ;;  %vm76_vm1 = vcmask 261120   ;;  %vm136_vm2 = vcmask 64512   ;;  %s4145_s27 = smov 64   ;;  %s4146_s28 = smov 88   ;;  %s4791_s2 = inlined_call_operand.vmem [shape: bf16[2,32,96], index: 2, kind: input, shape index: {}]   ;;  %s4792_s0 = inlined_call_operand.vmem [shape: f32[2,8,32], index: 0, kind: input, shape index: {}]   ;;  %s4793_s3 = inlined_call_operand.vmem [shape: f32[2,1,96], index: 3, kind: input, shape index: {}]   ;;  %s4794_s1 = inlined_call_operand.vmem [shape: f32[2,1,8], index: 1, kind: input, shape index: {}]   ;;  %s4795_s4 = inlined_call_operand.vmem [shape: bf16[2,32,32], index: 4, kind: input, shape index: {}]   ;;  %s4796_s5 = inlined_call_operand.vmem [shape: f32[2,1,32], index: 5, kind: input, shape index: {}]   ;;  %s4797_s8 = inlined_call_operand.vmem [shape: bf16[2,32,64], index: 8, kind: input, shape index: {}]   ;;  %s4798_s10 = inlined_call_operand.vmem [shape: bf16[2,64,32], index: 10, kind: input, shape index: {}]   ;;  %s4799_s6 = inlined_call_operand.vmem [shape: f32[2,1,32], index: 6, kind: input, shape index: {}]   ;;  %s4800_s7 = inlined_call_operand.vmem [shape: f32[2,1,32], index: 7, kind: input, shape index: {}]   ;;  %s4801_s9 = inlined_call_operand.vmem [shape: f32[2,1,64], index: 9, kind: input, shape index: {}]   ;;  %s4802_s11 = inlined_call_operand.vmem [shape: f32[2,1,32], index: 11, kind: input, shape index: {}]   ;;  %s4803_s12 = inlined_call_operand.vmem [shape: f32[2,1,32], index: 12, kind: input, shape index: {}]   ;;  %s4804_s13 = inlined_call_operand.vmem [shape: f32[2,1,32], index: 13, kind: input, shape index: {}]   ;;  %s4805_s14 = inlined_call_operand.vmem [shape: f32[2,8,32], index: 14, kind: output, shape index: {}]  }
   0x1   :  { %3762 = vmatprep.subr.bf16.mxu0 %v4142_v0  ;;  %v4040_v1 = vld [vmem:[%s4791_s2 + $0x8] sm:$0xff]   ;;  %3766 = vmatprep.mubr.msk.bf16.mxu0 %vm4143_vm0, %v4142_v0  ;;  %v4041_v2 = vld [vmem:[%s4791_s2] sm:$0xff]   ;;  %s4147_s29 = smov 120   ;;  %s4148_s30 = smov 56   ;;  %vm1478_vm3 = vcmask 130048   ;;  %vm1481_vm4 = vcmask 195584  }
   0x2   :  { %3775 = vmatprep.subr.mxu1 %v4142_v0  ;;  %3777 = vmatprep.mubr.msk.f32.mxu1 %vm4143_vm0, %v4142_v0  ;;  %v4248_v3 = vld [vmem:[%s4792_s0] sm:$0xff]  ;;  %v4253_v4 = vld [vmem:[%s4792_s0 + $0x8] sm:$0xff]  ;;  %s4144_s0 = smov 96   ;;  %s4149_s15 = smov 80   ;;  %vm1709_vm5 = vcmask 523264  }
   0x3   :  { %3763 = vmatpush3.bf16.msra.mxu0 %v4040_v1  ;;  %v57_v5 = vpack.c.bf16 %v4253_v4, %v4248_v3  ;;  %v3548_v6 = vld [vmem:[%s4793_s3] ss:$0 sm:$0xff]  ;;  %v4294_v19 = vld [vmem:[%s4794_s1 + $0x1] ss:$0 sm:$0xff]  ;;  %s4150_s16 = smov 112   ;;  %s4151_s17 = smov 48  }
   0x4   :  { %3764 = vmatprep.subr.bf16.mxu0 %v4142_v0  ;;  %v4288_v15 = vld [vmem:[%s4794_s1] ss:$0 sm:$0xff]  ;;  %s4152_s18 = smov 72   ;;  %s4153_s19 = smov 104  }
   0x5   :  { %s4809_s20 = smov 40   ;;  %s4808_s21 = smov 8  }
   0x6   :  { %s4806_s22 = smov 16  }
   0x7   :  { %3765 = vmatpush3.bf16.msra.mxu0 %v4041_v2 }
   0x8   :  { %3770 = vmatprep.subr.mxu0 %v4142_v0 }
   0xa   :  { %3767 = vmatmul.mubr.msk.bf16.vlgmr.msra.gmra.mxu0 %vm76_vm1, %v57_v5 }
   0xb   :  { %3772 = vmatprep.mubr.msk.f32.mxu0 %vm4143_vm0, %v4142_v0 }
  0xca   :  { %v114_v7 = vpop.f32.mrf.mxu0 }
  0xcb   :  { %v4265_v8 = vadd.f32 %v3548_v6, %v114_v7 }
  0xcc   :  { %v3768_v9 = vpop.f32.mrf.mxu0 }
  0xcd   :  { %134 = vrot.lane.b32.xlu0 %v4265_v8, %s4144_s0 }
  0xce   :  { %v117_v10 = vpop.f32.mrf.mxu0 }
  0xcf   :  { %v4269_v11 = vadd.f32 %v3548_v6, %v117_v10 }
  0xd0   :  { %v3769_v12 = vpop.f32.mrf.mxu0 }
  0xd1   :  { %212 = vrot.lane.b32.xlu0 %v4269_v11, %s4144_s0 }
 0x13f   :  { %v135_v13 = vpop.permute.xlu0 %134 }
 0x140   :  { %3771 = vmatpush3.xpose.msk.msra.mxu0 %vm136_vm2, %v135_v13 }
 0x141   :  { %3785 = vmatprep.subr.mxu0 %v4142_v0 }
 0x143   :  { %3773 = vmatmul.mubr.msk.f32.vlgmr.msra.gmra.mxu0 %vm136_vm2, %v4265_v8  ;;  %v213_v14 = vpop.permute.xlu0 %212 }
 0x144   :  { %3776 = vmatpush3.xpose.msk.msra.mxu1 %vm136_vm2, %v213_v14  ;;  %3787 = vmatprep.mubr.msk.f32.mxu0 %vm4143_vm0, %v4142_v0 }
 0x145   :  { %3780 = vmatprep.subr.mxu1 %v4142_v0 }
 0x147   :  { %3778 = vmatmul.mubr.msk.f32.vlgmr.msra.gmra.mxu1 %vm136_vm2, %v4269_v11 }
 0x148   :  { %3782 = vmatprep.mubr.msk.f32.mxu1 %vm4143_vm0, %v4142_v0 }
 0x203   :  { %v207_v16 = vpop.f32.mrf.mxu0 }
 0x204   :  { %v208_v17 = vadd.f32 %v4288_v15, %v207_v16 }
 0x205   :  { %v3774_v18 = vpop.f32.mrf.mxu0 }
 0x206   :  { %v288_v20 = vsel %vm136_vm2, %v208_v17, -inf }
 0x207   :  { %v284_v21 = vpop.f32.mrf.mxu1  ;;  %289 = vmax.xlane.f32.xlu1 %v288_v20 }
 0x208   :  { %v285_v22 = vadd.f32 %v4294_v19, %v284_v21 }
 0x209   :  { %v3779_v23 = vpop.f32.mrf.mxu1 }
 0x20a   :  { %v291_v24 = vsel %vm136_vm2, %v285_v22, -inf }
 0x20b   :  { %292 = vmax.xlane.f32.xlu1 %v291_v24 }
 0x21c   :  { %310 = vrot.lane.b32.xlu1 %v4265_v8, %s4145_s27 }
 0x220   :  { %386 = vrot.lane.b32.xlu1 %v4269_v11, %s4145_s27 }
 0x224   :  { %464 = vrot.lane.b32.xlu1 %v4265_v8, %s4146_s28 }
 0x228   :  { %542 = vrot.lane.b32.xlu1 %v4269_v11, %s4146_s28 }
 0x290   :  { %v290_v25 = vpop.xlane.xlu1 %289 }
 0x291   :  { %v294_v26 = vsub.f32 %v208_v17, %v290_v25 }
 0x293   :  { %v296_v27 = vmul.f32 1.442695, %v294_v26 }
 0x294   :  { %v293_v28 = vpop.xlane.xlu1 %292 }
 0x295   :  { %4060 = vpow2.f32 %v296_v27  ;;  %v295_v29 = vsub.f32 %v285_v22, %v293_v28 }
 0x297   :  { %v298_v30 = vmul.f32 1.442695, %v295_v29 }
 0x298   :  { %v311_v31 = vpop.permute.xlu1 %310 }
 0x299   :  { %4062 = vpow2.f32 %v298_v30  ;;  %3781 = vmatpush3.msra.mxu1 %v311_v31 }
 0x29a   :  { %3790 = vmatprep.subr.mxu1 %v4142_v0 }
 0x29c   :  { %v387_v32 = vpop.permute.xlu1 %386 }
 0x29d   :  { %3786 = vmatpush3.msra.mxu0 %v387_v32 }
 0x29e   :  { %3795 = vmatprep.subr.mxu0 %v4142_v0 }
 0x2a0   :  { %v465_v37 = vpop.permute.xlu1 %464 }
 0x2a2   :  { %v4061_v33 = vpop.eup %4060 }
 0x2a3   :  { %v300_v34 = vsel %vm136_vm2, %v4061_v33, 0.0 }
 0x2a4   :  { %301 = vadd.xlane.f32.xlu0 %v300_v34  ;;  %v543_v38 = vpop.permute.xlu1 %542 }
 0x2a6   :  { %v4063_v35 = vpop.eup %4062 }
 0x2a7   :  { %v303_v36 = vsel %vm136_vm2, %v4063_v35, 0.0 }
 0x2a8   :  { %304 = vadd.xlane.f32.xlu1 %v303_v36 }
 0x2b9   :  { %540 = vrot.lane.b32.xlu1 %v4269_v11, %s4147_s29 }
 0x2ba   :  { %462 = vrot.lane.b32.xlu0 %v4265_v8, %s4147_s29 }
 0x32d   :  { %v302_v39 = vpop.xlane.xlu0 %301 }
 0x32e   :  { %4064 = vrcp.f32 %v302_v39 }
 0x331   :  { %v305_v40 = vpop.xlane.xlu1 %304  ;;  %v463_v45 = vpop.permute.xlu0 %462 }
 0x332   :  { %4066 = vrcp.f32 %v305_v40 }
 0x335   :  { %v541_v46 = vpop.permute.xlu1 %540 }
 0x33b   :  { %v4065_v41 = vpop.eup %4064 }
 0x33c   :  { %v308_v42 = vmul.f32 %v4065_v41, %v4061_v33 }
 0x33e   :  { %3783 = vmatmul.mubr.msk.f32.vlgmr.msra.gmra.mxu1 %vm136_vm2, %v308_v42 }
 0x33f   :  { %v4067_v43 = vpop.eup %4066  ;;  %3791 = vmatpush3.xpose.msk.msra.mxu1 %vm136_vm2, %v465_v37  ;;  %3792 = vmatprep.mubr.msk.f32.mxu1 %vm4143_vm0, %v4142_v0 }
 0x340   :  { %v309_v44 = vmul.f32 %v4067_v43, %v4063_v35  ;;  %3800 = vmatprep.subr.mxu1 %v4142_v0 }
 0x342   :  { %3788 = vmatmul.mubr.msk.f32.vlgmr.msra.gmra.mxu0 %vm136_vm2, %v309_v44  ;;  %3793 = vmatmul.mubr.msk.f32.vlgmr.msra.gmra.mxu1 %vm136_vm2, %v463_v45 }
 0x343   :  { %3796 = vmatpush3.xpose.msk.msra.mxu0 %vm136_vm2, %v543_v38  ;;  %3797 = vmatprep.mubr.msk.f32.mxu0 %vm4143_vm0, %v4142_v0 }
 0x344   :  { %3805 = vmatprep.subr.mxu0 %v4142_v0  ;;  %3802 = vmatprep.mubr.msk.f32.mxu1 %vm4143_vm0, %v4142_v0 }
 0x346   :  { %3798 = vmatmul.mubr.msk.f32.vlgmr.msra.gmra.mxu0 %vm136_vm2, %v541_v46 }
 0x347   :  { %3807 = vmatprep.mubr.msk.f32.mxu0 %vm4143_vm0, %v4142_v0 }
 0x3fe   :  { %v4331_v47 = vpop.f32.mrf.mxu1 }
 0x400   :  { %v3784_v48 = vpop.f32.mrf.mxu1 }
 0x402   :  { %v4333_v49 = vpop.f32.mrf.mxu0  ;;  %v536_v50 = vpop.f32.mrf.mxu1 }
 0x403   :  { %v537_v51 = vadd.f32 %v4288_v15, %v536_v50 }
 0x404   :  { %v3789_v52 = vpop.f32.mrf.mxu0  ;;  %v3794_v53 = vpop.f32.mrf.mxu1 }
 0x405   :  { %v618_v54 = vsel %vm136_vm2, %v537_v51, -inf }
 0x406   :  { %619 = vmax.xlane.f32.xlu1 %v618_v54  ;;  %v614_v55 = vpop.f32.mrf.mxu0 }
 0x407   :  { %v615_v56 = vadd.f32 %v4294_v19, %v614_v55 }
 0x408   :  { %v3799_v57 = vpop.f32.mrf.mxu0 }
 0x409   :  { %v621_v58 = vsel %vm136_vm2, %v615_v56, -inf }
 0x40a   :  { %622 = vmax.xlane.f32.xlu0 %v621_v58 }
 0x417   :  { %640 = vrot.lane.b32.xlu1 %v4265_v8, %s4148_s30 }
 0x41b   :  { %794 = vrot.lane.b32.xlu1 %v4265_v8, %s4149_s15 }
 0x41f   :  { %872 = vrot.lane.b32.xlu1 %v4269_v11, %s4149_s15 }
 0x420   :  { %716 = vrot.lane.b32.xlu0 %v4269_v11, %s4148_s30 }
 0x424   :  { %792 = vrot.lane.b32.xlu0 %v4265_v8, %s4150_s16 }
 0x48f   :  { %v620_v59 = vpop.xlane.xlu1 %619 }
 0x490   :  { %v624_v60 = vsub.f32 %v537_v51, %v620_v59 }
 0x492   :  { %v626_v61 = vmul.f32 1.442695, %v624_v60 }
 0x493   :  { %v641_v62 = vpop.permute.xlu1 %640  ;;  %v623_v63 = vpop.xlane.xlu0 %622 }
 0x494   :  { %4068 = vpow2.f32 %v626_v61  ;;  %v625_v1 = vsub.f32 %v615_v56, %v623_v63  ;;  %3801 = vmatpush3.msra.mxu1 %v641_v62 }
 0x495   :  { %3810 = vmatprep.subr.mxu1 %v4142_v0 }
 0x496   :  { %v628_v2 = vmul.f32 1.442695, %v625_v1 }
 0x497   :  { %v717_v5 = vpop.permute.xlu0 %716  ;;  %v795_v12 = vpop.permute.xlu1 %794 }
 0x498   :  { %4070 = vpow2.f32 %v628_v2  ;;  %3806 = vmatpush3.msra.mxu0 %v717_v5 }
 0x499   :  { %3815 = vmatprep.subr.mxu0 %v4142_v0 }
 0x49b   :  { %v873_v13 = vpop.permute.xlu1 %872  ;;  %v793_v22 = vpop.permute.xlu0 %792 }
 0x4a1   :  { %v4069_v6 = vpop.eup %4068 }
 0x4a2   :  { %v630_v7 = vsel %vm136_vm2, %v4069_v6, 0.0 }
 0x4a3   :  { %631 = vadd.xlane.f32.xlu1 %v630_v7 }
 0x4a5   :  { %v4071_v9 = vpop.eup %4070 }
 0x4a6   :  { %v633_v10 = vsel %vm136_vm2, %v4071_v9, 0.0 }
 0x4a7   :  { %634 = vadd.xlane.f32.xlu1 %v633_v10 }
 0x4b8   :  { %870 = vrot.lane.b32.xlu1 %v4269_v11, %s4150_s16 }
 0x52c   :  { %v632_v14 = vpop.xlane.xlu1 %631 }
 0x52d   :  { %4072 = vrcp.f32 %v632_v14 }
 0x530   :  { %v635_v16 = vpop.xlane.xlu1 %634 }
 0x531   :  { %4074 = vrcp.f32 %v635_v16 }
 0x534   :  { %v871_v23 = vpop.permute.xlu1 %870 }
 0x53a   :  { %v4073_v17 = vpop.eup %4072 }
 0x53b   :  { %v638_v18 = vmul.f32 %v4073_v17, %v4069_v6 }
 0x53d   :  { %3803 = vmatmul.mubr.msk.f32.vlgmr.msra.gmra.mxu1 %vm136_vm2, %v638_v18 }
 0x53e   :  { %v4075_v20 = vpop.eup %4074  ;;  %3811 = vmatpush3.xpose.msk.msra.mxu1 %vm136_vm2, %v795_v12  ;;  %3812 = vmatprep.mubr.msk.f32.mxu1 %vm4143_vm0, %v4142_v0 }
 0x53f   :  { %v639_v21 = vmul.f32 %v4075_v20, %v4071_v9  ;;  %3820 = vmatprep.subr.mxu1 %v4142_v0 }
 0x541   :  { %3808 = vmatmul.mubr.msk.f32.vlgmr.msra.gmra.mxu0 %vm136_vm2, %v639_v21  ;;  %3813 = vmatmul.mubr.msk.f32.vlgmr.msra.gmra.mxu1 %vm136_vm2, %v793_v22 }
 0x542   :  { %3816 = vmatpush3.xpose.msk.msra.mxu0 %vm136_vm2, %v873_v13  ;;  %3817 = vmatprep.mubr.msk.f32.mxu0 %vm4143_vm0, %v4142_v0 }
 0x543   :  { %3825 = vmatprep.subr.mxu0 %v4142_v0  ;;  %3822 = vmatprep.mubr.msk.f32.mxu1 %vm4143_vm0, %v4142_v0 }
 0x545   :  { %3818 = vmatmul.mubr.msk.f32.vlgmr.msra.gmra.mxu0 %vm136_vm2, %v871_v23 }
 0x546   :  { %3827 = vmatprep.mubr.msk.f32.mxu0 %vm4143_vm0, %v4142_v0 }
 0x5fd   :  { %v4371_v24 = vpop.f32.mrf.mxu1 }
 0x5ff   :  { %v3804_v25 = vpop.f32.mrf.mxu1 }
 0x601   :  { %v4373_v26 = vpop.f32.mrf.mxu0  ;;  %v866_v27 = vpop.f32.mrf.mxu1 }
 0x602   :  { %v4010_v28 = vpack.i.bf16 %v4373_v26, %v4371_v24  ;;  %v867_v29 = vadd.f32 %v4288_v15, %v866_v27 }
 0x603   :  { %v3809_v30 = vpop.f32.mrf.mxu0  ;;  %v3814_v31 = vpop.f32.mrf.mxu1 }
 0x604   :  { %v948_v32 = vsel %vm136_vm2, %v867_v29, -inf }
 0x605   :  { %949 = vmax.xlane.f32.xlu0 %v948_v32  ;;  %v944_v33 = vpop.f32.mrf.mxu0 }
 0x606   :  { %v945_v34 = vadd.f32 %v4294_v19, %v944_v33 }
 0x607   :  { %v3819_v35 = vpop.f32.mrf.mxu0 }
 0x608   :  { %v951_v36 = vsel %vm136_vm2, %v945_v34, -inf }
 0x609   :  { %952 = vmax.xlane.f32.xlu1 %v951_v36 }
 0x61a   :  { %970 = vrot.lane.b32.xlu1 %v4265_v8, %s4151_s17 }
 0x61e   :  { %1124 = vrot.lane.b32.xlu1 %v4265_v8, %s4152_s18 }
 0x622   :  { %1202 = vrot.lane.b32.xlu1 %v4269_v11, %s4152_s18 }
 0x626   :  { %1200 = vrot.lane.b32.xlu1 %v4269_v11, %s4153_s19 }
 0x68e   :  { %v950_v37 = vpop.xlane.xlu0 %949 }
 0x68f   :  { %v954_v38 = vsub.f32 %v867_v29, %v950_v37 }
 0x691   :  { %v956_v39 = vmul.f32 1.442695, %v954_v38 }
 0x692   :  { %v953_v40 = vpop.xlane.xlu1 %952 }
 0x693   :  { %4076 = vpow2.f32 %v956_v39  ;;  %v955_v41 = vsub.f32 %v945_v34, %v953_v40  ;;  %v4043_v34 = vld [vmem:[%s4795_s4] sm:$0xff]  }
 0x695   :  { %v958_v42 = vmul.f32 1.442695, %v955_v41 }
 0x696   :  { %v971_v43 = vpop.permute.xlu1 %970 }
 0x697   :  { %4078 = vpow2.f32 %v958_v42  ;;  %3821 = vmatpush3.msra.mxu1 %v971_v43 }
 0x698   :  { %3830 = vmatprep.subr.mxu1 %v4142_v0 }
 0x69a   :  { %v1125_v53 = vpop.permute.xlu1 %1124 }
 0x69e   :  { %v1203_v57 = vpop.permute.xlu1 %1202 }
 0x6a0   :  { %v4077_v44 = vpop.eup %4076 }
 0x6a1   :  { %v960_v45 = vsel %vm136_vm2, %v4077_v44, 0.0 }
 0x6a2   :  { %961 = vadd.xlane.f32.xlu0 %v960_v45  ;;  %v1201_v60 = vpop.permute.xlu1 %1200 }
 0x6a4   :  { %v4079_v46 = vpop.eup %4078 }
 0x6a5   :  { %v963_v48 = vsel %vm136_vm2, %v4079_v46, 0.0 }
 0x6a6   :  { %964 = vadd.xlane.f32.xlu0 %v963_v48 }
 0x6bc   :  { %1046 = vrot.lane.b32.xlu0 %v4269_v11, %s4151_s17 }
 0x6c0   :  { %1122 = vrot.lane.b32.xlu0 %v4265_v8, %s4153_s19 }
 0x72b   :  { %v962_v50 = vpop.xlane.xlu0 %961 }
 0x72c   :  { %4080 = vrcp.f32 %v962_v50 }
 0x72f   :  { %v965_v51 = vpop.xlane.xlu0 %964 }
 0x730   :  { %4082 = vrcp.f32 %v965_v51 }
 0x733   :  { %v1047_v52 = vpop.permute.xlu0 %1046 }
 0x734   :  { %3826 = vmatpush3.msra.mxu0 %v1047_v52 }
 0x735   :  { %3835 = vmatprep.subr.mxu0 %v4142_v0 }
 0x737   :  { %v1123_v59 = vpop.permute.xlu0 %1122 }
 0x739   :  { %v4081_v54 = vpop.eup %4080 }
 0x73a   :  { %v968_v55 = vmul.f32 %v4081_v54, %v4077_v44 }
 0x73c   :  { %3823 = vmatmul.mubr.msk.f32.vlgmr.msra.gmra.mxu1 %vm136_vm2, %v968_v55 }
 0x73d   :  { %v4083_v56 = vpop.eup %4082  ;;  %3831 = vmatpush3.xpose.msk.msra.mxu1 %vm136_vm2, %v1125_v53  ;;  %3832 = vmatprep.mubr.msk.f32.mxu1 %vm4143_vm0, %v4142_v0 }
 0x73e   :  { %v969_v58 = vmul.f32 %v4083_v56, %v4079_v46  ;;  %3840 = vmatprep.subr.mxu1 %v4142_v0 }
 0x740   :  { %3828 = vmatmul.mubr.msk.f32.vlgmr.msra.gmra.mxu0 %vm136_vm2, %v969_v58  ;;  %3833 = vmatmul.mubr.msk.f32.vlgmr.msra.gmra.mxu1 %vm136_vm2, %v1123_v59 }
 0x741   :  { %3836 = vmatpush3.xpose.msk.msra.mxu0 %vm136_vm2, %v1203_v57  ;;  %3837 = vmatprep.mubr.msk.f32.mxu0 %vm4143_vm0, %v4142_v0 }
 0x742   :  { %3845 = vmatprep.subr.mxu0 %v4142_v0  ;;  %3842 = vmatprep.mubr.msk.f32.mxu1 %vm4143_vm0, %v4142_v0 }
 0x744   :  { %3838 = vmatmul.mubr.msk.f32.vlgmr.msra.gmra.mxu0 %vm136_vm2, %v1201_v60 }
 0x745   :  { %3847 = vmatprep.mubr.msk.f32.mxu0 %vm4143_vm0, %v4142_v0 }
 0x7fc   :  { %v1042_v61 = vpop.f32.mrf.mxu1 }
 0x7fe   :  { %v3824_v62 = vpop.f32.mrf.mxu1 }
 0x800   :  { %v1118_v63 = vpop.f32.mrf.mxu0  ;;  %v1196_v1 = vpop.f32.mrf.mxu1 }
 0x801   :  { %v1197_v2 = vadd.f32 %v4288_v15, %v1196_v1  ;;  %v4015_v14 = vpack.i.bf16 %v1118_v63, %v1042_v61 }
 0x802   :  { %v3829_v5 = vpop.f32.mrf.mxu0  ;;  %v3834_v6 = vpop.f32.mrf.mxu1 }
 0x803   :  { %v1278_v7 = vsel %vm136_vm2, %v1197_v2, -inf }
 0x804   :  { %1279 = vmax.xlane.f32.xlu0 %v1278_v7  ;;  %v1274_v9 = vpop.f32.mrf.mxu0 }
 0x805   :  { %v1275_v10 = vadd.f32 %v4294_v19, %v1274_v9 }
 0x806   :  { %v3839_v12 = vpop.f32.mrf.mxu0 }
 0x807   :  { %v1281_v13 = vsel %vm136_vm2, %v1275_v10, -inf }
 0x808   :  { %1282 = vmax.xlane.f32.xlu1 %v1281_v13 }
 0x819   :  { %1300 = vrot.lane.b32.xlu1 %v4265_v8, %s4809_s20 }
 0x81d   :  { %4011 = vrot.lane.b32.xlu1 %v4010_v28, %s4808_s21 }
 0x821   :  { %4016 = vrot.lane.b32.xlu1 %v4015_v14, %s4806_s22  ;;  %s4807_s22 = smov 24  }
 0x88d   :  { %v1280_v16 = vpop.xlane.xlu0 %1279 }
 0x88e   :  { %v1284_v17 = vsub.f32 %v1197_v2, %v1280_v16 }
 0x890   :  { %v1286_v18 = vmul.f32 1.442695, %v1284_v17 }
 0x891   :  { %v1283_v20 = vpop.xlane.xlu1 %1282 }
 0x892   :  { %4084 = vpow2.f32 %v1286_v18  ;;  %v1285_v21 = vsub.f32 %v1275_v10, %v1283_v20  ;;  %v4045_v18 = vld [vmem:[%s4797_s8] sm:$0xff]   ;;  %v4046_v20 = vld [vmem:[%s4798_s10 + $0x18] sm:$0xff]  }
 0x894   :  { %v1288_v22 = vmul.f32 1.442695, %v1285_v21 }
 0x895   :  { %v1301_v23 = vpop.permute.xlu1 %1300 }
 0x896   :  { %4086 = vpow2.f32 %v1288_v22  ;;  %3841 = vmatpush3.msra.mxu1 %v1301_v23 }
 0x897   :  { %3850 = vmatprep.subr.bf16.mxu1 %v4142_v0 }
 0x899   :  { %v4012_v40 = vpop.permute.xlu1 %4011 }
 0x89a   :  { %v4014_v42 = vunpack.i.h.bf16 %v4012_v40  ;;  %v4013_v43 = vunpack.i.l.bf16 %v4012_v40 }
 0x89c   :  { %v1477_v48 = vsel %vm136_vm2, %v4333_v49, %v4014_v42  ;;  %v1476_v50 = vsel %vm136_vm2, %v4331_v47, %v4013_v43  ;;  %v3578_v47 = vld [vmem:[%s4796_s5] ss:$0 sm:$0xff] }
 0x89d   :  { %v4017_v41 = vpop.permute.xlu1 %4016 }
 0x89e   :  { %v4019_v44 = vunpack.i.h.bf16 %v4017_v41  ;;  %v4018_v45 = vunpack.i.l.bf16 %v4017_v41 }
 0x89f   :  { %v4085_v8 = vpop.eup %4084 }
 0x8a0   :  { %v1290_v24 = vsel %vm136_vm2, %v4085_v8, 0.0  ;;  %v1479_v53 = vsel %vm1478_vm3, %v1476_v50, %v4018_v45  ;;  %v1480_v54 = vsel %vm1478_vm3, %v1477_v48, %v4019_v44 }
 0x8a1   :  { %1291 = vadd.xlane.f32.xlu0 %v1290_v24 }
 0x8a3   :  { %v4087_v25 = vpop.eup %4086 }
 0x8a4   :  { %v1293_v26 = vsel %vm136_vm2, %v4087_v25, 0.0 }
 0x8a5   :  { %1294 = vadd.xlane.f32.xlu0 %v1293_v26 }
 0x8bb   :  { %1376 = vrot.lane.b32.xlu0 %v4269_v11, %s4809_s20  ;;  %v4042_v11 = vld [vmem:[%s4795_s4 + $0x8] sm:$0xff]  }
 0x92a   :  { %v1292_v27 = vpop.xlane.xlu0 %1291 }
 0x92b   :  { %4088 = vrcp.f32 %v1292_v27 }
 0x92e   :  { %v1295_v28 = vpop.xlane.xlu0 %1294 }
 0x92f   :  { %4090 = vrcp.f32 %v1295_v28  ;;  %v3582_v28 = vld [vmem:[%s4799_s6] ss:$0 sm:$0xff] }
 0x932   :  { %v1377_v29 = vpop.permute.xlu0 %1376 }
 0x933   :  { %3846 = vmatpush3.msra.mxu0 %v1377_v29 }
 0x934   :  { %3858 = vmatprep.subr.bf16.mxu0 %v4142_v0 }
 0x938   :  { %v4089_v30 = vpop.eup %4088 }
 0x939   :  { %v1298_v31 = vmul.f32 %v4089_v30, %v4085_v8 }
 0x93b   :  { %3843 = vmatmul.mubr.msk.f32.vlgmr.msra.gmra.mxu1 %vm136_vm2, %v1298_v31 }
 0x93c   :  { %v4091_v32 = vpop.eup %4090  ;;  %3854 = vmatprep.mubr.msk.bf16.mxu1 %vm4143_vm0, %v4142_v0  ;;  %3851 = vmatpush3.bf16.msra.mxu1 %v4042_v11 }
 0x93d   :  { %v1299_v33 = vmul.f32 %v4091_v32, %v4087_v25  ;;  %3852 = vmatprep.subr.bf16.mxu1 %v4142_v0  ;;  %v3583_v32 = vld [vmem:[%s4800_s7] ss:$0 sm:$0xff] }
 0x93f   :  { %3848 = vmatmul.mubr.msk.f32.vlgmr.msra.gmra.mxu0 %vm136_vm2, %v1299_v33 }
 0x940   :  { %3862 = vmatprep.mubr.msk.bf16.mxu0 %vm4143_vm0, %v4142_v0  ;;  %3853 = vmatpush3.bf16.msra.mxu1 %v4043_v34 }
 0x941   :  { %3866 = vmatprep.subr.bf16.mxu1 %v4142_v0 }
 0x9fb   :  { %v1372_v35 = vpop.f32.mrf.mxu1 }
 0x9fd   :  { %v3844_v36 = vpop.f32.mrf.mxu1 }
 0x9fe   :  { %v4047_v36 = vld [vmem:[%s4798_s10 + $0x10] sm:$0xff]  }
 0x9ff   :  { %v1448_v37 = vpop.f32.mrf.mxu0 }
 0xa00   :  { %v4020_v38 = vpack.i.bf16 %v1448_v37, %v1372_v35  ;;  %v4048_v37 = vld [vmem:[%s4798_s10 + $0x8] sm:$0xff]  }
 0xa01   :  { %v3849_v39 = vpop.f32.mrf.mxu0 }
 0xa02   :  { %4021 = vrot.lane.b32.xlu0 %v4020_v38, %s4807_s22  ;;  %v4049_v38 = vld [vmem:[%s4798_s10] sm:$0xff]  }
 0xa03   :  { %v3584_v39 = vld [vmem:[%s4801_s9] ss:$0 sm:$0xff] }
 0xa74   :  { %v4022_v46 = vpop.permute.xlu0 %4021 }
 0xa75   :  { %v4024_v51 = vunpack.i.h.bf16 %v4022_v46  ;;  %v4023_v52 = vunpack.i.l.bf16 %v4022_v46 }
 0xa77   :  { %v1483_v55 = vsel %vm1481_vm4, %v1480_v54, %v4024_v51  ;;  %v1482_v56 = vsel %vm1481_vm4, %v1479_v53, %v4023_v52  ;;  %v3588_v51 = vld [vmem:[%s4802_s11] ss:$0 sm:$0xff] }
 0xa78   :  { %v1489_v57 = vpack.c.bf16 %v1483_v55, %v1482_v56 }
 0xa7a   :  { %3855 = vmatmul.mubr.msk.bf16.vlgmr.msra.gmra.mxu1 %vm76_vm1, %v1489_v57 }
 0xa7b   :  { %3874 = vmatprep.mubr.msk.bf16.mxu1 %vm4143_vm0, %v4142_v0  ;;  %3867 = vmatpush3.bf16.msra.mxu1 %v4046_v20 }
 0xa7c   :  { %3868 = vmatprep.subr.bf16.mxu1 %v4142_v0 }
 0xa7f   :  { %3869 = vmatpush3.bf16.msra.mxu1 %v4047_v36 }
 0xa80   :  { %3870 = vmatprep.subr.bf16.mxu1 %v4142_v0 }
 0xa83   :  { %3871 = vmatpush3.bf16.msra.mxu1 %v4048_v37 }
 0xa84   :  { %3872 = vmatprep.subr.bf16.mxu1 %v4142_v0 }
 0xa87   :  { %3873 = vmatpush3.bf16.msra.mxu1 %v4049_v38 }
 0xa88   :  { %3896 = vmatprep.subr.mxu1 %v4142_v0 }
 0xb3a   :  { %v1545_v49 = vpop.f32.mrf.mxu1 }
 0xb3b   :  { %v1546_v58 = vadd.f32 %v3578_v47, %v1545_v49 }
 0xb3c   :  { %v3856_v59 = vpop.f32.mrf.mxu1 }
 0xb3d   :  { %v1552_v60 = vadd.f32 %v1546_v58, %v4248_v3 }
 0xb3e   :  { %v1548_v61 = vpop.f32.mrf.mxu1 }
 0xb3f   :  { %v1549_v62 = vadd.f32 %v3578_v47, %v1548_v61  ;;  %v1556_v63 = vsel %vm76_vm1, %v1552_v60, 0.0 }
 0xb40   :  { %1557 = vadd.xlane.f32.xlu1 %v1556_v63  ;;  %v3857_v1 = vpop.f32.mrf.mxu1 }
 0xb41   :  { %v1553_v2 = vadd.f32 %v1549_v62, %v4253_v4  ;;  %v4044_v4 = vld [vmem:[%s4797_s8 + $0x8] sm:$0xff]  }
 0xb42   :  { %3859 = vmatpush3.bf16.msra.mxu0 %v4044_v4 }
 0xb43   :  { %v1559_v5 = vsel %vm76_vm1, %v1553_v2, 0.0  ;;  %3860 = vmatprep.subr.bf16.mxu0 %v4142_v0 }
 0xb44   :  { %1560 = vadd.xlane.f32.xlu0 %v1559_v5 }
 0xb46   :  { %3861 = vmatpush3.bf16.msra.mxu0 %v4045_v18 }
 0xb47   :  { %3878 = vmatprep.subr.bf16.mxu0 %v4142_v0 }
 0xbc9   :  { %v1558_v6 = vpop.xlane.xlu1 %1557 }
 0xbca   :  { %v1563_v7 = vmul.f32 0.03125, %v1558_v6 }
 0xbcc   :  { %v1565_v9 = vsub.f32 %v1552_v60, %v1563_v7 }
 0xbcd   :  { %v1561_v10 = vpop.xlane.xlu0 %1560 }
 0xbce   :  { %v1564_v12 = vmul.f32 0.03125, %v1561_v10  ;;  %v1567_v13 = vmul.f32 %v1565_v9, %v1565_v9  ;;  %v4050_v10 = vld [vmem:[%s4791_s2 + $0x18] sm:$0xff]  }
 0xbd0   :  { %v1566_v14 = vsub.f32 %v1553_v2, %v1564_v12  ;;  %v1569_v3 = vsel %vm76_vm1, %v1567_v13, 0.0  ;;  %v4051_v12 = vld [vmem:[%s4791_s2 + $0x10] sm:$0xff]  }
 0xbd1   :  { %1570 = vadd.xlane.f32.xlu0 %v1569_v3 }
 0xbd2   :  { %v1568_v16 = vmul.f32 %v1566_v14, %v1566_v14 }
 0xbd4   :  { %v1572_v17 = vsel %vm76_vm1, %v1568_v16, 0.0 }
 0xbd5   :  { %1573 = vadd.xlane.f32.xlu1 %v1572_v17 }
 0xc5a   :  { %v1571_v21 = vpop.xlane.xlu0 %1570 }
 0xc5b   :  { %v1575_v22 = vmul.f32 0.03125, %v1571_v21  ;;  %v3594_v21 = vld [vmem:[%s4803_s12] ss:$0 sm:$0xff] }
 0xc5d   :  { %v1577_v23 = vadd.f32 1e-05, %v1575_v22 }
 0xc5e   :  { %v1574_v8 = vpop.xlane.xlu1 %1573 }
 0xc5f   :  { %4092 = vrsqrt.f32 %v1577_v23  ;;  %v1576_v24 = vmul.f32 0.03125, %v1574_v8 }
 0xc61   :  { %v1578_v25 = vadd.f32 1e-05, %v1576_v24  ;;  %v3595_v24 = vld [vmem:[%s4804_s13] ss:$0 sm:$0xff] }
 0xc63   :  { %4094 = vrsqrt.f32 %v1578_v25 }
 0xc6c   :  { %v4093_v26 = vpop.eup %4092 }
 0xc6d   :  { %v1581_v27 = vmul.f32 %v4093_v26, %v1565_v9 }
 0xc6f   :  { %v1589_v31 = vmul.f32 %v3582_v28, %v1581_v27 }
 0xc70   :  { %v4095_v29 = vpop.eup %4094 }
 0xc71   :  { %v1582_v30 = vmul.f32 %v4095_v29, %v1566_v14  ;;  %v1597_v11 = vadd.f32 %v3583_v32, %v1589_v31  ;;  %v3601_v29 = vld [vmem:[%s4793_s3 + $0x1] ss:$0 sm:$0xff] }
 0xc73   :  { %v1590_v33 = vmul.f32 %v3582_v28, %v1582_v30 }
 0xc75   :  { %v1598_v34 = vadd.f32 %v3583_v32, %v1590_v33 }
 0xc77   :  { %v1604_v35 = vpack.c.bf16 %v1598_v34, %v1597_v11 }
 0xc79   :  { %3863 = vmatmul.mubr.msk.bf16.vlgmr.msra.gmra.mxu0 %vm76_vm1, %v1604_v35 }
 0xc7a   :  { %3882 = vmatprep.mubr.msk.bf16.mxu0 %vm4143_vm0, %v4142_v0  ;;  %3879 = vmatpush3.bf16.msra.mxu0 %v4050_v10 }
 0xc7b   :  { %3880 = vmatprep.subr.bf16.mxu0 %v4142_v0 }
 0xc7e   :  { %3881 = vmatpush3.bf16.msra.mxu0 %v4051_v12 }
 0xc7f   :  { %3886 = vmatprep.subr.mxu0 %v4142_v0 }
 0xd39   :  { %v1660_v40 = vpop.f32.mrf.mxu0 }
 0xd3a   :  { %v1661_v42 = vadd.f32 %v3584_v39, %v1660_v40 }
 0xd3b   :  { %v3864_v41 = vpop.f32.mrf.mxu0 }
 0xd3c   :  { %v1667_v46 = vmax.f32 %v1661_v42, 0.0 }
 0xd3d   :  { %v1663_v43 = vpop.f32.mrf.mxu0 }
 0xd3e   :  { %v1664_v44 = vadd.f32 %v3584_v39, %v1663_v43 }
 0xd3f   :  { %v3865_v45 = vpop.f32.mrf.mxu0 }
 0xd40   :  { %v1668_v48 = vmax.f32 %v1664_v44, 0.0 }
 0xd42   :  { %v1678_v50 = vpack.c.bf16 %v1668_v48, %v1667_v46 }
 0xd44   :  { %3875 = vmatmul.mubr.msk.bf16.vlgmr.msra.gmra.mxu1 %vm1709_vm5, %v1678_v50 }
 0xd45   :  { %3898 = vmatprep.mubr.msk.f32.mxu1 %vm4143_vm0, %v4142_v0 }
 0xe04   :  { %v1747_v52 = vpop.f32.mrf.mxu1 }
 0xe05   :  { %v1748_v53 = vadd.f32 %v3588_v51, %v1747_v52 }
 0xe06   :  { %v3876_v54 = vpop.f32.mrf.mxu1 }
 0xe07   :  { %v1754_v55 = vadd.f32 %v1748_v53, %v1597_v11 }
 0xe08   :  { %v1750_v56 = vpop.f32.mrf.mxu1 }
 0xe09   :  { %v1751_v57 = vadd.f32 %v3588_v51, %v1750_v56  ;;  %v1758_v47 = vsel %vm76_vm1, %v1754_v55, 0.0 }
 0xe0a   :  { %1759 = vadd.xlane.f32.xlu0 %v1758_v47  ;;  %v3877_v49 = vpop.f32.mrf.mxu1 }
 0xe0b   :  { %v1755_v58 = vadd.f32 %v1751_v57, %v1598_v34 }
 0xe0d   :  { %v1761_v59 = vsel %vm76_vm1, %v1755_v58, 0.0 }
 0xe0e   :  { %1762 = vadd.xlane.f32.xlu1 %v1761_v59 }
 0xe93   :  { %v1760_v60 = vpop.xlane.xlu0 %1759 }
 0xe94   :  { %v1764_v61 = vmul.f32 0.03125, %v1760_v60 }
 0xe96   :  { %v1766_v62 = vsub.f32 %v1754_v55, %v1764_v61 }
 0xe97   :  { %v1763_v63 = vpop.xlane.xlu1 %1762 }
 0xe98   :  { %v1765_v1 = vmul.f32 0.03125, %v1763_v63  ;;  %v1768_v2 = vmul.f32 %v1766_v62, %v1766_v62 }
 0xe9a   :  { %v1767_v5 = vsub.f32 %v1755_v58, %v1765_v1  ;;  %v1770_v6 = vsel %vm76_vm1, %v1768_v2, 0.0 }
 0xe9b   :  { %1771 = vadd.xlane.f32.xlu0 %v1770_v6 }
 0xe9c   :  { %v1769_v7 = vmul.f32 %v1767_v5, %v1767_v5 }
 0xe9e   :  { %v1773_v9 = vsel %vm76_vm1, %v1769_v7, 0.0 }
 0xe9f   :  { %1774 = vadd.xlane.f32.xlu1 %v1773_v9  ;;  %v4600_v9 = vld [vmem:[%s4794_s1] ss:$0 sm:$0xff] }
 0xf24   :  { %v1772_v13 = vpop.xlane.xlu0 %1771 }
 0xf25   :  { %v1776_v14 = vmul.f32 0.03125, %v1772_v13 }
 0xf27   :  { %v1778_v3 = vadd.f32 1e-05, %v1776_v14 }
 0xf28   :  { %v1775_v16 = vpop.xlane.xlu1 %1774 }
 0xf29   :  { %4096 = vrsqrt.f32 %v1778_v3  ;;  %v1777_v17 = vmul.f32 0.03125, %v1775_v16  ;;  %v4607_v16 = vld [vmem:[%s4794_s1 + $0x1] ss:$0 sm:$0xff]  ;;  %s4811_s1 = smov 40  }
 0xf2b   :  { %v1779_v4 = vadd.f32 1e-05, %v1777_v17 }
 0xf2d   :  { %4098 = vrsqrt.f32 %v1779_v4 }
 0xf36   :  { %v4097_v18 = vpop.eup %4096 }
 0xf37   :  { %v1782_v20 = vmul.f32 %v4097_v18, %v1766_v62 }
 0xf39   :  { %v1790_v8 = vmul.f32 %v3594_v21, %v1782_v20 }
 0xf3a   :  { %v4099_v22 = vpop.eup %4098 }
 0xf3b   :  { %v1783_v23 = vmul.f32 %v4099_v22, %v1767_v5  ;;  %v4525_v26 = vadd.f32 %v3595_v24, %v1790_v8 }
 0xf3d   :  { %v1791_v25 = vmul.f32 %v3594_v21, %v1783_v23 }
 0xf3f   :  { %v4527_v27 = vadd.f32 %v3595_v24, %v1791_v25 }
 0xf41   :  { %v1807_v28 = vpack.c.bf16 %v4527_v27, %v4525_v26 }
 0xf43   :  { %3883 = vmatmul.mubr.msk.bf16.vlgmr.msra.gmra.mxu0 %vm76_vm1, %v1807_v28 }
 0xf44   :  { %3888 = vmatprep.mubr.msk.f32.mxu0 %vm4143_vm0, %v4142_v0 }
0x1003   :  { %v1863_v30 = vpop.f32.mrf.mxu0 }
0x1004   :  { %v4537_v31 = vadd.f32 %v3601_v29, %v1863_v30 }
0x1005   :  { %v3884_v32 = vpop.f32.mrf.mxu0 }
0x1006   :  { %1871 = vrot.lane.b32.xlu0 %v4537_v31, %s4144_s0 }
0x1007   :  { %v1866_v33 = vpop.f32.mrf.mxu0 }
0x1008   :  { %v4541_v11 = vadd.f32 %v3601_v29, %v1866_v33 }
0x1009   :  { %v3885_v34 = vpop.f32.mrf.mxu0 }
0x100a   :  { %1948 = vrot.lane.b32.xlu1 %v4541_v11, %s4144_s0 }
0x1078   :  { %v1872_v35 = vpop.permute.xlu0 %1871 }
0x1079   :  { %3887 = vmatpush3.xpose.msk.msra.mxu0 %vm136_vm2, %v1872_v35 }
0x107a   :  { %3891 = vmatprep.subr.mxu0 %v4142_v0 }
0x107c   :  { %3889 = vmatmul.mubr.msk.f32.vlgmr.msra.gmra.mxu0 %vm136_vm2, %v4537_v31  ;;  %v1949_v36 = vpop.permute.xlu1 %1948 }
0x107d   :  { %3892 = vmatpush3.xpose.msk.msra.mxu0 %vm136_vm2, %v1949_v36  ;;  %3893 = vmatprep.mubr.msk.f32.mxu0 %vm4143_vm0, %v4142_v0 }
0x107e   :  { %3901 = vmatprep.subr.mxu0 %v4142_v0 }
0x1080   :  { %3894 = vmatmul.mubr.msk.f32.vlgmr.msra.gmra.mxu0 %vm136_vm2, %v4541_v11 }
0x1081   :  { %3903 = vmatprep.mubr.msk.f32.mxu0 %vm4143_vm0, %v4142_v0 }
0x113c   :  { %v1943_v37 = vpop.f32.mrf.mxu0 }
0x113d   :  { %v1944_v38 = vadd.f32 %v4288_v15, %v1943_v37 }
0x113e   :  { %v3890_v39 = vpop.f32.mrf.mxu0 }
0x113f   :  { %v2024_v40 = vsel %vm136_vm2, %v1944_v38, -inf }
0x1140   :  { %2025 = vmax.xlane.f32.xlu1 %v2024_v40  ;;  %v2020_v41 = vpop.f32.mrf.mxu0 }
0x1141   :  { %v2021_v42 = vadd.f32 %v4294_v19, %v2020_v41 }
0x1142   :  { %v3895_v43 = vpop.f32.mrf.mxu0 }
0x1143   :  { %v2027_v44 = vsel %vm136_vm2, %v2021_v42, -inf }
0x1144   :  { %2028 = vmax.xlane.f32.xlu0 %v2027_v44 }
0x1151   :  { %2122 = vrot.lane.b32.xlu1 %v4541_v11, %s4145_s27 }
0x1155   :  { %2200 = vrot.lane.b32.xlu1 %v4537_v31, %s4146_s28 }
0x115a   :  { %2046 = vrot.lane.b32.xlu0 %v4537_v31, %s4145_s27 }
0x11c9   :  { %v2026_v15 = vpop.xlane.xlu1 %2025 }
0x11ca   :  { %v2030_v45 = vsub.f32 %v1944_v38, %v2026_v15 }
0x11cc   :  { %v2032_v46 = vmul.f32 1.442695, %v2030_v45 }
0x11cd   :  { %v2123_v48 = vpop.permute.xlu1 %2122  ;;  %v2029_v50 = vpop.xlane.xlu0 %2028 }
0x11ce   :  { %4100 = vpow2.f32 %v2032_v46  ;;  %v2031_v19 = vsub.f32 %v2021_v42, %v2029_v50  ;;  %3902 = vmatpush3.msra.mxu0 %v2123_v48 }
0x11cf   :  { %3911 = vmatprep.subr.mxu0 %v4142_v0 }
0x11d0   :  { %v2034_v51 = vmul.f32 1.442695, %v2031_v19 }
0x11d1   :  { %v2047_v52 = vpop.permute.xlu0 %2046  ;;  %v2201_v57 = vpop.permute.xlu1 %2200 }
0x11d2   :  { %4102 = vpow2.f32 %v2034_v51  ;;  %3897 = vmatpush3.msra.mxu1 %v2047_v52 }
0x11d3   :  { %3906 = vmatprep.subr.mxu1 %v4142_v0 }
0x11db   :  { %v4101_v53 = vpop.eup %4100 }
0x11dc   :  { %v2036_v54 = vsel %vm136_vm2, %v4101_v53, 0.0 }
0x11dd   :  { %2037 = vadd.xlane.f32.xlu0 %v2036_v54 }
0x11df   :  { %v4103_v55 = vpop.eup %4102 }
0x11e0   :  { %v2039_v56 = vsel %vm136_vm2, %v4103_v55, 0.0 }
0x11e1   :  { %2040 = vadd.xlane.f32.xlu1 %v2039_v56 }
0x11f2   :  { %2198 = vrot.lane.b32.xlu1 %v4537_v31, %s4147_s29 }
0x11f3   :  { %2278 = vrot.lane.b32.xlu0 %v4541_v11, %s4146_s28 }
0x11f7   :  { %2276 = vrot.lane.b32.xlu0 %v4541_v11, %s4147_s29  ;;  %s4812_s29 = smov 8  }
0x1266   :  { %v2038_v47 = vpop.xlane.xlu0 %2037 }
0x1267   :  { %4104 = vrcp.f32 %v2038_v47 }
0x126a   :  { %v2041_v49 = vpop.xlane.xlu1 %2040  ;;  %v2279_v61 = vpop.permute.xlu0 %2278 }
0x126b   :  { %4106 = vrcp.f32 %v2041_v49 }
0x126e   :  { %v2199_v63 = vpop.permute.xlu1 %2198  ;;  %v2277_v1 = vpop.permute.xlu0 %2276 }
0x1274   :  { %v4105_v58 = vpop.eup %4104 }
0x1275   :  { %v2044_v59 = vmul.f32 %v4105_v58, %v4101_v53 }
0x1277   :  { %3899 = vmatmul.mubr.msk.f32.vlgmr.msra.gmra.mxu1 %vm136_vm2, %v2044_v59 }
0x1278   :  { %v4107_v60 = vpop.eup %4106  ;;  %3907 = vmatpush3.xpose.msk.msra.mxu1 %vm136_vm2, %v2201_v57  ;;  %3908 = vmatprep.mubr.msk.f32.mxu1 %vm4143_vm0, %v4142_v0 }
0x1279   :  { %v2045_v62 = vmul.f32 %v4107_v60, %v4103_v55  ;;  %3916 = vmatprep.subr.mxu1 %v4142_v0 }
0x127b   :  { %3904 = vmatmul.mubr.msk.f32.vlgmr.msra.gmra.mxu0 %vm136_vm2, %v2045_v62  ;;  %3909 = vmatmul.mubr.msk.f32.vlgmr.msra.gmra.mxu1 %vm136_vm2, %v2199_v63 }
0x127c   :  { %3912 = vmatpush3.xpose.msk.msra.mxu0 %vm136_vm2, %v2279_v61  ;;  %3913 = vmatprep.mubr.msk.f32.mxu0 %vm4143_vm0, %v4142_v0 }
0x127d   :  { %3921 = vmatprep.subr.mxu0 %v4142_v0  ;;  %3918 = vmatprep.mubr.msk.f32.mxu1 %vm4143_vm0, %v4142_v0 }
0x127f   :  { %3914 = vmatmul.mubr.msk.f32.vlgmr.msra.gmra.mxu0 %vm136_vm2, %v2277_v1 }
0x1280   :  { %3923 = vmatprep.mubr.msk.f32.mxu0 %vm4143_vm0, %v4142_v0 }
0x1337   :  { %v4593_v2 = vpop.f32.mrf.mxu1 }
0x1339   :  { %v3900_v5 = vpop.f32.mrf.mxu1 }
0x133b   :  { %v4595_v6 = vpop.f32.mrf.mxu0  ;;  %v2272_v7 = vpop.f32.mrf.mxu1 }
0x133c   :  { %v2273_v10 = vadd.f32 %v4600_v9, %v2272_v7 }
0x133d   :  { %v3905_v12 = vpop.f32.mrf.mxu0  ;;  %v3910_v13 = vpop.f32.mrf.mxu1 }
0x133e   :  { %v2354_v14 = vsel %vm136_vm2, %v2273_v10, -inf }
0x133f   :  { %2355 = vmax.xlane.f32.xlu1 %v2354_v14  ;;  %v2350_v3 = vpop.f32.mrf.mxu0 }
0x1340   :  { %v2351_v17 = vadd.f32 %v4607_v16, %v2350_v3 }
0x1341   :  { %v3915_v4 = vpop.f32.mrf.mxu0 }
0x1342   :  { %v2357_v18 = vsel %vm136_vm2, %v2351_v17, -inf }
0x1343   :  { %2358 = vmax.xlane.f32.xlu0 %v2357_v18 }
0x1350   :  { %2452 = vrot.lane.b32.xlu1 %v4541_v11, %s4148_s30 }
0x1354   :  { %2530 = vrot.lane.b32.xlu1 %v4537_v31, %s4149_s15 }
0x1359   :  { %2376 = vrot.lane.b32.xlu0 %v4537_v31, %s4148_s30  ;;  %s4813_s30 = smov 16  }
0x13c8   :  { %v2356_v20 = vpop.xlane.xlu1 %2355 }
0x13c9   :  { %v2360_v21 = vsub.f32 %v2273_v10, %v2356_v20 }
0x13cb   :  { %v2362_v22 = vmul.f32 1.442695, %v2360_v21 }
0x13cc   :  { %v2453_v23 = vpop.permute.xlu1 %2452  ;;  %v2359_v8 = vpop.xlane.xlu0 %2358 }
0x13cd   :  { %4108 = vpow2.f32 %v2362_v22  ;;  %v2361_v24 = vsub.f32 %v2351_v17, %v2359_v8  ;;  %3922 = vmatpush3.msra.mxu0 %v2453_v23 }
0x13ce   :  { %3931 = vmatprep.subr.mxu0 %v4142_v0 }
0x13cf   :  { %v2364_v25 = vmul.f32 1.442695, %v2361_v24 }
0x13d0   :  { %v2377_v28 = vpop.permute.xlu0 %2376  ;;  %v2531_v34 = vpop.permute.xlu1 %2530 }
0x13d1   :  { %4110 = vpow2.f32 %v2364_v25  ;;  %3917 = vmatpush3.msra.mxu1 %v2377_v28 }
0x13d2   :  { %3926 = vmatprep.subr.mxu1 %v4142_v0 }
0x13da   :  { %v4109_v29 = vpop.eup %4108 }
0x13db   :  { %v2366_v30 = vsel %vm136_vm2, %v4109_v29, 0.0 }
0x13dc   :  { %2367 = vadd.xlane.f32.xlu0 %v2366_v30 }
0x13de   :  { %v4111_v32 = vpop.eup %4110 }
0x13df   :  { %v2369_v33 = vsel %vm136_vm2, %v4111_v32, 0.0 }
0x13e0   :  { %2370 = vadd.xlane.f32.xlu1 %v2369_v33 }
0x13f1   :  { %2528 = vrot.lane.b32.xlu1 %v4537_v31, %s4150_s16 }
0x13f2   :  { %2608 = vrot.lane.b32.xlu0 %v4541_v11, %s4149_s15 }
0x13f6   :  { %2606 = vrot.lane.b32.xlu0 %v4541_v11, %s4150_s16 }
0x1465   :  { %v2368_v35 = vpop.xlane.xlu0 %2367 }
0x1466   :  { %4112 = vrcp.f32 %v2368_v35 }
0x1469   :  { %v2371_v36 = vpop.xlane.xlu1 %2370  ;;  %v2609_v40 = vpop.permute.xlu0 %2608 }
0x146a   :  { %4114 = vrcp.f32 %v2371_v36 }
0x146d   :  { %v2529_v42 = vpop.permute.xlu1 %2528  ;;  %v2607_v43 = vpop.permute.xlu0 %2606 }
0x1473   :  { %v4113_v37 = vpop.eup %4112 }
0x1474   :  { %v2374_v38 = vmul.f32 %v4113_v37, %v4109_v29 }
0x1476   :  { %3919 = vmatmul.mubr.msk.f32.vlgmr.msra.gmra.mxu1 %vm136_vm2, %v2374_v38 }
0x1477   :  { %v4115_v39 = vpop.eup %4114  ;;  %3927 = vmatpush3.xpose.msk.msra.mxu1 %vm136_vm2, %v2531_v34  ;;  %3928 = vmatprep.mubr.msk.f32.mxu1 %vm4143_vm0, %v4142_v0 }
0x1478   :  { %v2375_v41 = vmul.f32 %v4115_v39, %v4111_v32  ;;  %3936 = vmatprep.subr.mxu1 %v4142_v0 }
0x147a   :  { %3924 = vmatmul.mubr.msk.f32.vlgmr.msra.gmra.mxu0 %vm136_vm2, %v2375_v41  ;;  %3929 = vmatmul.mubr.msk.f32.vlgmr.msra.gmra.mxu1 %vm136_vm2, %v2529_v42 }
0x147b   :  { %3932 = vmatpush3.xpose.msk.msra.mxu0 %vm136_vm2, %v2609_v40  ;;  %3933 = vmatprep.mubr.msk.f32.mxu0 %vm4143_vm0, %v4142_v0 }
0x147c   :  { %3941 = vmatprep.subr.mxu0 %v4142_v0  ;;  %3938 = vmatprep.mubr.msk.f32.mxu1 %vm4143_vm0, %v4142_v0 }
0x147e   :  { %3934 = vmatmul.mubr.msk.f32.vlgmr.msra.gmra.mxu0 %vm136_vm2, %v2607_v43 }
0x147f   :  { %3943 = vmatprep.mubr.msk.f32.mxu0 %vm4143_vm0, %v4142_v0 }
0x1536   :  { %v4643_v44 = vpop.f32.mrf.mxu1 }
0x1538   :  { %v3920_v15 = vpop.f32.mrf.mxu1 }
0x153a   :  { %v4645_v45 = vpop.f32.mrf.mxu0  ;;  %v2602_v46 = vpop.f32.mrf.mxu1 }
0x153b   :  { %v4025_v48 = vpack.i.bf16 %v4645_v45, %v4643_v44  ;;  %v2603_v50 = vadd.f32 %v4600_v9, %v2602_v46 }
0x153c   :  { %v3925_v19 = vpop.f32.mrf.mxu0  ;;  %v3930_v51 = vpop.f32.mrf.mxu1 }
0x153d   :  { %v2684_v52 = vsel %vm136_vm2, %v2603_v50, -inf }
0x153e   :  { %2685 = vmax.xlane.f32.xlu1 %v2684_v52  ;;  %v2680_v53 = vpop.f32.mrf.mxu0  ;;  %v4053_v52 = vld [vmem:[%s4795_s4 + $0x10] sm:$0xff]  }
0x153f   :  { %v2681_v54 = vadd.f32 %v4607_v16, %v2680_v53 }
0x1540   :  { %v3935_v55 = vpop.f32.mrf.mxu0 }
0x1541   :  { %v2687_v56 = vsel %vm136_vm2, %v2681_v54, -inf }
0x1542   :  { %2688 = vmax.xlane.f32.xlu0 %v2687_v56 }
0x154f   :  { %2782 = vrot.lane.b32.xlu1 %v4541_v11, %s4151_s17 }
0x1553   :  { %2860 = vrot.lane.b32.xlu1 %v4537_v31, %s4152_s18 }
0x1558   :  { %2706 = vrot.lane.b32.xlu0 %v4537_v31, %s4151_s17 }
0x15c7   :  { %v2686_v57 = vpop.xlane.xlu1 %2685 }
0x15c8   :  { %v2690_v47 = vsub.f32 %v2603_v50, %v2686_v57 }
0x15ca   :  { %v2692_v49 = vmul.f32 1.442695, %v2690_v47 }
0x15cb   :  { %v2783_v58 = vpop.permute.xlu1 %2782  ;;  %v2689_v59 = vpop.xlane.xlu0 %2688 }
0x15cc   :  { %4116 = vpow2.f32 %v2692_v49  ;;  %v2691_v60 = vsub.f32 %v2681_v54, %v2689_v59  ;;  %3942 = vmatpush3.msra.mxu0 %v2783_v58 }
0x15cd   :  { %3951 = vmatprep.subr.mxu0 %v4142_v0 }
0x15ce   :  { %v2694_v61 = vmul.f32 1.442695, %v2691_v60 }
0x15cf   :  { %v2707_v62 = vpop.permute.xlu0 %2706  ;;  %v2861_v10 = vpop.permute.xlu1 %2860 }
0x15d0   :  { %4118 = vpow2.f32 %v2694_v61  ;;  %3937 = vmatpush3.msra.mxu1 %v2707_v62 }
0x15d1   :  { %3946 = vmatprep.subr.mxu1 %v4142_v0 }
0x15d9   :  { %v4117_v63 = vpop.eup %4116 }
0x15da   :  { %v2696_v1 = vsel %vm136_vm2, %v4117_v63, 0.0 }
0x15db   :  { %2697 = vadd.xlane.f32.xlu0 %v2696_v1 }
0x15dd   :  { %v4119_v5 = vpop.eup %4118 }
0x15de   :  { %v2699_v7 = vsel %vm136_vm2, %v4119_v5, 0.0 }
0x15df   :  { %2700 = vadd.xlane.f32.xlu1 %v2699_v7 }
0x15f0   :  { %2858 = vrot.lane.b32.xlu1 %v4537_v31, %s4153_s19 }
0x15f1   :  { %2938 = vrot.lane.b32.xlu0 %v4541_v11, %s4152_s18 }
0x15f5   :  { %2936 = vrot.lane.b32.xlu0 %v4541_v11, %s4153_s19  ;;  %s4814_s19 = smov 24  }
0x1664   :  { %v2698_v12 = vpop.xlane.xlu0 %2697 }
0x1665   :  { %4120 = vrcp.f32 %v2698_v12 }
0x1668   :  { %v2701_v13 = vpop.xlane.xlu1 %2700  ;;  %v2939_v4 = vpop.permute.xlu0 %2938 }
0x1669   :  { %4122 = vrcp.f32 %v2701_v13 }
0x166c   :  { %v2859_v20 = vpop.permute.xlu1 %2858  ;;  %v2937_v21 = vpop.permute.xlu0 %2936 }
0x1672   :  { %v4121_v14 = vpop.eup %4120 }
0x1673   :  { %v2704_v3 = vmul.f32 %v4121_v14, %v4117_v63 }
0x1675   :  { %3939 = vmatmul.mubr.msk.f32.vlgmr.msra.gmra.mxu1 %vm136_vm2, %v2704_v3 }
0x1676   :  { %v4123_v17 = vpop.eup %4122  ;;  %3947 = vmatpush3.xpose.msk.msra.mxu1 %vm136_vm2, %v2861_v10  ;;  %3948 = vmatprep.mubr.msk.f32.mxu1 %vm4143_vm0, %v4142_v0 }
0x1677   :  { %v2705_v18 = vmul.f32 %v4123_v17, %v4119_v5  ;;  %3956 = vmatprep.subr.mxu1 %v4142_v0 }
0x1679   :  { %3944 = vmatmul.mubr.msk.f32.vlgmr.msra.gmra.mxu0 %vm136_vm2, %v2705_v18  ;;  %3949 = vmatmul.mubr.msk.f32.vlgmr.msra.gmra.mxu1 %vm136_vm2, %v2859_v20 }
0x167a   :  { %3952 = vmatpush3.xpose.msk.msra.mxu0 %vm136_vm2, %v2939_v4  ;;  %3953 = vmatprep.mubr.msk.f32.mxu0 %vm4143_vm0, %v4142_v0 }
0x167b   :  { %3961 = vmatprep.subr.mxu0 %v4142_v0  ;;  %3958 = vmatprep.mubr.msk.f32.mxu1 %vm4143_vm0, %v4142_v0 }
0x167d   :  { %3954 = vmatmul.mubr.msk.f32.vlgmr.msra.gmra.mxu0 %vm136_vm2, %v2937_v21 }
0x167e   :  { %3963 = vmatprep.mubr.msk.f32.mxu0 %vm4143_vm0, %v4142_v0 }
0x1735   :  { %v2778_v22 = vpop.f32.mrf.mxu1 }
0x1737   :  { %v3940_v23 = vpop.f32.mrf.mxu1 }
0x1739   :  { %v2854_v8 = vpop.f32.mrf.mxu0  ;;  %v2932_v24 = vpop.f32.mrf.mxu1 }
0x173a   :  { %v4030_v25 = vpack.i.bf16 %v2854_v8, %v2778_v22  ;;  %v2933_v28 = vadd.f32 %v4600_v9, %v2932_v24 }
0x173b   :  { %v3945_v29 = vpop.f32.mrf.mxu0  ;;  %v3950_v30 = vpop.f32.mrf.mxu1 }
0x173c   :  { %v3014_v32 = vsel %vm136_vm2, %v2933_v28, -inf }
0x173d   :  { %3015 = vmax.xlane.f32.xlu1 %v3014_v32  ;;  %v3010_v33 = vpop.f32.mrf.mxu0 }
0x173e   :  { %v3011_v34 = vadd.f32 %v4607_v16, %v3010_v33 }
0x173f   :  { %v3955_v35 = vpop.f32.mrf.mxu0 }
0x1740   :  { %v3017_v36 = vsel %vm136_vm2, %v3011_v34, -inf }
0x1741   :  { %3018 = vmax.xlane.f32.xlu0 %v3017_v36 }
0x17c6   :  { %v3016_v37 = vpop.xlane.xlu1 %3015 }
0x17c7   :  { %v3020_v38 = vsub.f32 %v2933_v28, %v3016_v37  ;;  %v4055_v37 = vld [vmem:[%s4797_s8 + $0x10] sm:$0xff]  }
0x17c9   :  { %v3022_v39 = vmul.f32 1.442695, %v3020_v38  ;;  %v4056_v38 = vld [vmem:[%s4798_s10 + $0x38] sm:$0xff]  }
0x17ca   :  { %v3019_v40 = vpop.xlane.xlu0 %3018 }
0x17cb   :  { %4124 = vpow2.f32 %v3022_v39  ;;  %v3021_v41 = vsub.f32 %v3011_v34, %v3019_v40 }
0x17cd   :  { %v3024_v42 = vmul.f32 1.442695, %v3021_v41 }
0x17cf   :  { %4126 = vpow2.f32 %v3024_v42 }
0x17d8   :  { %v4125_v9 = vpop.eup %4124 }
0x17d9   :  { %v3026_v43 = vsel %vm136_vm2, %v4125_v9, 0.0 }
0x17da   :  { %3027 = vadd.xlane.f32.xlu0 %v3026_v43 }
0x17dc   :  { %v4127_v15 = vpop.eup %4126 }
0x17dd   :  { %v3029_v46 = vsel %vm136_vm2, %v4127_v15, 0.0 }
0x17de   :  { %3030 = vadd.xlane.f32.xlu1 %v3029_v46 }
0x17ef   :  { %3112 = vrot.lane.b32.xlu1 %v4541_v11, %s4811_s1 }
0x17f0   :  { %3036 = vrot.lane.b32.xlu0 %v4537_v31, %s4811_s1 }
0x17f3   :  { %4026 = vrot.lane.b32.xlu1 %v4025_v48, %s4812_s29  ;;  %v4052_v48 = vld [vmem:[%s4795_s4 + $0x18] sm:$0xff]  }
0x17f4   :  { %4031 = vrot.lane.b32.xlu0 %v4030_v25, %s4813_s30 }
0x1863   :  { %v3028_v16 = vpop.xlane.xlu0 %3027 }
0x1864   :  { %4128 = vrcp.f32 %v3028_v16  ;;  %v3640_v16 = vld [vmem:[%s4799_s6 + $0x1] ss:$0 sm:$0xff] }
0x1867   :  { %v3031_v50 = vpop.xlane.xlu1 %3030  ;;  %v3037_v19 = vpop.permute.xlu0 %3036 }
0x1868   :  { %4130 = vrcp.f32 %v3031_v50  ;;  %3957 = vmatpush3.msra.mxu1 %v3037_v19 }
0x1869   :  { %3966 = vmatprep.subr.bf16.mxu1 %v4142_v0 }
0x186b   :  { %v3113_v51 = vpop.permute.xlu1 %3112  ;;  %v4032_v59 = vpop.permute.xlu0 %4031 }
0x186c   :  { %3962 = vmatpush3.msra.mxu0 %v3113_v51  ;;  %v4034_v62 = vunpack.i.h.bf16 %v4032_v59  ;;  %v4033_v63 = vunpack.i.l.bf16 %v4032_v59 }
0x186d   :  { %3974 = vmatprep.subr.bf16.mxu0 %v4142_v0 }
0x186f   :  { %v4027_v47 = vpop.permute.xlu1 %4026 }
0x1870   :  { %v4029_v49 = vunpack.i.h.bf16 %v4027_v47  ;;  %v4028_v58 = vunpack.i.l.bf16 %v4027_v47 }
0x1871   :  { %v4129_v31 = vpop.eup %4128 }
0x1872   :  { %v3034_v11 = vmul.f32 %v4129_v31, %v4125_v9  ;;  %v3213_v60 = vsel %vm136_vm2, %v4595_v6, %v4029_v49  ;;  %v3212_v61 = vsel %vm136_vm2, %v4593_v2, %v4028_v58  ;;  %v3634_v2 = vld [vmem:[%s4796_s5 + $0x1] ss:$0 sm:$0xff] }
0x1873   :  { %v3214_v10 = vsel %vm1478_vm3, %v3212_v61, %v4033_v63  ;;  %v3215_v12 = vsel %vm1478_vm3, %v3213_v60, %v4034_v62  ;;  %v3641_v31 = vld [vmem:[%s4800_s7 + $0x1] ss:$0 sm:$0xff] }
0x1874   :  { %3959 = vmatmul.mubr.msk.f32.vlgmr.msra.gmra.mxu1 %vm136_vm2, %v3034_v11 }
0x1875   :  { %v4131_v44 = vpop.eup %4130  ;;  %3970 = vmatprep.mubr.msk.bf16.mxu1 %vm4143_vm0, %v4142_v0  ;;  %3967 = vmatpush3.bf16.msra.mxu1 %v4052_v48 }
0x1876   :  { %v3035_v45 = vmul.f32 %v4131_v44, %v4127_v15  ;;  %3968 = vmatprep.subr.bf16.mxu1 %v4142_v0 }
0x1878   :  { %3964 = vmatmul.mubr.msk.f32.vlgmr.msra.gmra.mxu0 %vm136_vm2, %v3035_v45 }
0x1879   :  { %3978 = vmatprep.mubr.msk.bf16.mxu0 %vm4143_vm0, %v4142_v0  ;;  %3969 = vmatpush3.bf16.msra.mxu1 %v4053_v52  ;;  %v4057_v52 = vld [vmem:[%s4798_s10 + $0x30] sm:$0xff]  }
0x187a   :  { %3982 = vmatprep.subr.bf16.mxu1 %v4142_v0 }
0x1934   :  { %v3108_v53 = vpop.f32.mrf.mxu1 }
0x1936   :  { %v3960_v54 = vpop.f32.mrf.mxu1 }
0x1937   :  { %v4059_v54 = vld [vmem:[%s4798_s10 + $0x20] sm:$0xff]  }
0x1938   :  { %v3184_v55 = vpop.f32.mrf.mxu0 }
0x1939   :  { %v4035_v56 = vpack.i.bf16 %v3184_v55, %v3108_v53  ;;  %v4058_v53 = vld [vmem:[%s4798_s10 + $0x28] sm:$0xff]   ;;  %v3647_v55 = vld [vmem:[%s4801_s9 + $0x1] ss:$0 sm:$0xff] }
0x193a   :  { %v3965_v57 = vpop.f32.mrf.mxu0 }
0x193b   :  { %4036 = vrot.lane.b32.xlu1 %v4035_v56, %s4814_s19 }
0x19ad   :  { %v4037_v1 = vpop.permute.xlu1 %4036 }
0x19ae   :  { %v4039_v5 = vunpack.i.h.bf16 %v4037_v1  ;;  %v4038_v7 = vunpack.i.l.bf16 %v4037_v1 }
0x19b0   :  { %v3217_v13 = vsel %vm1481_vm4, %v3215_v12, %v4039_v5  ;;  %v3216_v14 = vsel %vm1481_vm4, %v3214_v10, %v4038_v7 }
0x19b1   :  { %v3225_v3 = vpack.c.bf16 %v3217_v13, %v3216_v14 }
0x19b3   :  { %3971 = vmatmul.mubr.msk.bf16.vlgmr.msra.gmra.mxu1 %vm76_vm1, %v3225_v3 }
0x19b4   :  { %3990 = vmatprep.mubr.msk.bf16.mxu1 %vm4143_vm0, %v4142_v0  ;;  %3983 = vmatpush3.bf16.msra.mxu1 %v4056_v38 }
0x19b5   :  { %3984 = vmatprep.subr.bf16.mxu1 %v4142_v0 }
0x19b8   :  { %3985 = vmatpush3.bf16.msra.mxu1 %v4057_v52 }
0x19b9   :  { %3986 = vmatprep.subr.bf16.mxu1 %v4142_v0 }
0x19bc   :  { %3987 = vmatpush3.bf16.msra.mxu1 %v4058_v53 }
0x19bd   :  { %3988 = vmatprep.subr.bf16.mxu1 %v4142_v0 }
0x19c0   :  { %3989 = vmatpush3.bf16.msra.mxu1 %v4059_v54 }
0x1a73   :  { %v3281_v6 = vpop.f32.mrf.mxu1 }
0x1a74   :  { %v3282_v17 = vadd.f32 %v3634_v2, %v3281_v6 }
0x1a75   :  { %v3972_v4 = vpop.f32.mrf.mxu1 }
0x1a76   :  { %v3288_v18 = vadd.f32 %v3282_v17, %v4525_v26 }
0x1a77   :  { %v3284_v20 = vpop.f32.mrf.mxu1 }
0x1a78   :  { %v3285_v21 = vadd.f32 %v3634_v2, %v3284_v20  ;;  %v3294_v22 = vsel %vm76_vm1, %v3288_v18, 0.0 }
0x1a79   :  { %3295 = vadd.xlane.f32.xlu0 %v3294_v22  ;;  %v3973_v23 = vpop.f32.mrf.mxu1 }
0x1a7a   :  { %v3289_v8 = vadd.f32 %v3285_v21, %v4527_v27  ;;  %v4054_v27 = vld [vmem:[%s4797_s8 + $0x18] sm:$0xff]  }
0x1a7b   :  { %3975 = vmatpush3.bf16.msra.mxu0 %v4054_v27 }
0x1a7c   :  { %v3297_v24 = vsel %vm76_vm1, %v3289_v8, 0.0  ;;  %3976 = vmatprep.subr.bf16.mxu0 %v4142_v0  ;;  %v3660_v0 = vld [vmem:[%s4802_s11 + $0x1] ss:$0 sm:$0xff] }
0x1a7d   :  { %3298 = vadd.xlane.f32.xlu1 %v3297_v24 }
0x1a7f   :  { %3977 = vmatpush3.bf16.msra.mxu0 %v4055_v37 }
0x1b02   :  { %v3296_v25 = vpop.xlane.xlu0 %3295 }
0x1b03   :  { %v3300_v28 = vmul.f32 0.03125, %v3296_v25 }
0x1b05   :  { %v3302_v29 = vsub.f32 %v3288_v18, %v3300_v28 }
0x1b06   :  { %v3299_v30 = vpop.xlane.xlu1 %3298 }
0x1b07   :  { %v3301_v32 = vmul.f32 0.03125, %v3299_v30  ;;  %v3304_v33 = vmul.f32 %v3302_v29, %v3302_v29 }
0x1b09   :  { %v3303_v34 = vsub.f32 %v3289_v8, %v3301_v32  ;;  %v3306_v26 = vsel %vm76_vm1, %v3304_v33, 0.0 }
0x1b0a   :  { %3307 = vadd.xlane.f32.xlu0 %v3306_v26  ;;  %v3668_v26 = vld [vmem:[%s4803_s12 + $0x1] ss:$0 sm:$0xff] }
0x1b0b   :  { %v3305_v35 = vmul.f32 %v3303_v34, %v3303_v34 }
0x1b0d   :  { %v3309_v36 = vsel %vm76_vm1, %v3305_v35, 0.0 }
0x1b0e   :  { %3310 = vadd.xlane.f32.xlu0 %v3309_v36  ;;  %v3669_v36 = vld [vmem:[%s4804_s13 + $0x1] ss:$0 sm:$0xff] }
0x1b93   :  { %v3308_v39 = vpop.xlane.xlu0 %3307 }
0x1b94   :  { %v3312_v40 = vmul.f32 0.03125, %v3308_v39 }
0x1b96   :  { %v3314_v41 = vadd.f32 1e-05, %v3312_v40 }
0x1b97   :  { %v3311_v42 = vpop.xlane.xlu0 %3310 }
0x1b98   :  { %4132 = vrsqrt.f32 %v3314_v41  ;;  %v3313_v9 = vmul.f32 0.03125, %v3311_v42 }
0x1b9a   :  { %v3315_v43 = vadd.f32 1e-05, %v3313_v9 }
0x1b9c   :  { %4134 = vrsqrt.f32 %v3315_v43 }
0x1ba5   :  { %v4133_v15 = vpop.eup %4132 }
0x1ba6   :  { %v3318_v46 = vmul.f32 %v4133_v15, %v3302_v29 }
0x1ba8   :  { %v3326_v51 = vmul.f32 %v3640_v16, %v3318_v46 }
0x1ba9   :  { %v4135_v50 = vpop.eup %4134 }
0x1baa   :  { %v3319_v19 = vmul.f32 %v4135_v50, %v3303_v34  ;;  %v3334_v44 = vadd.f32 %v3641_v31, %v3326_v51 }
0x1bac   :  { %v3327_v11 = vmul.f32 %v3640_v16, %v3319_v19 }
0x1bae   :  { %v3335_v45 = vadd.f32 %v3641_v31, %v3327_v11 }
0x1bb0   :  { %v3343_v48 = vpack.c.bf16 %v3335_v45, %v3334_v44 }
0x1bb2   :  { %3979 = vmatmul.mubr.msk.bf16.vlgmr.msra.gmra.mxu0 %vm76_vm1, %v3343_v48 }
0x1c72   :  { %v3399_v56 = vpop.f32.mrf.mxu0 }
0x1c73   :  { %v3400_v47 = vadd.f32 %v3647_v55, %v3399_v56 }
0x1c74   :  { %v3980_v57 = vpop.f32.mrf.mxu0 }
0x1c75   :  { %v3406_v60 = vmax.f32 %v3400_v47, 0.0 }
0x1c76   :  { %v3402_v49 = vpop.f32.mrf.mxu0 }
0x1c77   :  { %v3403_v58 = vadd.f32 %v3647_v55, %v3402_v49 }
0x1c78   :  { %v3981_v59 = vpop.f32.mrf.mxu0 }
0x1c79   :  { %v3407_v61 = vmax.f32 %v3403_v58, 0.0 }
0x1c7b   :  { %v3419_v62 = vpack.c.bf16 %v3407_v61, %v3406_v60 }
0x1c7d   :  { %3991 = vmatmul.mubr.msk.bf16.vlgmr.msra.gmra.mxu1 %vm1709_vm5, %v3419_v62 }
0x1d3d   :  { %v3487_v63 = vpop.f32.mrf.mxu1 }
0x1d3e   :  { %v3488_v1 = vadd.f32 %v3660_v0, %v3487_v63 }
0x1d3f   :  { %v3992_v5 = vpop.f32.mrf.mxu1 }
0x1d40   :  { %v3494_v7 = vadd.f32 %v3488_v1, %v3334_v44 }
0x1d41   :  { %v3490_v10 = vpop.f32.mrf.mxu1 }
0x1d42   :  { %v3491_v12 = vadd.f32 %v3660_v0, %v3490_v10  ;;  %v3500_v13 = vsel %vm76_vm1, %v3494_v7, 0.0 }
0x1d43   :  { %3501 = vadd.xlane.f32.xlu1 %v3500_v13  ;;  %v3993_v14 = vpop.f32.mrf.mxu1 }
0x1d44   :  { %v3495_v3 = vadd.f32 %v3491_v12, %v3335_v45 }
0x1d46   :  { %v3503_v2 = vsel %vm76_vm1, %v3495_v3, 0.0 }
0x1d47   :  { %3504 = vadd.xlane.f32.xlu0 %v3503_v2 }
0x1dcc   :  { %v3502_v6 = vpop.xlane.xlu1 %3501 }
0x1dcd   :  { %v3506_v17 = vmul.f32 0.03125, %v3502_v6 }
0x1dcf   :  { %v3508_v4 = vsub.f32 %v3494_v7, %v3506_v17 }
0x1dd0   :  { %v3505_v18 = vpop.xlane.xlu0 %3504 }
0x1dd1   :  { %v3507_v20 = vmul.f32 0.03125, %v3505_v18  ;;  %v3510_v21 = vmul.f32 %v3508_v4, %v3508_v4 }
0x1dd3   :  { %v3509_v22 = vsub.f32 %v3495_v3, %v3507_v20  ;;  %v3512_v23 = vsel %vm76_vm1, %v3510_v21, 0.0 }
0x1dd4   :  { %3513 = vadd.xlane.f32.xlu1 %v3512_v23 }
0x1dd5   :  { %v3511_v8 = vmul.f32 %v3509_v22, %v3509_v22 }
0x1dd7   :  { %v3515_v24 = vsel %vm76_vm1, %v3511_v8, 0.0 }
0x1dd8   :  { %3516 = vadd.xlane.f32.xlu0 %v3515_v24 }
0x1e5d   :  { %v3514_v25 = vpop.xlane.xlu1 %3513 }
0x1e5e   :  { %v3518_v28 = vmul.f32 0.03125, %v3514_v25 }
0x1e60   :  { %v3520_v29 = vadd.f32 1e-05, %v3518_v28 }
0x1e61   :  { %v3517_v30 = vpop.xlane.xlu0 %3516 }
0x1e62   :  { %4136 = vrsqrt.f32 %v3520_v29  ;;  %v3519_v32 = vmul.f32 0.03125, %v3517_v30 }
0x1e64   :  { %v3521_v33 = vadd.f32 1e-05, %v3519_v32 }
0x1e66   :  { %4138 = vrsqrt.f32 %v3521_v33 }
0x1e6f   :  { %v4137_v34 = vpop.eup %4136 }
0x1e70   :  { %v3524_v35 = vmul.f32 %v4137_v34, %v3508_v4 }
0x1e72   :  { %v3532_v27 = vmul.f32 %v3668_v26, %v3524_v35 }
0x1e73   :  { %v4139_v37 = vpop.eup %4138 }
0x1e74   :  { %v3540_v38 = vadd.f32 %v3669_v36, %v3532_v27  ;;  %v3525_v39 = vmul.f32 %v4139_v37, %v3509_v22 }
0x1e76   :  { %3542 = vst.msk [vmem:[%s4805_s14] sm:$0xff] %vm76_vm1, %v3540_v38  ;;  %v3533_v40 = vmul.f32 %v3668_v26, %v3525_v39 }
0x1e78   :  { %v3541_v41 = vadd.f32 %v3669_v36, %v3533_v40 }
0x1e7a   :  { %3543 = vst.msk [vmem:[%s4805_s14 + $0x8] sm:$0xff] %vm76_vm1, %v3541_v41 }

// kernel: transformer_forward.3
= control target key start
LH: loop header
LB: loop body
LE: loop exit
PB: predicated region body
PF: predicated region fallthrough
CT: control target
= control target key end

     0   :  { %s9228_s0 = inlined_call_operand.vmem [shape: f32[2,8,32], index: 0, kind: input, shape index: {}]   ;;  %s9229_s1 = inlined_call_operand.vmem [shape: f32[2,8,32], index: 1, kind: input, shape index: {}]   ;;  %s9230_s2 = inlined_call_operand.vmem [shape: f32[2,1,8], index: 2, kind: input, shape index: {}]   ;;  %s9231_s3 = inlined_call_operand.vmem [shape: f32[2,1,8], index: 3, kind: input, shape index: {}]   ;;  %s9232_s4 = inlined_call_operand.vmem [shape: bf16[2,32,96], index: 4, kind: input, shape index: {}]   ;;  %s9233_s5 = inlined_call_operand.vmem [shape: f32[2,1,96], index: 5, kind: input, shape index: {}]   ;;  %s9234_s6 = inlined_call_operand.vmem [shape: bf16[2,32,32], index: 6, kind: input, shape index: {}]   ;;  %s9235_s7 = inlined_call_operand.vmem [shape: f32[2,1,32], index: 7, kind: input, shape index: {}]   ;;  %s9236_s8 = inlined_call_operand.vmem [shape: f32[2,1,32], index: 8, kind: input, shape index: {}]   ;;  %s9237_s9 = inlined_call_operand.vmem [shape: f32[2,1,32], index: 9, kind: input, shape index: {}]   ;;  %s9238_s10 = inlined_call_operand.vmem [shape: bf16[2,32,32], index: 10, kind: input, shape index: {}]   ;;  %s9239_s11 = inlined_call_operand.vmem [shape: f32[2,1,32], index: 11, kind: input, shape index: {}]   ;;  %s9240_s12 = inlined_call_operand.vmem [shape: bf16[2,32,64], index: 12, kind: input, shape index: {}]   ;;  %s9241_s13 = inlined_call_operand.vmem [shape: f32[2,1,64], index: 13, kind: input, shape index: {}]   ;;  %s9242_s14 = inlined_call_operand.vmem [shape: bf16[2,32,32], index: 14, kind: input, shape index: {}]   ;;  %s9243_s15 = inlined_call_operand.vmem [shape: f32[2,1,32], index: 15, kind: input, shape index: {}]   ;;  %s9244_s16 = inlined_call_operand.vmem [shape: f32[2,1,32], index: 16, kind: input, shape index: {}]   ;;  %s9245_s17 = inlined_call_operand.vmem [shape: f32[2,1,32], index: 17, kind: input, shape index: {}]   ;;  %s9246_s18 = inlined_call_operand.vmem [shape: bf16[2,32,64], index: 18, kind: input, shape index: {}]   ;;  %s9247_s19 = inlined_call_operand.vmem [shape: f32[2,1,64], index: 19, kind: input, shape index: {}]   ;;  %s9248_s20 = inlined_call_operand.vmem [shape: bf16[2,64,32], index: 20, kind: input, shape index: {}]   ;;  %s9249_s21 = inlined_call_operand.vmem [shape: f32[2,1,32], index: 21, kind: input, shape index: {}]   ;;  %s9250_s22 = inlined_call_operand.vmem [shape: f32[2,1,32], index: 22, kind: input, shape index: {}]   ;;  %s9251_s23 = inlined_call_operand.vmem [shape: f32[2,1,32], index: 23, kind: input, shape index: {}]   ;;  %s9252_s24 = inlined_call_operand.vmem [shape: bf16[32,128], index: 24, kind: input, shape index: {}]   ;;  %s9253_s25 = inlined_call_operand.vmem [shape: f32[1,128], index: 25, kind: input, shape index: {}]   ;;  %s9254_s26 = inlined_call_operand.hbm [shape: f32[2,8,128], index: 26, kind: output, shape index: {}]  }
   0x1   :  { %9301 = sst [smem:[#allocation5_spill]] %s9228_s0 }
   0x2   :  { %9302 = sst [smem:[#allocation6_spill]] %s9229_s1 }
   0x3   :  { %9303 = sst [smem:[#allocation7_spill]] %s9230_s2 }
   0x4   :  { %9304 = sst [smem:[#allocation8_spill]] %s9231_s3 }
   0x5   :  { %9305 = sst [smem:[#allocation9_spill]] %s9232_s4 }
   0x6   :  { %9306 = sst [smem:[#allocation10_spill]] %s9233_s5 }
   0x7   :  { %9307 = sst [smem:[#allocation11_spill]] %s9234_s6 }
   0x8   :  { %9308 = sst [smem:[#allocation12_spill]] %s9235_s7 }
   0x9   :  { %9309 = sst [smem:[#allocation13_spill]] %s9236_s8 }
   0xa   :  { %9310 = sst [smem:[#allocation14_spill]] %s9237_s9 }
   0xb   :  { %9311 = sst [smem:[#allocation15_spill]] %s9238_s10 }
   0xc   :  { %9312 = sst [smem:[#allocation16_spill]] %s9239_s11 }
   0xd   :  { %9313 = sst [smem:[#allocation17_spill]] %s9242_s14 }
   0xe   :  { %9314 = sst [smem:[#allocation18_spill]] %s9243_s15 }
   0xf   :  { %9315 = sst [smem:[#allocation19_spill]] %s9245_s17 }
  0x10   :  { %9316 = sst [smem:[#allocation20_spill]] %s9252_s24 }
  0x11   :  { %9317 = sst [smem:[#allocation21_spill]] %s9253_s25 }
  0x12   :  { %9318 = sst [smem:[#allocation22_spill]] %s9254_s26 }
  0x13   :  { %s9319_s7 = sld [smem:[#allocation9_spill]]  ;;  %v8022_v1 = vmov 0.0   ;;  %vm8023_vm0 = vmmov 0   ;;  %vm139_vm1 = vcmask 261120  }
  0x14   :  { %7286 = vmatprep.subr.bf16.mxu0 %v8022_v1  ;;  %7294 = vmatprep.subr.mxu1 %v8022_v1  ;;  %s9320_s0 = sld [smem:[#allocation5_spill]] }
  0x15   :  { %7290 = vmatprep.mubr.msk.bf16.mxu0 %vm8023_vm0, %v8022_v1  ;;  %7296 = vmatprep.mubr.msk.f32.mxu1 %vm8023_vm0, %v8022_v1 }
  0x19   :  { %v7812_v0 = vld [vmem:[%s9319_s7 + $0x8] sm:$0xff]   ;;  %v7813_v2 = vld [vmem:[%s9319_s7] sm:$0xff]  }
  0x1a   :  { %7287 = vmatpush3.bf16.msra.mxu0 %v7812_v0  ;;  %v8188_v3 = vld [vmem:[%s9320_s0] sm:$0xff]  ;;  %v8193_v4 = vld [vmem:[%s9320_s0 + $0x8] sm:$0xff] }
  0x1b   :  { %7288 = vmatprep.subr.bf16.mxu0 %v8022_v1  ;;  %v120_v5 = vpack.c.bf16 %v8193_v4, %v8188_v3 }
  0x1e   :  { %7289 = vmatpush3.bf16.msra.mxu0 %v7813_v2 }
  0x1f   :  { %7309 = vmatprep.subr.mxu0 %v8022_v1 }
  0x21   :  { %7291 = vmatmul.mubr.msk.bf16.vlgmr.msra.gmra.mxu0 %vm139_vm1, %v120_v5 }
  0x22   :  { %7311 = vmatprep.mubr.msk.f32.mxu0 %vm8023_vm0, %v8022_v1 }
  0x23   :  { %31 = vsyncpa [#allocation3], 0  ;;  %s9321_s10 = sld [smem:[#allocation10_spill]]  ;;  %s9292_s6 = smov 96   ;;  %vm187_vm2 = vcmask 64512   ;;  %v89_v15 = vlaneseq  ;;  %vm1529_vm4 = vcmask 130048  }
  0x24   :  { %s9322_s3 = sld [smem:[#allocation7_spill]]  ;;  %s9272_s4 = smov 64   ;;  %vm1532_vm5 = vcmask 195584   ;;  %vm3368_vm6 = vcmask 523264  }
  0x25   :  { %v90_v16 = vshrl.u32 %v89_v15, 7  ;;  %v92_v17 = vand.u32 127, %v89_v15  ;;  %s9288_s29 = smov 88   ;;  %s9290_s0 = smov 120  }
  0x26   :  { %s9270_s9 = smov 56   ;;  %s9284_s30 = smov 80  }
  0x27   :  { %vm93_vm3 = vcmp.gt.s32.totalorder %v92_v17, %v90_v16  ;;  %s9286_s2 = smov 112   ;;  %s9268_s5 = smov 48  }
  0x28   :  { %v6887_v18 = vsel %vm93_vm3, 1.0, %v8022_v1  ;;  %s9280_s1 = smov 72   ;;  %s9282_s27 = smov 104  }
  0x29   :  { %v6890_v6 = vld [vmem:[%s9321_s10] ss:$0 sm:$0xff]  ;;  %v96_v19 = vmul.f32 -1e+09, %v6887_v18  ;;  %s9276_s28 = smov 8   ;;  %s9274_s8 = smov 16  }
  0x2a   :  { %v6888_v20 = vld [vmem:[%s9322_s3] ss:$0 sm:$0xff]  ;;  %v6889_v22 = vld [vmem:[%s9322_s3 + $0x1] ss:$0 sm:$0xff]  ;;  %s9266_s3 = smov 40   ;;  %s9341_s24 = smov 56  }
  0x2b   :  { %v8231_v21 = vadd.f32 %v6888_v20, %v96_v19  ;;  %v8237_v25 = vadd.f32 %v6889_v22, %v96_v19  ;;  %s9342_s25 = smov 48   ;;  %s9344_s26 = sld [smem:[#allocation16_spill]] }
  0xe1   :  { %v177_v7 = vpop.f32.mrf.mxu0 }
  0xe2   :  { %v8207_v8 = vadd.f32 %v6890_v6, %v177_v7 }
  0xe3   :  { %v7292_v9 = vpop.f32.mrf.mxu0 }
  0xe4   :  { %185 = vrot.lane.b32.xlu0 %v8207_v8, %s9292_s6 }
  0xe5   :  { %v180_v10 = vpop.f32.mrf.mxu0 }
  0xe6   :  { %v8211_v11 = vadd.f32 %v6890_v6, %v180_v10 }
  0xe7   :  { %v7293_v12 = vpop.f32.mrf.mxu0 }
  0xe8   :  { %263 = vrot.lane.b32.xlu0 %v8211_v11, %s9292_s6 }
 0x156   :  { %v186_v13 = vpop.permute.xlu0 %185 }
 0x157   :  { %7295 = vmatpush3.xpose.msk.msra.mxu1 %vm187_vm2, %v186_v13 }
 0x158   :  { %7299 = vmatprep.subr.mxu1 %v8022_v1 }
 0x15a   :  { %7297 = vmatmul.mubr.msk.f32.vlgmr.msra.gmra.mxu1 %vm187_vm2, %v8207_v8  ;;  %v264_v14 = vpop.permute.xlu0 %263 }
 0x15b   :  { %7300 = vmatpush3.xpose.msk.msra.mxu1 %vm187_vm2, %v264_v14  ;;  %7301 = vmatprep.mubr.msk.f32.mxu1 %vm8023_vm0, %v8022_v1 }
 0x15c   :  { %7304 = vmatprep.subr.mxu1 %v8022_v1 }
 0x15e   :  { %7302 = vmatmul.mubr.msk.f32.vlgmr.msra.gmra.mxu1 %vm187_vm2, %v8211_v11 }
 0x15f   :  { %7306 = vmatprep.mubr.msk.f32.mxu1 %vm8023_vm0, %v8022_v1 }
 0x21a   :  { %v258_v23 = vpop.f32.mrf.mxu1 }
 0x21b   :  { %v259_v24 = vadd.f32 %v258_v23, %v8231_v21 }
 0x21c   :  { %v7298_v26 = vpop.f32.mrf.mxu1 }
 0x21d   :  { %v339_v27 = vsel %vm187_vm2, %v259_v24, -inf }
 0x21e   :  { %340 = vmax.xlane.f32.xlu1 %v339_v27  ;;  %v335_v28 = vpop.f32.mrf.mxu1 }
 0x21f   :  { %v336_v29 = vadd.f32 %v335_v28, %v8237_v25 }
 0x220   :  { %v7303_v30 = vpop.f32.mrf.mxu1 }
 0x221   :  { %v342_v31 = vsel %vm187_vm2, %v336_v29, -inf }
 0x222   :  { %343 = vmax.xlane.f32.xlu1 %v342_v31 }
 0x233   :  { %361 = vrot.lane.b32.xlu1 %v8207_v8, %s9272_s4 }
 0x237   :  { %437 = vrot.lane.b32.xlu1 %v8211_v11, %s9272_s4  ;;  %s9328_s4 = sld [smem:[#allocation14_spill]] }
 0x23b   :  { %515 = vrot.lane.b32.xlu1 %v8207_v8, %s9288_s29 }
 0x23f   :  { %593 = vrot.lane.b32.xlu1 %v8211_v11, %s9288_s29  ;;  %s9334_s29 = smov 72  }
 0x2a7   :  { %v341_v32 = vpop.xlane.xlu1 %340 }
 0x2a8   :  { %v345_v33 = vsub.f32 %v259_v24, %v341_v32 }
 0x2aa   :  { %v347_v34 = vmul.f32 1.442695, %v345_v33 }
 0x2ab   :  { %v344_v35 = vpop.xlane.xlu1 %343 }
 0x2ac   :  { %7846 = vpow2.f32 %v347_v34  ;;  %v346_v36 = vsub.f32 %v336_v29, %v344_v35 }
 0x2ae   :  { %v349_v37 = vmul.f32 1.442695, %v346_v36 }
 0x2af   :  { %v362_v38 = vpop.permute.xlu1 %361 }
 0x2b0   :  { %7848 = vpow2.f32 %v349_v37  ;;  %7305 = vmatpush3.msra.mxu1 %v362_v38 }
 0x2b1   :  { %7314 = vmatprep.subr.mxu1 %v8022_v1 }
 0x2b3   :  { %v438_v39 = vpop.permute.xlu1 %437 }
 0x2b4   :  { %7310 = vmatpush3.msra.mxu0 %v438_v39 }
 0x2b5   :  { %7319 = vmatprep.subr.mxu0 %v8022_v1 }
 0x2b7   :  { %v516_v44 = vpop.permute.xlu1 %515 }
 0x2b9   :  { %v7847_v40 = vpop.eup %7846 }
 0x2ba   :  { %v351_v41 = vsel %vm187_vm2, %v7847_v40, 0.0 }
 0x2bb   :  { %352 = vadd.xlane.f32.xlu0 %v351_v41  ;;  %v594_v45 = vpop.permute.xlu1 %593 }
 0x2bd   :  { %v7849_v42 = vpop.eup %7848 }
 0x2be   :  { %v354_v43 = vsel %vm187_vm2, %v7849_v42, 0.0 }
 0x2bf   :  { %355 = vadd.xlane.f32.xlu1 %v354_v43 }
 0x2d0   :  { %591 = vrot.lane.b32.xlu1 %v8211_v11, %s9290_s0 }
 0x2d1   :  { %513 = vrot.lane.b32.xlu0 %v8207_v8, %s9290_s0 }
 0x344   :  { %v353_v46 = vpop.xlane.xlu0 %352 }
 0x345   :  { %7850 = vrcp.f32 %v353_v46 }
 0x348   :  { %v356_v47 = vpop.xlane.xlu1 %355  ;;  %v514_v52 = vpop.permute.xlu0 %513 }
 0x349   :  { %7852 = vrcp.f32 %v356_v47 }
 0x34c   :  { %v592_v53 = vpop.permute.xlu1 %591 }
 0x352   :  { %v7851_v48 = vpop.eup %7850 }
 0x353   :  { %v359_v49 = vmul.f32 %v7851_v48, %v7847_v40 }
 0x355   :  { %7307 = vmatmul.mubr.msk.f32.vlgmr.msra.gmra.mxu1 %vm187_vm2, %v359_v49 }
 0x356   :  { %v7853_v50 = vpop.eup %7852  ;;  %7315 = vmatpush3.xpose.msk.msra.mxu1 %vm187_vm2, %v516_v44  ;;  %7316 = vmatprep.mubr.msk.f32.mxu1 %vm8023_vm0, %v8022_v1 }
 0x357   :  { %v360_v51 = vmul.f32 %v7853_v50, %v7849_v42  ;;  %7324 = vmatprep.subr.mxu1 %v8022_v1 }
 0x359   :  { %7312 = vmatmul.mubr.msk.f32.vlgmr.msra.gmra.mxu0 %vm187_vm2, %v360_v51  ;;  %7317 = vmatmul.mubr.msk.f32.vlgmr.msra.gmra.mxu1 %vm187_vm2, %v514_v52 }
 0x35a   :  { %7320 = vmatpush3.xpose.msk.msra.mxu0 %vm187_vm2, %v594_v45  ;;  %7321 = vmatprep.mubr.msk.f32.mxu0 %vm8023_vm0, %v8022_v1 }
 0x35b   :  { %7329 = vmatprep.subr.mxu0 %v8022_v1  ;;  %7326 = vmatprep.mubr.msk.f32.mxu1 %vm8023_vm0, %v8022_v1 }
 0x35d   :  { %7322 = vmatmul.mubr.msk.f32.vlgmr.msra.gmra.mxu0 %vm187_vm2, %v592_v53 }
 0x35e   :  { %7331 = vmatprep.mubr.msk.f32.mxu0 %vm8023_vm0, %v8022_v1 }
 0x415   :  { %v8274_v54 = vpop.f32.mrf.mxu1 }
 0x417   :  { %v7308_v55 = vpop.f32.mrf.mxu1 }
 0x419   :  { %v8276_v56 = vpop.f32.mrf.mxu0  ;;  %v587_v57 = vpop.f32.mrf.mxu1 }
 0x41a   :  { %v588_v58 = vadd.f32 %v587_v57, %v8231_v21 }
 0x41b   :  { %v7313_v59 = vpop.f32.mrf.mxu0  ;;  %v7318_v60 = vpop.f32.mrf.mxu1 }
 0x41c   :  { %v669_v61 = vsel %vm187_vm2, %v588_v58, -inf }
 0x41d   :  { %670 = vmax.xlane.f32.xlu1 %v669_v61  ;;  %v665_v62 = vpop.f32.mrf.mxu0 }
 0x41e   :  { %v666_v63 = vadd.f32 %v665_v62, %v8237_v25 }
 0x41f   :  { %v7323_v0 = vpop.f32.mrf.mxu0 }
 0x420   :  { %v672_v2 = vsel %vm187_vm2, %v666_v63, -inf }
 0x421   :  { %673 = vmax.xlane.f32.xlu0 %v672_v2 }
 0x42e   :  { %691 = vrot.lane.b32.xlu1 %v8207_v8, %s9270_s9 }
 0x432   :  { %845 = vrot.lane.b32.xlu1 %v8207_v8, %s9284_s30 }
 0x436   :  { %923 = vrot.lane.b32.xlu1 %v8211_v11, %s9284_s30  ;;  %s9325_s30 = sld [smem:[#allocation6_spill]] }
 0x437   :  { %767 = vrot.lane.b32.xlu0 %v8211_v11, %s9270_s9  ;;  %s9323_s9 = sld [smem:[#allocation11_spill]] }
 0x43b   :  { %843 = vrot.lane.b32.xlu0 %v8207_v8, %s9286_s2 }
 0x4a6   :  { %v671_v5 = vpop.xlane.xlu1 %670 }
 0x4a7   :  { %v675_v6 = vsub.f32 %v588_v58, %v671_v5 }
 0x4a9   :  { %v677_v7 = vmul.f32 1.442695, %v675_v6 }
 0x4aa   :  { %v692_v9 = vpop.permute.xlu1 %691  ;;  %v674_v10 = vpop.xlane.xlu0 %673 }
 0x4ab   :  { %7854 = vpow2.f32 %v677_v7  ;;  %v676_v12 = vsub.f32 %v666_v63, %v674_v10  ;;  %7325 = vmatpush3.msra.mxu1 %v692_v9 }
 0x4ac   :  { %7334 = vmatprep.subr.mxu1 %v8022_v1 }
 0x4ad   :  { %v679_v13 = vmul.f32 1.442695, %v676_v12 }
 0x4ae   :  { %v768_v14 = vpop.permute.xlu0 %767  ;;  %v846_v19 = vpop.permute.xlu1 %845 }
 0x4af   :  { %7856 = vpow2.f32 %v679_v13  ;;  %7330 = vmatpush3.msra.mxu0 %v768_v14 }
 0x4b0   :  { %7339 = vmatprep.subr.mxu0 %v8022_v1 }
 0x4b2   :  { %v924_v20 = vpop.permute.xlu1 %923  ;;  %v844_v29 = vpop.permute.xlu0 %843 }
 0x4b8   :  { %v7855_v15 = vpop.eup %7854 }
 0x4b9   :  { %v681_v16 = vsel %vm187_vm2, %v7855_v15, 0.0 }
 0x4ba   :  { %682 = vadd.xlane.f32.xlu1 %v681_v16 }
 0x4bc   :  { %v7857_v17 = vpop.eup %7856 }
 0x4bd   :  { %v684_v18 = vsel %vm187_vm2, %v7857_v17, 0.0 }
 0x4be   :  { %685 = vadd.xlane.f32.xlu1 %v684_v18 }
 0x4cf   :  { %921 = vrot.lane.b32.xlu1 %v8211_v11, %s9286_s2  ;;  %s9327_s2 = sld [smem:[#allocation13_spill]] }
 0x543   :  { %v683_v22 = vpop.xlane.xlu1 %682 }
 0x544   :  { %7858 = vrcp.f32 %v683_v22 }
 0x547   :  { %v686_v23 = vpop.xlane.xlu1 %685 }
 0x548   :  { %7860 = vrcp.f32 %v686_v23 }
 0x54b   :  { %v922_v30 = vpop.permute.xlu1 %921 }
 0x551   :  { %v7859_v24 = vpop.eup %7858 }
 0x552   :  { %v689_v26 = vmul.f32 %v7859_v24, %v7855_v15 }
 0x554   :  { %7327 = vmatmul.mubr.msk.f32.vlgmr.msra.gmra.mxu1 %vm187_vm2, %v689_v26 }
 0x555   :  { %v7861_v27 = vpop.eup %7860  ;;  %7335 = vmatpush3.xpose.msk.msra.mxu1 %vm187_vm2, %v846_v19  ;;  %7336 = vmatprep.mubr.msk.f32.mxu1 %vm8023_vm0, %v8022_v1 }
 0x556   :  { %v690_v28 = vmul.f32 %v7861_v27, %v7857_v17  ;;  %7344 = vmatprep.subr.mxu1 %v8022_v1 }
 0x558   :  { %7332 = vmatmul.mubr.msk.f32.vlgmr.msra.gmra.mxu0 %vm187_vm2, %v690_v28  ;;  %7337 = vmatmul.mubr.msk.f32.vlgmr.msra.gmra.mxu1 %vm187_vm2, %v844_v29 }
 0x559   :  { %7340 = vmatpush3.xpose.msk.msra.mxu0 %vm187_vm2, %v924_v20  ;;  %7341 = vmatprep.mubr.msk.f32.mxu0 %vm8023_vm0, %v8022_v1 }
 0x55a   :  { %7349 = vmatprep.subr.mxu0 %v8022_v1  ;;  %7346 = vmatprep.mubr.msk.f32.mxu1 %vm8023_vm0, %v8022_v1 }
 0x55c   :  { %7342 = vmatmul.mubr.msk.f32.vlgmr.msra.gmra.mxu0 %vm187_vm2, %v922_v30 }
 0x55d   :  { %7351 = vmatprep.mubr.msk.f32.mxu0 %vm8023_vm0, %v8022_v1 }
 0x614   :  { %v8314_v31 = vpop.f32.mrf.mxu1 }
 0x616   :  { %v7328_v32 = vpop.f32.mrf.mxu1 }
 0x618   :  { %v8316_v33 = vpop.f32.mrf.mxu0  ;;  %v917_v34 = vpop.f32.mrf.mxu1 }
 0x619   :  { %v7752_v35 = vpack.i.bf16 %v8316_v33, %v8314_v31  ;;  %v918_v36 = vadd.f32 %v917_v34, %v8231_v21 }
 0x61a   :  { %v7333_v37 = vpop.f32.mrf.mxu0  ;;  %v7338_v38 = vpop.f32.mrf.mxu1 }
 0x61b   :  { %v999_v39 = vsel %vm187_vm2, %v918_v36, -inf }
 0x61c   :  { %1000 = vmax.xlane.f32.xlu0 %v999_v39  ;;  %v995_v40 = vpop.f32.mrf.mxu0 }
 0x61d   :  { %v996_v41 = vadd.f32 %v995_v40, %v8237_v25 }
 0x61e   :  { %v7343_v42 = vpop.f32.mrf.mxu0 }
 0x61f   :  { %v1002_v43 = vsel %vm187_vm2, %v996_v41, -inf }
 0x620   :  { %1003 = vmax.xlane.f32.xlu1 %v1002_v43 }
 0x631   :  { %1021 = vrot.lane.b32.xlu1 %v8207_v8, %s9268_s5 }
 0x635   :  { %1175 = vrot.lane.b32.xlu1 %v8207_v8, %s9280_s1 }
 0x639   :  { %1253 = vrot.lane.b32.xlu1 %v8211_v11, %s9280_s1  ;;  %s9329_s1 = sld [smem:[#allocation8_spill]] }
 0x63d   :  { %1251 = vrot.lane.b32.xlu1 %v8211_v11, %s9282_s27 }
 0x6a5   :  { %v1001_v44 = vpop.xlane.xlu0 %1000 }
 0x6a6   :  { %v1005_v45 = vsub.f32 %v918_v36, %v1001_v44 }
 0x6a8   :  { %v1007_v46 = vmul.f32 1.442695, %v1005_v45 }
 0x6a9   :  { %v1004_v47 = vpop.xlane.xlu1 %1003 }
 0x6aa   :  { %7862 = vpow2.f32 %v1007_v46  ;;  %v1006_v48 = vsub.f32 %v996_v41, %v1004_v47  ;;  %v7815_v41 = vld [vmem:[%s9323_s9] sm:$0xff]  }
 0x6ac   :  { %v1009_v49 = vmul.f32 1.442695, %v1006_v48 }
 0x6ad   :  { %v1022_v50 = vpop.permute.xlu1 %1021 }
 0x6ae   :  { %7864 = vpow2.f32 %v1009_v49  ;;  %7345 = vmatpush3.msra.mxu1 %v1022_v50 }
 0x6af   :  { %7354 = vmatprep.subr.mxu1 %v8022_v1 }
 0x6b1   :  { %v1176_v60 = vpop.permute.xlu1 %1175 }
 0x6b5   :  { %v1254_v0 = vpop.permute.xlu1 %1253 }
 0x6b7   :  { %v7863_v51 = vpop.eup %7862 }
 0x6b8   :  { %v1011_v52 = vsel %vm187_vm2, %v7863_v51, 0.0 }
 0x6b9   :  { %1012 = vadd.xlane.f32.xlu0 %v1011_v52  ;;  %v1252_v6 = vpop.permute.xlu1 %1251 }
 0x6bb   :  { %v7865_v53 = vpop.eup %7864 }
 0x6bc   :  { %v1014_v55 = vsel %vm187_vm2, %v7865_v53, 0.0 }
 0x6bd   :  { %1015 = vadd.xlane.f32.xlu0 %v1014_v55 }
 0x6d3   :  { %1097 = vrot.lane.b32.xlu0 %v8211_v11, %s9268_s5  ;;  %s9331_s5 = smov 112  }
 0x6d7   :  { %1173 = vrot.lane.b32.xlu0 %v8207_v8, %s9282_s27  ;;  %s9333_s27 = smov 104  }
 0x742   :  { %v1013_v57 = vpop.xlane.xlu0 %1012 }
 0x743   :  { %7866 = vrcp.f32 %v1013_v57 }
 0x746   :  { %v1016_v58 = vpop.xlane.xlu0 %1015 }
 0x747   :  { %7868 = vrcp.f32 %v1016_v58 }
 0x74a   :  { %v1098_v59 = vpop.permute.xlu0 %1097 }
 0x74b   :  { %7350 = vmatpush3.msra.mxu0 %v1098_v59 }
 0x74c   :  { %7359 = vmatprep.subr.mxu0 %v8022_v1 }
 0x74e   :  { %v1174_v5 = vpop.permute.xlu0 %1173 }
 0x750   :  { %v7867_v61 = vpop.eup %7866 }
 0x751   :  { %v1019_v62 = vmul.f32 %v7867_v61, %v7863_v51 }
 0x753   :  { %7347 = vmatmul.mubr.msk.f32.vlgmr.msra.gmra.mxu1 %vm187_vm2, %v1019_v62 }
 0x754   :  { %v7869_v63 = vpop.eup %7868  ;;  %7355 = vmatpush3.xpose.msk.msra.mxu1 %vm187_vm2, %v1176_v60  ;;  %7356 = vmatprep.mubr.msk.f32.mxu1 %vm8023_vm0, %v8022_v1 }
 0x755   :  { %v1020_v2 = vmul.f32 %v7869_v63, %v7865_v53  ;;  %7364 = vmatprep.subr.mxu1 %v8022_v1 }
 0x757   :  { %7352 = vmatmul.mubr.msk.f32.vlgmr.msra.gmra.mxu0 %vm187_vm2, %v1020_v2  ;;  %7357 = vmatmul.mubr.msk.f32.vlgmr.msra.gmra.mxu1 %vm187_vm2, %v1174_v5 }
 0x758   :  { %7360 = vmatpush3.xpose.msk.msra.mxu0 %vm187_vm2, %v1254_v0  ;;  %7361 = vmatprep.mubr.msk.f32.mxu0 %vm8023_vm0, %v8022_v1 }
 0x759   :  { %7369 = vmatprep.subr.mxu0 %v8022_v1  ;;  %7366 = vmatprep.mubr.msk.f32.mxu1 %vm8023_vm0, %v8022_v1 }
 0x75b   :  { %7362 = vmatmul.mubr.msk.f32.vlgmr.msra.gmra.mxu0 %vm187_vm2, %v1252_v6 }
 0x75c   :  { %7371 = vmatprep.mubr.msk.f32.mxu0 %vm8023_vm0, %v8022_v1 }
 0x813   :  { %v1093_v7 = vpop.f32.mrf.mxu1 }
 0x815   :  { %v7348_v9 = vpop.f32.mrf.mxu1 }
 0x817   :  { %v1169_v10 = vpop.f32.mrf.mxu0  ;;  %v1247_v12 = vpop.f32.mrf.mxu1 }
 0x818   :  { %v1248_v13 = vadd.f32 %v1247_v12, %v8231_v21  ;;  %v7757_v22 = vpack.i.bf16 %v1169_v10, %v1093_v7 }
 0x819   :  { %v7353_v14 = vpop.f32.mrf.mxu0  ;;  %v7358_v15 = vpop.f32.mrf.mxu1 }
 0x81a   :  { %v1329_v16 = vsel %vm187_vm2, %v1248_v13, -inf }
 0x81b   :  { %1330 = vmax.xlane.f32.xlu0 %v1329_v16  ;;  %v1325_v17 = vpop.f32.mrf.mxu0 }
 0x81c   :  { %v1326_v18 = vadd.f32 %v1325_v17, %v8237_v25 }
 0x81d   :  { %v7363_v19 = vpop.f32.mrf.mxu0 }
 0x81e   :  { %v1332_v20 = vsel %vm187_vm2, %v1326_v18, -inf }
 0x81f   :  { %1333 = vmax.xlane.f32.xlu1 %v1332_v20 }
 0x830   :  { %1351 = vrot.lane.b32.xlu1 %v8207_v8, %s9266_s3 }
 0x834   :  { %7753 = vrot.lane.b32.xlu1 %v7752_v35, %s9276_s28  ;;  %s9278_s28 = smov 24  }
 0x838   :  { %7758 = vrot.lane.b32.xlu1 %v7757_v22, %s9274_s8  ;;  %s9332_s8 = smov 80  }
 0x8a4   :  { %v1331_v23 = vpop.xlane.xlu0 %1330 }
 0x8a5   :  { %v1335_v24 = vsub.f32 %v1248_v13, %v1331_v23 }
 0x8a7   :  { %v1337_v26 = vmul.f32 1.442695, %v1335_v24 }
 0x8a8   :  { %v1334_v27 = vpop.xlane.xlu1 %1333 }
 0x8a9   :  { %7870 = vpow2.f32 %v1337_v26  ;;  %v1336_v28 = vsub.f32 %v1326_v18, %v1334_v27  ;;  %v7817_v26 = vld [vmem:[%s9240_s12] sm:$0xff]  }
 0x8aa   :  { %v87_v27 = vld [vmem:[%s9325_s30] sm:$0xff] }
 0x8ab   :  { %v1339_v29 = vmul.f32 1.442695, %v1336_v28  ;;  %v88_v28 = vld [vmem:[%s9325_s30 + $0x8] sm:$0xff]  ;;  %s9330_s30 = smov 88  }
 0x8ac   :  { %v1352_v30 = vpop.permute.xlu1 %1351 }
 0x8ad   :  { %7872 = vpow2.f32 %v1339_v29  ;;  %7365 = vmatpush3.msra.mxu1 %v1352_v30  ;;  %v8421_v29 = vpack.c.bf16 %v88_v28, %v87_v27 }
 0x8ae   :  { %7374 = vmatprep.subr.bf16.mxu1 %v8022_v1 }
 0x8b0   :  { %v7754_v47 = vpop.permute.xlu1 %7753 }
 0x8b1   :  { %v7756_v49 = vunpack.i.h.bf16 %v7754_v47  ;;  %v7755_v50 = vunpack.i.l.bf16 %v7754_v47  ;;  %v6928_v47 = vld [vmem:[%s9241_s13] ss:$0 sm:$0xff] }
 0x8b3   :  { %v1528_v55 = vsel %vm187_vm2, %v8276_v56, %v7756_v49  ;;  %v1527_v57 = vsel %vm187_vm2, %v8274_v54, %v7755_v50 }
 0x8b4   :  { %v7759_v48 = vpop.permute.xlu1 %7758 }
 0x8b5   :  { %v7761_v51 = vunpack.i.h.bf16 %v7759_v48  ;;  %v7760_v52 = vunpack.i.l.bf16 %v7759_v48 }
 0x8b6   :  { %v7871_v8 = vpop.eup %7870 }
 0x8b7   :  { %v1341_v31 = vsel %vm187_vm2, %v7871_v8, 0.0  ;;  %v1530_v60 = vsel %vm1529_vm4, %v1527_v57, %v7760_v52  ;;  %v1531_v61 = vsel %vm1529_vm4, %v1528_v55, %v7761_v51  ;;  %v6924_v55 = vld [vmem:[%s9239_s11] ss:$0 sm:$0xff]  ;;  %s9337_s11 = smov 24  }
 0x8b8   :  { %1342 = vadd.xlane.f32.xlu0 %v1341_v31 }
 0x8ba   :  { %v7873_v32 = vpop.eup %7872 }
 0x8bb   :  { %v1344_v33 = vsel %vm187_vm2, %v7873_v32, 0.0 }
 0x8bc   :  { %1345 = vadd.xlane.f32.xlu0 %v1344_v33 }
 0x8d2   :  { %1427 = vrot.lane.b32.xlu0 %v8211_v11, %s9266_s3  ;;  %v7814_v11 = vld [vmem:[%s9323_s9 + $0x8] sm:$0xff]   ;;  %s9324_s3 = sld [smem:[#allocation12_spill]] }
 0x8d8   :  { %v6918_v54 = vld [vmem:[%s9324_s3] ss:$0 sm:$0xff] }
 0x941   :  { %v1343_v34 = vpop.xlane.xlu0 %1342 }
 0x942   :  { %7874 = vrcp.f32 %v1343_v34 }
 0x945   :  { %v1346_v35 = vpop.xlane.xlu0 %1345 }
 0x946   :  { %7876 = vrcp.f32 %v1346_v35 }
 0x949   :  { %v1428_v36 = vpop.permute.xlu0 %1427 }
 0x94a   :  { %7370 = vmatpush3.msra.mxu0 %v1428_v36 }
 0x94b   :  { %7382 = vmatprep.subr.bf16.mxu0 %v8022_v1 }
 0x94f   :  { %v7875_v37 = vpop.eup %7874 }
 0x950   :  { %v1349_v38 = vmul.f32 %v7875_v37, %v7871_v8 }
 0x952   :  { %7367 = vmatmul.mubr.msk.f32.vlgmr.msra.gmra.mxu1 %vm187_vm2, %v1349_v38 }
 0x953   :  { %v7877_v39 = vpop.eup %7876  ;;  %7378 = vmatprep.mubr.msk.bf16.mxu1 %vm8023_vm0, %v8022_v1  ;;  %7375 = vmatpush3.bf16.msra.mxu1 %v7814_v11 }
 0x954   :  { %v1350_v40 = vmul.f32 %v7877_v39, %v7873_v32  ;;  %7376 = vmatprep.subr.bf16.mxu1 %v8022_v1  ;;  %v6922_v39 = vld [vmem:[%s9327_s2] ss:$0 sm:$0xff] }
 0x956   :  { %7372 = vmatmul.mubr.msk.f32.vlgmr.msra.gmra.mxu0 %vm187_vm2, %v1350_v40 }
 0x957   :  { %7386 = vmatprep.mubr.msk.bf16.mxu0 %vm8023_vm0, %v8022_v1  ;;  %7377 = vmatpush3.bf16.msra.mxu1 %v7815_v41 }
 0x958   :  { %7390 = vmatprep.subr.bf16.mxu1 %v8022_v1 }
 0xa12   :  { %v1423_v42 = vpop.f32.mrf.mxu1 }
 0xa14   :  { %v7368_v43 = vpop.f32.mrf.mxu1 }
 0xa16   :  { %v1499_v44 = vpop.f32.mrf.mxu0 }
 0xa17   :  { %v7762_v45 = vpack.i.bf16 %v1499_v44, %v1423_v42  ;;  %v6923_v42 = vld [vmem:[%s9328_s4] ss:$0 sm:$0xff] }
 0xa18   :  { %v7373_v46 = vpop.f32.mrf.mxu0 }
 0xa19   :  { %7763 = vrot.lane.b32.xlu0 %v7762_v45, %s9278_s28  ;;  %s9326_s28 = sld [smem:[#allocation15_spill]] }
 0xa1f   :  { %v7818_v30 = vld [vmem:[%s9326_s28 + $0x8] sm:$0xff]   ;;  %v7819_v8 = vld [vmem:[%s9326_s28] sm:$0xff]  }
 0xa20   :  { %7383 = vmatpush3.bf16.msra.mxu0 %v7818_v30 }
 0xa21   :  { %7384 = vmatprep.subr.bf16.mxu0 %v8022_v1 }
 0xa24   :  { %7385 = vmatpush3.bf16.msra.mxu0 %v7819_v8 }
 0xa25   :  { %7398 = vmatprep.subr.mxu0 %v8022_v1 }
 0xa8b   :  { %v7764_v53 = vpop.permute.xlu0 %7763 }
 0xa8c   :  { %v7766_v58 = vunpack.i.h.bf16 %v7764_v53  ;;  %v7765_v59 = vunpack.i.l.bf16 %v7764_v53 }
 0xa8e   :  { %v1534_v62 = vsel %vm1532_vm5, %v1531_v61, %v7766_v58  ;;  %v1533_v63 = vsel %vm1532_vm5, %v1530_v60, %v7765_v59 }
 0xa8f   :  { %v1540_v0 = vpack.c.bf16 %v1534_v62, %v1533_v63  ;;  %v8482_v63 = vld [vmem:[%s9329_s1] ss:$0 sm:$0xff] }
 0xa91   :  { %7379 = vmatmul.mubr.msk.bf16.vlgmr.msra.gmra.mxu1 %vm139_vm1, %v1540_v0 }
 0xa92   :  { %7394 = vmatprep.mubr.msk.bf16.mxu1 %vm8023_vm0, %v8022_v1 }
 0xb51   :  { %v1596_v56 = vpop.f32.mrf.mxu1 }
 0xb52   :  { %v1597_v2 = vadd.f32 %v6918_v54, %v1596_v56 }
 0xb53   :  { %v7380_v5 = vpop.f32.mrf.mxu1 }
 0xb54   :  { %v1603_v6 = vadd.f32 %v1597_v2, %v8188_v3  ;;  %v8488_v2 = vld [vmem:[%s9329_s1 + $0x1] ss:$0 sm:$0xff]  ;;  %s9345_s1 = sld [smem:[#allocation8_spill]] }
 0xb55   :  { %v1599_v7 = vpop.f32.mrf.mxu1 }
 0xb56   :  { %v1600_v9 = vadd.f32 %v6918_v54, %v1599_v7  ;;  %v1607_v10 = vsel %vm139_vm1, %v1603_v6, 0.0 }
 0xb57   :  { %1608 = vadd.xlane.f32.xlu1 %v1607_v10  ;;  %v7381_v12 = vpop.f32.mrf.mxu1 }
 0xb58   :  { %v1604_v13 = vadd.f32 %v1600_v9, %v8193_v4  ;;  %v7816_v4 = vld [vmem:[%s9240_s12 + $0x8] sm:$0xff]  }
 0xb59   :  { %7391 = vmatpush3.bf16.msra.mxu1 %v7816_v4 }
 0xb5a   :  { %v1610_v14 = vsel %vm139_vm1, %v1604_v13, 0.0  ;;  %7392 = vmatprep.subr.bf16.mxu1 %v8022_v1 }
 0xb5b   :  { %1611 = vadd.xlane.f32.xlu0 %v1610_v14 }
 0xb5d   :  { %7393 = vmatpush3.bf16.msra.mxu1 %v7817_v26 }
 0xb5e   :  { %7408 = vmatprep.subr.mxu1 %v8022_v1 }
 0xb60   :  { %7395 = vmatmul.mubr.msk.bf16.vlgmr.msra.gmra.mxu1 %vm139_vm1, %v8421_v29 }
 0xb61   :  { %7410 = vmatprep.mubr.msk.f32.mxu1 %vm8023_vm0, %v8022_v1 }
 0xbe0   :  { %v1609_v15 = vpop.xlane.xlu1 %1608 }
 0xbe1   :  { %v1614_v16 = vmul.f32 0.03125, %v1609_v15 }
 0xbe3   :  { %v1616_v17 = vsub.f32 %v1603_v6, %v1614_v16 }
 0xbe4   :  { %v1612_v18 = vpop.xlane.xlu0 %1611 }
 0xbe5   :  { %v1615_v19 = vmul.f32 0.03125, %v1612_v18  ;;  %v1618_v20 = vmul.f32 %v1616_v17, %v1616_v17 }
 0xbe7   :  { %v1617_v22 = vsub.f32 %v1604_v13, %v1615_v19  ;;  %v1620_v3 = vsel %vm139_vm1, %v1618_v20, 0.0 }
 0xbe8   :  { %1621 = vadd.xlane.f32.xlu0 %v1620_v3 }
 0xbe9   :  { %v1619_v23 = vmul.f32 %v1617_v22, %v1617_v22 }
 0xbeb   :  { %v1623_v24 = vsel %vm139_vm1, %v1619_v23, 0.0 }
 0xbec   :  { %1624 = vadd.xlane.f32.xlu1 %v1623_v24 }
 0xc20   :  { %v1779_v48 = vpop.f32.mrf.mxu1 }
 0xc21   :  { %v8454_v49 = vadd.f32 %v6928_v47, %v1779_v48 }
 0xc22   :  { %v7396_v50 = vpop.f32.mrf.mxu1 }
 0xc24   :  { %v1782_v51 = vpop.f32.mrf.mxu1 }
 0xc25   :  { %v8459_v52 = vadd.f32 %v6928_v47, %v1782_v51 }
 0xc26   :  { %v7397_v53 = vpop.f32.mrf.mxu1 }
 0xc71   :  { %v1622_v31 = vpop.xlane.xlu0 %1621 }
 0xc72   :  { %v1626_v32 = vmul.f32 0.03125, %v1622_v31 }
 0xc74   :  { %v1628_v33 = vadd.f32 1e-05, %v1626_v32 }
 0xc75   :  { %v1625_v34 = vpop.xlane.xlu1 %1624 }
 0xc76   :  { %7878 = vrsqrt.f32 %v1628_v33  ;;  %v1627_v35 = vmul.f32 0.03125, %v1625_v34 }
 0xc78   :  { %v1629_v36 = vadd.f32 1e-05, %v1627_v35 }
 0xc7a   :  { %7880 = vrsqrt.f32 %v1629_v36 }
 0xc83   :  { %v7879_v37 = vpop.eup %7878 }
 0xc84   :  { %v1632_v38 = vmul.f32 %v7879_v37, %v1616_v17 }
 0xc86   :  { %v1640_v41 = vmul.f32 %v6922_v39, %v1632_v38 }
 0xc87   :  { %v7881_v40 = vpop.eup %7880 }
 0xc88   :  { %v1633_v11 = vmul.f32 %v7881_v40, %v1617_v22  ;;  %v8442_v44 = vadd.f32 %v6923_v42, %v1640_v41 }
 0xc8a   :  { %v1641_v43 = vmul.f32 %v6922_v39, %v1633_v11 }
 0xc8c   :  { %v8444_v45 = vadd.f32 %v6923_v42, %v1641_v43 }
 0xc8e   :  { %v1655_v46 = vpack.c.bf16 %v8444_v45, %v8442_v44 }
 0xc90   :  { %7387 = vmatmul.mubr.msk.bf16.vlgmr.msra.gmra.mxu0 %vm139_vm1, %v1655_v46 }
 0xc91   :  { %7400 = vmatprep.mubr.msk.f32.mxu0 %vm8023_vm0, %v8022_v1  ;;  %7399 = vmatpush3.xpose.msk.msra.mxu0 %vm187_vm2, %v8454_v49 }
 0xc92   :  { %7403 = vmatprep.subr.mxu0 %v8022_v1 }
 0xd50   :  { %v1711_v57 = vpop.f32.mrf.mxu0 }
 0xd51   :  { %v8464_v58 = vadd.f32 %v6924_v55, %v1711_v57 }
 0xd52   :  { %v7388_v59 = vpop.f32.mrf.mxu0 }
 0xd53   :  { %7401 = vmatmul.mubr.msk.f32.vlgmr.msra.gmra.mxu0 %vm187_vm2, %v8464_v58 }
 0xd54   :  { %7404 = vmatpush3.xpose.msk.msra.mxu0 %vm187_vm2, %v8459_v52  ;;  %v1714_v60 = vpop.f32.mrf.mxu0  ;;  %7405 = vmatprep.mubr.msk.f32.mxu0 %vm8023_vm0, %v8022_v1 }
 0xd55   :  { %v8472_v61 = vadd.f32 %v6924_v55, %v1714_v60  ;;  %7413 = vmatprep.subr.mxu0 %v8022_v1 }
 0xd56   :  { %v7389_v62 = vpop.f32.mrf.mxu0 }
 0xd57   :  { %7406 = vmatmul.mubr.msk.f32.vlgmr.msra.gmra.mxu0 %vm187_vm2, %v8472_v61 }
 0xd58   :  { %7415 = vmatprep.mubr.msk.f32.mxu0 %vm8023_vm0, %v8022_v1 }
 0xe13   :  { %v1870_v0 = vpop.f32.mrf.mxu0 }
 0xe14   :  { %v1871_v54 = vadd.f32 %v8482_v63, %v1870_v0 }
 0xe15   :  { %v7402_v56 = vpop.f32.mrf.mxu0 }
 0xe16   :  { %v1950_v5 = vsel %vm187_vm2, %v1871_v54, -inf }
 0xe17   :  { %1951 = vmax.xlane.f32.xlu0 %v1950_v5  ;;  %v1946_v6 = vpop.f32.mrf.mxu0 }
 0xe18   :  { %v1947_v7 = vadd.f32 %v8488_v2, %v1946_v6 }
 0xe19   :  { %v7407_v9 = vpop.f32.mrf.mxu0 }
 0xe1a   :  { %v1953_v10 = vsel %vm187_vm2, %v1947_v7, -inf }
 0xe1b   :  { %1954 = vmax.xlane.f32.xlu1 %v1953_v10 }
 0xe2c   :  { %2048 = vrot.lane.b32.xlu1 %v8459_v52, %s9292_s6 }
 0xe2d   :  { %1972 = vrot.lane.b32.xlu0 %v8454_v49, %s9292_s6  ;;  %s9336_s6 = smov 16  }
 0xe30   :  { %2126 = vrot.lane.b32.xlu1 %v8454_v49, %s9290_s0 }
 0xea0   :  { %v1952_v12 = vpop.xlane.xlu0 %1951 }
 0xea1   :  { %v1956_v13 = vsub.f32 %v1871_v54, %v1952_v12 }
 0xea3   :  { %v1958_v14 = vmul.f32 1.442695, %v1956_v13 }
 0xea4   :  { %v1973_v15 = vpop.permute.xlu0 %1972  ;;  %v1955_v16 = vpop.xlane.xlu1 %1954 }
 0xea5   :  { %7882 = vpow2.f32 %v1958_v14  ;;  %v1957_v17 = vsub.f32 %v1947_v7, %v1955_v16  ;;  %7409 = vmatpush3.msra.mxu1 %v1973_v15 }
 0xea6   :  { %7418 = vmatprep.subr.mxu1 %v8022_v1 }
 0xea7   :  { %v1960_v18 = vmul.f32 1.442695, %v1957_v17 }
 0xea8   :  { %v2049_v19 = vpop.permute.xlu1 %2048 }
 0xea9   :  { %7884 = vpow2.f32 %v1960_v18  ;;  %7414 = vmatpush3.msra.mxu0 %v2049_v19 }
 0xeaa   :  { %7423 = vmatprep.subr.mxu0 %v8022_v1 }
 0xeac   :  { %v2127_v24 = vpop.permute.xlu1 %2126 }
 0xeb2   :  { %v7883_v20 = vpop.eup %7882 }
 0xeb3   :  { %v1962_v22 = vsel %vm187_vm2, %v7883_v20, 0.0 }
 0xeb4   :  { %1963 = vadd.xlane.f32.xlu0 %v1962_v22 }
 0xeb6   :  { %v7885_v3 = vpop.eup %7884 }
 0xeb7   :  { %v1965_v23 = vsel %vm187_vm2, %v7885_v3, 0.0 }
 0xeb8   :  { %1966 = vadd.xlane.f32.xlu1 %v1965_v23 }
 0xec9   :  { %2124 = vrot.lane.b32.xlu1 %v8464_v58, %s9290_s0 }
 0xeca   :  { %2204 = vrot.lane.b32.xlu0 %v8459_v52, %s9290_s0 }
 0xece   :  { %2202 = vrot.lane.b32.xlu0 %v8472_v61, %s9290_s0  ;;  %s9335_s0 = smov 8  }
 0xf3d   :  { %v1964_v4 = vpop.xlane.xlu0 %1963 }
 0xf3e   :  { %7886 = vrcp.f32 %v1964_v4 }
 0xf41   :  { %v1967_v26 = vpop.xlane.xlu1 %1966  ;;  %v2205_v8 = vpop.permute.xlu0 %2204 }
 0xf42   :  { %7888 = vrcp.f32 %v1967_v26 }
 0xf45   :  { %v2125_v32 = vpop.permute.xlu1 %2124  ;;  %v2203_v33 = vpop.permute.xlu0 %2202 }
 0xf4b   :  { %v7887_v27 = vpop.eup %7886 }
 0xf4c   :  { %v1970_v28 = vmul.f32 %v7887_v27, %v7883_v20 }
 0xf4e   :  { %7411 = vmatmul.mubr.msk.f32.vlgmr.msra.gmra.mxu1 %vm187_vm2, %v1970_v28 }
 0xf4f   :  { %v7889_v30 = vpop.eup %7888  ;;  %7419 = vmatpush3.xpose.msk.msra.mxu1 %vm187_vm2, %v2127_v24  ;;  %7420 = vmatprep.mubr.msk.f32.mxu1 %vm8023_vm0, %v8022_v1 }
 0xf50   :  { %v1971_v31 = vmul.f32 %v7889_v30, %v7885_v3  ;;  %7428 = vmatprep.subr.mxu1 %v8022_v1 }
 0xf52   :  { %7416 = vmatmul.mubr.msk.f32.vlgmr.msra.gmra.mxu0 %vm187_vm2, %v1971_v31  ;;  %7421 = vmatmul.mubr.msk.f32.vlgmr.msra.gmra.mxu1 %vm187_vm2, %v2125_v32 }
 0xf53   :  { %7424 = vmatpush3.xpose.msk.msra.mxu0 %vm187_vm2, %v2205_v8  ;;  %7425 = vmatprep.mubr.msk.f32.mxu0 %vm8023_vm0, %v8022_v1 }
 0xf54   :  { %7433 = vmatprep.subr.mxu0 %v8022_v1  ;;  %7430 = vmatprep.mubr.msk.f32.mxu1 %vm8023_vm0, %v8022_v1 }
 0xf56   :  { %7426 = vmatmul.mubr.msk.f32.vlgmr.msra.gmra.mxu0 %vm187_vm2, %v2203_v33 }
 0xf57   :  { %7435 = vmatprep.mubr.msk.f32.mxu0 %vm8023_vm0, %v8022_v1 }
0x100e   :  { %v8525_v34 = vpop.f32.mrf.mxu1 }
0x1010   :  { %v7412_v35 = vpop.f32.mrf.mxu1 }
0x1012   :  { %v8527_v36 = vpop.f32.mrf.mxu0  ;;  %v2198_v37 = vpop.f32.mrf.mxu1 }
0x1013   :  { %v2199_v38 = vadd.f32 %v8482_v63, %v2198_v37 }
0x1014   :  { %v7417_v39 = vpop.f32.mrf.mxu0  ;;  %v7422_v40 = vpop.f32.mrf.mxu1 }
0x1015   :  { %v2280_v11 = vsel %vm187_vm2, %v2199_v38, -inf }
0x1016   :  { %2281 = vmax.xlane.f32.xlu1 %v2280_v11  ;;  %v2276_v41 = vpop.f32.mrf.mxu0 }
0x1017   :  { %v2277_v42 = vadd.f32 %v8488_v2, %v2276_v41 }
0x1018   :  { %v7427_v43 = vpop.f32.mrf.mxu0 }
0x1019   :  { %v2283_v46 = vsel %vm187_vm2, %v2277_v42, -inf }
0x101a   :  { %2284 = vmax.xlane.f32.xlu0 %v2283_v46 }
0x1027   :  { %2378 = vrot.lane.b32.xlu1 %v8459_v52, %s9330_s30 }
0x102b   :  { %2456 = vrot.lane.b32.xlu1 %v8454_v49, %s9331_s5 }
0x1030   :  { %2302 = vrot.lane.b32.xlu0 %v8454_v49, %s9330_s30 }
0x109f   :  { %v2282_v47 = vpop.xlane.xlu1 %2281 }
0x10a0   :  { %v2286_v48 = vsub.f32 %v2199_v38, %v2282_v47 }
0x10a2   :  { %v2288_v50 = vmul.f32 1.442695, %v2286_v48 }
0x10a3   :  { %v2379_v51 = vpop.permute.xlu1 %2378  ;;  %v2285_v53 = vpop.xlane.xlu0 %2284 }
0x10a4   :  { %7890 = vpow2.f32 %v2288_v50  ;;  %v2287_v55 = vsub.f32 %v2277_v42, %v2285_v53  ;;  %7434 = vmatpush3.msra.mxu0 %v2379_v51 }
0x10a5   :  { %7443 = vmatprep.subr.mxu0 %v8022_v1 }
0x10a6   :  { %v2290_v57 = vmul.f32 1.442695, %v2287_v55 }
0x10a7   :  { %v2303_v59 = vpop.permute.xlu0 %2302  ;;  %v2457_v56 = vpop.permute.xlu1 %2456 }
0x10a8   :  { %7892 = vpow2.f32 %v2290_v57  ;;  %7429 = vmatpush3.msra.mxu1 %v2303_v59 }
0x10a9   :  { %7438 = vmatprep.subr.mxu1 %v8022_v1 }
0x10b1   :  { %v7891_v60 = vpop.eup %7890 }
0x10b2   :  { %v2292_v62 = vsel %vm187_vm2, %v7891_v60, 0.0 }
0x10b3   :  { %2293 = vadd.xlane.f32.xlu0 %v2292_v62 }
0x10b5   :  { %v7893_v0 = vpop.eup %7892 }
0x10b6   :  { %v2295_v54 = vsel %vm187_vm2, %v7893_v0, 0.0 }
0x10b7   :  { %2296 = vadd.xlane.f32.xlu1 %v2295_v54 }
0x10c8   :  { %2454 = vrot.lane.b32.xlu1 %v8464_v58, %s9331_s5 }
0x10c9   :  { %2534 = vrot.lane.b32.xlu0 %v8459_v52, %s9331_s5 }
0x10cd   :  { %2532 = vrot.lane.b32.xlu0 %v8472_v61, %s9331_s5 }
0x113c   :  { %v2294_v5 = vpop.xlane.xlu0 %2293 }
0x113d   :  { %7894 = vrcp.f32 %v2294_v5 }
0x1140   :  { %v2297_v6 = vpop.xlane.xlu1 %2296  ;;  %v2535_v12 = vpop.permute.xlu0 %2534 }
0x1141   :  { %7896 = vrcp.f32 %v2297_v6 }
0x1144   :  { %v2455_v14 = vpop.permute.xlu1 %2454  ;;  %v2533_v15 = vpop.permute.xlu0 %2532 }
0x114a   :  { %v7895_v7 = vpop.eup %7894 }
0x114b   :  { %v2300_v9 = vmul.f32 %v7895_v7, %v7891_v60 }
0x114d   :  { %7431 = vmatmul.mubr.msk.f32.vlgmr.msra.gmra.mxu1 %vm187_vm2, %v2300_v9 }
0x114e   :  { %v7897_v10 = vpop.eup %7896  ;;  %7439 = vmatpush3.xpose.msk.msra.mxu1 %vm187_vm2, %v2457_v56  ;;  %7440 = vmatprep.mubr.msk.f32.mxu1 %vm8023_vm0, %v8022_v1 }
0x114f   :  { %v2301_v13 = vmul.f32 %v7897_v10, %v7893_v0  ;;  %7448 = vmatprep.subr.mxu1 %v8022_v1 }
0x1151   :  { %7436 = vmatmul.mubr.msk.f32.vlgmr.msra.gmra.mxu0 %vm187_vm2, %v2301_v13  ;;  %7441 = vmatmul.mubr.msk.f32.vlgmr.msra.gmra.mxu1 %vm187_vm2, %v2455_v14 }
0x1152   :  { %7444 = vmatpush3.xpose.msk.msra.mxu0 %vm187_vm2, %v2535_v12  ;;  %7445 = vmatprep.mubr.msk.f32.mxu0 %vm8023_vm0, %v8022_v1 }
0x1153   :  { %7453 = vmatprep.subr.mxu0 %v8022_v1  ;;  %7450 = vmatprep.mubr.msk.f32.mxu1 %vm8023_vm0, %v8022_v1 }
0x1155   :  { %7446 = vmatmul.mubr.msk.f32.vlgmr.msra.gmra.mxu0 %vm187_vm2, %v2533_v15 }
0x1156   :  { %7455 = vmatprep.mubr.msk.f32.mxu0 %vm8023_vm0, %v8022_v1 }
0x120d   :  { %v8565_v16 = vpop.f32.mrf.mxu1 }
0x120f   :  { %v7432_v17 = vpop.f32.mrf.mxu1 }
0x1211   :  { %v8567_v18 = vpop.f32.mrf.mxu0  ;;  %v2528_v19 = vpop.f32.mrf.mxu1 }
0x1212   :  { %v7767_v20 = vpack.i.bf16 %v8567_v18, %v8565_v16  ;;  %v2529_v22 = vadd.f32 %v8482_v63, %v2528_v19 }
0x1213   :  { %v7437_v3 = vpop.f32.mrf.mxu0  ;;  %v7442_v23 = vpop.f32.mrf.mxu1 }
0x1214   :  { %v2610_v24 = vsel %vm187_vm2, %v2529_v22, -inf }
0x1215   :  { %2611 = vmax.xlane.f32.xlu1 %v2610_v24  ;;  %v2606_v4 = vpop.f32.mrf.mxu0 }
0x1216   :  { %v2607_v26 = vadd.f32 %v8488_v2, %v2606_v4 }
0x1217   :  { %v7447_v27 = vpop.f32.mrf.mxu0 }
0x1218   :  { %v2613_v28 = vsel %vm187_vm2, %v2607_v26, -inf  ;;  %v7821_v27 = vld [vmem:[%s9242_s14] sm:$0xff]  }
0x1219   :  { %2614 = vmax.xlane.f32.xlu0 %v2613_v28 }
0x1226   :  { %2708 = vrot.lane.b32.xlu1 %v8459_v52, %s9332_s8 }
0x122a   :  { %2786 = vrot.lane.b32.xlu1 %v8454_v49, %s9333_s27 }
0x122f   :  { %2632 = vrot.lane.b32.xlu0 %v8454_v49, %s9332_s8 }
0x129e   :  { %v2612_v30 = vpop.xlane.xlu1 %2611 }
0x129f   :  { %v2616_v8 = vsub.f32 %v2529_v22, %v2612_v30 }
0x12a1   :  { %v2618_v31 = vmul.f32 1.442695, %v2616_v8 }
0x12a2   :  { %v2709_v32 = vpop.permute.xlu1 %2708  ;;  %v2615_v33 = vpop.xlane.xlu0 %2614 }
0x12a3   :  { %7898 = vpow2.f32 %v2618_v31  ;;  %v2617_v35 = vsub.f32 %v2607_v26, %v2615_v33  ;;  %7454 = vmatpush3.msra.mxu0 %v2709_v32 }
0x12a4   :  { %7463 = vmatprep.subr.mxu0 %v8022_v1 }
0x12a5   :  { %v2620_v37 = vmul.f32 1.442695, %v2617_v35 }
0x12a6   :  { %v2633_v38 = vpop.permute.xlu0 %2632  ;;  %v2787_v42 = vpop.permute.xlu1 %2786 }
0x12a7   :  { %7900 = vpow2.f32 %v2620_v37  ;;  %7449 = vmatpush3.msra.mxu1 %v2633_v38 }
0x12a8   :  { %7458 = vmatprep.subr.mxu1 %v8022_v1 }
0x12b0   :  { %v7899_v39 = vpop.eup %7898 }
0x12b1   :  { %v2622_v40 = vsel %vm187_vm2, %v7899_v39, 0.0 }
0x12b2   :  { %2623 = vadd.xlane.f32.xlu0 %v2622_v40 }
0x12b4   :  { %v7901_v11 = vpop.eup %7900 }
0x12b5   :  { %v2625_v41 = vsel %vm187_vm2, %v7901_v11, 0.0 }
0x12b6   :  { %2626 = vadd.xlane.f32.xlu1 %v2625_v41 }
0x12c7   :  { %2784 = vrot.lane.b32.xlu1 %v8464_v58, %s9333_s27 }
0x12c8   :  { %2864 = vrot.lane.b32.xlu0 %v8459_v52, %s9333_s27 }
0x12cc   :  { %2862 = vrot.lane.b32.xlu0 %v8472_v61, %s9333_s27 }
0x133b   :  { %v2624_v43 = vpop.xlane.xlu0 %2623 }
0x133c   :  { %7902 = vrcp.f32 %v2624_v43 }
0x133f   :  { %v2627_v46 = vpop.xlane.xlu1 %2626  ;;  %v2865_v51 = vpop.permute.xlu0 %2864 }
0x1340   :  { %7904 = vrcp.f32 %v2627_v46 }
0x1343   :  { %v2785_v61 = vpop.permute.xlu1 %2784  ;;  %v2863_v53 = vpop.permute.xlu0 %2862 }
0x1349   :  { %v7903_v47 = vpop.eup %7902 }
0x134a   :  { %v2630_v48 = vmul.f32 %v7903_v47, %v7899_v39 }
0x134c   :  { %7451 = vmatmul.mubr.msk.f32.vlgmr.msra.gmra.mxu1 %vm187_vm2, %v2630_v48 }
0x134d   :  { %v7905_v50 = vpop.eup %7904  ;;  %7459 = vmatpush3.xpose.msk.msra.mxu1 %vm187_vm2, %v2787_v42  ;;  %7460 = vmatprep.mubr.msk.f32.mxu1 %vm8023_vm0, %v8022_v1 }
0x134e   :  { %v2631_v58 = vmul.f32 %v7905_v50, %v7901_v11  ;;  %7468 = vmatprep.subr.mxu1 %v8022_v1 }
0x1350   :  { %7456 = vmatmul.mubr.msk.f32.vlgmr.msra.gmra.mxu0 %vm187_vm2, %v2631_v58  ;;  %7461 = vmatmul.mubr.msk.f32.vlgmr.msra.gmra.mxu1 %vm187_vm2, %v2785_v61 }
0x1351   :  { %7464 = vmatpush3.xpose.msk.msra.mxu0 %vm187_vm2, %v2865_v51  ;;  %7465 = vmatprep.mubr.msk.f32.mxu0 %vm8023_vm0, %v8022_v1 }
0x1352   :  { %7473 = vmatprep.subr.mxu0 %v8022_v1  ;;  %7470 = vmatprep.mubr.msk.f32.mxu1 %vm8023_vm0, %v8022_v1 }
0x1354   :  { %7466 = vmatmul.mubr.msk.f32.vlgmr.msra.gmra.mxu0 %vm187_vm2, %v2863_v53 }
0x1355   :  { %7475 = vmatprep.mubr.msk.f32.mxu0 %vm8023_vm0, %v8022_v1 }
0x140c   :  { %v2704_v55 = vpop.f32.mrf.mxu1 }
0x140e   :  { %v7452_v57 = vpop.f32.mrf.mxu1 }
0x1410   :  { %v2780_v59 = vpop.f32.mrf.mxu0  ;;  %v2858_v60 = vpop.f32.mrf.mxu1 }
0x1411   :  { %v7772_v62 = vpack.i.bf16 %v2780_v59, %v2704_v55  ;;  %v2859_v0 = vadd.f32 %v8482_v63, %v2858_v60 }
0x1412   :  { %v7457_v54 = vpop.f32.mrf.mxu0  ;;  %v7462_v56 = vpop.f32.mrf.mxu1 }
0x1413   :  { %v2940_v5 = vsel %vm187_vm2, %v2859_v0, -inf }
0x1414   :  { %2941 = vmax.xlane.f32.xlu1 %v2940_v5  ;;  %v2936_v6 = vpop.f32.mrf.mxu0 }
0x1415   :  { %v2937_v7 = vadd.f32 %v8488_v2, %v2936_v6 }
0x1416   :  { %v7467_v9 = vpop.f32.mrf.mxu0 }
0x1417   :  { %v2943_v10 = vsel %vm187_vm2, %v2937_v7, -inf }
0x1418   :  { %2944 = vmax.xlane.f32.xlu0 %v2943_v10 }
0x149d   :  { %v2942_v12 = vpop.xlane.xlu1 %2941 }
0x149e   :  { %v2946_v13 = vsub.f32 %v2859_v0, %v2942_v12 }
0x14a0   :  { %v2948_v14 = vmul.f32 1.442695, %v2946_v13 }
0x14a1   :  { %v2945_v15 = vpop.xlane.xlu0 %2944 }
0x14a2   :  { %7906 = vpow2.f32 %v2948_v14  ;;  %v2947_v17 = vsub.f32 %v2937_v7, %v2945_v15  ;;  %v7823_v15 = vld [vmem:[%s9246_s18] sm:$0xff]  }
0x14a4   :  { %v2950_v19 = vmul.f32 1.442695, %v2947_v17  ;;  %v7824_v17 = vld [vmem:[%s9248_s20 + $0x18] sm:$0xff]  }
0x14a6   :  { %7908 = vpow2.f32 %v2950_v19 }
0x14af   :  { %v7907_v63 = vpop.eup %7906 }
0x14b0   :  { %v2952_v22 = vsel %vm187_vm2, %v7907_v63, 0.0 }
0x14b1   :  { %2953 = vadd.xlane.f32.xlu0 %v2952_v22 }
0x14b3   :  { %v7909_v3 = vpop.eup %7908 }
0x14b4   :  { %v2955_v23 = vsel %vm187_vm2, %v7909_v3, 0.0 }
0x14b5   :  { %2956 = vadd.xlane.f32.xlu1 %v2955_v23 }
0x14c6   :  { %3038 = vrot.lane.b32.xlu1 %v8459_v52, %s9334_s29 }
0x14c7   :  { %2962 = vrot.lane.b32.xlu0 %v8454_v49, %s9334_s29 }
0x14ca   :  { %7768 = vrot.lane.b32.xlu1 %v7767_v20, %s9335_s0  ;;  %v7820_v20 = vld [vmem:[%s9242_s14 + $0x8] sm:$0xff]   ;;  %s9338_s14 = smov 96  }
0x14cb   :  { %7773 = vrot.lane.b32.xlu0 %v7772_v62, %s9336_s6 }
0x153a   :  { %v2954_v2 = vpop.xlane.xlu0 %2953 }
0x153b   :  { %7910 = vrcp.f32 %v2954_v2 }
0x153e   :  { %v2957_v24 = vpop.xlane.xlu1 %2956  ;;  %v2963_v4 = vpop.permute.xlu0 %2962 }
0x153f   :  { %7912 = vrcp.f32 %v2957_v24  ;;  %7469 = vmatpush3.msra.mxu1 %v2963_v4 }
0x1540   :  { %7478 = vmatprep.subr.bf16.mxu1 %v8022_v1 }
0x1542   :  { %v3039_v26 = vpop.permute.xlu1 %3038  ;;  %v7774_v38 = vpop.permute.xlu0 %7773 }
0x1543   :  { %7474 = vmatpush3.msra.mxu0 %v3039_v26  ;;  %v7776_v11 = vunpack.i.h.bf16 %v7774_v38  ;;  %v7775_v41 = vunpack.i.l.bf16 %v7774_v38  ;;  %v6962_v26 = vld [vmem:[%s9244_s16] ss:$0 sm:$0xff] }
0x1544   :  { %7486 = vmatprep.subr.bf16.mxu0 %v8022_v1 }
0x1546   :  { %v7769_v33 = vpop.permute.xlu1 %7768 }
0x1547   :  { %v7771_v35 = vunpack.i.h.bf16 %v7769_v33  ;;  %v7770_v37 = vunpack.i.l.bf16 %v7769_v33  ;;  %v6964_v33 = vld [vmem:[%s9247_s19] ss:$0 sm:$0xff] }
0x1548   :  { %v7911_v49 = vpop.eup %7910 }
0x1549   :  { %v2960_v52 = vmul.f32 %v7911_v49, %v7907_v63  ;;  %v3139_v39 = vsel %vm187_vm2, %v8527_v36, %v7771_v35  ;;  %v3138_v40 = vsel %vm187_vm2, %v8525_v34, %v7770_v37  ;;  %v6958_v34 = vld [vmem:[%s9243_s15] ss:$0 sm:$0xff]  ;;  %s9340_s15 = smov 120  }
0x154a   :  { %v3140_v47 = vsel %vm1529_vm4, %v3138_v40, %v7775_v41  ;;  %v3141_v48 = vsel %vm1529_vm4, %v3139_v39, %v7776_v11 }
0x154b   :  { %7471 = vmatmul.mubr.msk.f32.vlgmr.msra.gmra.mxu1 %vm187_vm2, %v2960_v52 }
0x154c   :  { %v7913_v16 = vpop.eup %7912  ;;  %7482 = vmatprep.mubr.msk.bf16.mxu1 %vm8023_vm0, %v8022_v1  ;;  %7479 = vmatpush3.bf16.msra.mxu1 %v7820_v20 }
0x154d   :  { %v2961_v18 = vmul.f32 %v7913_v16, %v7909_v3  ;;  %7480 = vmatprep.subr.bf16.mxu1 %v8022_v1 }
0x154f   :  { %7476 = vmatmul.mubr.msk.f32.vlgmr.msra.gmra.mxu0 %vm187_vm2, %v2961_v18  ;;  %v6963_v18 = vld [vmem:[%s9245_s17] ss:$0 sm:$0xff] }
0x1550   :  { %7490 = vmatprep.mubr.msk.bf16.mxu0 %vm8023_vm0, %v8022_v1  ;;  %7481 = vmatpush3.bf16.msra.mxu1 %v7821_v27 }
0x1551   :  { %7494 = vmatprep.subr.bf16.mxu1 %v8022_v1 }
0x160b   :  { %v3034_v28 = vpop.f32.mrf.mxu1 }
0x160d   :  { %v7472_v30 = vpop.f32.mrf.mxu1 }
0x160f   :  { %v3110_v8 = vpop.f32.mrf.mxu0 }
0x1610   :  { %v7777_v31 = vpack.i.bf16 %v3110_v8, %v3034_v28  ;;  %v7825_v8 = vld [vmem:[%s9248_s20 + $0x10] sm:$0xff]  }
0x1611   :  { %v7477_v32 = vpop.f32.mrf.mxu0 }
0x1612   :  { %7778 = vrot.lane.b32.xlu1 %v7777_v31, %s9337_s11  ;;  %v7826_v31 = vld [vmem:[%s9248_s20 + $0x8] sm:$0xff]   ;;  %v7827_v32 = vld [vmem:[%s9248_s20] sm:$0xff]  }
0x1684   :  { %v7779_v42 = vpop.permute.xlu1 %7778 }
0x1685   :  { %v7781_v43 = vunpack.i.h.bf16 %v7779_v42  ;;  %v7780_v46 = vunpack.i.l.bf16 %v7779_v42 }
0x1687   :  { %v3143_v50 = vsel %vm1532_vm5, %v3141_v48, %v7781_v43  ;;  %v3142_v51 = vsel %vm1532_vm5, %v3140_v47, %v7780_v46  ;;  %v6968_v46 = vld [vmem:[%s9249_s21] ss:$0 sm:$0xff] }
0x1688   :  { %v3149_v58 = vpack.c.bf16 %v3143_v50, %v3142_v51 }
0x168a   :  { %7483 = vmatmul.mubr.msk.bf16.vlgmr.msra.gmra.mxu1 %vm139_vm1, %v3149_v58 }
0x168b   :  { %7502 = vmatprep.mubr.msk.bf16.mxu1 %vm8023_vm0, %v8022_v1  ;;  %7495 = vmatpush3.bf16.msra.mxu1 %v7824_v17 }
0x168c   :  { %7496 = vmatprep.subr.bf16.mxu1 %v8022_v1 }
0x168f   :  { %7497 = vmatpush3.bf16.msra.mxu1 %v7825_v8 }
0x1690   :  { %7498 = vmatprep.subr.bf16.mxu1 %v8022_v1 }
0x1693   :  { %7499 = vmatpush3.bf16.msra.mxu1 %v7826_v31 }
0x1694   :  { %7500 = vmatprep.subr.bf16.mxu1 %v8022_v1 }
0x1697   :  { %7501 = vmatpush3.bf16.msra.mxu1 %v7827_v32 }
0x1698   :  { %7524 = vmatprep.subr.mxu1 %v8022_v1 }
0x174a   :  { %v3205_v36 = vpop.f32.mrf.mxu1 }
0x174b   :  { %v3206_v61 = vadd.f32 %v6958_v34, %v3205_v36 }
0x174c   :  { %v7484_v53 = vpop.f32.mrf.mxu1 }
0x174d   :  { %v3212_v55 = vadd.f32 %v3206_v61, %v8442_v44 }
0x174e   :  { %v3208_v57 = vpop.f32.mrf.mxu1 }
0x174f   :  { %v3209_v59 = vadd.f32 %v6958_v34, %v3208_v57  ;;  %v3216_v60 = vsel %vm139_vm1, %v3212_v55, 0.0 }
0x1750   :  { %3217 = vadd.xlane.f32.xlu0 %v3216_v60  ;;  %v7485_v62 = vpop.f32.mrf.mxu1 }
0x1751   :  { %v3213_v0 = vadd.f32 %v3209_v59, %v8444_v45  ;;  %v7822_v45 = vld [vmem:[%s9246_s18 + $0x8] sm:$0xff]  }
0x1752   :  { %7487 = vmatpush3.bf16.msra.mxu0 %v7822_v45 }
0x1753   :  { %v3219_v54 = vsel %vm139_vm1, %v3213_v0, 0.0  ;;  %7488 = vmatprep.subr.bf16.mxu0 %v8022_v1 }
0x1754   :  { %3220 = vadd.xlane.f32.xlu1 %v3219_v54 }
0x1756   :  { %7489 = vmatpush3.bf16.msra.mxu0 %v7823_v15 }
0x1757   :  { %7506 = vmatprep.subr.bf16.mxu0 %v8022_v1 }
0x17d9   :  { %v3218_v56 = vpop.xlane.xlu0 %3217 }
0x17da   :  { %v3222_v5 = vmul.f32 0.03125, %v3218_v56 }
0x17dc   :  { %v3224_v6 = vsub.f32 %v3212_v55, %v3222_v5 }
0x17dd   :  { %v3221_v7 = vpop.xlane.xlu1 %3220 }
0x17de   :  { %v3223_v9 = vmul.f32 0.03125, %v3221_v7  ;;  %v3226_v10 = vmul.f32 %v3224_v6, %v3224_v6 }
0x17e0   :  { %v3225_v12 = vsub.f32 %v3213_v0, %v3223_v9  ;;  %v3228_v44 = vsel %vm139_vm1, %v3226_v10, 0.0  ;;  %v7828_v9 = vld [vmem:[%s9319_s7 + $0x18] sm:$0xff]   ;;  %v7829_v10 = vld [vmem:[%s9319_s7 + $0x10] sm:$0xff]   ;;  %s9343_s7 = smov 40  }
0x17e1   :  { %3229 = vadd.xlane.f32.xlu0 %v3228_v44 }
0x17e2   :  { %v3227_v13 = vmul.f32 %v3225_v12, %v3225_v12 }
0x17e4   :  { %v3231_v14 = vsel %vm139_vm1, %v3227_v13, 0.0 }
0x17e5   :  { %3232 = vadd.xlane.f32.xlu0 %v3231_v14 }
0x186a   :  { %v3230_v19 = vpop.xlane.xlu0 %3229 }
0x186b   :  { %v3234_v63 = vmul.f32 0.03125, %v3230_v19 }
0x186d   :  { %v3236_v22 = vadd.f32 1e-05, %v3234_v63  ;;  %v6974_v63 = vld [vmem:[%s9250_s22] ss:$0 sm:$0xff] }
0x186e   :  { %v3233_v3 = vpop.xlane.xlu0 %3232 }
0x186f   :  { %7914 = vrsqrt.f32 %v3236_v22  ;;  %v3235_v23 = vmul.f32 0.03125, %v3233_v3 }
0x1871   :  { %v3237_v2 = vadd.f32 1e-05, %v3235_v23 }
0x1873   :  { %7916 = vrsqrt.f32 %v3237_v2  ;;  %v6975_v2 = vld [vmem:[%s9251_s23] ss:$0 sm:$0xff] }
0x187c   :  { %v7915_v24 = vpop.eup %7914 }
0x187d   :  { %v3240_v4 = vmul.f32 %v7915_v24, %v3224_v6 }
0x187f   :  { %v3248_v16 = vmul.f32 %v6962_v26, %v3240_v4 }
0x1880   :  { %v7917_v49 = vpop.eup %7916 }
0x1881   :  { %v3241_v52 = vmul.f32 %v7917_v49, %v3225_v12  ;;  %v3256_v27 = vadd.f32 %v6963_v18, %v3248_v16 }
0x1883   :  { %v3249_v20 = vmul.f32 %v6962_v26, %v3241_v52  ;;  %v6981_v52 = vld [vmem:[%s9321_s10 + $0x1] ss:$0 sm:$0xff]  ;;  %s9339_s10 = smov 64  }
0x1885   :  { %v3257_v28 = vadd.f32 %v6963_v18, %v3249_v20 }
0x1887   :  { %v3263_v30 = vpack.c.bf16 %v3257_v28, %v3256_v27 }
0x1889   :  { %7491 = vmatmul.mubr.msk.bf16.vlgmr.msra.gmra.mxu0 %vm139_vm1, %v3263_v30 }
0x188a   :  { %7510 = vmatprep.mubr.msk.bf16.mxu0 %vm8023_vm0, %v8022_v1  ;;  %7507 = vmatpush3.bf16.msra.mxu0 %v7828_v9 }
0x188b   :  { %7508 = vmatprep.subr.bf16.mxu0 %v8022_v1 }
0x188e   :  { %7509 = vmatpush3.bf16.msra.mxu0 %v7829_v10 }
0x188f   :  { %7514 = vmatprep.subr.mxu0 %v8022_v1 }
0x1949   :  { %v3319_v35 = vpop.f32.mrf.mxu0 }
0x194a   :  { %v3320_v38 = vadd.f32 %v6964_v33, %v3319_v35 }
0x194b   :  { %v7492_v37 = vpop.f32.mrf.mxu0 }
0x194c   :  { %v3326_v41 = vmax.f32 %v3320_v38, 0.0 }
0x194d   :  { %v3322_v39 = vpop.f32.mrf.mxu0 }
0x194e   :  { %v3323_v40 = vadd.f32 %v6964_v33, %v3322_v39 }
0x194f   :  { %v7493_v11 = vpop.f32.mrf.mxu0 }
0x1950   :  { %v3327_v42 = vmax.f32 %v3323_v40, 0.0 }
0x1952   :  { %v3337_v43 = vpack.c.bf16 %v3327_v42, %v3326_v41 }
0x1954   :  { %7503 = vmatmul.mubr.msk.bf16.vlgmr.msra.gmra.mxu1 %vm3368_vm6, %v3337_v43 }
0x1955   :  { %7526 = vmatprep.mubr.msk.f32.mxu1 %vm8023_vm0, %v8022_v1 }
0x1a14   :  { %v3406_v47 = vpop.f32.mrf.mxu1 }
0x1a15   :  { %v3407_v48 = vadd.f32 %v6968_v46, %v3406_v47 }
0x1a16   :  { %v7504_v50 = vpop.f32.mrf.mxu1 }
0x1a17   :  { %v3413_v51 = vadd.f32 %v3407_v48, %v3256_v27 }
0x1a18   :  { %v3409_v58 = vpop.f32.mrf.mxu1 }
0x1a19   :  { %v3410_v34 = vadd.f32 %v6968_v46, %v3409_v58  ;;  %v3417_v36 = vsel %vm139_vm1, %v3413_v51, 0.0 }
0x1a1a   :  { %3418 = vadd.xlane.f32.xlu1 %v3417_v36  ;;  %v7505_v61 = vpop.f32.mrf.mxu1 }
0x1a1b   :  { %v3414_v53 = vadd.f32 %v3410_v34, %v3257_v28 }
0x1a1d   :  { %v3420_v55 = vsel %vm139_vm1, %v3414_v53, 0.0 }
0x1a1e   :  { %3421 = vadd.xlane.f32.xlu0 %v3420_v55 }
0x1aa3   :  { %v3419_v57 = vpop.xlane.xlu1 %3418 }
0x1aa4   :  { %v3423_v59 = vmul.f32 0.03125, %v3419_v57 }
0x1aa6   :  { %v3425_v60 = vsub.f32 %v3413_v51, %v3423_v59 }
0x1aa7   :  { %v3422_v62 = vpop.xlane.xlu0 %3421 }
0x1aa8   :  { %v3424_v0 = vmul.f32 0.03125, %v3422_v62  ;;  %v3427_v54 = vmul.f32 %v3425_v60, %v3425_v60 }
0x1aaa   :  { %v3426_v56 = vsub.f32 %v3414_v53, %v3424_v0  ;;  %v3429_v5 = vsel %vm139_vm1, %v3427_v54, 0.0 }
0x1aab   :  { %3430 = vadd.xlane.f32.xlu1 %v3429_v5 }
0x1aac   :  { %v3428_v6 = vmul.f32 %v3426_v56, %v3426_v56 }
0x1aae   :  { %v3432_v7 = vsel %vm139_vm1, %v3428_v6, 0.0 }
0x1aaf   :  { %3433 = vadd.xlane.f32.xlu0 %v3432_v7 }
0x1b34   :  { %v3431_v12 = vpop.xlane.xlu1 %3430 }
0x1b35   :  { %v3435_v44 = vmul.f32 0.03125, %v3431_v12 }
0x1b37   :  { %v3437_v13 = vadd.f32 1e-05, %v3435_v44 }
0x1b38   :  { %v3434_v14 = vpop.xlane.xlu0 %3433 }
0x1b39   :  { %7918 = vrsqrt.f32 %v3437_v13  ;;  %v3436_v45 = vmul.f32 0.03125, %v3434_v14 }
0x1b3b   :  { %v3438_v15 = vadd.f32 1e-05, %v3436_v45 }
0x1b3d   :  { %7920 = vrsqrt.f32 %v3438_v15 }
0x1b46   :  { %v7919_v17 = vpop.eup %7918 }
0x1b47   :  { %v3441_v19 = vmul.f32 %v7919_v17, %v3425_v60 }
0x1b49   :  { %v3449_v23 = vmul.f32 %v6974_v63, %v3441_v19 }
0x1b4a   :  { %v7921_v22 = vpop.eup %7920 }
0x1b4b   :  { %v3442_v3 = vmul.f32 %v7921_v22, %v3426_v56  ;;  %v8719_v4 = vadd.f32 %v6975_v2, %v3449_v23 }
0x1b4d   :  { %v3450_v24 = vmul.f32 %v6974_v63, %v3442_v3 }
0x1b4f   :  { %v8721_v26 = vadd.f32 %v6975_v2, %v3450_v24 }
0x1b51   :  { %v3466_v49 = vpack.c.bf16 %v8721_v26, %v8719_v4 }
0x1b53   :  { %7511 = vmatmul.mubr.msk.bf16.vlgmr.msra.gmra.mxu0 %vm139_vm1, %v3466_v49 }
0x1b54   :  { %7516 = vmatprep.mubr.msk.f32.mxu0 %vm8023_vm0, %v8022_v1 }
0x1c13   :  { %v3522_v16 = vpop.f32.mrf.mxu0 }
0x1c14   :  { %v8731_v18 = vadd.f32 %v6981_v52, %v3522_v16 }
0x1c15   :  { %v7512_v20 = vpop.f32.mrf.mxu0 }
0x1c16   :  { %3530 = vrot.lane.b32.xlu1 %v8731_v18, %s9338_s14 }
0x1c17   :  { %v3525_v27 = vpop.f32.mrf.mxu0 }
0x1c18   :  { %v8735_v28 = vadd.f32 %v6981_v52, %v3525_v27 }
0x1c19   :  { %v7513_v30 = vpop.f32.mrf.mxu0 }
0x1c1a   :  { %3607 = vrot.lane.b32.xlu0 %v8735_v28, %s9338_s14 }
0x1c88   :  { %v3531_v8 = vpop.permute.xlu1 %3530 }
0x1c89   :  { %7515 = vmatpush3.xpose.msk.msra.mxu0 %vm187_vm2, %v3531_v8 }
0x1c8a   :  { %7519 = vmatprep.subr.mxu0 %v8022_v1 }
0x1c8c   :  { %7517 = vmatmul.mubr.msk.f32.vlgmr.msra.gmra.mxu0 %vm187_vm2, %v8731_v18  ;;  %v3608_v31 = vpop.permute.xlu0 %3607 }
0x1c8d   :  { %7520 = vmatpush3.xpose.msk.msra.mxu0 %vm187_vm2, %v3608_v31  ;;  %7521 = vmatprep.mubr.msk.f32.mxu0 %vm8023_vm0, %v8022_v1 }
0x1c8e   :  { %7529 = vmatprep.subr.mxu0 %v8022_v1 }
0x1c90   :  { %7522 = vmatmul.mubr.msk.f32.vlgmr.msra.gmra.mxu0 %vm187_vm2, %v8735_v28 }
0x1c91   :  { %7531 = vmatprep.mubr.msk.f32.mxu0 %vm8023_vm0, %v8022_v1 }
0x1d4c   :  { %v3602_v32 = vpop.f32.mrf.mxu0 }
0x1d4d   :  { %v3603_v33 = vadd.f32 %v3602_v32, %v8231_v21 }
0x1d4e   :  { %v7518_v35 = vpop.f32.mrf.mxu0 }
0x1d4f   :  { %v3683_v37 = vsel %vm187_vm2, %v3603_v33, -inf }
0x1d50   :  { %3684 = vmax.xlane.f32.xlu1 %v3683_v37  ;;  %v3679_v38 = vpop.f32.mrf.mxu0 }
0x1d51   :  { %v3680_v39 = vadd.f32 %v3679_v38, %v8237_v25 }
0x1d52   :  { %v7523_v40 = vpop.f32.mrf.mxu0 }
0x1d53   :  { %v3686_v11 = vsel %vm187_vm2, %v3680_v39, -inf }
0x1d54   :  { %3687 = vmax.xlane.f32.xlu0 %v3686_v11 }
0x1d61   :  { %3705 = vrot.lane.b32.xlu1 %v8731_v18, %s9339_s10 }
0x1dd9   :  { %v3685_v41 = vpop.xlane.xlu1 %3684 }
0x1dda   :  { %v3689_v42 = vsub.f32 %v3603_v33, %v3685_v41 }
0x1ddc   :  { %v3691_v43 = vmul.f32 1.442695, %v3689_v42 }
0x1ddd   :  { %v3706_v46 = vpop.permute.xlu1 %3705  ;;  %v3688_v47 = vpop.xlane.xlu0 %3687 }
0x1dde   :  { %7922 = vpow2.f32 %v3691_v43  ;;  %v3690_v48 = vsub.f32 %v3680_v39, %v3688_v47  ;;  %7525 = vmatpush3.msra.mxu1 %v3706_v46 }
0x1ddf   :  { %7534 = vmatprep.subr.mxu1 %v8022_v1 }
0x1de0   :  { %v3693_v50 = vmul.f32 1.442695, %v3690_v48 }
0x1de2   :  { %7924 = vpow2.f32 %v3693_v50 }
0x1deb   :  { %v7923_v51 = vpop.eup %7922 }
0x1dec   :  { %v3695_v58 = vsel %vm187_vm2, %v7923_v51, 0.0 }
0x1ded   :  { %3696 = vadd.xlane.f32.xlu1 %v3695_v58 }
0x1def   :  { %v7925_v34 = vpop.eup %7924 }
0x1df0   :  { %v3698_v36 = vsel %vm187_vm2, %v7925_v34, 0.0 }
0x1df1   :  { %3699 = vadd.xlane.f32.xlu0 %v3698_v36 }
0x1dfe   :  { %3859 = vrot.lane.b32.xlu1 %v8731_v18, %s9330_s30 }
0x1e02   :  { %3937 = vrot.lane.b32.xlu1 %v8735_v28, %s9330_s30 }
0x1e06   :  { %3935 = vrot.lane.b32.xlu1 %v8735_v28, %s9340_s15 }
0x1e07   :  { %3781 = vrot.lane.b32.xlu0 %v8735_v28, %s9339_s10 }
0x1e0b   :  { %3857 = vrot.lane.b32.xlu0 %v8731_v18, %s9340_s15 }
0x1e76   :  { %v3697_v61 = vpop.xlane.xlu1 %3696 }
0x1e77   :  { %7926 = vrcp.f32 %v3697_v61 }
0x1e7a   :  { %v3700_v53 = vpop.xlane.xlu0 %3699  ;;  %v3860_v57 = vpop.permute.xlu1 %3859 }
0x1e7b   :  { %7928 = vrcp.f32 %v3700_v53 }
0x1e7e   :  { %v3782_v55 = vpop.permute.xlu0 %3781  ;;  %v3938_v0 = vpop.permute.xlu1 %3937 }
0x1e7f   :  { %7530 = vmatpush3.msra.mxu0 %v3782_v55 }
0x1e80   :  { %7539 = vmatprep.subr.mxu0 %v8022_v1 }
0x1e82   :  { %v3858_v56 = vpop.permute.xlu0 %3857  ;;  %v3936_v5 = vpop.permute.xlu1 %3935 }
0x1e84   :  { %v7927_v59 = vpop.eup %7926 }
0x1e85   :  { %v3703_v60 = vmul.f32 %v7927_v59, %v7923_v51 }
0x1e87   :  { %7527 = vmatmul.mubr.msk.f32.vlgmr.msra.gmra.mxu1 %vm187_vm2, %v3703_v60 }
0x1e88   :  { %v7929_v62 = vpop.eup %7928  ;;  %7535 = vmatpush3.xpose.msk.msra.mxu1 %vm187_vm2, %v3860_v57  ;;  %7536 = vmatprep.mubr.msk.f32.mxu1 %vm8023_vm0, %v8022_v1 }
0x1e89   :  { %v3704_v54 = vmul.f32 %v7929_v62, %v7925_v34  ;;  %7544 = vmatprep.subr.mxu1 %v8022_v1 }
0x1e8b   :  { %7532 = vmatmul.mubr.msk.f32.vlgmr.msra.gmra.mxu0 %vm187_vm2, %v3704_v54  ;;  %7537 = vmatmul.mubr.msk.f32.vlgmr.msra.gmra.mxu1 %vm187_vm2, %v3858_v56 }
0x1e8c   :  { %7540 = vmatpush3.xpose.msk.msra.mxu0 %vm187_vm2, %v3938_v0  ;;  %7541 = vmatprep.mubr.msk.f32.mxu0 %vm8023_vm0, %v8022_v1 }
0x1e8d   :  { %7549 = vmatprep.subr.mxu0 %v8022_v1  ;;  %7546 = vmatprep.mubr.msk.f32.mxu1 %vm8023_vm0, %v8022_v1 }
0x1e8f   :  { %7542 = vmatmul.mubr.msk.f32.vlgmr.msra.gmra.mxu0 %vm187_vm2, %v3936_v5 }
0x1e90   :  { %7551 = vmatprep.mubr.msk.f32.mxu0 %vm8023_vm0, %v8022_v1 }
0x1f47   :  { %v8787_v6 = vpop.f32.mrf.mxu1 }
0x1f49   :  { %v7528_v7 = vpop.f32.mrf.mxu1 }
0x1f4b   :  { %v8789_v9 = vpop.f32.mrf.mxu0  ;;  %v3931_v10 = vpop.f32.mrf.mxu1 }
0x1f4c   :  { %v3932_v12 = vadd.f32 %v3931_v10, %v8231_v21 }
0x1f4d   :  { %v7533_v44 = vpop.f32.mrf.mxu0  ;;  %v7538_v13 = vpop.f32.mrf.mxu1 }
0x1f4e   :  { %v4013_v14 = vsel %vm187_vm2, %v3932_v12, -inf }
0x1f4f   :  { %4014 = vmax.xlane.f32.xlu0 %v4013_v14  ;;  %v4009_v45 = vpop.f32.mrf.mxu0 }
0x1f50   :  { %v4010_v15 = vadd.f32 %v4009_v45, %v8237_v25 }
0x1f51   :  { %v7543_v17 = vpop.f32.mrf.mxu0 }
0x1f52   :  { %v4016_v19 = vsel %vm187_vm2, %v4010_v15, -inf }
0x1f53   :  { %4017 = vmax.xlane.f32.xlu1 %v4016_v19 }
0x1f64   :  { %4035 = vrot.lane.b32.xlu1 %v8731_v18, %s9341_s24 }
0x1f68   :  { %4189 = vrot.lane.b32.xlu1 %v8731_v18, %s9332_s8 }
0x1f6c   :  { %4267 = vrot.lane.b32.xlu1 %v8735_v28, %s9332_s8 }
0x1f70   :  { %4265 = vrot.lane.b32.xlu1 %v8735_v28, %s9331_s5 }
0x1fd8   :  { %v4015_v63 = vpop.xlane.xlu0 %4014 }
0x1fd9   :  { %v4019_v22 = vsub.f32 %v3932_v12, %v4015_v63 }
0x1fdb   :  { %v4021_v3 = vmul.f32 1.442695, %v4019_v22 }
0x1fdc   :  { %v4018_v23 = vpop.xlane.xlu1 %4017 }
0x1fdd   :  { %7930 = vpow2.f32 %v4021_v3  ;;  %v4020_v2 = vsub.f32 %v4010_v15, %v4018_v23 }
0x1fdf   :  { %v4023_v24 = vmul.f32 1.442695, %v4020_v2 }
0x1fe0   :  { %v4036_v49 = vpop.permute.xlu1 %4035 }
0x1fe1   :  { %7932 = vpow2.f32 %v4023_v24  ;;  %7545 = vmatpush3.msra.mxu1 %v4036_v49 }
0x1fe2   :  { %7554 = vmatprep.subr.mxu1 %v8022_v1 }
0x1fe4   :  { %v4190_v32 = vpop.permute.xlu1 %4189 }
0x1fe8   :  { %v4268_v38 = vpop.permute.xlu1 %4267 }
0x1fea   :  { %v7931_v52 = vpop.eup %7930 }
0x1feb   :  { %v4025_v16 = vsel %vm187_vm2, %v7931_v52, 0.0 }
0x1fec   :  { %4026 = vadd.xlane.f32.xlu0 %v4025_v16  ;;  %v4266_v11 = vpop.permute.xlu1 %4265 }
0x1fee   :  { %v7933_v20 = vpop.eup %7932 }
0x1fef   :  { %v4028_v27 = vsel %vm187_vm2, %v7933_v20, 0.0 }
0x1ff0   :  { %4029 = vadd.xlane.f32.xlu0 %v4028_v27 }
0x2006   :  { %4111 = vrot.lane.b32.xlu0 %v8735_v28, %s9341_s24 }
0x200a   :  { %4187 = vrot.lane.b32.xlu0 %v8731_v18, %s9331_s5 }
0x2075   :  { %v4027_v30 = vpop.xlane.xlu0 %4026 }
0x2076   :  { %7934 = vrcp.f32 %v4027_v30 }
0x2079   :  { %v4030_v8 = vpop.xlane.xlu0 %4029 }
0x207a   :  { %7936 = vrcp.f32 %v4030_v8 }
0x207d   :  { %v4112_v31 = vpop.permute.xlu0 %4111 }
0x207e   :  { %7550 = vmatpush3.msra.mxu0 %v4112_v31 }
0x207f   :  { %7559 = vmatprep.subr.mxu0 %v8022_v1 }
0x2081   :  { %v4188_v40 = vpop.permute.xlu0 %4187 }
0x2083   :  { %v7935_v33 = vpop.eup %7934 }
0x2084   :  { %v4033_v35 = vmul.f32 %v7935_v33, %v7931_v52 }
0x2086   :  { %7547 = vmatmul.mubr.msk.f32.vlgmr.msra.gmra.mxu1 %vm187_vm2, %v4033_v35 }
0x2087   :  { %v7937_v37 = vpop.eup %7936  ;;  %7555 = vmatpush3.xpose.msk.msra.mxu1 %vm187_vm2, %v4190_v32  ;;  %7556 = vmatprep.mubr.msk.f32.mxu1 %vm8023_vm0, %v8022_v1 }
0x2088   :  { %v4034_v39 = vmul.f32 %v7937_v37, %v7933_v20  ;;  %7564 = vmatprep.subr.mxu1 %v8022_v1 }
0x208a   :  { %7552 = vmatmul.mubr.msk.f32.vlgmr.msra.gmra.mxu0 %vm187_vm2, %v4034_v39  ;;  %7557 = vmatmul.mubr.msk.f32.vlgmr.msra.gmra.mxu1 %vm187_vm2, %v4188_v40 }
0x208b   :  { %7560 = vmatpush3.xpose.msk.msra.mxu0 %vm187_vm2, %v4268_v38  ;;  %7561 = vmatprep.mubr.msk.f32.mxu0 %vm8023_vm0, %v8022_v1 }
0x208c   :  { %7569 = vmatprep.subr.mxu0 %v8022_v1  ;;  %7566 = vmatprep.mubr.msk.f32.mxu1 %vm8023_vm0, %v8022_v1 }
0x208e   :  { %7562 = vmatmul.mubr.msk.f32.vlgmr.msra.gmra.mxu0 %vm187_vm2, %v4266_v11 }
0x208f   :  { %7571 = vmatprep.mubr.msk.f32.mxu0 %vm8023_vm0, %v8022_v1 }
0x2146   :  { %v8827_v41 = vpop.f32.mrf.mxu1 }
0x2148   :  { %v7548_v42 = vpop.f32.mrf.mxu1 }
0x214a   :  { %v8829_v43 = vpop.f32.mrf.mxu0  ;;  %v4261_v46 = vpop.f32.mrf.mxu1 }
0x214b   :  { %v7782_v47 = vpack.i.bf16 %v8829_v43, %v8827_v41  ;;  %v4262_v48 = vadd.f32 %v4261_v46, %v8231_v21 }
0x214c   :  { %v7553_v50 = vpop.f32.mrf.mxu0  ;;  %v7558_v51 = vpop.f32.mrf.mxu1 }
0x214d   :  { %v4343_v58 = vsel %vm187_vm2, %v4262_v48, -inf }
0x214e   :  { %4344 = vmax.xlane.f32.xlu0 %v4343_v58  ;;  %v4339_v34 = vpop.f32.mrf.mxu0 }
0x214f   :  { %v4340_v36 = vadd.f32 %v4339_v34, %v8237_v25  ;;  %v7831_v34 = vld [vmem:[%s9323_s9 + $0x10] sm:$0xff]  }
0x2150   :  { %v7563_v61 = vpop.f32.mrf.mxu0 }
0x2151   :  { %v4346_v53 = vsel %vm187_vm2, %v4340_v36, -inf }
0x2152   :  { %4347 = vmax.xlane.f32.xlu1 %v4346_v53 }
0x2163   :  { %4365 = vrot.lane.b32.xlu1 %v8731_v18, %s9342_s25 }
0x2167   :  { %4519 = vrot.lane.b32.xlu1 %v8731_v18, %s9334_s29 }
0x216b   :  { %4597 = vrot.lane.b32.xlu1 %v8735_v28, %s9334_s29 }
0x216f   :  { %4595 = vrot.lane.b32.xlu1 %v8735_v28, %s9333_s27 }
0x21d7   :  { %v4345_v55 = vpop.xlane.xlu0 %4344 }
0x21d8   :  { %v4349_v57 = vsub.f32 %v4262_v48, %v4345_v55 }
0x21da   :  { %v4351_v59 = vmul.f32 1.442695, %v4349_v57 }
0x21db   :  { %v4348_v60 = vpop.xlane.xlu1 %4347 }
0x21dc   :  { %7938 = vpow2.f32 %v4351_v59  ;;  %v4350_v62 = vsub.f32 %v4340_v36, %v4348_v60 }
0x21de   :  { %v4353_v0 = vmul.f32 1.442695, %v4350_v62 }
0x21df   :  { %v4366_v54 = vpop.permute.xlu1 %4365 }
0x21e0   :  { %7940 = vpow2.f32 %v4353_v0  ;;  %7565 = vmatpush3.msra.mxu1 %v4366_v54 }
0x21e1   :  { %7574 = vmatprep.subr.mxu1 %v8022_v1 }
0x21e3   :  { %v4520_v14 = vpop.permute.xlu1 %4519 }
0x21e7   :  { %v4598_v19 = vpop.permute.xlu1 %4597 }
0x21e9   :  { %v7939_v56 = vpop.eup %7938 }
0x21ea   :  { %v4355_v5 = vsel %vm187_vm2, %v7939_v56, 0.0 }
0x21eb   :  { %4356 = vadd.xlane.f32.xlu0 %v4355_v5  ;;  %v4596_v3 = vpop.permute.xlu1 %4595 }
0x21ed   :  { %v7941_v7 = vpop.eup %7940 }
0x21ee   :  { %v4358_v10 = vsel %vm187_vm2, %v7941_v7, 0.0 }
0x21ef   :  { %4359 = vadd.xlane.f32.xlu0 %v4358_v10 }
0x2205   :  { %4441 = vrot.lane.b32.xlu0 %v8735_v28, %s9342_s25 }
0x2209   :  { %4517 = vrot.lane.b32.xlu0 %v8731_v18, %s9333_s27 }
0x2274   :  { %v4357_v12 = vpop.xlane.xlu0 %4356 }
0x2275   :  { %7942 = vrcp.f32 %v4357_v12 }
0x2278   :  { %v4360_v44 = vpop.xlane.xlu0 %4359 }
0x2279   :  { %7944 = vrcp.f32 %v4360_v44 }
0x227c   :  { %v4442_v13 = vpop.permute.xlu0 %4441 }
0x227d   :  { %7570 = vmatpush3.msra.mxu0 %v4442_v13 }
0x227e   :  { %7579 = vmatprep.subr.mxu0 %v8022_v1 }
0x2280   :  { %v4518_v22 = vpop.permute.xlu0 %4517 }
0x2282   :  { %v7943_v45 = vpop.eup %7942 }
0x2283   :  { %v4363_v15 = vmul.f32 %v7943_v45, %v7939_v56 }
0x2285   :  { %7567 = vmatmul.mubr.msk.f32.vlgmr.msra.gmra.mxu1 %vm187_vm2, %v4363_v15 }
0x2286   :  { %v7945_v17 = vpop.eup %7944  ;;  %7575 = vmatpush3.xpose.msk.msra.mxu1 %vm187_vm2, %v4520_v14  ;;  %7576 = vmatprep.mubr.msk.f32.mxu1 %vm8023_vm0, %v8022_v1 }
0x2287   :  { %v4364_v63 = vmul.f32 %v7945_v17, %v7941_v7  ;;  %7584 = vmatprep.subr.mxu1 %v8022_v1 }
0x2289   :  { %7572 = vmatmul.mubr.msk.f32.vlgmr.msra.gmra.mxu0 %vm187_vm2, %v4364_v63  ;;  %7577 = vmatmul.mubr.msk.f32.vlgmr.msra.gmra.mxu1 %vm187_vm2, %v4518_v22 }
0x228a   :  { %7580 = vmatpush3.xpose.msk.msra.mxu0 %vm187_vm2, %v4598_v19  ;;  %7581 = vmatprep.mubr.msk.f32.mxu0 %vm8023_vm0, %v8022_v1 }
0x228b   :  { %7589 = vmatprep.subr.mxu0 %v8022_v1  ;;  %7586 = vmatprep.mubr.msk.f32.mxu1 %vm8023_vm0, %v8022_v1 }
0x228d   :  { %7582 = vmatmul.mubr.msk.f32.vlgmr.msra.gmra.mxu0 %vm187_vm2, %v4596_v3 }
0x228e   :  { %7591 = vmatprep.mubr.msk.f32.mxu0 %vm8023_vm0, %v8022_v1 }
0x2345   :  { %v4437_v23 = vpop.f32.mrf.mxu1 }
0x2347   :  { %v7568_v2 = vpop.f32.mrf.mxu1 }
0x2349   :  { %v4513_v24 = vpop.f32.mrf.mxu0  ;;  %v4591_v49 = vpop.f32.mrf.mxu1 }
0x234a   :  { %v4592_v52 = vadd.f32 %v4591_v49, %v8231_v21  ;;  %v7787_v21 = vpack.i.bf16 %v4513_v24, %v4437_v23 }
0x234b   :  { %v7573_v16 = vpop.f32.mrf.mxu0  ;;  %v7578_v20 = vpop.f32.mrf.mxu1 }
0x234c   :  { %v4673_v27 = vsel %vm187_vm2, %v4592_v52, -inf }
0x234d   :  { %4674 = vmax.xlane.f32.xlu0 %v4673_v27  ;;  %v4669_v30 = vpop.f32.mrf.mxu0 }
0x234e   :  { %v4670_v8 = vadd.f32 %v4669_v30, %v8237_v25 }
0x234f   :  { %v7583_v31 = vpop.f32.mrf.mxu0 }
0x2350   :  { %v4676_v32 = vsel %vm187_vm2, %v4670_v8, -inf }
0x2351   :  { %4677 = vmax.xlane.f32.xlu1 %v4676_v32 }
0x2362   :  { %4695 = vrot.lane.b32.xlu1 %v8731_v18, %s9343_s7 }
0x2366   :  { %7783 = vrot.lane.b32.xlu1 %v7782_v47, %s9335_s0 }
0x236a   :  { %7788 = vrot.lane.b32.xlu1 %v7787_v21, %s9336_s6 }
0x23d6   :  { %v4675_v33 = vpop.xlane.xlu0 %4674 }
0x23d7   :  { %v4679_v35 = vsub.f32 %v4592_v52, %v4675_v33 }
0x23d9   :  { %v4681_v37 = vmul.f32 1.442695, %v4679_v35  ;;  %v7833_v35 = vld [vmem:[%s9240_s12 + $0x10] sm:$0xff]  }
0x23da   :  { %v4678_v38 = vpop.xlane.xlu1 %4677 }
0x23db   :  { %7946 = vpow2.f32 %v4681_v37  ;;  %v4680_v25 = vsub.f32 %v4670_v8, %v4678_v38  ;;  %v7834_v37 = vld [vmem:[%s9326_s28 + $0x18] sm:$0xff]   ;;  %v7835_v38 = vld [vmem:[%s9326_s28 + $0x10] sm:$0xff]  }
0x23dd   :  { %v4683_v39 = vmul.f32 1.442695, %v4680_v25 }
0x23de   :  { %v4696_v40 = vpop.permute.xlu1 %4695 }
0x23df   :  { %7948 = vpow2.f32 %v4683_v39  ;;  %7585 = vmatpush3.msra.mxu1 %v4696_v40 }
0x23e0   :  { %7594 = vmatprep.subr.bf16.mxu1 %v8022_v1 }
0x23e2   :  { %v7784_v59 = vpop.permute.xlu1 %7783 }
0x23e3   :  { %v7786_v62 = vunpack.i.h.bf16 %v7784_v59  ;;  %v7785_v0 = vunpack.i.l.bf16 %v7784_v59 }
0x23e5   :  { %v4872_v7 = vsel %vm187_vm2, %v8789_v9, %v7786_v62  ;;  %v4871_v10 = vsel %vm187_vm2, %v8787_v6, %v7785_v0  ;;  %v7014_v6 = vld [vmem:[%s9324_s3 + $0x1] ss:$0 sm:$0xff]  ;;  %s9350_s3 = sld [smem:[#allocation21_spill]] }
0x23e6   :  { %v7789_v60 = vpop.permute.xlu1 %7788  ;;  %v7027_v62 = vld [vmem:[%s9344_s26 + $0x1] ss:$0 sm:$0xff]  ;;  %s9348_s26 = sld [smem:[#allocation19_spill]] }
0x23e7   :  { %v7791_v54 = vunpack.i.h.bf16 %v7789_v60  ;;  %v7790_v56 = vunpack.i.l.bf16 %v7789_v60 }
0x23e8   :  { %v7947_v18 = vpop.eup %7946 }
0x23e9   :  { %v4685_v11 = vsel %vm187_vm2, %v7947_v18, 0.0  ;;  %v4873_v13 = vsel %vm1529_vm4, %v4871_v10, %v7790_v56  ;;  %v4874_v14 = vsel %vm1529_vm4, %v4872_v7, %v7791_v54 }
0x23ea   :  { %4686 = vadd.xlane.f32.xlu0 %v4685_v11 }
0x23ec   :  { %v7949_v41 = vpop.eup %7948 }
0x23ed   :  { %v4688_v42 = vsel %vm187_vm2, %v7949_v41, 0.0 }
0x23ee   :  { %4689 = vadd.xlane.f32.xlu0 %v4688_v42 }
0x2404   :  { %4771 = vrot.lane.b32.xlu0 %v8735_v28, %s9343_s7  ;;  %v7830_v28 = vld [vmem:[%s9323_s9 + $0x18] sm:$0xff]  }
0x2473   :  { %v4687_v43 = vpop.xlane.xlu0 %4686 }
0x2474   :  { %7950 = vrcp.f32 %v4687_v43  ;;  %v7020_v43 = vld [vmem:[%s9327_s2 + $0x1] ss:$0 sm:$0xff] }
0x2477   :  { %v4690_v46 = vpop.xlane.xlu0 %4689 }
0x2478   :  { %7952 = vrcp.f32 %v4690_v46 }
0x247b   :  { %v4772_v47 = vpop.permute.xlu0 %4771 }
0x247c   :  { %7590 = vmatpush3.msra.mxu0 %v4772_v47 }
0x247d   :  { %7602 = vmatprep.subr.bf16.mxu0 %v8022_v1 }
0x2481   :  { %v7951_v48 = vpop.eup %7950 }
0x2482   :  { %v4693_v50 = vmul.f32 %v7951_v48, %v7947_v18 }
0x2484   :  { %7587 = vmatmul.mubr.msk.f32.vlgmr.msra.gmra.mxu1 %vm187_vm2, %v4693_v50  ;;  %v7021_v50 = vld [vmem:[%s9328_s4 + $0x1] ss:$0 sm:$0xff] }
0x2485   :  { %v7953_v51 = vpop.eup %7952  ;;  %7598 = vmatprep.mubr.msk.bf16.mxu1 %vm8023_vm0, %v8022_v1  ;;  %7595 = vmatpush3.bf16.msra.mxu1 %v7830_v28 }
0x2486   :  { %v4694_v58 = vmul.f32 %v7953_v51, %v7949_v41  ;;  %7596 = vmatprep.subr.bf16.mxu1 %v8022_v1 }
0x2488   :  { %7592 = vmatmul.mubr.msk.f32.vlgmr.msra.gmra.mxu0 %vm187_vm2, %v4694_v58 }
0x2489   :  { %7606 = vmatprep.mubr.msk.bf16.mxu0 %vm8023_vm0, %v8022_v1  ;;  %7597 = vmatpush3.bf16.msra.mxu1 %v7831_v34 }
0x248a   :  { %7610 = vmatprep.subr.bf16.mxu1 %v8022_v1  ;;  %7603 = vmatpush3.bf16.msra.mxu0 %v7834_v37 }
0x248b   :  { %7604 = vmatprep.subr.bf16.mxu0 %v8022_v1 }
0x248e   :  { %7605 = vmatpush3.bf16.msra.mxu0 %v7835_v38 }
0x248f   :  { %7618 = vmatprep.subr.mxu0 %v8022_v1 }
0x2544   :  { %v4767_v36 = vpop.f32.mrf.mxu1 }
0x2546   :  { %v7588_v61 = vpop.f32.mrf.mxu1 }
0x2548   :  { %v4843_v53 = vpop.f32.mrf.mxu0 }
0x2549   :  { %v7792_v55 = vpack.i.bf16 %v4843_v53, %v4767_v36  ;;  %v7036_v36 = vld [vmem:[%s9241_s13 + $0x1] ss:$0 sm:$0xff] }
0x254a   :  { %v7593_v57 = vpop.f32.mrf.mxu0 }
0x254b   :  { %7793 = vrot.lane.b32.xlu0 %v7792_v55, %s9337_s11 }
0x25bd   :  { %v7794_v5 = vpop.permute.xlu0 %7793 }
0x25be   :  { %v7796_v12 = vunpack.i.h.bf16 %v7794_v5  ;;  %v7795_v44 = vunpack.i.l.bf16 %v7794_v5 }
0x25c0   :  { %v4876_v45 = vsel %vm1532_vm5, %v4874_v14, %v7796_v12  ;;  %v4875_v15 = vsel %vm1532_vm5, %v4873_v13, %v7795_v44  ;;  %v8987_v44 = vld [vmem:[%s9345_s1] ss:$0 sm:$0xff] }
0x25c1   :  { %v4884_v17 = vpack.c.bf16 %v4876_v45, %v4875_v15 }
0x25c3   :  { %7599 = vmatmul.mubr.msk.bf16.vlgmr.msra.gmra.mxu1 %vm139_vm1, %v4884_v17  ;;  %v8994_v17 = vld [vmem:[%s9345_s1 + $0x1] ss:$0 sm:$0xff] }
0x25c4   :  { %7614 = vmatprep.mubr.msk.bf16.mxu1 %vm8023_vm0, %v8022_v1 }
0x2683   :  { %v4940_v9 = vpop.f32.mrf.mxu1 }
0x2684   :  { %v4941_v19 = vadd.f32 %v7014_v6, %v4940_v9 }
0x2685   :  { %v7600_v63 = vpop.f32.mrf.mxu1 }
0x2686   :  { %v4947_v22 = vadd.f32 %v4941_v19, %v8719_v4 }
0x2687   :  { %v4943_v3 = vpop.f32.mrf.mxu1 }
0x2688   :  { %v4944_v23 = vadd.f32 %v7014_v6, %v4943_v3  ;;  %v4953_v2 = vsel %vm139_vm1, %v4947_v22, 0.0 }
0x2689   :  { %4954 = vadd.xlane.f32.xlu1 %v4953_v2  ;;  %v7601_v24 = vpop.f32.mrf.mxu1 }
0x268a   :  { %v4948_v49 = vadd.f32 %v4944_v23, %v8721_v26  ;;  %v7832_v26 = vld [vmem:[%s9240_s12 + $0x18] sm:$0xff]  }
0x268b   :  { %7611 = vmatpush3.bf16.msra.mxu1 %v7832_v26 }
0x268c   :  { %v4956_v52 = vsel %vm139_vm1, %v4948_v49, 0.0  ;;  %7612 = vmatprep.subr.bf16.mxu1 %v8022_v1 }
0x268d   :  { %4957 = vadd.xlane.f32.xlu0 %v4956_v52 }
0x268f   :  { %7613 = vmatpush3.bf16.msra.mxu1 %v7833_v35 }
0x2690   :  { %7628 = vmatprep.subr.mxu1 %v8022_v1 }
0x2692   :  { %7615 = vmatmul.mubr.msk.bf16.vlgmr.msra.gmra.mxu1 %vm139_vm1, %v8421_v29 }
0x2693   :  { %7630 = vmatprep.mubr.msk.f32.mxu1 %vm8023_vm0, %v8022_v1 }
0x2712   :  { %v4955_v16 = vpop.xlane.xlu1 %4954 }
0x2713   :  { %v4959_v20 = vmul.f32 0.03125, %v4955_v16 }
0x2715   :  { %v4961_v27 = vsub.f32 %v4947_v22, %v4959_v20 }
0x2716   :  { %v4958_v30 = vpop.xlane.xlu0 %4957 }
0x2717   :  { %v4960_v8 = vmul.f32 0.03125, %v4958_v30  ;;  %v4963_v31 = vmul.f32 %v4961_v27, %v4961_v27 }
0x2719   :  { %v4962_v32 = vsub.f32 %v4948_v49, %v4960_v8  ;;  %v4965_v4 = vsel %vm139_vm1, %v4963_v31, 0.0 }
0x271a   :  { %4966 = vadd.xlane.f32.xlu0 %v4965_v4 }
0x271b   :  { %v4964_v21 = vmul.f32 %v4962_v32, %v4962_v32 }
0x271d   :  { %v4968_v33 = vsel %vm139_vm1, %v4964_v21, 0.0 }
0x271e   :  { %4969 = vadd.xlane.f32.xlu1 %v4968_v33 }
0x2752   :  { %v5124_v61 = vpop.f32.mrf.mxu1 }
0x2753   :  { %v8959_v53 = vadd.f32 %v7036_v36, %v5124_v61 }
0x2754   :  { %v7616_v55 = vpop.f32.mrf.mxu1 }
0x2756   :  { %v5127_v57 = vpop.f32.mrf.mxu1 }
0x2757   :  { %v8964_v59 = vadd.f32 %v7036_v36, %v5127_v57 }
0x2758   :  { %v7617_v60 = vpop.f32.mrf.mxu1 }
0x27a3   :  { %v4967_v25 = vpop.xlane.xlu0 %4966 }
0x27a4   :  { %v4971_v39 = vmul.f32 0.03125, %v4967_v25 }
0x27a6   :  { %v4973_v29 = vadd.f32 1e-05, %v4971_v39 }
0x27a7   :  { %v4970_v40 = vpop.xlane.xlu1 %4969 }
0x27a8   :  { %7954 = vrsqrt.f32 %v4973_v29  ;;  %v4972_v18 = vmul.f32 0.03125, %v4970_v40 }
0x27aa   :  { %v4974_v11 = vadd.f32 1e-05, %v4972_v18 }
0x27ac   :  { %7956 = vrsqrt.f32 %v4974_v11 }
0x27b5   :  { %v7955_v41 = vpop.eup %7954 }
0x27b6   :  { %v4977_v42 = vmul.f32 %v7955_v41, %v4961_v27 }
0x27b8   :  { %v4985_v48 = vmul.f32 %v7020_v43, %v4977_v42 }
0x27b9   :  { %v7957_v46 = vpop.eup %7956 }
0x27ba   :  { %v4978_v47 = vmul.f32 %v7957_v46, %v4962_v32  ;;  %v8947_v58 = vadd.f32 %v7021_v50, %v4985_v48 }
0x27bc   :  { %v4986_v51 = vmul.f32 %v7020_v43, %v4978_v47 }
0x27be   :  { %v8949_v28 = vadd.f32 %v7021_v50, %v4986_v51 }
0x27c0   :  { %v5002_v34 = vpack.c.bf16 %v8949_v28, %v8947_v58 }
0x27c2   :  { %7607 = vmatmul.mubr.msk.bf16.vlgmr.msra.gmra.mxu0 %vm139_vm1, %v5002_v34 }
0x27c3   :  { %7620 = vmatprep.mubr.msk.f32.mxu0 %vm8023_vm0, %v8022_v1  ;;  %7619 = vmatpush3.xpose.msk.msra.mxu0 %vm187_vm2, %v8959_v53 }
0x27c4   :  { %7623 = vmatprep.subr.mxu0 %v8022_v1 }
0x2882   :  { %v5058_v0 = vpop.f32.mrf.mxu0 }
0x2883   :  { %v8969_v54 = vadd.f32 %v7027_v62, %v5058_v0 }
0x2884   :  { %v7608_v56 = vpop.f32.mrf.mxu0 }
0x2885   :  { %7621 = vmatmul.mubr.msk.f32.vlgmr.msra.gmra.mxu0 %vm187_vm2, %v8969_v54 }
0x2886   :  { %7624 = vmatpush3.xpose.msk.msra.mxu0 %vm187_vm2, %v8964_v59  ;;  %v5061_v5 = vpop.f32.mrf.mxu0  ;;  %7625 = vmatprep.mubr.msk.f32.mxu0 %vm8023_vm0, %v8022_v1 }
0x2887   :  { %v8977_v7 = vadd.f32 %v7027_v62, %v5061_v5  ;;  %7633 = vmatprep.subr.mxu0 %v8022_v1 }
0x2888   :  { %v7609_v10 = vpop.f32.mrf.mxu0 }
0x2889   :  { %7626 = vmatmul.mubr.msk.f32.vlgmr.msra.gmra.mxu0 %vm187_vm2, %v8977_v7 }
0x288a   :  { %7635 = vmatprep.mubr.msk.f32.mxu0 %vm8023_vm0, %v8022_v1 }
0x2945   :  { %v5203_v12 = vpop.f32.mrf.mxu0 }
0x2946   :  { %v5204_v13 = vadd.f32 %v8987_v44, %v5203_v12 }
0x2947   :  { %v7622_v14 = vpop.f32.mrf.mxu0 }
0x2948   :  { %v5283_v45 = vsel %vm187_vm2, %v5204_v13, -inf }
0x2949   :  { %5284 = vmax.xlane.f32.xlu0 %v5283_v45  ;;  %v5279_v15 = vpop.f32.mrf.mxu0 }
0x294a   :  { %v5280_v6 = vadd.f32 %v8994_v17, %v5279_v15 }
0x294b   :  { %v7627_v9 = vpop.f32.mrf.mxu0 }
0x294c   :  { %v5286_v19 = vsel %vm187_vm2, %v5280_v6, -inf }
0x294d   :  { %5287 = vmax.xlane.f32.xlu1 %v5286_v19 }
0x295e   :  { %5381 = vrot.lane.b32.xlu1 %v8964_v59, %s9338_s14 }
0x295f   :  { %5305 = vrot.lane.b32.xlu0 %v8959_v53, %s9338_s14  ;;  %s9347_s14 = sld [smem:[#allocation18_spill]] }
0x2962   :  { %5459 = vrot.lane.b32.xlu1 %v8959_v53, %s9340_s15 }
0x29d2   :  { %v5285_v63 = vpop.xlane.xlu0 %5284 }
0x29d3   :  { %v5289_v22 = vsub.f32 %v5204_v13, %v5285_v63 }
0x29d5   :  { %v5291_v3 = vmul.f32 1.442695, %v5289_v22 }
0x29d6   :  { %v5306_v23 = vpop.permute.xlu0 %5305  ;;  %v5288_v2 = vpop.xlane.xlu1 %5287 }
0x29d7   :  { %7958 = vpow2.f32 %v5291_v3  ;;  %v5290_v24 = vsub.f32 %v5280_v6, %v5288_v2  ;;  %7629 = vmatpush3.msra.mxu1 %v5306_v23 }
0x29d8   :  { %7638 = vmatprep.subr.mxu1 %v8022_v1 }
0x29d9   :  { %v5293_v49 = vmul.f32 1.442695, %v5290_v24 }
0x29da   :  { %v5382_v52 = vpop.permute.xlu1 %5381 }
0x29db   :  { %7960 = vpow2.f32 %v5293_v49  ;;  %7634 = vmatpush3.msra.mxu0 %v5382_v52 }
0x29dc   :  { %7643 = vmatprep.subr.mxu0 %v8022_v1 }
0x29de   :  { %v5460_v8 = vpop.permute.xlu1 %5459 }
0x29e4   :  { %v7959_v16 = vpop.eup %7958 }
0x29e5   :  { %v5295_v20 = vsel %vm187_vm2, %v7959_v16, 0.0 }
0x29e6   :  { %5296 = vadd.xlane.f32.xlu0 %v5295_v20 }
0x29e8   :  { %v7961_v27 = vpop.eup %7960 }
0x29e9   :  { %v5298_v30 = vsel %vm187_vm2, %v7961_v27, 0.0 }
0x29ea   :  { %5299 = vadd.xlane.f32.xlu1 %v5298_v30 }
0x29fb   :  { %5457 = vrot.lane.b32.xlu1 %v8969_v54, %s9340_s15 }
0x29fc   :  { %5537 = vrot.lane.b32.xlu0 %v8964_v59, %s9340_s15 }
0x2a00   :  { %5535 = vrot.lane.b32.xlu0 %v8977_v7, %s9340_s15 }
0x2a6f   :  { %v5297_v31 = vpop.xlane.xlu0 %5296 }
0x2a70   :  { %7962 = vrcp.f32 %v5297_v31 }
0x2a73   :  { %v5300_v32 = vpop.xlane.xlu1 %5299  ;;  %v5538_v26 = vpop.permute.xlu0 %5537 }
0x2a74   :  { %7964 = vrcp.f32 %v5300_v32 }
0x2a77   :  { %v5458_v37 = vpop.permute.xlu1 %5457  ;;  %v5536_v38 = vpop.permute.xlu0 %5535 }
0x2a7d   :  { %v7963_v4 = vpop.eup %7962 }
0x2a7e   :  { %v5303_v21 = vmul.f32 %v7963_v4, %v7959_v16 }
0x2a80   :  { %7631 = vmatmul.mubr.msk.f32.vlgmr.msra.gmra.mxu1 %vm187_vm2, %v5303_v21 }
0x2a81   :  { %v7965_v33 = vpop.eup %7964  ;;  %7639 = vmatpush3.xpose.msk.msra.mxu1 %vm187_vm2, %v5460_v8  ;;  %7640 = vmatprep.mubr.msk.f32.mxu1 %vm8023_vm0, %v8022_v1 }
0x2a82   :  { %v5304_v35 = vmul.f32 %v7965_v33, %v7961_v27  ;;  %7648 = vmatprep.subr.mxu1 %v8022_v1 }
0x2a84   :  { %7636 = vmatmul.mubr.msk.f32.vlgmr.msra.gmra.mxu0 %vm187_vm2, %v5304_v35  ;;  %7641 = vmatmul.mubr.msk.f32.vlgmr.msra.gmra.mxu1 %vm187_vm2, %v5458_v37 }
0x2a85   :  { %7644 = vmatpush3.xpose.msk.msra.mxu0 %vm187_vm2, %v5538_v26  ;;  %7645 = vmatprep.mubr.msk.f32.mxu0 %vm8023_vm0, %v8022_v1 }
0x2a86   :  { %7653 = vmatprep.subr.mxu0 %v8022_v1  ;;  %7650 = vmatprep.mubr.msk.f32.mxu1 %vm8023_vm0, %v8022_v1 }
0x2a88   :  { %7646 = vmatmul.mubr.msk.f32.vlgmr.msra.gmra.mxu0 %vm187_vm2, %v5536_v38 }
0x2a89   :  { %7655 = vmatprep.mubr.msk.f32.mxu0 %vm8023_vm0, %v8022_v1 }
0x2b40   :  { %v9030_v25 = vpop.f32.mrf.mxu1 }
0x2b42   :  { %v7632_v39 = vpop.f32.mrf.mxu1 }
0x2b44   :  { %v9032_v29 = vpop.f32.mrf.mxu0  ;;  %v5531_v40 = vpop.f32.mrf.mxu1 }
0x2b45   :  { %v5532_v18 = vadd.f32 %v8987_v44, %v5531_v40 }
0x2b46   :  { %v7637_v11 = vpop.f32.mrf.mxu0  ;;  %v7642_v41 = vpop.f32.mrf.mxu1 }
0x2b47   :  { %v5613_v42 = vsel %vm187_vm2, %v5532_v18, -inf }
0x2b48   :  { %5614 = vmax.xlane.f32.xlu1 %v5613_v42  ;;  %v5609_v43 = vpop.f32.mrf.mxu0 }
0x2b49   :  { %v5610_v46 = vadd.f32 %v8994_v17, %v5609_v43 }
0x2b4a   :  { %v7647_v47 = vpop.f32.mrf.mxu0 }
0x2b4b   :  { %v5616_v48 = vsel %vm187_vm2, %v5610_v46, -inf }
0x2b4c   :  { %5617 = vmax.xlane.f32.xlu0 %v5616_v48 }
0x2b59   :  { %5711 = vrot.lane.b32.xlu1 %v8964_v59, %s9330_s30 }
0x2b5d   :  { %5789 = vrot.lane.b32.xlu1 %v8959_v53, %s9331_s5 }
0x2b62   :  { %5635 = vrot.lane.b32.xlu0 %v8959_v53, %s9330_s30 }
0x2bd1   :  { %v5615_v50 = vpop.xlane.xlu1 %5614 }
0x2bd2   :  { %v5619_v51 = vsub.f32 %v5532_v18, %v5615_v50 }
0x2bd4   :  { %v5621_v34 = vmul.f32 1.442695, %v5619_v51 }
0x2bd5   :  { %v5712_v36 = vpop.permute.xlu1 %5711  ;;  %v5618_v61 = vpop.xlane.xlu0 %5617 }
0x2bd6   :  { %7966 = vpow2.f32 %v5621_v34  ;;  %v5620_v55 = vsub.f32 %v5610_v46, %v5618_v61  ;;  %7654 = vmatpush3.msra.mxu0 %v5712_v36 }
0x2bd7   :  { %7663 = vmatprep.subr.mxu0 %v8022_v1 }
0x2bd8   :  { %v5623_v57 = vmul.f32 1.442695, %v5620_v55 }
0x2bd9   :  { %v5636_v60 = vpop.permute.xlu0 %5635  ;;  %v5790_v10 = vpop.permute.xlu1 %5789 }
0x2bda   :  { %7968 = vpow2.f32 %v5623_v57  ;;  %7649 = vmatpush3.msra.mxu1 %v5636_v60 }
0x2bdb   :  { %7658 = vmatprep.subr.mxu1 %v8022_v1 }
0x2be3   :  { %v7967_v62 = vpop.eup %7966 }
0x2be4   :  { %v5625_v0 = vsel %vm187_vm2, %v7967_v62, 0.0 }
0x2be5   :  { %5626 = vadd.xlane.f32.xlu0 %v5625_v0 }
0x2be7   :  { %v7969_v56 = vpop.eup %7968 }
0x2be8   :  { %v5628_v5 = vsel %vm187_vm2, %v7969_v56, 0.0 }
0x2be9   :  { %5629 = vadd.xlane.f32.xlu1 %v5628_v5 }
0x2bfa   :  { %5787 = vrot.lane.b32.xlu1 %v8969_v54, %s9331_s5 }
0x2bfb   :  { %5867 = vrot.lane.b32.xlu0 %v8964_v59, %s9331_s5 }
0x2bff   :  { %5865 = vrot.lane.b32.xlu0 %v8977_v7, %s9331_s5  ;;  %s9346_s5 = sld [smem:[#allocation17_spill]] }
0x2c6e   :  { %v5627_v12 = vpop.xlane.xlu0 %5626 }
0x2c6f   :  { %7970 = vrcp.f32 %v5627_v12 }
0x2c72   :  { %v5630_v13 = vpop.xlane.xlu1 %5629  ;;  %v5868_v6 = vpop.permute.xlu0 %5867 }
0x2c73   :  { %7972 = vrcp.f32 %v5630_v13 }
0x2c76   :  { %v5788_v19 = vpop.permute.xlu1 %5787  ;;  %v5866_v63 = vpop.permute.xlu0 %5865 }
0x2c7c   :  { %v7971_v14 = vpop.eup %7970 }
0x2c7d   :  { %v5633_v45 = vmul.f32 %v7971_v14, %v7967_v62 }
0x2c7f   :  { %7651 = vmatmul.mubr.msk.f32.vlgmr.msra.gmra.mxu1 %vm187_vm2, %v5633_v45 }
0x2c80   :  { %v7973_v15 = vpop.eup %7972  ;;  %7659 = vmatpush3.xpose.msk.msra.mxu1 %vm187_vm2, %v5790_v10  ;;  %7660 = vmatprep.mubr.msk.f32.mxu1 %vm8023_vm0, %v8022_v1 }
0x2c81   :  { %v5634_v9 = vmul.f32 %v7973_v15, %v7969_v56  ;;  %7668 = vmatprep.subr.mxu1 %v8022_v1 }
0x2c83   :  { %7656 = vmatmul.mubr.msk.f32.vlgmr.msra.gmra.mxu0 %vm187_vm2, %v5634_v9  ;;  %7661 = vmatmul.mubr.msk.f32.vlgmr.msra.gmra.mxu1 %vm187_vm2, %v5788_v19 }
0x2c84   :  { %7664 = vmatpush3.xpose.msk.msra.mxu0 %vm187_vm2, %v5868_v6  ;;  %7665 = vmatprep.mubr.msk.f32.mxu0 %vm8023_vm0, %v8022_v1 }
0x2c85   :  { %7673 = vmatprep.subr.mxu0 %v8022_v1  ;;  %7670 = vmatprep.mubr.msk.f32.mxu1 %vm8023_vm0, %v8022_v1 }
0x2c87   :  { %7666 = vmatmul.mubr.msk.f32.vlgmr.msra.gmra.mxu0 %vm187_vm2, %v5866_v63 }
0x2c88   :  { %7675 = vmatprep.mubr.msk.f32.mxu0 %vm8023_vm0, %v8022_v1 }
0x2d3f   :  { %v9070_v22 = vpop.f32.mrf.mxu1 }
0x2d41   :  { %v7652_v3 = vpop.f32.mrf.mxu1 }
0x2d43   :  { %v9072_v23 = vpop.f32.mrf.mxu0  ;;  %v5861_v2 = vpop.f32.mrf.mxu1 }
0x2d44   :  { %v7797_v24 = vpack.i.bf16 %v9072_v23, %v9070_v22  ;;  %v5862_v49 = vadd.f32 %v8987_v44, %v5861_v2 }
0x2d45   :  { %v7657_v52 = vpop.f32.mrf.mxu0  ;;  %v7662_v16 = vpop.f32.mrf.mxu1 }
0x2d46   :  { %v5943_v20 = vsel %vm187_vm2, %v5862_v49, -inf }
0x2d47   :  { %5944 = vmax.xlane.f32.xlu1 %v5943_v20  ;;  %v5939_v27 = vpop.f32.mrf.mxu0  ;;  %v7837_v20 = vld [vmem:[%s9346_s5 + $0x10] sm:$0xff]  }
0x2d48   :  { %v5940_v30 = vadd.f32 %v8994_v17, %v5939_v27 }
0x2d49   :  { %v7667_v8 = vpop.f32.mrf.mxu0 }
0x2d4a   :  { %v5946_v31 = vsel %vm187_vm2, %v5940_v30, -inf }
0x2d4b   :  { %5947 = vmax.xlane.f32.xlu0 %v5946_v31 }
0x2d58   :  { %6041 = vrot.lane.b32.xlu1 %v8964_v59, %s9332_s8 }
0x2d5c   :  { %6119 = vrot.lane.b32.xlu1 %v8959_v53, %s9333_s27 }
0x2d61   :  { %5965 = vrot.lane.b32.xlu0 %v8959_v53, %s9332_s8 }
0x2dd0   :  { %v5945_v32 = vpop.xlane.xlu1 %5944 }
0x2dd1   :  { %v5949_v4 = vsub.f32 %v5862_v49, %v5945_v32 }
0x2dd3   :  { %v5951_v21 = vmul.f32 1.442695, %v5949_v4 }
0x2dd4   :  { %v6042_v33 = vpop.permute.xlu1 %6041  ;;  %v5948_v26 = vpop.xlane.xlu0 %5947 }
0x2dd5   :  { %7974 = vpow2.f32 %v5951_v21  ;;  %v5950_v35 = vsub.f32 %v5940_v30, %v5948_v26  ;;  %7674 = vmatpush3.msra.mxu0 %v6042_v33 }
0x2dd6   :  { %7683 = vmatprep.subr.mxu0 %v8022_v1 }
0x2dd7   :  { %v5953_v37 = vmul.f32 1.442695, %v5950_v35 }
0x2dd8   :  { %v5966_v38 = vpop.permute.xlu0 %5965  ;;  %v6120_v41 = vpop.permute.xlu1 %6119 }
0x2dd9   :  { %7976 = vpow2.f32 %v5953_v37  ;;  %7669 = vmatpush3.msra.mxu1 %v5966_v38 }
0x2dda   :  { %7678 = vmatprep.subr.mxu1 %v8022_v1 }
0x2de2   :  { %v7975_v39 = vpop.eup %7974 }
0x2de3   :  { %v5955_v40 = vsel %vm187_vm2, %v7975_v39, 0.0 }
0x2de4   :  { %5956 = vadd.xlane.f32.xlu0 %v5955_v40 }
0x2de6   :  { %v7977_v18 = vpop.eup %7976 }
0x2de7   :  { %v5958_v11 = vsel %vm187_vm2, %v7977_v18, 0.0 }
0x2de8   :  { %5959 = vadd.xlane.f32.xlu1 %v5958_v11 }
0x2df9   :  { %6117 = vrot.lane.b32.xlu1 %v8969_v54, %s9333_s27 }
0x2dfa   :  { %6197 = vrot.lane.b32.xlu0 %v8964_v59, %s9333_s27 }
0x2dfe   :  { %6195 = vrot.lane.b32.xlu0 %v8977_v7, %s9333_s27 }
0x2e6d   :  { %v5957_v42 = vpop.xlane.xlu0 %5956 }
0x2e6e   :  { %7978 = vrcp.f32 %v5957_v42 }
0x2e71   :  { %v5960_v43 = vpop.xlane.xlu1 %5959  ;;  %v6198_v50 = vpop.permute.xlu0 %6197 }
0x2e72   :  { %7980 = vrcp.f32 %v5960_v43 }
0x2e75   :  { %v6118_v7 = vpop.permute.xlu1 %6117  ;;  %v6196_v51 = vpop.permute.xlu0 %6195 }
0x2e7b   :  { %v7979_v46 = vpop.eup %7978 }
0x2e7c   :  { %v5963_v47 = vmul.f32 %v7979_v46, %v7975_v39 }
0x2e7e   :  { %7671 = vmatmul.mubr.msk.f32.vlgmr.msra.gmra.mxu1 %vm187_vm2, %v5963_v47 }
0x2e7f   :  { %v7981_v48 = vpop.eup %7980  ;;  %7679 = vmatpush3.xpose.msk.msra.mxu1 %vm187_vm2, %v6120_v41  ;;  %7680 = vmatprep.mubr.msk.f32.mxu1 %vm8023_vm0, %v8022_v1 }
0x2e80   :  { %v5964_v54 = vmul.f32 %v7981_v48, %v7977_v18  ;;  %7688 = vmatprep.subr.mxu1 %v8022_v1 }
0x2e82   :  { %7676 = vmatmul.mubr.msk.f32.vlgmr.msra.gmra.mxu0 %vm187_vm2, %v5964_v54  ;;  %7681 = vmatmul.mubr.msk.f32.vlgmr.msra.gmra.mxu1 %vm187_vm2, %v6118_v7 }
0x2e83   :  { %7684 = vmatpush3.xpose.msk.msra.mxu0 %vm187_vm2, %v6198_v50  ;;  %7685 = vmatprep.mubr.msk.f32.mxu0 %vm8023_vm0, %v8022_v1 }
0x2e84   :  { %7693 = vmatprep.subr.mxu0 %v8022_v1  ;;  %7690 = vmatprep.mubr.msk.f32.mxu1 %vm8023_vm0, %v8022_v1 }
0x2e86   :  { %7686 = vmatmul.mubr.msk.f32.vlgmr.msra.gmra.mxu0 %vm187_vm2, %v6196_v51 }
0x2e87   :  { %7695 = vmatprep.mubr.msk.f32.mxu0 %vm8023_vm0, %v8022_v1 }
0x2f3e   :  { %v6037_v34 = vpop.f32.mrf.mxu1 }
0x2f40   :  { %v7672_v36 = vpop.f32.mrf.mxu1 }
0x2f42   :  { %v6113_v61 = vpop.f32.mrf.mxu0  ;;  %v6191_v55 = vpop.f32.mrf.mxu1 }
0x2f43   :  { %v7802_v57 = vpack.i.bf16 %v6113_v61, %v6037_v34  ;;  %v6192_v60 = vadd.f32 %v8987_v44, %v6191_v55 }
0x2f44   :  { %v7677_v62 = vpop.f32.mrf.mxu0  ;;  %v7682_v0 = vpop.f32.mrf.mxu1 }
0x2f45   :  { %v6273_v56 = vsel %vm187_vm2, %v6192_v60, -inf }
0x2f46   :  { %6274 = vmax.xlane.f32.xlu1 %v6273_v56  ;;  %v6269_v5 = vpop.f32.mrf.mxu0 }
0x2f47   :  { %v6270_v10 = vadd.f32 %v8994_v17, %v6269_v5 }
0x2f48   :  { %v7687_v12 = vpop.f32.mrf.mxu0 }
0x2f49   :  { %v6276_v13 = vsel %vm187_vm2, %v6270_v10, -inf }
0x2f4a   :  { %6277 = vmax.xlane.f32.xlu0 %v6276_v13 }
0x2fcf   :  { %v6275_v14 = vpop.xlane.xlu1 %6274 }
0x2fd0   :  { %v6279_v45 = vsub.f32 %v6192_v60, %v6275_v14  ;;  %v7839_v14 = vld [vmem:[%s9246_s18 + $0x10] sm:$0xff]  }
0x2fd2   :  { %v6281_v15 = vmul.f32 1.442695, %v6279_v45  ;;  %v7840_v45 = vld [vmem:[%s9248_s20 + $0x38] sm:$0xff]  }
0x2fd3   :  { %v6278_v6 = vpop.xlane.xlu0 %6277 }
0x2fd4   :  { %7982 = vpow2.f32 %v6281_v15  ;;  %v6280_v9 = vsub.f32 %v6270_v10, %v6278_v6 }
0x2fd6   :  { %v6283_v19 = vmul.f32 1.442695, %v6280_v9 }
0x2fd8   :  { %7984 = vpow2.f32 %v6283_v19 }
0x2fe1   :  { %v7983_v44 = vpop.eup %7982 }
0x2fe2   :  { %v6285_v63 = vsel %vm187_vm2, %v7983_v44, 0.0 }
0x2fe3   :  { %6286 = vadd.xlane.f32.xlu0 %v6285_v63 }
0x2fe5   :  { %v7985_v3 = vpop.eup %7984 }
0x2fe6   :  { %v6288_v2 = vsel %vm187_vm2, %v7985_v3, 0.0 }
0x2fe7   :  { %6289 = vadd.xlane.f32.xlu1 %v6288_v2 }
0x2ff8   :  { %6371 = vrot.lane.b32.xlu1 %v8964_v59, %s9334_s29 }
0x2ff9   :  { %6295 = vrot.lane.b32.xlu0 %v8959_v53, %s9334_s29 }
0x2ffc   :  { %7798 = vrot.lane.b32.xlu1 %v7797_v24, %s9335_s0  ;;  %v7836_v24 = vld [vmem:[%s9346_s5 + $0x18] sm:$0xff]  }
0x2ffd   :  { %7803 = vrot.lane.b32.xlu0 %v7802_v57, %s9336_s6 }
0x306c   :  { %v6287_v17 = vpop.xlane.xlu0 %6286 }
0x306d   :  { %7986 = vrcp.f32 %v6287_v17  ;;  %v7075_v17 = vld [vmem:[%s9244_s16 + $0x1] ss:$0 sm:$0xff] }
0x3070   :  { %v6290_v49 = vpop.xlane.xlu1 %6289  ;;  %v6296_v52 = vpop.permute.xlu0 %6295 }
0x3071   :  { %7988 = vrcp.f32 %v6290_v49  ;;  %7689 = vmatpush3.msra.mxu1 %v6296_v52 }
0x3072   :  { %7698 = vmatprep.subr.bf16.mxu1 %v8022_v1 }
0x3074   :  { %v6372_v16 = vpop.permute.xlu1 %6371  ;;  %v7804_v26 = vpop.permute.xlu0 %7803 }
0x3075   :  { %7694 = vmatpush3.msra.mxu0 %v6372_v16  ;;  %v7806_v38 = vunpack.i.h.bf16 %v7804_v26  ;;  %v7805_v39 = vunpack.i.l.bf16 %v7804_v26 }
0x3076   :  { %7706 = vmatprep.subr.bf16.mxu0 %v8022_v1 }
0x3078   :  { %v7799_v4 = vpop.permute.xlu1 %7798 }
0x3079   :  { %v7801_v21 = vunpack.i.h.bf16 %v7799_v4  ;;  %v7800_v33 = vunpack.i.l.bf16 %v7799_v4 }
0x307a   :  { %v7987_v53 = vpop.eup %7986 }
0x307b   :  { %v6293_v59 = vmul.f32 %v7987_v53, %v7983_v44  ;;  %v6472_v35 = vsel %vm187_vm2, %v9032_v29, %v7801_v21  ;;  %v6471_v37 = vsel %vm187_vm2, %v9030_v25, %v7800_v33  ;;  %v7069_v25 = vld [vmem:[%s9347_s14 + $0x1] ss:$0 sm:$0xff] }
0x307c   :  { %v6473_v41 = vsel %vm1529_vm4, %v6471_v37, %v7805_v39  ;;  %v6474_v42 = vsel %vm1529_vm4, %v6472_v35, %v7806_v38  ;;  %v7076_v53 = vld [vmem:[%s9348_s26 + $0x1] ss:$0 sm:$0xff] }
0x307d   :  { %7691 = vmatmul.mubr.msk.f32.vlgmr.msra.gmra.mxu1 %vm187_vm2, %v6293_v59  ;;  %v7095_v39 = vld [vmem:[%s9249_s21 + $0x1] ss:$0 sm:$0xff]  ;;  %s9349_s21 = sld [smem:[#allocation20_spill]] }
0x307e   :  { %v7989_v22 = vpop.eup %7988  ;;  %7702 = vmatprep.mubr.msk.bf16.mxu1 %vm8023_vm0, %v8022_v1  ;;  %7699 = vmatpush3.bf16.msra.mxu1 %v7836_v24 }
0x307f   :  { %v6294_v23 = vmul.f32 %v7989_v22, %v7985_v3  ;;  %7700 = vmatprep.subr.bf16.mxu1 %v8022_v1 }
0x3081   :  { %7696 = vmatmul.mubr.msk.f32.vlgmr.msra.gmra.mxu0 %vm187_vm2, %v6294_v23 }
0x3082   :  { %7710 = vmatprep.mubr.msk.bf16.mxu0 %vm8023_vm0, %v8022_v1  ;;  %7701 = vmatpush3.bf16.msra.mxu1 %v7837_v20  ;;  %v7841_v20 = vld [vmem:[%s9248_s20 + $0x30] sm:$0xff]  }
0x3083   :  { %7714 = vmatprep.subr.bf16.mxu1 %v8022_v1 }
0x313d   :  { %v6367_v27 = vpop.f32.mrf.mxu1 }
0x313f   :  { %v7692_v30 = vpop.f32.mrf.mxu1 }
0x3140   :  { %v7843_v30 = vld [vmem:[%s9248_s20 + $0x20] sm:$0xff]  }
0x3141   :  { %v6443_v8 = vpop.f32.mrf.mxu0 }
0x3142   :  { %v7807_v31 = vpack.i.bf16 %v6443_v8, %v6367_v27  ;;  %v7842_v27 = vld [vmem:[%s9248_s20 + $0x28] sm:$0xff]   ;;  %v7082_v8 = vld [vmem:[%s9247_s19 + $0x1] ss:$0 sm:$0xff] }
0x3143   :  { %v7697_v32 = vpop.f32.mrf.mxu0 }
0x3144   :  { %7808 = vrot.lane.b32.xlu1 %v7807_v31, %s9337_s11 }
0x31b6   :  { %v7809_v40 = vpop.permute.xlu1 %7808 }
0x31b7   :  { %v7811_v18 = vunpack.i.h.bf16 %v7809_v40  ;;  %v7810_v11 = vunpack.i.l.bf16 %v7809_v40 }
0x31b9   :  { %v6476_v43 = vsel %vm1532_vm5, %v6474_v42, %v7811_v18  ;;  %v6475_v46 = vsel %vm1532_vm5, %v6473_v41, %v7810_v11 }
0x31ba   :  { %v6484_v47 = vpack.c.bf16 %v6476_v43, %v6475_v46 }
0x31bc   :  { %7703 = vmatmul.mubr.msk.bf16.vlgmr.msra.gmra.mxu1 %vm139_vm1, %v6484_v47 }
0x31bd   :  { %7722 = vmatprep.mubr.msk.bf16.mxu1 %vm8023_vm0, %v8022_v1  ;;  %7715 = vmatpush3.bf16.msra.mxu1 %v7840_v45 }
0x31be   :  { %7716 = vmatprep.subr.bf16.mxu1 %v8022_v1 }
0x31c1   :  { %7717 = vmatpush3.bf16.msra.mxu1 %v7841_v20 }
0x31c2   :  { %7718 = vmatprep.subr.bf16.mxu1 %v8022_v1 }
0x31c5   :  { %7719 = vmatpush3.bf16.msra.mxu1 %v7842_v27 }
0x31c6   :  { %7720 = vmatprep.subr.bf16.mxu1 %v8022_v1 }
0x31c9   :  { %7721 = vmatpush3.bf16.msra.mxu1 %v7843_v30 }
0x327c   :  { %v6540_v29 = vpop.f32.mrf.mxu1 }
0x327d   :  { %v6541_v48 = vadd.f32 %v7069_v25, %v6540_v29 }
0x327e   :  { %v7704_v50 = vpop.f32.mrf.mxu1 }
0x327f   :  { %v6547_v54 = vadd.f32 %v6541_v48, %v8947_v58 }
0x3280   :  { %v6543_v7 = vpop.f32.mrf.mxu1 }
0x3281   :  { %v6544_v51 = vadd.f32 %v7069_v25, %v6543_v7  ;;  %v6553_v34 = vsel %vm139_vm1, %v6547_v54, 0.0 }
0x3282   :  { %6554 = vadd.xlane.f32.xlu0 %v6553_v34  ;;  %v7705_v36 = vpop.f32.mrf.mxu1 }
0x3283   :  { %v6548_v61 = vadd.f32 %v6544_v51, %v8949_v28  ;;  %v7838_v28 = vld [vmem:[%s9246_s18 + $0x18] sm:$0xff]  }
0x3284   :  { %7707 = vmatpush3.bf16.msra.mxu0 %v7838_v28 }
0x3285   :  { %v6556_v55 = vsel %vm139_vm1, %v6548_v61, 0.0  ;;  %7708 = vmatprep.subr.bf16.mxu0 %v8022_v1 }
0x3286   :  { %6557 = vadd.xlane.f32.xlu1 %v6556_v55 }
0x3288   :  { %7709 = vmatpush3.bf16.msra.mxu0 %v7839_v14  ;;  %v7103_v14 = vld [vmem:[%s9250_s22 + $0x1] ss:$0 sm:$0xff]  ;;  %s8038_s22 = smov [#allocation2]  }
0x3289   :  { %7726 = vmatprep.subr.bf16.mxu0 %v8022_v1  ;;  %s6876_s2 = sshll.u32 %s8038_s22, 4  ;;  %s6877_s2 = int_to_ptr.vmem [resolvable:$true] %s6876_s2 }
0x328a   :  { %p8005_p1 = scmp.lt.s32.totalorder %s6877_s2, %s6877_s2 }
0x330b   :  { %v6555_v57 = vpop.xlane.xlu0 %6554 }
0x330c   :  { %v6559_v60 = vmul.f32 0.03125, %v6555_v57 }
0x330e   :  { %v6561_v62 = vsub.f32 %v6547_v54, %v6559_v60  ;;  %v7844_v60 = vld [vmem:[%s9349_s21 + $0x8] sm:$0xff]  }
0x330f   :  { %v6558_v0 = vpop.xlane.xlu1 %6557 }
0x3310   :  { %v6560_v56 = vmul.f32 0.03125, %v6558_v0  ;;  %v6563_v5 = vmul.f32 %v6561_v62, %v6561_v62 }
0x3312   :  { %v6562_v10 = vsub.f32 %v6548_v61, %v6560_v56  ;;  %v6565_v58 = vsel %vm139_vm1, %v6563_v5, 0.0 }
0x3313   :  { %6566 = vadd.xlane.f32.xlu0 %v6565_v58 }
0x3314   :  { %v6564_v12 = vmul.f32 %v6562_v10, %v6562_v10 }
0x3316   :  { %v6568_v13 = vsel %vm139_vm1, %v6564_v12, 0.0 }
0x3317   :  { %6569 = vadd.xlane.f32.xlu0 %v6568_v13 }
0x339c   :  { %v6567_v15 = vpop.xlane.xlu0 %6566 }
0x339d   :  { %v6571_v6 = vmul.f32 0.03125, %v6567_v15 }
0x339f   :  { %v6573_v9 = vadd.f32 1e-05, %v6571_v6 }
0x33a0   :  { %v6570_v19 = vpop.xlane.xlu0 %6569 }
0x33a1   :  { %7990 = vrsqrt.f32 %v6573_v9  ;;  %v6572_v44 = vmul.f32 0.03125, %v6570_v19 }
0x33a3   :  { %v6574_v63 = vadd.f32 1e-05, %v6572_v44 }
0x33a5   :  { %7992 = vrsqrt.f32 %v6574_v63 }
0x33ae   :  { %v7991_v3 = vpop.eup %7990 }
0x33af   :  { %v6577_v2 = vmul.f32 %v7991_v3, %v6561_v62  ;;  %v7845_v62 = vld [vmem:[%s9349_s21] sm:$0xff]  }
0x33b0   :  { %v7105_v3 = vld [vmem:[%s9350_s3] ss:$0 sm:$0xff] }
0x33b1   :  { %v6585_v16 = vmul.f32 %v7075_v17, %v6577_v2 }
0x33b2   :  { %v7993_v49 = vpop.eup %7992 }
0x33b3   :  { %v6578_v52 = vmul.f32 %v7993_v49, %v6562_v10  ;;  %v6593_v22 = vadd.f32 %v7076_v53, %v6585_v16 }
0x33b5   :  { %v6586_v59 = vmul.f32 %v7075_v17, %v6578_v52 }
0x33b7   :  { %v6594_v23 = vadd.f32 %v7076_v53, %v6586_v59 }
0x33b9   :  { %v6602_v24 = vpack.c.bf16 %v6594_v23, %v6593_v22 }
0x33bb   :  { %7711 = vmatmul.mubr.msk.bf16.vlgmr.msra.gmra.mxu0 %vm139_vm1, %v6602_v24 }
0x33bc   :  { %7730 = vmatprep.mubr.msk.bf16.mxu0 %vm8023_vm0, %v8022_v1  ;;  %7727 = vmatpush3.bf16.msra.mxu0 %v7844_v60 }
0x33bd   :  { %7728 = vmatprep.subr.bf16.mxu0 %v8022_v1  ;;  %v7104_v1 = vld [vmem:[%s9251_s23 + $0x1] ss:$0 sm:$0xff]  ;;  %s8000_s23 = scalar_lea.vmem %s6877_s2, 256 }
0x33be   :  { %p8001_p0 = scmp.ne.s32.totalorder %s6877_s2, %s8000_s23  ;;  %p8006_p2 = scmp.lt.s32.totalorder %s8000_s23, %s8000_s23 }
0x33c0   :  { %7729 = vmatpush3.bf16.msra.mxu0 %v7845_v62  ;;  %p8007_p3 = por %p8006_p2, %p8005_p1 }
0x33c2   :  { %p8008_p4 = pnand %p8007_p3, %p8001_p0 }
0x347b   :  { %v6658_v31 = vpop.f32.mrf.mxu0 }
0x347c   :  { %v6659_v4 = vadd.f32 %v7082_v8, %v6658_v31 }
0x347d   :  { %v7712_v32 = vpop.f32.mrf.mxu0 }
0x347e   :  { %v6665_v35 = vmax.f32 %v6659_v4, 0.0 }
0x347f   :  { %v6661_v21 = vpop.f32.mrf.mxu0 }
0x3480   :  { %v6662_v33 = vadd.f32 %v7082_v8, %v6661_v21 }
0x3481   :  { %v7713_v26 = vpop.f32.mrf.mxu0 }
0x3482   :  { %v6666_v37 = vmax.f32 %v6662_v33, 0.0 }
0x3484   :  { %v6678_v38 = vpack.c.bf16 %v6666_v37, %v6665_v35 }
0x3486   :  { %7723 = vmatmul.mubr.msk.bf16.vlgmr.msra.gmra.mxu1 %vm3368_vm6, %v6678_v38 }
0x3546   :  { %v6746_v40 = vpop.f32.mrf.mxu1 }
0x3547   :  { %v6747_v18 = vadd.f32 %v7095_v39, %v6746_v40 }
0x3548   :  { %v7724_v11 = vpop.f32.mrf.mxu1 }
0x3549   :  { %v6753_v41 = vadd.f32 %v6747_v18, %v6593_v22 }
0x354a   :  { %v6749_v42 = vpop.f32.mrf.mxu1 }
0x354b   :  { %v6750_v43 = vadd.f32 %v7095_v39, %v6749_v42  ;;  %v6759_v46 = vsel %vm139_vm1, %v6753_v41, 0.0 }
0x354c   :  { %6760 = vadd.xlane.f32.xlu1 %v6759_v46  ;;  %v7725_v47 = vpop.f32.mrf.mxu1 }
0x354d   :  { %v6754_v25 = vadd.f32 %v6750_v43, %v6594_v23 }
0x354f   :  { %v6762_v29 = vsel %vm139_vm1, %v6754_v25, 0.0 }
0x3550   :  { %6763 = vadd.xlane.f32.xlu0 %v6762_v29 }
0x35d5   :  { %v6761_v48 = vpop.xlane.xlu1 %6760 }
0x35d6   :  { %v6765_v50 = vmul.f32 0.03125, %v6761_v48 }
0x35d8   :  { %v6767_v54 = vsub.f32 %v6753_v41, %v6765_v50 }
0x35d9   :  { %v6764_v7 = vpop.xlane.xlu0 %6763 }
0x35da   :  { %v6766_v51 = vmul.f32 0.03125, %v6764_v7  ;;  %v6769_v34 = vmul.f32 %v6767_v54, %v6767_v54 }
0x35dc   :  { %v6768_v36 = vsub.f32 %v6754_v25, %v6766_v51  ;;  %v6771_v61 = vsel %vm139_vm1, %v6769_v34, 0.0 }
0x35dd   :  { %6772 = vadd.xlane.f32.xlu1 %v6771_v61 }
0x35de   :  { %v6770_v55 = vmul.f32 %v6768_v36, %v6768_v36 }
0x35e0   :  { %v6774_v57 = vsel %vm139_vm1, %v6770_v55, 0.0 }
0x35e1   :  { %6775 = vadd.xlane.f32.xlu0 %v6774_v57 }
0x3666   :  { %v6773_v0 = vpop.xlane.xlu1 %6772 }
0x3667   :  { %v6777_v56 = vmul.f32 0.03125, %v6773_v0 }
0x3669   :  { %v6779_v5 = vadd.f32 1e-05, %v6777_v56 }
0x366a   :  { %v6776_v10 = vpop.xlane.xlu0 %6775 }
0x366b   :  { %7994 = vrsqrt.f32 %v6779_v5  ;;  %v6778_v58 = vmul.f32 0.03125, %v6776_v10 }
0x366d   :  { %v6780_v12 = vadd.f32 1e-05, %v6778_v58 }
0x366f   :  { %7996 = vrsqrt.f32 %v6780_v12 }
0x3678   :  { %v7995_v13 = vpop.eup %7994 }
0x3679   :  { %v6783_v28 = vmul.f32 %v7995_v13, %v6767_v54 }
0x367b   :  { %v6791_v6 = vmul.f32 %v7103_v14, %v6783_v28 }
0x367c   :  { %v7997_v45 = vpop.eup %7996 }
0x367d   :  { %v6784_v15 = vmul.f32 %v7997_v45, %v6768_v36  ;;  %v6799_v19 = vadd.f32 %v7104_v1, %v6791_v6 }
0x367f   :  { %v6792_v9 = vmul.f32 %v7103_v14, %v6784_v15 }
0x3681   :  { %v6800_v44 = vadd.f32 %v7104_v1, %v6792_v9 }
0x3683   :  { %v6806_v63 = vpack.c.bf16 %v6800_v44, %v6799_v19 }
0x3685   :  { %7731 = vmatmul.mubr.msk.bf16.vlgmr.msra.gmra.mxu0 %vm139_vm1, %v6806_v63 }
0x3745   :  { %v6862_v2 = vpop.f32.mrf.mxu0 }
0x3746   :  { %v6863_v17 = vadd.f32 %v7105_v3, %v6862_v2 }
0x3747   :  { %v7732_v49 = vpop.f32.mrf.mxu0 }
0x3748   :  { %6869 = vst [vmem:[#allocation2] sm:$0xff] %v6863_v17 }
0x3749   :  { %v6865_v52 = vpop.f32.mrf.mxu0 }
0x374a   :  { %v6866_v16 = vadd.f32 %v7105_v3, %v6865_v52 }
0x374b   :  { %v7733_v53 = vpop.f32.mrf.mxu0 }
0x374c   :  { %6870 = vst [vmem:[#allocation2 + $0x8] sm:$0xff] %v6866_v16 }
0x374d   :  { %8011 = shalt.err (!%p8008_p4)
}
0x374e   :  { %s8039_s18 = smov 128   ;;  %s9351_s7 = sld [smem:[#allocation22_spill]] }
0x3754   :  { %6882 = dma.vmem_to_hbm [thread:$0]  %s6877_s2, 256, %s9351_s7, [#allocation3], %s8039_s18, %s8039_s18, %s9335_s0  }
0x3755   :  { %8020 = dma.done.wait [#allocation3], 256  }
0x3756   :  { %8021 = vsyncadd [#allocation3], 4294967040 }
0x3757   :  { %6886 = vsyncpa [#allocation3], 1 }

</bundles_post_ra>
